<compile_context>
chip_gen: v6e
topology: v6e:2x2x1
jax: 0.10.0
libtpu: 0.0.40
codegen_flags: <defaults>
</compile_context>

<pallas_src>
import math
import functools

import jax
import jax.numpy as jnp
from jax.experimental import pallas as pl
from jax.experimental.pallas import tpu as pltpu


# bf16 operands on the MXU with f32 accumulation (supported on v5e/v6e/v7x);
# weights and inter-kernel activations are stored in this dtype in HBM.
MXU_DTYPE = jnp.bfloat16

# Explicit scoped-VMEM ceiling for the matmul-heavy kernels: above the 16/32 MiB
# defaults, below v7x's 64 MiB physical VMEM (128 MiB on v5e/v6e).
VMEM_LIMIT_BYTES = 48 * 1024 * 1024


# ----------------------------- tiling helpers -----------------------------

def _round_up(x, m):
    return ((x + m - 1) // m) * m


def _tile_dim(dim, target, align):
    """Return (tile, padded_dim).

    * dim <= target          -> full-extent block (always legal), no padding.
    * aligned divisor exists -> that tile, no padding.
    * otherwise              -> `target` tile and zero-pad `dim` up to a multiple
                                (ragged edge handled by padding + output slicing,
                                never by a giant untiled block).
    """
    if dim <= target:
        return dim, dim
    t = (target // align) * align
    while t >= align:
        if dim % t == 0:
            return t, dim
        t -= align
    t = (target // align) * align
    return t, _round_up(dim, t)


def _pad2d(x, rows, cols):
    if x.shape == (rows, cols):
        return x
    return jnp.pad(x, ((0, rows - x.shape[0]), (0, cols - x.shape[1])))


# ----------------------------- Pallas kernels -----------------------------

def _linear_kernel(x_ref, w_ref, b_ref, o_ref, acc_ref, *, relu):
    # K-accumulating tiled matmul: bf16 operands, f32 VMEM accumulator.
    @pl.when(pl.program_id(2) == 0)
    def _():
        acc_ref[...] = jnp.zeros_like(acc_ref)

    acc_ref[...] += jnp.dot(x_ref[...], w_ref[...],
                            preferred_element_type=jnp.float32)

    @pl.when(pl.program_id(2) == pl.num_programs(2) - 1)
    def _():
        y = acc_ref[...] + b_ref[...]
        if relu:
            y = jnp.maximum(y, 0.0)
        o_ref[...] = y.astype(o_ref.dtype)


def _ffn_kernel(x_ref, w1_ref, b1_ref, w2_ref, b2_ref, o_ref):
    # Fused feed-forward: (x@W1+b1) -> ReLU -> @W2+b2, intermediate stays in VMEM.
    # TODO(synk): tile dff on an inner "arbitrary" grid axis for very large dff.
    h = jnp.dot(x_ref[...], w1_ref[...], preferred_element_type=jnp.float32)
    h = jnp.maximum(h + b1_ref[...], 0.0)
    y = jnp.dot(h.astype(MXU_DTYPE), w2_ref[...],
                preferred_element_type=jnp.float32)
    o_ref[...] = (y + b2_ref[...]).astype(o_ref.dtype)


def _add_layernorm_kernel(x_ref, r_ref, g_ref, b_ref, o_ref):
    # LayerNorm(x + residual), statistics in f32, bf16 in/out.
    x = x_ref[...].astype(jnp.float32) + r_ref[...].astype(jnp.float32)
    mean = jnp.mean(x, axis=-1, keepdims=True)
    var = jnp.mean(jnp.square(x - mean), axis=-1, keepdims=True)
    y = (x - mean) * jax.lax.rsqrt(var + 1e-5)
    o_ref[...] = (y * g_ref[...] + b_ref[...]).astype(o_ref.dtype)


def _add_pe_kernel(e_ref, pe_ref, o_ref):
    # token_embedding (sqrt(E) pre-folded into the table) + positional encoding.
    o_ref[...] = (e_ref[...].astype(jnp.float32) + pe_ref[...]).astype(o_ref.dtype)


def _attn_core(q_all, k_all, v_all, bias, o_ref, *, nhead, dh, scale):
    # q_all/k_all/v_all: (Sq|Sk, H*Dh) bf16 blocks; bias: (Sq, Sk) f32.
    # Heads are static lane slices; scores/softmax in f32; the per-head outputs
    # are concatenated on the lane axis so the final store is a single
    # lane-dense (Sq, E) store feeding the out-projection without any transpose.
    outs = []
    for h in range(nhead):
        sl = slice(h * dh, (h + 1) * dh)
        q = q_all[:, sl].astype(MXU_DTYPE)
        k = k_all[:, sl].astype(MXU_DTYPE)
        v = v_all[:, sl].astype(MXU_DTYPE)
        # q @ k^T via contraction on the Dh axis (no separate HBM K-transpose pass).
        s = jax.lax.dot_general(q, k, (((1,), (1,)), ((), ())),
                                preferred_element_type=jnp.float32) * scale
        s = s + bias
        m = jnp.max(s, axis=-1, keepdims=True)
        p = jnp.exp(s - m)
        denom = jnp.sum(p, axis=-1, keepdims=True)
        o = jnp.dot(p.astype(MXU_DTYPE), v, preferred_element_type=jnp.float32)
        outs.append(o * pl.reciprocal(denom, approx=True))
    o_ref[0] = jnp.concatenate(outs, axis=-1).astype(o_ref.dtype)


def _self_attn_kernel(qkv_ref, mask_ref, kpad_ref, o_ref, *, nhead, dh, scale):
    # One batch element per grid step; fused (S, 3E) QKV block fetched once.
    qkv = qkv_ref[0]                               # (S, 3E) bf16
    e = nhead * dh
    bias = mask_ref[...] + kpad_ref[0]             # (Sq, Sk) + (1, Sk), f32
    _attn_core(qkv[:, :e], qkv[:, e:2 * e], qkv[:, 2 * e:], bias, o_ref,
               nhead=nhead, dh=dh, scale=scale)


def _cross_attn_kernel(q_ref, kv_ref, mask_ref, kpad_ref, o_ref, *, nhead, dh, scale):
    q = q_ref[0]                                   # (St, E)  bf16
    kv = kv_ref[0]                                 # (Ss, 2E) bf16
    e = nhead * dh
    bias = mask_ref[...] + kpad_ref[0]
    _attn_core(q, kv[:, :e], kv[:, e:], bias, o_ref,
               nhead=nhead, dh=dh, scale=scale)


# ----------------------------- Pallas wrappers -----------------------------

def pallas_linear(x, w, b, *, relu=False, out_dtype=None):
    # x: (M, K) bf16, w: (K, N) bf16 (pre-transposed), b: (N,) f32
    if x.dtype != MXU_DTYPE:
        x = x.astype(MXU_DTYPE)
    M, K = x.shape
    N = w.shape[1]
    out_dtype = out_dtype or x.dtype
    tm, Mp = _tile_dim(M, 512, 8)      # 512 is 256-aligned (v6e/v7x MXU) and 128-aligned (v5e)
    tk, Kp = _tile_dim(K, 512, 128)
    tn, Np = _tile_dim(N, 512, 128)
    xp = _pad2d(x, Mp, Kp)
    wp = _pad2d(w, Kp, Np)
    bp = _pad2d(b.reshape(1, -1), 1, Np)
    out = pl.pallas_call(
        functools.partial(_linear_kernel, relu=relu),
        out_shape=jax.ShapeDtypeStruct((Mp, Np), out_dtype),
        grid=(Mp // tm, Np // tn, Kp // tk),
        in_specs=[
            pl.BlockSpec((tm, tk), lambda i, j, k: (i, k)),
            pl.BlockSpec((tk, tn), lambda i, j, k: (k, j)),
            pl.BlockSpec((1, tn), lambda i, j, k: (0, j)),
        ],
        out_specs=pl.BlockSpec((tm, tn), lambda i, j, k: (i, j)),
        scratch_shapes=[pltpu.VMEM((tm, tn), jnp.float32)],
        compiler_params=pltpu.CompilerParams(
            dimension_semantics=("parallel", "parallel", "arbitrary"),
            vmem_limit_bytes=VMEM_LIMIT_BYTES),
    )(xp, wp, bp)
    if (Mp, Np) != (M, N):
        out = out[:M, :N]
    return out


def pallas_ffn(x, ff):
    # Fused FFN: x (M, E) bf16 -> (M, E) bf16; intermediate (tm, dff) stays in VMEM.
    M, E = x.shape
    dff = ff["w1"].shape[1]
    tm, Mp = _tile_dim(M, 512, 8)
    xp = _pad2d(x, Mp, E)
    out = pl.pallas_call(
        _ffn_kernel,
        out_shape=jax.ShapeDtypeStruct((Mp, E), x.dtype),
        grid=(Mp // tm,),
        in_specs=[
            pl.BlockSpec((tm, E), lambda i: (i, 0)),
            pl.BlockSpec((E, dff), lambda i: (0, 0)),
            pl.BlockSpec((1, dff), lambda i: (0, 0)),
            pl.BlockSpec((dff, E), lambda i: (0, 0)),
            pl.BlockSpec((1, E), lambda i: (0, 0)),
        ],
        out_specs=pl.BlockSpec((tm, E), lambda i: (i, 0)),
        compiler_params=pltpu.CompilerParams(
            dimension_semantics=("parallel",),
            vmem_limit_bytes=VMEM_LIMIT_BYTES),
    )(xp, ff["w1"], ff["b1"].reshape(1, -1), ff["w2"], ff["b2"].reshape(1, -1))
    return out[:M] if Mp != M else out


def pallas_add_layernorm(x, r, g, b):
    # LayerNorm(x + r); x, r: (M, E) bf16; g, b: (E,) f32.
    M, E = x.shape
    tm, Mp = _tile_dim(M, 1024, 8)
    xp = _pad2d(x, Mp, E)
    rp = _pad2d(r, Mp, E)
    out = pl.pallas_call(
        _add_layernorm_kernel,
        out_shape=jax.ShapeDtypeStruct((Mp, E), x.dtype),
        grid=(Mp // tm,),
        in_specs=[
            pl.BlockSpec((tm, E), lambda i: (i, 0)),
            pl.BlockSpec((tm, E), lambda i: (i, 0)),
            pl.BlockSpec((1, E), lambda i: (0, 0)),
            pl.BlockSpec((1, E), lambda i: (0, 0)),
        ],
        out_specs=pl.BlockSpec((tm, E), lambda i: (i, 0)),
        compiler_params=pltpu.CompilerParams(dimension_semantics=("parallel",)),
    )(xp, rp, g.reshape(1, -1), b.reshape(1, -1))
    return out[:M] if Mp != M else out


def pallas_add_pe(e, pe):
    # e: (N, S, E) bf16, pe: (1, S, E) f32  (dropout = identity, eval mode)
    N, S, E = e.shape
    return pl.pallas_call(
        _add_pe_kernel,
        out_shape=jax.ShapeDtypeStruct((N, S, E), e.dtype),
        grid=(N,),
        in_specs=[
            pl.BlockSpec((1, S, E), lambda b: (b, 0, 0)),
            pl.BlockSpec((1, S, E), lambda b: (0, 0, 0)),
        ],
        out_specs=pl.BlockSpec((1, S, E), lambda b: (b, 0, 0)),
        compiler_params=pltpu.CompilerParams(dimension_semantics=("parallel",)),
    )(e, pe)


def pallas_self_attention(qkv, attn_bias, kpad_bias, nhead):
    # qkv: (N, S, 3E) bf16 (fused projection output, no XLA head-split transposes);
    # attn_bias: (S, S) f32 shared across batch; kpad_bias: (N, 1, S) f32.
    # TODO(synk): add an Sq-tile / head grid axis (flash-style online softmax) for
    # long sequences and better v7x dual-core balance; full-S blocks are fine here.
    N, S, E3 = qkv.shape
    E = E3 // 3
    dh = E // nhead
    return pl.pallas_call(
        functools.partial(_self_attn_kernel, nhead=nhead, dh=dh,
                          scale=1.0 / math.sqrt(dh)),
        out_shape=jax.ShapeDtypeStruct((N, S, E), qkv.dtype),
        grid=(N,),
        in_specs=[
            pl.BlockSpec((1, S, E3), lambda b: (b, 0, 0)),
            pl.BlockSpec((S, S), lambda b: (0, 0)),        # shared mask, no per-b copy
            pl.BlockSpec((1, 1, S), lambda b: (b, 0, 0)),  # per-batch key padding
        ],
        out_specs=pl.BlockSpec((1, S, E), lambda b: (b, 0, 0)),
        compiler_params=pltpu.CompilerParams(dimension_semantics=("parallel",)),
    )(qkv, attn_bias, kpad_bias)


def pallas_cross_attention(q, kv, attn_bias, kpad_bias, nhead):
    # q: (N, St, E) bf16; kv: (N, Ss, 2E) bf16 (fused K/V projection of memory).
    N, St, E = q.shape
    Ss = kv.shape[1]
    dh = E // nhead
    return pl.pallas_call(
        functools.partial(_cross_attn_kernel, nhead=nhead, dh=dh,
                          scale=1.0 / math.sqrt(dh)),
        out_shape=jax.ShapeDtypeStruct((N, St, E), q.dtype),
        grid=(N,),
        in_specs=[
            pl.BlockSpec((1, St, E), lambda b: (b, 0, 0)),
            pl.BlockSpec((1, Ss, 2 * E), lambda b: (b, 0, 0)),
            pl.BlockSpec((St, Ss), lambda b: (0, 0)),
            pl.BlockSpec((1, 1, Ss), lambda b: (b, 0, 0)),
        ],
        out_specs=pl.BlockSpec((1, St, E), lambda b: (b, 0, 0)),
        compiler_params=pltpu.CompilerParams(dimension_semantics=("parallel",)),
    )(q, kv, attn_bias, kpad_bias)


# ----------------------------- Model glue -----------------------------
# Activations are carried batch-major: (N, S, E) bf16, flattened to (N*S, E) for
# the linear kernels (free reshapes, no transposes between kernels).

def make_positional_encoding(maxlen, E):
    den = jnp.exp(-jnp.arange(0, E, 2, dtype=jnp.float32) * math.log(10000.0) / E)
    pos = jnp.arange(maxlen, dtype=jnp.float32).reshape(maxlen, 1)
    pe = jnp.zeros((maxlen, E), jnp.float32)
    pe = pe.at[:, 0::2].set(jnp.sin(pos * den))
    pe = pe.at[:, 1::2].set(jnp.cos(pos * den))
    return pe  # (maxlen, E) f32


def _attn_mask_to_bias(mask, Sq, Sk):
    if mask is None:
        return jnp.zeros((Sq, Sk), jnp.float32)
    if mask.dtype == jnp.bool_:
        return jnp.where(mask, -1e9, 0.0).astype(jnp.float32)
    return mask.astype(jnp.float32)


def _key_padding_to_bias(mask, N, Sk):
    if mask is None:
        return jnp.zeros((N, 1, Sk), jnp.float32)
    return jnp.where(mask, -1e9, 0.0).astype(jnp.float32).reshape(N, 1, Sk)


def token_embed_pe(tokens, emb_table, pe):
    # tokens: (S, N) int32 -> (N, S, E) bf16 (sqrt(E) scale folded into the table)
    S = tokens.shape[0]
    e = jnp.take(emb_table, tokens.T, axis=0)          # XLA gather (glue)
    return pallas_add_pe(e, pe[:S][None])


def self_attention_block(x, p, attn_bias, kpad_bias, nhead):
    # x: (N, S, E) -> (N*S, E)
    N, S, E = x.shape
    qkv = pallas_linear(x.reshape(N * S, E), p["in_w"], p["in_b"])  # fused (E,3E)
    o = pallas_self_attention(qkv.reshape(N, S, 3 * E), attn_bias, kpad_bias, nhead)
    return pallas_linear(o.reshape(N * S, E), p["out_w"], p["out_b"])


def cross_attention_block(x, memory, p, attn_bias, kpad_bias, nhead):
    # x: (N, St, E), memory: (N, Ss, E) -> (N*St, E)
    N, St, E = x.shape
    Ss = memory.shape[1]
    q = pallas_linear(x.reshape(N * St, E), p["q_w"], p["q_b"])
    kv = pallas_linear(memory.reshape(N * Ss, E), p["kv_w"], p["kv_b"])  # fused (E,2E)
    o = pallas_cross_attention(q.reshape(N, St, E), kv.reshape(N, Ss, 2 * E),
                               attn_bias, kpad_bias, nhead)
    return pallas_linear(o.reshape(N * St, E), p["out_w"], p["out_b"])


def encoder_layer(x, p, attn_bias, kpad_bias, nhead):
    # PyTorch TransformerEncoderLayer, norm_first=False, activation=relu, eval mode
    N, S, E = x.shape
    x2 = x.reshape(N * S, E)
    a = self_attention_block(x, p["self_attn"], attn_bias, kpad_bias, nhead)
    x2 = pallas_add_layernorm(x2, a, p["norm1"]["g"], p["norm1"]["b"])
    h = pallas_ffn(x2, p["ff"])
    x2 = pallas_add_layernorm(x2, h, p["norm2"]["g"], p["norm2"]["b"])
    return x2.reshape(N, S, E)


def decoder_layer(x, memory, p, self_bias, self_kpad, cross_bias, cross_kpad, nhead):
    N, S, E = x.shape
    x2 = x.reshape(N * S, E)
    a = self_attention_block(x, p["self_attn"], self_bias, self_kpad, nhead)
    x2 = pallas_add_layernorm(x2, a, p["norm1"]["g"], p["norm1"]["b"])
    c = cross_attention_block(x2.reshape(N, S, E), memory, p["cross_attn"],
                              cross_bias, cross_kpad, nhead)
    x2 = pallas_add_layernorm(x2, c, p["norm2"]["g"], p["norm2"]["b"])
    h = pallas_ffn(x2, p["ff"])
    x2 = pallas_add_layernorm(x2, h, p["norm3"]["g"], p["norm3"]["b"])
    return x2.reshape(N, S, E)


def seq2seq_forward(params, src, tgt, mask_src, mask_tgt,
                    padding_mask_src, padding_mask_tgt, memory_key_padding_mask,
                    *, nhead):
    E = params["emb_src"].shape[1]
    S_src, N = src.shape
    S_tgt = tgt.shape[0]
    pe = params["pe"]

    # --- encoder ---
    memory = token_embed_pe(src, params["emb_src"], pe)               # (N, S_src, E)
    enc_bias = _attn_mask_to_bias(mask_src, S_src, S_src)
    enc_kpad = _key_padding_to_bias(padding_mask_src, N, S_src)
    for p in params["encoder"]:
        memory = encoder_layer(memory, p, enc_bias, enc_kpad, nhead)

    # --- decoder ---
    x = token_embed_pe(tgt, params["emb_tgt"], pe)                    # (N, S_tgt, E)
    self_bias = _attn_mask_to_bias(mask_tgt, S_tgt, S_tgt)
    self_kpad = _key_padding_to_bias(padding_mask_tgt, N, S_tgt)
    cross_bias = jnp.zeros((S_tgt, S_src), jnp.float32)
    cross_kpad = _key_padding_to_bias(memory_key_padding_mask, N, S_src)
    for p in params["decoder"]:
        x = decoder_layer(x, memory, p, self_bias, self_kpad,
                          cross_bias, cross_kpad, nhead)

    # --- output projection (logits in f32) ---
    logits = pallas_linear(x.reshape(N * S_tgt, E), params["out_w"], params["out_b"],
                           out_dtype=jnp.float32)
    V = logits.shape[1]
    return logits.reshape(N, S_tgt, V).transpose(1, 0, 2)             # back to (S, N, V)


# ----------------------------- Parameter init -----------------------------
# Weights are stored in bf16, pre-transposed (K, N layout) and pre-split so no .T
# or slicing happens in the forward pass; biases / LN params stay f32.

def init_params(key, E, nhead, dff, vocab_src, vocab_tgt, n_enc, n_dec, maxlen=6000):
    assert E % nhead == 0
    keys = iter(jax.random.split(key, 512))

    def nrm(shape, s=0.02):
        return (s * jax.random.normal(next(keys), shape)).astype(MXU_DTYPE)

    def mha_p():
        in_w = nrm((E, 3 * E))                     # x @ in_w -> [q | k | v]
        in_b = jnp.zeros((3 * E,), jnp.float32)
        return dict(
            in_w=in_w, in_b=in_b,
            q_w=in_w[:, :E], q_b=in_b[:E],
            kv_w=in_w[:, E:], kv_b=in_b[E:],
            out_w=nrm((E, E)), out_b=jnp.zeros((E,), jnp.float32))

    def ln_p():
        return dict(g=jnp.ones((E,), jnp.float32), b=jnp.zeros((E,), jnp.float32))

    def ff_p():
        return dict(w1=nrm((E, dff)), b1=jnp.zeros((dff,), jnp.float32),
                    w2=nrm((dff, E)), b2=jnp.zeros((E,), jnp.float32))

    def emb(vocab):
        # sqrt(E) token-embedding scale folded into the table.
        return (jax.random.normal(next(keys), (vocab, E)) * math.sqrt(E)).astype(MXU_DTYPE)

    enc = [dict(self_attn=mha_p(), norm1=ln_p(), norm2=ln_p(), ff=ff_p())
           for _ in range(n_enc)]
    dec = [dict(self_attn=mha_p(), cross_attn=mha_p(),
                norm1=ln_p(), norm2=ln_p(), norm3=ln_p(), ff=ff_p())
           for _ in range(n_dec)]
    return dict(
        emb_src=emb(vocab_src),
        emb_tgt=emb(vocab_tgt),
        pe=make_positional_encoding(maxlen, E),
        encoder=enc,
        decoder=dec,
        out_w=nrm((E, vocab_tgt)),
        out_b=jnp.zeros((vocab_tgt,), jnp.float32),
    )


# ----------------------------- Main -----------------------------

if __name__ == "__main__":
    # Small shapes consistent with the module (module defaults: E=256, nhead=8,
    # dff=100, 2 encoder + 2 decoder layers).
    S_SRC, S_TGT, N = 12, 9, 2
    E, NHEAD, DFF = 128, 8, 100
    V_SRC, V_TGT = 50, 56
    N_ENC, N_DEC = 2, 2

    key = jax.random.PRNGKey(0)
    k_param, k_src, k_tgt = jax.random.split(key, 3)
    params = init_params(k_param, E, NHEAD, DFF, V_SRC, V_TGT, N_ENC, N_DEC, maxlen=64)

    src = jax.random.randint(k_src, (S_SRC, N), 0, V_SRC, dtype=jnp.int32)
    tgt = jax.random.randint(k_tgt, (S_TGT, N), 0, V_TGT, dtype=jnp.int32)

    mask_src = jnp.zeros((S_SRC, S_SRC), jnp.float32)
    causal = jnp.triu(jnp.ones((S_TGT, S_TGT), bool), k=1)
    mask_tgt = jnp.where(causal, -1e9, 0.0).astype(jnp.float32)
    padding_mask_src = jnp.zeros((N, S_SRC), bool)
    padding_mask_tgt = jnp.zeros((N, S_TGT), bool)
    memory_key_padding_mask = padding_mask_src

    fwd = jax.jit(functools.partial(seq2seq_forward, nhead=NHEAD))
    out = fwd(params, src, tgt, mask_src, mask_tgt,
              padding_mask_src, padding_mask_tgt, memory_key_padding_mask)
    out = jax.block_until_ready(out)
    assert out.shape == (S_TGT, N, V_TGT), out.shape
    assert bool(jnp.all(jnp.isfinite(out)))
    print("KERNEL_OK")
</pallas_src>

<mosaic_0001>
module attributes {stable_mosaic.version = 11 : i64} {
  func.func @_add_pe_kernel(%arg0: i32, %arg1: memref<1x9x128xbf16, #tpu.memory_space<vmem>>, %arg2: memref<1x9x128xf32, #tpu.memory_space<vmem>>, %arg3: memref<1x9x128xbf16, #tpu.memory_space<vmem>>) attributes {dimension_semantics = [#tpu.dimension_semantics<parallel>], iteration_bounds = array<i64: 2>, scalar_prefetch = 0 : i64, scratch_operands = 0 : i64, tpu.core_type = #tpu.core_type<tc>, window_params = [{transform_indices = @transform_0, window_bounds = array<i64: 1, 9, 128>}, {pipeline_mode = #tpu.pipeline_mode<synchronous>, transform_indices = @transform_1, window_bounds = array<i64: 1, 9, 128>}, {transform_indices = @transform_2, window_bounds = array<i64: 1, 9, 128>}]} {
    %c0 = arith.constant 0 : index
    %c0_0 = arith.constant 0 : index
    %c0_1 = arith.constant 0 : index
    %0 = vector.load %arg1[%c0, %c0_0, %c0_1] : memref<1x9x128xbf16, #tpu.memory_space<vmem>>, vector<1x9x128xbf16>
    %1 = arith.extf %0 : vector<1x9x128xbf16> to vector<1x9x128xf32>
    %c0_2 = arith.constant 0 : index
    %c0_3 = arith.constant 0 : index
    %c0_4 = arith.constant 0 : index
    %2 = vector.load %arg2[%c0_2, %c0_3, %c0_4] : memref<1x9x128xf32, #tpu.memory_space<vmem>>, vector<1x9x128xf32>
    %3 = arith.addf %1, %2 : vector<1x9x128xf32>
    %4 = arith.truncf %3 : vector<1x9x128xf32> to vector<1x9x128xbf16>
    %c0_5 = arith.constant 0 : index
    %c0_6 = arith.constant 0 : index
    %c0_7 = arith.constant 0 : index
    %5 = vector.load %arg3[%c0_5, %c0_6, %c0_7] : memref<1x9x128xbf16, #tpu.memory_space<vmem>>, vector<1x9x128xbf16>
    tpu.vector_store %arg3[%c0_5, %c0_6, %c0_7], %4 {strides = array<i32>} : memref<1x9x128xbf16, #tpu.memory_space<vmem>>, vector<1x9x128xbf16>,
    return
  }
  func.func @transform_0(%arg0: i32) -> (i32, i32, i32) {
    %c0_i32 = arith.constant 0 : i32
    %c0_i32_0 = arith.constant 0 : i32
    %c0_i32_1 = arith.constant 0 : i32
    return %arg0, %c0_i32, %c0_i32_0 : i32, i32, i32
  }
  func.func @transform_1(%arg0: i32) -> (i32, i32, i32) {
    %c0_i32 = arith.constant 0 : i32
    %c0_i32_0 = arith.constant 0 : i32
    %c0_i32_1 = arith.constant 0 : i32
    %c0_i32_2 = arith.constant 0 : i32
    return %c0_i32, %c0_i32_0, %c0_i32_1 : i32, i32, i32
  }
  func.func @transform_2(%arg0: i32) -> (i32, i32, i32) {
    %c0_i32 = arith.constant 0 : i32
    %c0_i32_0 = arith.constant 0 : i32
    %c0_i32_1 = arith.constant 0 : i32
    return %arg0, %c0_i32, %c0_i32_0 : i32, i32, i32
  }
}

module attributes {stable_mosaic.version = 11 : i64} {
  func.func @_linear_kernel(%arg0: i32, %arg1: i32, %arg2: i32, %arg3: memref<18x128xbf16, #tpu.memory_space<vmem>>, %arg4: memref<128x384xbf16, #tpu.memory_space<vmem>>, %arg5: memref<1x384xf32, #tpu.memory_space<vmem>>, %arg6: memref<18x384xbf16, #tpu.memory_space<vmem>>, %arg7: memref<18x384xf32, #tpu.memory_space<vmem>>) attributes {dimension_semantics = [#tpu.dimension_semantics<parallel>, #tpu.dimension_semantics<parallel>, #tpu.dimension_semantics<arbitrary>], iteration_bounds = array<i64: 1, 1, 1>, scalar_prefetch = 0 : i64, scratch_operands = 1 : i64, tpu.core_type = #tpu.core_type<tc>, window_params = [{transform_indices = @transform_0, window_bounds = array<i64: 18, 128>}, {transform_indices = @transform_1, window_bounds = array<i64: 128, 384>}, {transform_indices = @transform_2, window_bounds = array<i64: 1, 384>}, {transform_indices = @transform_3, window_bounds = array<i64: 18, 384>}]} {
    %c0_i32 = arith.constant 0 : i32
    %0 = arith.cmpi eq, %arg2, %c0_i32 : i32
    %1 = arith.extui %0 : i1 to i32
    %c0_i32_0 = arith.constant 0 : i32
    %2 = arith.cmpi ne, %1, %c0_i32_0 : i32
    scf.if %2 {
      %cst_10 = arith.constant 0.000000e+00 : f32
      %12 = vector.broadcast %cst_10 : f32 to vector<18x384xf32>
      %c0_11 = arith.constant 0 : index
      %c0_12 = arith.constant 0 : index
      %13 = vector.load %arg7[%c0_11, %c0_12] : memref<18x384xf32, #tpu.memory_space<vmem>>, vector<18x384xf32>
      tpu.vector_store %arg7[%c0_11, %c0_12], %12 {strides = array<i32>} : memref<18x384xf32, #tpu.memory_space<vmem>>, vector<18x384xf32>,
    } else {
    }
    %c0 = arith.constant 0 : index
    %c0_1 = arith.constant 0 : index
    %3 = vector.load %arg7[%c0, %c0_1] : memref<18x384xf32, #tpu.memory_space<vmem>>, vector<18x384xf32>
    %c0_2 = arith.constant 0 : index
    %c0_3 = arith.constant 0 : index
    %4 = vector.load %arg3[%c0_2, %c0_3] : memref<18x128xbf16, #tpu.memory_space<vmem>>, vector<18x128xbf16>
    %c0_4 = arith.constant 0 : index
    %c0_5 = arith.constant 0 : index
    %5 = vector.load %arg4[%c0_4, %c0_5] : memref<128x384xbf16, #tpu.memory_space<vmem>>, vector<128x384xbf16>
    %cst = arith.constant dense<0.000000e+00> : vector<18x384xf32>
    %6 = tpu.matmul %4, %5, %cst {dimension_numbers = #tpu.dot_dimension_numbers<[1], [0], [0], [1], [0, 0, 1, 1], [], []>} : vector<18x128xbf16>, vector<128x384xbf16>, vector<18x384xf32> -> vector<18x384xf32>
    %7 = arith.addf %3, %6 : vector<18x384xf32>
    %c0_6 = arith.constant 0 : index
    %c0_7 = arith.constant 0 : index
    %8 = vector.load %arg7[%c0_6, %c0_7] : memref<18x384xf32, #tpu.memory_space<vmem>>, vector<18x384xf32>
    tpu.vector_store %arg7[%c0_6, %c0_7], %7 {strides = array<i32>} : memref<18x384xf32, #tpu.memory_space<vmem>>, vector<18x384xf32>,
    %c0_i32_8 = arith.constant 0 : i32
    %9 = arith.cmpi eq, %arg2, %c0_i32_8 : i32
    %10 = arith.extui %9 : i1 to i32
    %c0_i32_9 = arith.constant 0 : i32
    %11 = arith.cmpi ne, %10, %c0_i32_9 : i32
    scf.if %11 {
      %c0_10 = arith.constant 0 : index
      %c0_11 = arith.constant 0 : index
      %12 = vector.load %arg7[%c0_10, %c0_11] : memref<18x384xf32, #tpu.memory_space<vmem>>, vector<18x384xf32>
      %c0_12 = arith.constant 0 : index
      %c0_13 = arith.constant 0 : index
      %13 = vector.load %arg5[%c0_12, %c0_13] : memref<1x384xf32, #tpu.memory_space<vmem>>, vector<1x384xf32>
      %14 = vector.broadcast %13 : vector<1x384xf32> to vector<18x384xf32>
      %15 = arith.addf %12, %14 : vector<18x384xf32>
      %16 = arith.truncf %15 : vector<18x384xf32> to vector<18x384xbf16>
      %c0_14 = arith.constant 0 : index
      %c0_15 = arith.constant 0 : index
      %17 = vector.load %arg6[%c0_14, %c0_15] : memref<18x384xbf16, #tpu.memory_space<vmem>>, vector<18x384xbf16>
      tpu.vector_store %arg6[%c0_14, %c0_15], %16 {strides = array<i32>} : memref<18x384xbf16, #tpu.memory_space<vmem>>, vector<18x384xbf16>,
    } else {
    }
    return
  }
  func.func @transform_0(%arg0: i32, %arg1: i32, %arg2: i32) -> (i32, i32) {
    %c0_i32 = arith.constant 0 : i32
    return %arg0, %arg2 : i32, i32
  }
  func.func @transform_1(%arg0: i32, %arg1: i32, %arg2: i32) -> (i32, i32) {
    %c0_i32 = arith.constant 0 : i32
    return %arg2, %arg1 : i32, i32
  }
  func.func @transform_2(%arg0: i32, %arg1: i32, %arg2: i32) -> (i32, i32) {
    %c0_i32 = arith.constant 0 : i32
    %c0_i32_0 = arith.constant 0 : i32
    return %c0_i32, %arg1 : i32, i32
  }
  func.func @transform_3(%arg0: i32, %arg1: i32, %arg2: i32) -> (i32, i32) {
    %c0_i32 = arith.constant 0 : i32
    return %arg0, %arg1 : i32, i32
  }
}

module attributes {stable_mosaic.version = 11 : i64} {
  func.func @_linear_kernel(%arg0: i32, %arg1: i32, %arg2: i32, %arg3: memref<18x128xbf16, #tpu.memory_space<vmem>>, %arg4: memref<128x128xbf16, #tpu.memory_space<vmem>>, %arg5: memref<1x128xf32, #tpu.memory_space<vmem>>, %arg6: memref<18x128xbf16, #tpu.memory_space<vmem>>, %arg7: memref<18x128xf32, #tpu.memory_space<vmem>>) attributes {dimension_semantics = [#tpu.dimension_semantics<parallel>, #tpu.dimension_semantics<parallel>, #tpu.dimension_semantics<arbitrary>], iteration_bounds = array<i64: 1, 1, 1>, scalar_prefetch = 0 : i64, scratch_operands = 1 : i64, tpu.core_type = #tpu.core_type<tc>, window_params = [{transform_indices = @transform_0, window_bounds = array<i64: 18, 128>}, {transform_indices = @transform_1, window_bounds = array<i64: 128, 128>}, {transform_indices = @transform_2, window_bounds = array<i64: 1, 128>}, {transform_indices = @transform_3, window_bounds = array<i64: 18, 128>}]} {
    %c0_i32 = arith.constant 0 : i32
    %0 = arith.cmpi eq, %arg2, %c0_i32 : i32
    %1 = arith.extui %0 : i1 to i32
    %c0_i32_0 = arith.constant 0 : i32
    %2 = arith.cmpi ne, %1, %c0_i32_0 : i32
    scf.if %2 {
      %cst_10 = arith.constant 0.000000e+00 : f32
      %12 = vector.broadcast %cst_10 : f32 to vector<18x128xf32>
      %c0_11 = arith.constant 0 : index
      %c0_12 = arith.constant 0 : index
      %13 = vector.load %arg7[%c0_11, %c0_12] : memref<18x128xf32, #tpu.memory_space<vmem>>, vector<18x128xf32>
      tpu.vector_store %arg7[%c0_11, %c0_12], %12 {strides = array<i32>} : memref<18x128xf32, #tpu.memory_space<vmem>>, vector<18x128xf32>,
    } else {
    }
    %c0 = arith.constant 0 : index
    %c0_1 = arith.constant 0 : index
    %3 = vector.load %arg7[%c0, %c0_1] : memref<18x128xf32, #tpu.memory_space<vmem>>, vector<18x128xf32>
    %c0_2 = arith.constant 0 : index
    %c0_3 = arith.constant 0 : index
    %4 = vector.load %arg3[%c0_2, %c0_3] : memref<18x128xbf16, #tpu.memory_space<vmem>>, vector<18x128xbf16>
    %c0_4 = arith.constant 0 : index
    %c0_5 = arith.constant 0 : index
    %5 = vector.load %arg4[%c0_4, %c0_5] : memref<128x128xbf16, #tpu.memory_space<vmem>>, vector<128x128xbf16>
    %cst = arith.constant dense<0.000000e+00> : vector<18x128xf32>
    %6 = tpu.matmul %4, %5, %cst {dimension_numbers = #tpu.dot_dimension_numbers<[1], [0], [0], [1], [0, 0, 1, 1], [], []>} : vector<18x128xbf16>, vector<128x128xbf16>, vector<18x128xf32> -> vector<18x128xf32>
    %7 = arith.addf %3, %6 : vector<18x128xf32>
    %c0_6 = arith.constant 0 : index
    %c0_7 = arith.constant 0 : index
    %8 = vector.load %arg7[%c0_6, %c0_7] : memref<18x128xf32, #tpu.memory_space<vmem>>, vector<18x128xf32>
    tpu.vector_store %arg7[%c0_6, %c0_7], %7 {strides = array<i32>} : memref<18x128xf32, #tpu.memory_space<vmem>>, vector<18x128xf32>,
    %c0_i32_8 = arith.constant 0 : i32
    %9 = arith.cmpi eq, %arg2, %c0_i32_8 : i32
    %10 = arith.extui %9 : i1 to i32
    %c0_i32_9 = arith.constant 0 : i32
    %11 = arith.cmpi ne, %10, %c0_i32_9 : i32
    scf.if %11 {
      %c0_10 = arith.constant 0 : index
      %c0_11 = arith.constant 0 : index
      %12 = vector.load %arg7[%c0_10, %c0_11] : memref<18x128xf32, #tpu.memory_space<vmem>>, vector<18x128xf32>
      %c0_12 = arith.constant 0 : index
      %c0_13 = arith.constant 0 : index
      %13 = vector.load %arg5[%c0_12, %c0_13] : memref<1x128xf32, #tpu.memory_space<vmem>>, vector<1x128xf32>
      %14 = vector.broadcast %13 : vector<1x128xf32> to vector<18x128xf32>
      %15 = arith.addf %12, %14 : vector<18x128xf32>
      %16 = arith.truncf %15 : vector<18x128xf32> to vector<18x128xbf16>
      %c0_14 = arith.constant 0 : index
      %c0_15 = arith.constant 0 : index
      %17 = vector.load %arg6[%c0_14, %c0_15] : memref<18x128xbf16, #tpu.memory_space<vmem>>, vector<18x128xbf16>
      tpu.vector_store %arg6[%c0_14, %c0_15], %16 {strides = array<i32>} : memref<18x128xbf16, #tpu.memory_space<vmem>>, vector<18x128xbf16>,
    } else {
    }
    return
  }
  func.func @transform_0(%arg0: i32, %arg1: i32, %arg2: i32) -> (i32, i32) {
    %c0_i32 = arith.constant 0 : i32
    return %arg0, %arg2 : i32, i32
  }
  func.func @transform_1(%arg0: i32, %arg1: i32, %arg2: i32) -> (i32, i32) {
    %c0_i32 = arith.constant 0 : i32
    return %arg2, %arg1 : i32, i32
  }
  func.func @transform_2(%arg0: i32, %arg1: i32, %arg2: i32) -> (i32, i32) {
    %c0_i32 = arith.constant 0 : i32
    %c0_i32_0 = arith.constant 0 : i32
    return %c0_i32, %arg1 : i32, i32
  }
  func.func @transform_3(%arg0: i32, %arg1: i32, %arg2: i32) -> (i32, i32) {
    %c0_i32 = arith.constant 0 : i32
    return %arg0, %arg1 : i32, i32
  }
}

module attributes {stable_mosaic.version = 11 : i64} {
  func.func @_self_attn_kernel(%arg0: i32, %arg1: memref<1x9x384xbf16, #tpu.memory_space<vmem>>, %arg2: memref<9x9xf32, #tpu.memory_space<vmem>>, %arg3: memref<1x1x9xf32, #tpu.memory_space<vmem>>, %arg4: memref<1x9x128xbf16, #tpu.memory_space<vmem>>) attributes {dimension_semantics = [#tpu.dimension_semantics<parallel>], iteration_bounds = array<i64: 2>, scalar_prefetch = 0 : i64, scratch_operands = 0 : i64, tpu.core_type = #tpu.core_type<tc>, window_params = [{transform_indices = @transform_0, window_bounds = array<i64: 1, 9, 384>}, {pipeline_mode = #tpu.pipeline_mode<synchronous>, transform_indices = @transform_1, window_bounds = array<i64: 9, 9>}, {transform_indices = @transform_2, window_bounds = array<i64: 1, 1, 9>}, {transform_indices = @transform_3, window_bounds = array<i64: 1, 9, 128>}]} {
    %c0 = arith.constant 0 : index
    %c0_0 = arith.constant 0 : index
    %c0_1 = arith.constant 0 : index
    %0 = vector.load %arg1[%c0, %c0_0, %c0_1] : memref<1x9x384xbf16, #tpu.memory_space<vmem>>, vector<1x9x384xbf16>
    %1 = vector.shape_cast %0 : vector<1x9x384xbf16> to vector<9x384xbf16>
    %c0_2 = arith.constant 0 : index
    %c0_3 = arith.constant 0 : index
    %2 = vector.load %arg2[%c0_2, %c0_3] : memref<9x9xf32, #tpu.memory_space<vmem>>, vector<9x9xf32>
    %c0_4 = arith.constant 0 : index
    %c0_5 = arith.constant 0 : index
    %c0_6 = arith.constant 0 : index
    %3 = vector.load %arg3[%c0_4, %c0_5, %c0_6] : memref<1x1x9xf32, #tpu.memory_space<vmem>>, vector<1x1x9xf32>
    %4 = vector.shape_cast %3 : vector<1x1x9xf32> to vector<1x9xf32>
    %5 = vector.broadcast %4 : vector<1x9xf32> to vector<9x9xf32>
    %6 = arith.addf %2, %5 : vector<9x9xf32>
    %7 = vector.extract_strided_slice %1 {offsets = [0, 0], sizes = [9, 128], strides = [1, 1]} : vector<9x384xbf16> to vector<9x128xbf16>
    %8 = vector.extract_strided_slice %1 {offsets = [0, 128], sizes = [9, 128], strides = [1, 1]} : vector<9x384xbf16> to vector<9x128xbf16>
    %9 = vector.extract_strided_slice %1 {offsets = [0, 256], sizes = [9, 128], strides = [1, 1]} : vector<9x384xbf16> to vector<9x128xbf16>
    %10 = vector.extract_strided_slice %7 {offsets = [0, 0], sizes = [9, 16], strides = [1, 1]} : vector<9x128xbf16> to vector<9x16xbf16>
    %11 = vector.extract_strided_slice %8 {offsets = [0, 0], sizes = [9, 16], strides = [1, 1]} : vector<9x128xbf16> to vector<9x16xbf16>
    %12 = vector.extract_strided_slice %9 {offsets = [0, 0], sizes = [9, 16], strides = [1, 1]} : vector<9x128xbf16> to vector<9x16xbf16>
    %cst = arith.constant dense<0.000000e+00> : vector<9x9xf32>
    %13 = tpu.matmul %10, %11, %cst {dimension_numbers = #tpu.dot_dimension_numbers<[1], [1], [0], [0], [0, 0, 1, 0], [], []>} : vector<9x16xbf16>, vector<9x16xbf16>, vector<9x9xf32> -> vector<9x9xf32>
    %cst_7 = arith.constant 2.500000e-01 : f32
    %14 = vector.broadcast %cst_7 : f32 to vector<9x9xf32>
    %15 = arith.mulf %13, %14 : vector<9x9xf32>
    %16 = arith.addf %15, %6 : vector<9x9xf32>
    %cst_8 = arith.constant dense<0xFF800000> : vector<9xf32>
    %17 = vector.multi_reduction <maximumf>, %16, %cst_8 [1] : vector<9x9xf32> to vector<9xf32>
    %18 = vector.shape_cast %17 : vector<9xf32> to vector<9x1xf32>
    %19 = vector.broadcast %18 : vector<9x1xf32> to vector<9x9xf32>
    %20 = arith.subf %16, %19 : vector<9x9xf32>
    %21 = math.exp %20 : vector<9x9xf32>
    %cst_9 = arith.constant dense<0.000000e+00> : vector<9xf32>
    %22 = vector.multi_reduction <add>, %21, %cst_9 [1] : vector<9x9xf32> to vector<9xf32>
    %23 = vector.shape_cast %22 : vector<9xf32> to vector<9x1xf32>
    %24 = arith.truncf %21 : vector<9x9xf32> to vector<9x9xbf16>
    %cst_10 = arith.constant dense<0.000000e+00> : vector<9x16xf32>
    %25 = tpu.matmul %24, %12, %cst_10 {dimension_numbers = #tpu.dot_dimension_numbers<[1], [0], [0], [1], [0, 0, 1, 1], [], []>} : vector<9x9xbf16>, vector<9x16xbf16>, vector<9x16xf32> -> vector<9x16xf32>
    %26 = tpu.reciprocal %23 {approx = true} : vector<9x1xf32> -> vector<9x1xf32>
    %27 = vector.broadcast %26 : vector<9x1xf32> to vector<9x16xf32>
    %28 = arith.mulf %25, %27 : vector<9x16xf32>
    %29 = vector.extract_strided_slice %7 {offsets = [0, 16], sizes = [9, 16], strides = [1, 1]} : vector<9x128xbf16> to vector<9x16xbf16>
    %30 = vector.extract_strided_slice %8 {offsets = [0, 16], sizes = [9, 16], strides = [1, 1]} : vector<9x128xbf16> to vector<9x16xbf16>
    %31 = vector.extract_strided_slice %9 {offsets = [0, 16], sizes = [9, 16], strides = [1, 1]} : vector<9x128xbf16> to vector<9x16xbf16>
    %cst_11 = arith.constant dense<0.000000e+00> : vector<9x9xf32>
    %32 = tpu.matmul %29, %30, %cst_11 {dimension_numbers = #tpu.dot_dimension_numbers<[1], [1], [0], [0], [0, 0, 1, 0], [], []>} : vector<9x16xbf16>, vector<9x16xbf16>, vector<9x9xf32> -> vector<9x9xf32>
    %cst_12 = arith.constant 2.500000e-01 : f32
    %33 = vector.broadcast %cst_12 : f32 to vector<9x9xf32>
    %34 = arith.mulf %32, %33 : vector<9x9xf32>
    %35 = arith.addf %34, %6 : vector<9x9xf32>
    %cst_13 = arith.constant dense<0xFF800000> : vector<9xf32>
    %36 = vector.multi_reduction <maximumf>, %35, %cst_13 [1] : vector<9x9xf32> to vector<9xf32>
    %37 = vector.shape_cast %36 : vector<9xf32> to vector<9x1xf32>
    %38 = vector.broadcast %37 : vector<9x1xf32> to vector<9x9xf32>
    %39 = arith.subf %35, %38 : vector<9x9xf32>
    %40 = math.exp %39 : vector<9x9xf32>
    %cst_14 = arith.constant dense<0.000000e+00> : vector<9xf32>
    %41 = vector.multi_reduction <add>, %40, %cst_14 [1] : vector<9x9xf32> to vector<9xf32>
    %42 = vector.shape_cast %41 : vector<9xf32> to vector<9x1xf32>
    %43 = arith.truncf %40 : vector<9x9xf32> to vector<9x9xbf16>
    %cst_15 = arith.constant dense<0.000000e+00> : vector<9x16xf32>
    %44 = tpu.matmul %43, %31, %cst_15 {dimension_numbers = #tpu.dot_dimension_numbers<[1], [0], [0], [1], [0, 0, 1, 1], [], []>} : vector<9x9xbf16>, vector<9x16xbf16>, vector<9x16xf32> -> vector<9x16xf32>
    %45 = tpu.reciprocal %42 {approx = true} : vector<9x1xf32> -> vector<9x1xf32>
    %46 = vector.broadcast %45 : vector<9x1xf32> to vector<9x16xf32>
    %47 = arith.mulf %44, %46 : vector<9x16xf32>
    %48 = vector.extract_strided_slice %7 {offsets = [0, 32], sizes = [9, 16], strides = [1, 1]} : vector<9x128xbf16> to vector<9x16xbf16>
    %49 = vector.extract_strided_slice %8 {offsets = [0, 32], sizes = [9, 16], strides = [1, 1]} : vector<9x128xbf16> to vector<9x16xbf16>
    %50 = vector.extract_strided_slice %9 {offsets = [0, 32], sizes = [9, 16], strides = [1, 1]} : vector<9x128xbf16> to vector<9x16xbf16>
    %cst_16 = arith.constant dense<0.000000e+00> : vector<9x9xf32>
    %51 = tpu.matmul %48, %49, %cst_16 {dimension_numbers = #tpu.dot_dimension_numbers<[1], [1], [0], [0], [0, 0, 1, 0], [], []>} : vector<9x16xbf16>, vector<9x16xbf16>, vector<9x9xf32> -> vector<9x9xf32>
    %cst_17 = arith.constant 2.500000e-01 : f32
    %52 = vector.broadcast %cst_17 : f32 to vector<9x9xf32>
    %53 = arith.mulf %51, %52 : vector<9x9xf32>
    %54 = arith.addf %53, %6 : vector<9x9xf32>
    %cst_18 = arith.constant dense<0xFF800000> : vector<9xf32>
    %55 = vector.multi_reduction <maximumf>, %54, %cst_18 [1] : vector<9x9xf32> to vector<9xf32>
    %56 = vector.shape_cast %55 : vector<9xf32> to vector<9x1xf32>
    %57 = vector.broadcast %56 : vector<9x1xf32> to vector<9x9xf32>
    %58 = arith.subf %54, %57 : vector<9x9xf32>
    %59 = math.exp %58 : vector<9x9xf32>
    %cst_19 = arith.constant dense<0.000000e+00> : vector<9xf32>
    %60 = vector.multi_reduction <add>, %59, %cst_19 [1] : vector<9x9xf32> to vector<9xf32>
    %61 = vector.shape_cast %60 : vector<9xf32> to vector<9x1xf32>
    %62 = arith.truncf %59 : vector<9x9xf32> to vector<9x9xbf16>
    %cst_20 = arith.constant dense<0.000000e+00> : vector<9x16xf32>
    %63 = tpu.matmul %62, %50, %cst_20 {dimension_numbers = #tpu.dot_dimension_numbers<[1], [0], [0], [1], [0, 0, 1, 1], [], []>} : vector<9x9xbf16>, vector<9x16xbf16>, vector<9x16xf32> -> vector<9x16xf32>
    %64 = tpu.reciprocal %61 {approx = true} : vector<9x1xf32> -> vector<9x1xf32>
    %65 = vector.broadcast %64 : vector<9x1xf32> to vector<9x16xf32>
    %66 = arith.mulf %63, %65 : vector<9x16xf32>
    %67 = vector.extract_strided_slice %7 {offsets = [0, 48], sizes = [9, 16], strides = [1, 1]} : vector<9x128xbf16> to vector<9x16xbf16>
    %68 = vector.extract_strided_slice %8 {offsets = [0, 48], sizes = [9, 16], strides = [1, 1]} : vector<9x128xbf16> to vector<9x16xbf16>
    %69 = vector.extract_strided_slice %9 {offsets = [0, 48], sizes = [9, 16], strides = [1, 1]} : vector<9x128xbf16> to vector<9x16xbf16>
    %cst_21 = arith.constant dense<0.000000e+00> : vector<9x9xf32>
    %70 = tpu.matmul %67, %68, %cst_21 {dimension_numbers = #tpu.dot_dimension_numbers<[1], [1], [0], [0], [0, 0, 1, 0], [], []>} : vector<9x16xbf16>, vector<9x16xbf16>, vector<9x9xf32> -> vector<9x9xf32>
    %cst_22 = arith.constant 2.500000e-01 : f32
    %71 = vector.broadcast %cst_22 : f32 to vector<9x9xf32>
    %72 = arith.mulf %70, %71 : vector<9x9xf32>
    %73 = arith.addf %72, %6 : vector<9x9xf32>
    %cst_23 = arith.constant dense<0xFF800000> : vector<9xf32>
    %74 = vector.multi_reduction <maximumf>, %73, %cst_23 [1] : vector<9x9xf32> to vector<9xf32>
    %75 = vector.shape_cast %74 : vector<9xf32> to vector<9x1xf32>
    %76 = vector.broadcast %75 : vector<9x1xf32> to vector<9x9xf32>
    %77 = arith.subf %73, %76 : vector<9x9xf32>
    %78 = math.exp %77 : vector<9x9xf32>
    %cst_24 = arith.constant dense<0.000000e+00> : vector<9xf32>
    %79 = vector.multi_reduction <add>, %78, %cst_24 [1] : vector<9x9xf32> to vector<9xf32>
    %80 = vector.shape_cast %79 : vector<9xf32> to vector<9x1xf32>
    %81 = arith.truncf %78 : vector<9x9xf32> to vector<9x9xbf16>
    %cst_25 = arith.constant dense<0.000000e+00> : vector<9x16xf32>
    %82 = tpu.matmul %81, %69, %cst_25 {dimension_numbers = #tpu.dot_dimension_numbers<[1], [0], [0], [1], [0, 0, 1, 1], [], []>} : vector<9x9xbf16>, vector<9x16xbf16>, vector<9x16xf32> -> vector<9x16xf32>
    %83 = tpu.reciprocal %80 {approx = true} : vector<9x1xf32> -> vector<9x1xf32>
    %84 = vector.broadcast %83 : vector<9x1xf32> to vector<9x16xf32>
    %85 = arith.mulf %82, %84 : vector<9x16xf32>
    %86 = vector.extract_strided_slice %7 {offsets = [0, 64], sizes = [9, 16], strides = [1, 1]} : vector<9x128xbf16> to vector<9x16xbf16>
    %87 = vector.extract_strided_slice %8 {offsets = [0, 64], sizes = [9, 16], strides = [1, 1]} : vector<9x128xbf16> to vector<9x16xbf16>
    %88 = vector.extract_strided_slice %9 {offsets = [0, 64], sizes = [9, 16], strides = [1, 1]} : vector<9x128xbf16> to vector<9x16xbf16>
    %cst_26 = arith.constant dense<0.000000e+00> : vector<9x9xf32>
    %89 = tpu.matmul %86, %87, %cst_26 {dimension_numbers = #tpu.dot_dimension_numbers<[1], [1], [0], [0], [0, 0, 1, 0], [], []>} : vector<9x16xbf16>, vector<9x16xbf16>, vector<9x9xf32> -> vector<9x9xf32>
    %cst_27 = arith.constant 2.500000e-01 : f32
    %90 = vector.broadcast %cst_27 : f32 to vector<9x9xf32>
    %91 = arith.mulf %89, %90 : vector<9x9xf32>
    %92 = arith.addf %91, %6 : vector<9x9xf32>
    %cst_28 = arith.constant dense<0xFF800000> : vector<9xf32>
    %93 = vector.multi_reduction <maximumf>, %92, %cst_28 [1] : vector<9x9xf32> to vector<9xf32>
    %94 = vector.shape_cast %93 : vector<9xf32> to vector<9x1xf32>
    %95 = vector.broadcast %94 : vector<9x1xf32> to vector<9x9xf32>
    %96 = arith.subf %92, %95 : vector<9x9xf32>
    %97 = math.exp %96 : vector<9x9xf32>
    %cst_29 = arith.constant dense<0.000000e+00> : vector<9xf32>
    %98 = vector.multi_reduction <add>, %97, %cst_29 [1] : vector<9x9xf32> to vector<9xf32>
    %99 = vector.shape_cast %98 : vector<9xf32> to vector<9x1xf32>
    %100 = arith.truncf %97 : vector<9x9xf32> to vector<9x9xbf16>
    %cst_30 = arith.constant dense<0.000000e+00> : vector<9x16xf32>
    %101 = tpu.matmul %100, %88, %cst_30 {dimension_numbers = #tpu.dot_dimension_numbers<[1], [0], [0], [1], [0, 0, 1, 1], [], []>} : vector<9x9xbf16>, vector<9x16xbf16>, vector<9x16xf32> -> vector<9x16xf32>
    %102 = tpu.reciprocal %99 {approx = true} : vector<9x1xf32> -> vector<9x1xf32>
    %103 = vector.broadcast %102 : vector<9x1xf32> to vector<9x16xf32>
    %104 = arith.mulf %101, %103 : vector<9x16xf32>
    %105 = vector.extract_strided_slice %7 {offsets = [0, 80], sizes = [9, 16], strides = [1, 1]} : vector<9x128xbf16> to vector<9x16xbf16>
    %106 = vector.extract_strided_slice %8 {offsets = [0, 80], sizes = [9, 16], strides = [1, 1]} : vector<9x128xbf16> to vector<9x16xbf16>
    %107 = vector.extract_strided_slice %9 {offsets = [0, 80], sizes = [9, 16], strides = [1, 1]} : vector<9x128xbf16> to vector<9x16xbf16>
    %cst_31 = arith.constant dense<0.000000e+00> : vector<9x9xf32>
    %108 = tpu.matmul %105, %106, %cst_31 {dimension_numbers = #tpu.dot_dimension_numbers<[1], [1], [0], [0], [0, 0, 1, 0], [], []>} : vector<9x16xbf16>, vector<9x16xbf16>, vector<9x9xf32> -> vector<9x9xf32>
    %cst_32 = arith.constant 2.500000e-01 : f32
    %109 = vector.broadcast %cst_32 : f32 to vector<9x9xf32>
    %110 = arith.mulf %108, %109 : vector<9x9xf32>
    %111 = arith.addf %110, %6 : vector<9x9xf32>
    %cst_33 = arith.constant dense<0xFF800000> : vector<9xf32>
    %112 = vector.multi_reduction <maximumf>, %111, %cst_33 [1] : vector<9x9xf32> to vector<9xf32>
    %113 = vector.shape_cast %112 : vector<9xf32> to vector<9x1xf32>
    %114 = vector.broadcast %113 : vector<9x1xf32> to vector<9x9xf32>
    %115 = arith.subf %111, %114 : vector<9x9xf32>
    %116 = math.exp %115 : vector<9x9xf32>
    %cst_34 = arith.constant dense<0.000000e+00> : vector<9xf32>
    %117 = vector.multi_reduction <add>, %116, %cst_34 [1] : vector<9x9xf32> to vector<9xf32>
    %118 = vector.shape_cast %117 : vector<9xf32> to vector<9x1xf32>
    %119 = arith.truncf %116 : vector<9x9xf32> to vector<9x9xbf16>
    %cst_35 = arith.constant dense<0.000000e+00> : vector<9x16xf32>
    %120 = tpu.matmul %119, %107, %cst_35 {dimension_numbers = #tpu.dot_dimension_numbers<[1], [0], [0], [1], [0, 0, 1, 1], [], []>} : vector<9x9xbf16>, vector<9x16xbf16>, vector<9x16xf32> -> vector<9x16xf32>
    %121 = tpu.reciprocal %118 {approx = true} : vector<9x1xf32> -> vector<9x1xf32>
    %122 = vector.broadcast %121 : vector<9x1xf32> to vector<9x16xf32>
    %123 = arith.mulf %120, %122 : vector<9x16xf32>
    %124 = vector.extract_strided_slice %7 {offsets = [0, 96], sizes = [9, 16], strides = [1, 1]} : vector<9x128xbf16> to vector<9x16xbf16>
    %125 = vector.extract_strided_slice %8 {offsets = [0, 96], sizes = [9, 16], strides = [1, 1]} : vector<9x128xbf16> to vector<9x16xbf16>
    %126 = vector.extract_strided_slice %9 {offsets = [0, 96], sizes = [9, 16], strides = [1, 1]} : vector<9x128xbf16> to vector<9x16xbf16>
    %cst_36 = arith.constant dense<0.000000e+00> : vector<9x9xf32>
    %127 = tpu.matmul %124, %125, %cst_36 {dimension_numbers = #tpu.dot_dimension_numbers<[1], [1], [0], [0], [0, 0, 1, 0], [], []>} : vector<9x16xbf16>, vector<9x16xbf16>, vector<9x9xf32> -> vector<9x9xf32>
    %cst_37 = arith.constant 2.500000e-01 : f32
    %128 = vector.broadcast %cst_37 : f32 to vector<9x9xf32>
    %129 = arith.mulf %127, %128 : vector<9x9xf32>
    %130 = arith.addf %129, %6 : vector<9x9xf32>
    %cst_38 = arith.constant dense<0xFF800000> : vector<9xf32>
    %131 = vector.multi_reduction <maximumf>, %130, %cst_38 [1] : vector<9x9xf32> to vector<9xf32>
    %132 = vector.shape_cast %131 : vector<9xf32> to vector<9x1xf32>
    %133 = vector.broadcast %132 : vector<9x1xf32> to vector<9x9xf32>
    %134 = arith.subf %130, %133 : vector<9x9xf32>
    %135 = math.exp %134 : vector<9x9xf32>
    %cst_39 = arith.constant dense<0.000000e+00> : vector<9xf32>
    %136 = vector.multi_reduction <add>, %135, %cst_39 [1] : vector<9x9xf32> to vector<9xf32>
    %137 = vector.shape_cast %136 : vector<9xf32> to vector<9x1xf32>
    %138 = arith.truncf %135 : vector<9x9xf32> to vector<9x9xbf16>
    %cst_40 = arith.constant dense<0.000000e+00> : vector<9x16xf32>
    %139 = tpu.matmul %138, %126, %cst_40 {dimension_numbers = #tpu.dot_dimension_numbers<[1], [0], [0], [1], [0, 0, 1, 1], [], []>} : vector<9x9xbf16>, vector<9x16xbf16>, vector<9x16xf32> -> vector<9x16xf32>
    %140 = tpu.reciprocal %137 {approx = true} : vector<9x1xf32> -> vector<9x1xf32>
    %141 = vector.broadcast %140 : vector<9x1xf32> to vector<9x16xf32>
    %142 = arith.mulf %139, %141 : vector<9x16xf32>
    %143 = vector.extract_strided_slice %7 {offsets = [0, 112], sizes = [9, 16], strides = [1, 1]} : vector<9x128xbf16> to vector<9x16xbf16>
    %144 = vector.extract_strided_slice %8 {offsets = [0, 112], sizes = [9, 16], strides = [1, 1]} : vector<9x128xbf16> to vector<9x16xbf16>
    %145 = vector.extract_strided_slice %9 {offsets = [0, 112], sizes = [9, 16], strides = [1, 1]} : vector<9x128xbf16> to vector<9x16xbf16>
    %cst_41 = arith.constant dense<0.000000e+00> : vector<9x9xf32>
    %146 = tpu.matmul %143, %144, %cst_41 {dimension_numbers = #tpu.dot_dimension_numbers<[1], [1], [0], [0], [0, 0, 1, 0], [], []>} : vector<9x16xbf16>, vector<9x16xbf16>, vector<9x9xf32> -> vector<9x9xf32>
    %cst_42 = arith.constant 2.500000e-01 : f32
    %147 = vector.broadcast %cst_42 : f32 to vector<9x9xf32>
    %148 = arith.mulf %146, %147 : vector<9x9xf32>
    %149 = arith.addf %148, %6 : vector<9x9xf32>
    %cst_43 = arith.constant dense<0xFF800000> : vector<9xf32>
    %150 = vector.multi_reduction <maximumf>, %149, %cst_43 [1] : vector<9x9xf32> to vector<9xf32>
    %151 = vector.shape_cast %150 : vector<9xf32> to vector<9x1xf32>
    %152 = vector.broadcast %151 : vector<9x1xf32> to vector<9x9xf32>
    %153 = arith.subf %149, %152 : vector<9x9xf32>
    %154 = math.exp %153 : vector<9x9xf32>
    %cst_44 = arith.constant dense<0.000000e+00> : vector<9xf32>
    %155 = vector.multi_reduction <add>, %154, %cst_44 [1] : vector<9x9xf32> to vector<9xf32>
    %156 = vector.shape_cast %155 : vector<9xf32> to vector<9x1xf32>
    %157 = arith.truncf %154 : vector<9x9xf32> to vector<9x9xbf16>
    %cst_45 = arith.constant dense<0.000000e+00> : vector<9x16xf32>
    %158 = tpu.matmul %157, %145, %cst_45 {dimension_numbers = #tpu.dot_dimension_numbers<[1], [0], [0], [1], [0, 0, 1, 1], [], []>} : vector<9x9xbf16>, vector<9x16xbf16>, vector<9x16xf32> -> vector<9x16xf32>
    %159 = tpu.reciprocal %156 {approx = true} : vector<9x1xf32> -> vector<9x1xf32>
    %160 = vector.broadcast %159 : vector<9x1xf32> to vector<9x16xf32>
    %161 = arith.mulf %158, %160 : vector<9x16xf32>
    %162 = tpu.concatenate %28, %47, %66, %85, %104, %123, %142, %161 in 1 : vector<9x16xf32>, vector<9x16xf32>, vector<9x16xf32>, vector<9x16xf32>, vector<9x16xf32>, vector<9x16xf32>, vector<9x16xf32>, vector<9x16xf32> -> vector<9x128xf32>
    %163 = arith.truncf %162 : vector<9x128xf32> to vector<9x128xbf16>
    %c0_46 = arith.constant 0 : index
    %c0_47 = arith.constant 0 : index
    %c0_48 = arith.constant 0 : index
    %164 = vector.load %arg4[%c0_46, %c0_47, %c0_48] : memref<1x9x128xbf16, #tpu.memory_space<vmem>>, vector<1x9x128xbf16>
    %165 = vector.shape_cast %164 : vector<1x9x128xbf16> to vector<9x128xbf16>
    %166 = vector.shape_cast %163 : vector<9x128xbf16> to vector<1x9x128xbf16>
    tpu.vector_store %arg4[%c0_46, %c0_47, %c0_48], %166 {strides = array<i32>} : memref<1x9x128xbf16, #tpu.memory_space<vmem>>, vector<1x9x128xbf16>,
    return
  }
  func.func @transform_0(%arg0: i32) -> (i32, i32, i32) {
    %c0_i32 = arith.constant 0 : i32
    %c0_i32_0 = arith.constant 0 : i32
    %c0_i32_1 = arith.constant 0 : i32
    return %arg0, %c0_i32, %c0_i32_0 : i32, i32, i32
  }
  func.func @transform_1(%arg0: i32) -> (i32, i32) {
    %c0_i32 = arith.constant 0 : i32
    %c0_i32_0 = arith.constant 0 : i32
    %c0_i32_1 = arith.constant 0 : i32
    return %c0_i32, %c0_i32_0 : i32, i32
  }
  func.func @transform_2(%arg0: i32) -> (i32, i32, i32) {
    %c0_i32 = arith.constant 0 : i32
    %c0_i32_0 = arith.constant 0 : i32
    %c0_i32_1 = arith.constant 0 : i32
    return %arg0, %c0_i32, %c0_i32_0 : i32, i32, i32
  }
  func.func @transform_3(%arg0: i32) -> (i32, i32, i32) {
    %c0_i32 = arith.constant 0 : i32
    %c0_i32_0 = arith.constant 0 : i32
    %c0_i32_1 = arith.constant 0 : i32
    return %arg0, %c0_i32, %c0_i32_0 : i32, i32, i32
  }
}

module attributes {stable_mosaic.version = 11 : i64} {
  func.func @_add_layernorm_kernel(%arg0: i32, %arg1: memref<18x128xbf16, #tpu.memory_space<vmem>>, %arg2: memref<18x128xbf16, #tpu.memory_space<vmem>>, %arg3: memref<1x128xf32, #tpu.memory_space<vmem>>, %arg4: memref<1x128xf32, #tpu.memory_space<vmem>>, %arg5: memref<18x128xbf16, #tpu.memory_space<vmem>>) attributes {dimension_semantics = [#tpu.dimension_semantics<parallel>], iteration_bounds = array<i64: 1>, scalar_prefetch = 0 : i64, scratch_operands = 0 : i64, tpu.core_type = #tpu.core_type<tc>, window_params = [{transform_indices = @transform_0, window_bounds = array<i64: 18, 128>}, {transform_indices = @transform_1, window_bounds = array<i64: 18, 128>}, {pipeline_mode = #tpu.pipeline_mode<synchronous>, transform_indices = @transform_2, window_bounds = array<i64: 1, 128>}, {pipeline_mode = #tpu.pipeline_mode<synchronous>, transform_indices = @transform_3, window_bounds = array<i64: 1, 128>}, {transform_indices = @transform_4, window_bounds = array<i64: 18, 128>}]} {
    %c0 = arith.constant 0 : index
    %c0_0 = arith.constant 0 : index
    %0 = vector.load %arg1[%c0, %c0_0] : memref<18x128xbf16, #tpu.memory_space<vmem>>, vector<18x128xbf16>
    %1 = arith.extf %0 : vector<18x128xbf16> to vector<18x128xf32>
    %c0_1 = arith.constant 0 : index
    %c0_2 = arith.constant 0 : index
    %2 = vector.load %arg2[%c0_1, %c0_2] : memref<18x128xbf16, #tpu.memory_space<vmem>>, vector<18x128xbf16>
    %3 = arith.extf %2 : vector<18x128xbf16> to vector<18x128xf32>
    %4 = arith.addf %1, %3 : vector<18x128xf32>
    %cst = arith.constant dense<0.000000e+00> : vector<18xf32>
    %5 = vector.multi_reduction <add>, %4, %cst [1] : vector<18x128xf32> to vector<18xf32>
    %6 = vector.shape_cast %5 : vector<18xf32> to vector<18x1xf32>
    %cst_3 = arith.constant 1.280000e+02 : f32
    %7 = vector.broadcast %cst_3 : f32 to vector<18x1xf32>
    %8 = arith.divf %6, %7 : vector<18x1xf32>
    %9 = vector.broadcast %8 : vector<18x1xf32> to vector<18x128xf32>
    %10 = arith.subf %4, %9 : vector<18x128xf32>
    %11 = arith.mulf %10, %10 : vector<18x128xf32>
    %cst_4 = arith.constant dense<0.000000e+00> : vector<18xf32>
    %12 = vector.multi_reduction <add>, %11, %cst_4 [1] : vector<18x128xf32> to vector<18xf32>
    %13 = vector.shape_cast %12 : vector<18xf32> to vector<18x1xf32>
    %cst_5 = arith.constant 1.280000e+02 : f32
    %14 = vector.broadcast %cst_5 : f32 to vector<18x1xf32>
    %15 = arith.divf %13, %14 : vector<18x1xf32>
    %16 = vector.broadcast %8 : vector<18x1xf32> to vector<18x128xf32>
    %17 = arith.subf %4, %16 : vector<18x128xf32>
    %cst_6 = arith.constant 9.99999974E-6 : f32
    %18 = vector.broadcast %cst_6 : f32 to vector<18x1xf32>
    %19 = arith.addf %15, %18 : vector<18x1xf32>
    %20 = math.rsqrt %19 : vector<18x1xf32>
    %21 = vector.broadcast %20 : vector<18x1xf32> to vector<18x128xf32>
    %22 = arith.mulf %17, %21 : vector<18x128xf32>
    %c0_7 = arith.constant 0 : index
    %c0_8 = arith.constant 0 : index
    %23 = vector.load %arg3[%c0_7, %c0_8] : memref<1x128xf32, #tpu.memory_space<vmem>>, vector<1x128xf32>
    %24 = vector.broadcast %23 : vector<1x128xf32> to vector<18x128xf32>
    %25 = arith.mulf %22, %24 : vector<18x128xf32>
    %c0_9 = arith.constant 0 : index
    %c0_10 = arith.constant 0 : index
    %26 = vector.load %arg4[%c0_9, %c0_10] : memref<1x128xf32, #tpu.memory_space<vmem>>, vector<1x128xf32>
    %27 = vector.broadcast %26 : vector<1x128xf32> to vector<18x128xf32>
    %28 = arith.addf %25, %27 : vector<18x128xf32>
    %29 = arith.truncf %28 : vector<18x128xf32> to vector<18x128xbf16>
    %c0_11 = arith.constant 0 : index
    %c0_12 = arith.constant 0 : index
    %30 = vector.load %arg5[%c0_11, %c0_12] : memref<18x128xbf16, #tpu.memory_space<vmem>>, vector<18x128xbf16>
    tpu.vector_store %arg5[%c0_11, %c0_12], %29 {strides = array<i32>} : memref<18x128xbf16, #tpu.memory_space<vmem>>, vector<18x128xbf16>,
    return
  }
  func.func @transform_0(%arg0: i32) -> (i32, i32) {
    %c0_i32 = arith.constant 0 : i32
    %c0_i32_0 = arith.constant 0 : i32
    return %arg0, %c0_i32 : i32, i32
  }
  func.func @transform_1(%arg0: i32) -> (i32, i32) {
    %c0_i32 = arith.constant 0 : i32
    %c0_i32_0 = arith.constant 0 : i32
    return %arg0, %c0_i32 : i32, i32
  }
  func.func @transform_2(%arg0: i32) -> (i32, i32) {
    %c0_i32 = arith.constant 0 : i32
    %c0_i32_0 = arith.constant 0 : i32
    %c0_i32_1 = arith.constant 0 : i32
    return %c0_i32, %c0_i32_0 : i32, i32
  }
  func.func @transform_3(%arg0: i32) -> (i32, i32) {
    %c0_i32 = arith.constant 0 : i32
    %c0_i32_0 = arith.constant 0 : i32
    %c0_i32_1 = arith.constant 0 : i32
    return %c0_i32, %c0_i32_0 : i32, i32
  }
  func.func @transform_4(%arg0: i32) -> (i32, i32) {
    %c0_i32 = arith.constant 0 : i32
    %c0_i32_0 = arith.constant 0 : i32
    return %arg0, %c0_i32 : i32, i32
  }
}

module attributes {stable_mosaic.version = 11 : i64} {
  func.func @_add_pe_kernel(%arg0: i32, %arg1: memref<1x12x128xbf16, #tpu.memory_space<vmem>>, %arg2: memref<1x12x128xf32, #tpu.memory_space<vmem>>, %arg3: memref<1x12x128xbf16, #tpu.memory_space<vmem>>) attributes {dimension_semantics = [#tpu.dimension_semantics<parallel>], iteration_bounds = array<i64: 2>, scalar_prefetch = 0 : i64, scratch_operands = 0 : i64, tpu.core_type = #tpu.core_type<tc>, window_params = [{transform_indices = @transform_0, window_bounds = array<i64: 1, 12, 128>}, {pipeline_mode = #tpu.pipeline_mode<synchronous>, transform_indices = @transform_1, window_bounds = array<i64: 1, 12, 128>}, {transform_indices = @transform_2, window_bounds = array<i64: 1, 12, 128>}]} {
    %c0 = arith.constant 0 : index
    %c0_0 = arith.constant 0 : index
    %c0_1 = arith.constant 0 : index
    %0 = vector.load %arg1[%c0, %c0_0, %c0_1] : memref<1x12x128xbf16, #tpu.memory_space<vmem>>, vector<1x12x128xbf16>
    %1 = arith.extf %0 : vector<1x12x128xbf16> to vector<1x12x128xf32>
    %c0_2 = arith.constant 0 : index
    %c0_3 = arith.constant 0 : index
    %c0_4 = arith.constant 0 : index
    %2 = vector.load %arg2[%c0_2, %c0_3, %c0_4] : memref<1x12x128xf32, #tpu.memory_space<vmem>>, vector<1x12x128xf32>
    %3 = arith.addf %1, %2 : vector<1x12x128xf32>
    %4 = arith.truncf %3 : vector<1x12x128xf32> to vector<1x12x128xbf16>
    %c0_5 = arith.constant 0 : index
    %c0_6 = arith.constant 0 : index
    %c0_7 = arith.constant 0 : index
    %5 = vector.load %arg3[%c0_5, %c0_6, %c0_7] : memref<1x12x128xbf16, #tpu.memory_space<vmem>>, vector<1x12x128xbf16>
    tpu.vector_store %arg3[%c0_5, %c0_6, %c0_7], %4 {strides = array<i32>} : memref<1x12x128xbf16, #tpu.memory_space<vmem>>, vector<1x12x128xbf16>,
    return
  }
  func.func @transform_0(%arg0: i32) -> (i32, i32, i32) {
    %c0_i32 = arith.constant 0 : i32
    %c0_i32_0 = arith.constant 0 : i32
    %c0_i32_1 = arith.constant 0 : i32
    return %arg0, %c0_i32, %c0_i32_0 : i32, i32, i32
  }
  func.func @transform_1(%arg0: i32) -> (i32, i32, i32) {
    %c0_i32 = arith.constant 0 : i32
    %c0_i32_0 = arith.constant 0 : i32
    %c0_i32_1 = arith.constant 0 : i32
    %c0_i32_2 = arith.constant 0 : i32
    return %c0_i32, %c0_i32_0, %c0_i32_1 : i32, i32, i32
  }
  func.func @transform_2(%arg0: i32) -> (i32, i32, i32) {
    %c0_i32 = arith.constant 0 : i32
    %c0_i32_0 = arith.constant 0 : i32
    %c0_i32_1 = arith.constant 0 : i32
    return %arg0, %c0_i32, %c0_i32_0 : i32, i32, i32
  }
}

module attributes {stable_mosaic.version = 11 : i64} {
  func.func @_linear_kernel(%arg0: i32, %arg1: i32, %arg2: i32, %arg3: memref<24x128xbf16, #tpu.memory_space<vmem>>, %arg4: memref<128x384xbf16, #tpu.memory_space<vmem>>, %arg5: memref<1x384xf32, #tpu.memory_space<vmem>>, %arg6: memref<24x384xbf16, #tpu.memory_space<vmem>>, %arg7: memref<24x384xf32, #tpu.memory_space<vmem>>) attributes {dimension_semantics = [#tpu.dimension_semantics<parallel>, #tpu.dimension_semantics<parallel>, #tpu.dimension_semantics<arbitrary>], iteration_bounds = array<i64: 1, 1, 1>, scalar_prefetch = 0 : i64, scratch_operands = 1 : i64, tpu.core_type = #tpu.core_type<tc>, window_params = [{transform_indices = @transform_0, window_bounds = array<i64: 24, 128>}, {transform_indices = @transform_1, window_bounds = array<i64: 128, 384>}, {transform_indices = @transform_2, window_bounds = array<i64: 1, 384>}, {transform_indices = @transform_3, window_bounds = array<i64: 24, 384>}]} {
    %c0_i32 = arith.constant 0 : i32
    %0 = arith.cmpi eq, %arg2, %c0_i32 : i32
    %1 = arith.extui %0 : i1 to i32
    %c0_i32_0 = arith.constant 0 : i32
    %2 = arith.cmpi ne, %1, %c0_i32_0 : i32
    scf.if %2 {
      %cst_10 = arith.constant 0.000000e+00 : f32
      %12 = vector.broadcast %cst_10 : f32 to vector<24x384xf32>
      %c0_11 = arith.constant 0 : index
      %c0_12 = arith.constant 0 : index
      %13 = vector.load %arg7[%c0_11, %c0_12] : memref<24x384xf32, #tpu.memory_space<vmem>>, vector<24x384xf32>
      tpu.vector_store %arg7[%c0_11, %c0_12], %12 {strides = array<i32>} : memref<24x384xf32, #tpu.memory_space<vmem>>, vector<24x384xf32>,
    } else {
    }
    %c0 = arith.constant 0 : index
    %c0_1 = arith.constant 0 : index
    %3 = vector.load %arg7[%c0, %c0_1] : memref<24x384xf32, #tpu.memory_space<vmem>>, vector<24x384xf32>
    %c0_2 = arith.constant 0 : index
    %c0_3 = arith.constant 0 : index
    %4 = vector.load %arg3[%c0_2, %c0_3] : memref<24x128xbf16, #tpu.memory_space<vmem>>, vector<24x128xbf16>
    %c0_4 = arith.constant 0 : index
    %c0_5 = arith.constant 0 : index
    %5 = vector.load %arg4[%c0_4, %c0_5] : memref<128x384xbf16, #tpu.memory_space<vmem>>, vector<128x384xbf16>
    %cst = arith.constant dense<0.000000e+00> : vector<24x384xf32>
    %6 = tpu.matmul %4, %5, %cst {dimension_numbers = #tpu.dot_dimension_numbers<[1], [0], [0], [1], [0, 0, 1, 1], [], []>} : vector<24x128xbf16>, vector<128x384xbf16>, vector<24x384xf32> -> vector<24x384xf32>
    %7 = arith.addf %3, %6 : vector<24x384xf32>
    %c0_6 = arith.constant 0 : index
    %c0_7 = arith.constant 0 : index
    %8 = vector.load %arg7[%c0_6, %c0_7] : memref<24x384xf32, #tpu.memory_space<vmem>>, vector<24x384xf32>
    tpu.vector_store %arg7[%c0_6, %c0_7], %7 {strides = array<i32>} : memref<24x384xf32, #tpu.memory_space<vmem>>, vector<24x384xf32>,
    %c0_i32_8 = arith.constant 0 : i32
    %9 = arith.cmpi eq, %arg2, %c0_i32_8 : i32
    %10 = arith.extui %9 : i1 to i32
    %c0_i32_9 = arith.constant 0 : i32
    %11 = arith.cmpi ne, %10, %c0_i32_9 : i32
    scf.if %11 {
      %c0_10 = arith.constant 0 : index
      %c0_11 = arith.constant 0 : index
      %12 = vector.load %arg7[%c0_10, %c0_11] : memref<24x384xf32, #tpu.memory_space<vmem>>, vector<24x384xf32>
      %c0_12 = arith.constant 0 : index
      %c0_13 = arith.constant 0 : index
      %13 = vector.load %arg5[%c0_12, %c0_13] : memref<1x384xf32, #tpu.memory_space<vmem>>, vector<1x384xf32>
      %14 = vector.broadcast %13 : vector<1x384xf32> to vector<24x384xf32>
      %15 = arith.addf %12, %14 : vector<24x384xf32>
      %16 = arith.truncf %15 : vector<24x384xf32> to vector<24x384xbf16>
      %c0_14 = arith.constant 0 : index
      %c0_15 = arith.constant 0 : index
      %17 = vector.load %arg6[%c0_14, %c0_15] : memref<24x384xbf16, #tpu.memory_space<vmem>>, vector<24x384xbf16>
      tpu.vector_store %arg6[%c0_14, %c0_15], %16 {strides = array<i32>} : memref<24x384xbf16, #tpu.memory_space<vmem>>, vector<24x384xbf16>,
    } else {
    }
    return
  }
  func.func @transform_0(%arg0: i32, %arg1: i32, %arg2: i32) -> (i32, i32) {
    %c0_i32 = arith.constant 0 : i32
    return %arg0, %arg2 : i32, i32
  }
  func.func @transform_1(%arg0: i32, %arg1: i32, %arg2: i32) -> (i32, i32) {
    %c0_i32 = arith.constant 0 : i32
    return %arg2, %arg1 : i32, i32
  }
  func.func @transform_2(%arg0: i32, %arg1: i32, %arg2: i32) -> (i32, i32) {
    %c0_i32 = arith.constant 0 : i32
    %c0_i32_0 = arith.constant 0 : i32
    return %c0_i32, %arg1 : i32, i32
  }
  func.func @transform_3(%arg0: i32, %arg1: i32, %arg2: i32) -> (i32, i32) {
    %c0_i32 = arith.constant 0 : i32
    return %arg0, %arg1 : i32, i32
  }
}

module attributes {stable_mosaic.version = 11 : i64} {
  func.func @_self_attn_kernel(%arg0: i32, %arg1: memref<1x12x384xbf16, #tpu.memory_space<vmem>>, %arg2: memref<12x12xf32, #tpu.memory_space<vmem>>, %arg3: memref<1x1x12xf32, #tpu.memory_space<vmem>>, %arg4: memref<1x12x128xbf16, #tpu.memory_space<vmem>>) attributes {dimension_semantics = [#tpu.dimension_semantics<parallel>], iteration_bounds = array<i64: 2>, scalar_prefetch = 0 : i64, scratch_operands = 0 : i64, tpu.core_type = #tpu.core_type<tc>, window_params = [{transform_indices = @transform_0, window_bounds = array<i64: 1, 12, 384>}, {pipeline_mode = #tpu.pipeline_mode<synchronous>, transform_indices = @transform_1, window_bounds = array<i64: 12, 12>}, {transform_indices = @transform_2, window_bounds = array<i64: 1, 1, 12>}, {transform_indices = @transform_3, window_bounds = array<i64: 1, 12, 128>}]} {
    %c0 = arith.constant 0 : index
    %c0_0 = arith.constant 0 : index
    %c0_1 = arith.constant 0 : index
    %0 = vector.load %arg1[%c0, %c0_0, %c0_1] : memref<1x12x384xbf16, #tpu.memory_space<vmem>>, vector<1x12x384xbf16>
    %1 = vector.shape_cast %0 : vector<1x12x384xbf16> to vector<12x384xbf16>
    %c0_2 = arith.constant 0 : index
    %c0_3 = arith.constant 0 : index
    %2 = vector.load %arg2[%c0_2, %c0_3] : memref<12x12xf32, #tpu.memory_space<vmem>>, vector<12x12xf32>
    %c0_4 = arith.constant 0 : index
    %c0_5 = arith.constant 0 : index
    %c0_6 = arith.constant 0 : index
    %3 = vector.load %arg3[%c0_4, %c0_5, %c0_6] : memref<1x1x12xf32, #tpu.memory_space<vmem>>, vector<1x1x12xf32>
    %4 = vector.shape_cast %3 : vector<1x1x12xf32> to vector<1x12xf32>
    %5 = vector.broadcast %4 : vector<1x12xf32> to vector<12x12xf32>
    %6 = arith.addf %2, %5 : vector<12x12xf32>
    %7 = vector.extract_strided_slice %1 {offsets = [0, 0], sizes = [12, 128], strides = [1, 1]} : vector<12x384xbf16> to vector<12x128xbf16>
    %8 = vector.extract_strided_slice %1 {offsets = [0, 128], sizes = [12, 128], strides = [1, 1]} : vector<12x384xbf16> to vector<12x128xbf16>
    %9 = vector.extract_strided_slice %1 {offsets = [0, 256], sizes = [12, 128], strides = [1, 1]} : vector<12x384xbf16> to vector<12x128xbf16>
    %10 = vector.extract_strided_slice %7 {offsets = [0, 0], sizes = [12, 16], strides = [1, 1]} : vector<12x128xbf16> to vector<12x16xbf16>
    %11 = vector.extract_strided_slice %8 {offsets = [0, 0], sizes = [12, 16], strides = [1, 1]} : vector<12x128xbf16> to vector<12x16xbf16>
    %12 = vector.extract_strided_slice %9 {offsets = [0, 0], sizes = [12, 16], strides = [1, 1]} : vector<12x128xbf16> to vector<12x16xbf16>
    %cst = arith.constant dense<0.000000e+00> : vector<12x12xf32>
    %13 = tpu.matmul %10, %11, %cst {dimension_numbers = #tpu.dot_dimension_numbers<[1], [1], [0], [0], [0, 0, 1, 0], [], []>} : vector<12x16xbf16>, vector<12x16xbf16>, vector<12x12xf32> -> vector<12x12xf32>
    %cst_7 = arith.constant 2.500000e-01 : f32
    %14 = vector.broadcast %cst_7 : f32 to vector<12x12xf32>
    %15 = arith.mulf %13, %14 : vector<12x12xf32>
    %16 = arith.addf %15, %6 : vector<12x12xf32>
    %cst_8 = arith.constant dense<0xFF800000> : vector<12xf32>
    %17 = vector.multi_reduction <maximumf>, %16, %cst_8 [1] : vector<12x12xf32> to vector<12xf32>
    %18 = vector.shape_cast %17 : vector<12xf32> to vector<12x1xf32>
    %19 = vector.broadcast %18 : vector<12x1xf32> to vector<12x12xf32>
    %20 = arith.subf %16, %19 : vector<12x12xf32>
    %21 = math.exp %20 : vector<12x12xf32>
    %cst_9 = arith.constant dense<0.000000e+00> : vector<12xf32>
    %22 = vector.multi_reduction <add>, %21, %cst_9 [1] : vector<12x12xf32> to vector<12xf32>
    %23 = vector.shape_cast %22 : vector<12xf32> to vector<12x1xf32>
    %24 = arith.truncf %21 : vector<12x12xf32> to vector<12x12xbf16>
    %cst_10 = arith.constant dense<0.000000e+00> : vector<12x16xf32>
    %25 = tpu.matmul %24, %12, %cst_10 {dimension_numbers = #tpu.dot_dimension_numbers<[1], [0], [0], [1], [0, 0, 1, 1], [], []>} : vector<12x12xbf16>, vector<12x16xbf16>, vector<12x16xf32> -> vector<12x16xf32>
    %26 = tpu.reciprocal %23 {approx = true} : vector<12x1xf32> -> vector<12x1xf32>
    %27 = vector.broadcast %26 : vector<12x1xf32> to vector<12x16xf32>
    %28 = arith.mulf %25, %27 : vector<12x16xf32>
    %29 = vector.extract_strided_slice %7 {offsets = [0, 16], sizes = [12, 16], strides = [1, 1]} : vector<12x128xbf16> to vector<12x16xbf16>
    %30 = vector.extract_strided_slice %8 {offsets = [0, 16], sizes = [12, 16], strides = [1, 1]} : vector<12x128xbf16> to vector<12x16xbf16>
    %31 = vector.extract_strided_slice %9 {offsets = [0, 16], sizes = [12, 16], strides = [1, 1]} : vector<12x128xbf16> to vector<12x16xbf16>
    %cst_11 = arith.constant dense<0.000000e+00> : vector<12x12xf32>
    %32 = tpu.matmul %29, %30, %cst_11 {dimension_numbers = #tpu.dot_dimension_numbers<[1], [1], [0], [0], [0, 0, 1, 0], [], []>} : vector<12x16xbf16>, vector<12x16xbf16>, vector<12x12xf32> -> vector<12x12xf32>
    %cst_12 = arith.constant 2.500000e-01 : f32
    %33 = vector.broadcast %cst_12 : f32 to vector<12x12xf32>
    %34 = arith.mulf %32, %33 : vector<12x12xf32>
    %35 = arith.addf %34, %6 : vector<12x12xf32>
    %cst_13 = arith.constant dense<0xFF800000> : vector<12xf32>
    %36 = vector.multi_reduction <maximumf>, %35, %cst_13 [1] : vector<12x12xf32> to vector<12xf32>
    %37 = vector.shape_cast %36 : vector<12xf32> to vector<12x1xf32>
    %38 = vector.broadcast %37 : vector<12x1xf32> to vector<12x12xf32>
    %39 = arith.subf %35, %38 : vector<12x12xf32>
    %40 = math.exp %39 : vector<12x12xf32>
    %cst_14 = arith.constant dense<0.000000e+00> : vector<12xf32>
    %41 = vector.multi_reduction <add>, %40, %cst_14 [1] : vector<12x12xf32> to vector<12xf32>
    %42 = vector.shape_cast %41 : vector<12xf32> to vector<12x1xf32>
    %43 = arith.truncf %40 : vector<12x12xf32> to vector<12x12xbf16>
    %cst_15 = arith.constant dense<0.000000e+00> : vector<12x16xf32>
    %44 = tpu.matmul %43, %31, %cst_15 {dimension_numbers = #tpu.dot_dimension_numbers<[1], [0], [0], [1], [0, 0, 1, 1], [], []>} : vector<12x12xbf16>, vector<12x16xbf16>, vector<12x16xf32> -> vector<12x16xf32>
    %45 = tpu.reciprocal %42 {approx = true} : vector<12x1xf32> -> vector<12x1xf32>
    %46 = vector.broadcast %45 : vector<12x1xf32> to vector<12x16xf32>
    %47 = arith.mulf %44, %46 : vector<12x16xf32>
    %48 = vector.extract_strided_slice %7 {offsets = [0, 32], sizes = [12, 16], strides = [1, 1]} : vector<12x128xbf16> to vector<12x16xbf16>
    %49 = vector.extract_strided_slice %8 {offsets = [0, 32], sizes = [12, 16], strides = [1, 1]} : vector<12x128xbf16> to vector<12x16xbf16>
    %50 = vector.extract_strided_slice %9 {offsets = [0, 32], sizes = [12, 16], strides = [1, 1]} : vector<12x128xbf16> to vector<12x16xbf16>
    %cst_16 = arith.constant dense<0.000000e+00> : vector<12x12xf32>
    %51 = tpu.matmul %48, %49, %cst_16 {dimension_numbers = #tpu.dot_dimension_numbers<[1], [1], [0], [0], [0, 0, 1, 0], [], []>} : vector<12x16xbf16>, vector<12x16xbf16>, vector<12x12xf32> -> vector<12x12xf32>
    %cst_17 = arith.constant 2.500000e-01 : f32
    %52 = vector.broadcast %cst_17 : f32 to vector<12x12xf32>
    %53 = arith.mulf %51, %52 : vector<12x12xf32>
    %54 = arith.addf %53, %6 : vector<12x12xf32>
    %cst_18 = arith.constant dense<0xFF800000> : vector<12xf32>
    %55 = vector.multi_reduction <maximumf>, %54, %cst_18 [1] : vector<12x12xf32> to vector<12xf32>
    %56 = vector.shape_cast %55 : vector<12xf32> to vector<12x1xf32>
    %57 = vector.broadcast %56 : vector<12x1xf32> to vector<12x12xf32>
    %58 = arith.subf %54, %57 : vector<12x12xf32>
    %59 = math.exp %58 : vector<12x12xf32>
    %cst_19 = arith.constant dense<0.000000e+00> : vector<12xf32>
    %60 = vector.multi_reduction <add>, %59, %cst_19 [1] : vector<12x12xf32> to vector<12xf32>
    %61 = vector.shape_cast %60 : vector<12xf32> to vector<12x1xf32>
    %62 = arith.truncf %59 : vector<12x12xf32> to vector<12x12xbf16>
    %cst_20 = arith.constant dense<0.000000e+00> : vector<12x16xf32>
    %63 = tpu.matmul %62, %50, %cst_20 {dimension_numbers = #tpu.dot_dimension_numbers<[1], [0], [0], [1], [0, 0, 1, 1], [], []>} : vector<12x12xbf16>, vector<12x16xbf16>, vector<12x16xf32> -> vector<12x16xf32>
    %64 = tpu.reciprocal %61 {approx = true} : vector<12x1xf32> -> vector<12x1xf32>
    %65 = vector.broadcast %64 : vector<12x1xf32> to vector<12x16xf32>
    %66 = arith.mulf %63, %65 : vector<12x16xf32>
    %67 = vector.extract_strided_slice %7 {offsets = [0, 48], sizes = [12, 16], strides = [1, 1]} : vector<12x128xbf16> to vector<12x16xbf16>
    %68 = vector.extract_strided_slice %8 {offsets = [0, 48], sizes = [12, 16], strides = [1, 1]} : vector<12x128xbf16> to vector<12x16xbf16>
    %69 = vector.extract_strided_slice %9 {offsets = [0, 48], sizes = [12, 16], strides = [1, 1]} : vector<12x128xbf16> to vector<12x16xbf16>
    %cst_21 = arith.constant dense<0.000000e+00> : vector<12x12xf32>
    %70 = tpu.matmul %67, %68, %cst_21 {dimension_numbers = #tpu.dot_dimension_numbers<[1], [1], [0], [0], [0, 0, 1, 0], [], []>} : vector<12x16xbf16>, vector<12x16xbf16>, vector<12x12xf32> -> vector<12x12xf32>
    %cst_22 = arith.constant 2.500000e-01 : f32
    %71 = vector.broadcast %cst_22 : f32 to vector<12x12xf32>
    %72 = arith.mulf %70, %71 : vector<12x12xf32>
    %73 = arith.addf %72, %6 : vector<12x12xf32>
    %cst_23 = arith.constant dense<0xFF800000> : vector<12xf32>
    %74 = vector.multi_reduction <maximumf>, %73, %cst_23 [1] : vector<12x12xf32> to vector<12xf32>
    %75 = vector.shape_cast %74 : vector<12xf32> to vector<12x1xf32>
    %76 = vector.broadcast %75 : vector<12x1xf32> to vector<12x12xf32>
    %77 = arith.subf %73, %76 : vector<12x12xf32>
    %78 = math.exp %77 : vector<12x12xf32>
    %cst_24 = arith.constant dense<0.000000e+00> : vector<12xf32>
    %79 = vector.multi_reduction <add>, %78, %cst_24 [1] : vector<12x12xf32> to vector<12xf32>
    %80 = vector.shape_cast %79 : vector<12xf32> to vector<12x1xf32>
    %81 = arith.truncf %78 : vector<12x12xf32> to vector<12x12xbf16>
    %cst_25 = arith.constant dense<0.000000e+00> : vector<12x16xf32>
    %82 = tpu.matmul %81, %69, %cst_25 {dimension_numbers = #tpu.dot_dimension_numbers<[1], [0], [0], [1], [0, 0, 1, 1], [], []>} : vector<12x12xbf16>, vector<12x16xbf16>, vector<12x16xf32> -> vector<12x16xf32>
    %83 = tpu.reciprocal %80 {approx = true} : vector<12x1xf32> -> vector<12x1xf32>
    %84 = vector.broadcast %83 : vector<12x1xf32> to vector<12x16xf32>
    %85 = arith.mulf %82, %84 : vector<12x16xf32>
    %86 = vector.extract_strided_slice %7 {offsets = [0, 64], sizes = [12, 16], strides = [1, 1]} : vector<12x128xbf16> to vector<12x16xbf16>
    %87 = vector.extract_strided_slice %8 {offsets = [0, 64], sizes = [12, 16], strides = [1, 1]} : vector<12x128xbf16> to vector<12x16xbf16>
    %88 = vector.extract_strided_slice %9 {offsets = [0, 64], sizes = [12, 16], strides = [1, 1]} : vector<12x128xbf16> to vector<12x16xbf16>
    %cst_26 = arith.constant dense<0.000000e+00> : vector<12x12xf32>
    %89 = tpu.matmul %86, %87, %cst_26 {dimension_numbers = #tpu.dot_dimension_numbers<[1], [1], [0], [0], [0, 0, 1, 0], [], []>} : vector<12x16xbf16>, vector<12x16xbf16>, vector<12x12xf32> -> vector<12x12xf32>
    %cst_27 = arith.constant 2.500000e-01 : f32
    %90 = vector.broadcast %cst_27 : f32 to vector<12x12xf32>
    %91 = arith.mulf %89, %90 : vector<12x12xf32>
    %92 = arith.addf %91, %6 : vector<12x12xf32>
    %cst_28 = arith.constant dense<0xFF800000> : vector<12xf32>
    %93 = vector.multi_reduction <maximumf>, %92, %cst_28 [1] : vector<12x12xf32> to vector<12xf32>
    %94 = vector.shape_cast %93 : vector<12xf32> to vector<12x1xf32>
    %95 = vector.broadcast %94 : vector<12x1xf32> to vector<12x12xf32>
    %96 = arith.subf %92, %95 : vector<12x12xf32>
    %97 = math.exp %96 : vector<12x12xf32>
    %cst_29 = arith.constant dense<0.000000e+00> : vector<12xf32>
    %98 = vector.multi_reduction <add>, %97, %cst_29 [1] : vector<12x12xf32> to vector<12xf32>
    %99 = vector.shape_cast %98 : vector<12xf32> to vector<12x1xf32>
    %100 = arith.truncf %97 : vector<12x12xf32> to vector<12x12xbf16>
    %cst_30 = arith.constant dense<0.000000e+00> : vector<12x16xf32>
    %101 = tpu.matmul %100, %88, %cst_30 {dimension_numbers = #tpu.dot_dimension_numbers<[1], [0], [0], [1], [0, 0, 1, 1], [], []>} : vector<12x12xbf16>, vector<12x16xbf16>, vector<12x16xf32> -> vector<12x16xf32>
    %102 = tpu.reciprocal %99 {approx = true} : vector<12x1xf32> -> vector<12x1xf32>
    %103 = vector.broadcast %102 : vector<12x1xf32> to vector<12x16xf32>
    %104 = arith.mulf %101, %103 : vector<12x16xf32>
    %105 = vector.extract_strided_slice %7 {offsets = [0, 80], sizes = [12, 16], strides = [1, 1]} : vector<12x128xbf16> to vector<12x16xbf16>
    %106 = vector.extract_strided_slice %8 {offsets = [0, 80], sizes = [12, 16], strides = [1, 1]} : vector<12x128xbf16> to vector<12x16xbf16>
    %107 = vector.extract_strided_slice %9 {offsets = [0, 80], sizes = [12, 16], strides = [1, 1]} : vector<12x128xbf16> to vector<12x16xbf16>
    %cst_31 = arith.constant dense<0.000000e+00> : vector<12x12xf32>
    %108 = tpu.matmul %105, %106, %cst_31 {dimension_numbers = #tpu.dot_dimension_numbers<[1], [1], [0], [0], [0, 0, 1, 0], [], []>} : vector<12x16xbf16>, vector<12x16xbf16>, vector<12x12xf32> -> vector<12x12xf32>
    %cst_32 = arith.constant 2.500000e-01 : f32
    %109 = vector.broadcast %cst_32 : f32 to vector<12x12xf32>
    %110 = arith.mulf %108, %109 : vector<12x12xf32>
    %111 = arith.addf %110, %6 : vector<12x12xf32>
    %cst_33 = arith.constant dense<0xFF800000> : vector<12xf32>
    %112 = vector.multi_reduction <maximumf>, %111, %cst_33 [1] : vector<12x12xf32> to vector<12xf32>
    %113 = vector.shape_cast %112 : vector<12xf32> to vector<12x1xf32>
    %114 = vector.broadcast %113 : vector<12x1xf32> to vector<12x12xf32>
    %115 = arith.subf %111, %114 : vector<12x12xf32>
    %116 = math.exp %115 : vector<12x12xf32>
    %cst_34 = arith.constant dense<0.000000e+00> : vector<12xf32>
    %117 = vector.multi_reduction <add>, %116, %cst_34 [1] : vector<12x12xf32> to vector<12xf32>
    %118 = vector.shape_cast %117 : vector<12xf32> to vector<12x1xf32>
    %119 = arith.truncf %116 : vector<12x12xf32> to vector<12x12xbf16>
    %cst_35 = arith.constant dense<0.000000e+00> : vector<12x16xf32>
    %120 = tpu.matmul %119, %107, %cst_35 {dimension_numbers = #tpu.dot_dimension_numbers<[1], [0], [0], [1], [0, 0, 1, 1], [], []>} : vector<12x12xbf16>, vector<12x16xbf16>, vector<12x16xf32> -> vector<12x16xf32>
    %121 = tpu.reciprocal %118 {approx = true} : vector<12x1xf32> -> vector<12x1xf32>
    %122 = vector.broadcast %121 : vector<12x1xf32> to vector<12x16xf32>
    %123 = arith.mulf %120, %122 : vector<12x16xf32>
    %124 = vector.extract_strided_slice %7 {offsets = [0, 96], sizes = [12, 16], strides = [1, 1]} : vector<12x128xbf16> to vector<12x16xbf16>
    %125 = vector.extract_strided_slice %8 {offsets = [0, 96], sizes = [12, 16], strides = [1, 1]} : vector<12x128xbf16> to vector<12x16xbf16>
    %126 = vector.extract_strided_slice %9 {offsets = [0, 96], sizes = [12, 16], strides = [1, 1]} : vector<12x128xbf16> to vector<12x16xbf16>
    %cst_36 = arith.constant dense<0.000000e+00> : vector<12x12xf32>
    %127 = tpu.matmul %124, %125, %cst_36 {dimension_numbers = #tpu.dot_dimension_numbers<[1], [1], [0], [0], [0, 0, 1, 0], [], []>} : vector<12x16xbf16>, vector<12x16xbf16>, vector<12x12xf32> -> vector<12x12xf32>
    %cst_37 = arith.constant 2.500000e-01 : f32
    %128 = vector.broadcast %cst_37 : f32 to vector<12x12xf32>
    %129 = arith.mulf %127, %128 : vector<12x12xf32>
    %130 = arith.addf %129, %6 : vector<12x12xf32>
    %cst_38 = arith.constant dense<0xFF800000> : vector<12xf32>
    %131 = vector.multi_reduction <maximumf>, %130, %cst_38 [1] : vector<12x12xf32> to vector<12xf32>
    %132 = vector.shape_cast %131 : vector<12xf32> to vector<12x1xf32>
    %133 = vector.broadcast %132 : vector<12x1xf32> to vector<12x12xf32>
    %134 = arith.subf %130, %133 : vector<12x12xf32>
    %135 = math.exp %134 : vector<12x12xf32>
    %cst_39 = arith.constant dense<0.000000e+00> : vector<12xf32>
    %136 = vector.multi_reduction <add>, %135, %cst_39 [1] : vector<12x12xf32> to vector<12xf32>
    %137 = vector.shape_cast %136 : vector<12xf32> to vector<12x1xf32>
    %138 = arith.truncf %135 : vector<12x12xf32> to vector<12x12xbf16>
    %cst_40 = arith.constant dense<0.000000e+00> : vector<12x16xf32>
    %139 = tpu.matmul %138, %126, %cst_40 {dimension_numbers = #tpu.dot_dimension_numbers<[1], [0], [0], [1], [0, 0, 1, 1], [], []>} : vector<12x12xbf16>, vector<12x16xbf16>, vector<12x16xf32> -> vector<12x16xf32>
    %140 = tpu.reciprocal %137 {approx = true} : vector<12x1xf32> -> vector<12x1xf32>
    %141 = vector.broadcast %140 : vector<12x1xf32> to vector<12x16xf32>
    %142 = arith.mulf %139, %141 : vector<12x16xf32>
    %143 = vector.extract_strided_slice %7 {offsets = [0, 112], sizes = [12, 16], strides = [1, 1]} : vector<12x128xbf16> to vector<12x16xbf16>
    %144 = vector.extract_strided_slice %8 {offsets = [0, 112], sizes = [12, 16], strides = [1, 1]} : vector<12x128xbf16> to vector<12x16xbf16>
    %145 = vector.extract_strided_slice %9 {offsets = [0, 112], sizes = [12, 16], strides = [1, 1]} : vector<12x128xbf16> to vector<12x16xbf16>
    %cst_41 = arith.constant dense<0.000000e+00> : vector<12x12xf32>
    %146 = tpu.matmul %143, %144, %cst_41 {dimension_numbers = #tpu.dot_dimension_numbers<[1], [1], [0], [0], [0, 0, 1, 0], [], []>} : vector<12x16xbf16>, vector<12x16xbf16>, vector<12x12xf32> -> vector<12x12xf32>
    %cst_42 = arith.constant 2.500000e-01 : f32
    %147 = vector.broadcast %cst_42 : f32 to vector<12x12xf32>
    %148 = arith.mulf %146, %147 : vector<12x12xf32>
    %149 = arith.addf %148, %6 : vector<12x12xf32>
    %cst_43 = arith.constant dense<0xFF800000> : vector<12xf32>
    %150 = vector.multi_reduction <maximumf>, %149, %cst_43 [1] : vector<12x12xf32> to vector<12xf32>
    %151 = vector.shape_cast %150 : vector<12xf32> to vector<12x1xf32>
    %152 = vector.broadcast %151 : vector<12x1xf32> to vector<12x12xf32>
    %153 = arith.subf %149, %152 : vector<12x12xf32>
    %154 = math.exp %153 : vector<12x12xf32>
    %cst_44 = arith.constant dense<0.000000e+00> : vector<12xf32>
    %155 = vector.multi_reduction <add>, %154, %cst_44 [1] : vector<12x12xf32> to vector<12xf32>
    %156 = vector.shape_cast %155 : vector<12xf32> to vector<12x1xf32>
    %157 = arith.truncf %154 : vector<12x12xf32> to vector<12x12xbf16>
    %cst_45 = arith.constant dense<0.000000e+00> : vector<12x16xf32>
    %158 = tpu.matmul %157, %145, %cst_45 {dimension_numbers = #tpu.dot_dimension_numbers<[1], [0], [0], [1], [0, 0, 1, 1], [], []>} : vector<12x12xbf16>, vector<12x16xbf16>, vector<12x16xf32> -> vector<12x16xf32>
    %159 = tpu.reciprocal %156 {approx = true} : vector<12x1xf32> -> vector<12x1xf32>
    %160 = vector.broadcast %159 : vector<12x1xf32> to vector<12x16xf32>
    %161 = arith.mulf %158, %160 : vector<12x16xf32>
    %162 = tpu.concatenate %28, %47, %66, %85, %104, %123, %142, %161 in 1 : vector<12x16xf32>, vector<12x16xf32>, vector<12x16xf32>, vector<12x16xf32>, vector<12x16xf32>, vector<12x16xf32>, vector<12x16xf32>, vector<12x16xf32> -> vector<12x128xf32>
    %163 = arith.truncf %162 : vector<12x128xf32> to vector<12x128xbf16>
    %c0_46 = arith.constant 0 : index
    %c0_47 = arith.constant 0 : index
    %c0_48 = arith.constant 0 : index
    %164 = vector.load %arg4[%c0_46, %c0_47, %c0_48] : memref<1x12x128xbf16, #tpu.memory_space<vmem>>, vector<1x12x128xbf16>
    %165 = vector.shape_cast %164 : vector<1x12x128xbf16> to vector<12x128xbf16>
    %166 = vector.shape_cast %163 : vector<12x128xbf16> to vector<1x12x128xbf16>
    tpu.vector_store %arg4[%c0_46, %c0_47, %c0_48], %166 {strides = array<i32>} : memref<1x12x128xbf16, #tpu.memory_space<vmem>>, vector<1x12x128xbf16>,
    return
  }
  func.func @transform_0(%arg0: i32) -> (i32, i32, i32) {
    %c0_i32 = arith.constant 0 : i32
    %c0_i32_0 = arith.constant 0 : i32
    %c0_i32_1 = arith.constant 0 : i32
    return %arg0, %c0_i32, %c0_i32_0 : i32, i32, i32
  }
  func.func @transform_1(%arg0: i32) -> (i32, i32) {
    %c0_i32 = arith.constant 0 : i32
    %c0_i32_0 = arith.constant 0 : i32
    %c0_i32_1 = arith.constant 0 : i32
    return %c0_i32, %c0_i32_0 : i32, i32
  }
  func.func @transform_2(%arg0: i32) -> (i32, i32, i32) {
    %c0_i32 = arith.constant 0 : i32
    %c0_i32_0 = arith.constant 0 : i32
    %c0_i32_1 = arith.constant 0 : i32
    return %arg0, %c0_i32, %c0_i32_0 : i32, i32, i32
  }
  func.func @transform_3(%arg0: i32) -> (i32, i32, i32) {
    %c0_i32 = arith.constant 0 : i32
    %c0_i32_0 = arith.constant 0 : i32
    %c0_i32_1 = arith.constant 0 : i32
    return %arg0, %c0_i32, %c0_i32_0 : i32, i32, i32
  }
}

module attributes {stable_mosaic.version = 11 : i64} {
  func.func @_linear_kernel(%arg0: i32, %arg1: i32, %arg2: i32, %arg3: memref<24x128xbf16, #tpu.memory_space<vmem>>, %arg4: memref<128x128xbf16, #tpu.memory_space<vmem>>, %arg5: memref<1x128xf32, #tpu.memory_space<vmem>>, %arg6: memref<24x128xbf16, #tpu.memory_space<vmem>>, %arg7: memref<24x128xf32, #tpu.memory_space<vmem>>) attributes {dimension_semantics = [#tpu.dimension_semantics<parallel>, #tpu.dimension_semantics<parallel>, #tpu.dimension_semantics<arbitrary>], iteration_bounds = array<i64: 1, 1, 1>, scalar_prefetch = 0 : i64, scratch_operands = 1 : i64, tpu.core_type = #tpu.core_type<tc>, window_params = [{transform_indices = @transform_0, window_bounds = array<i64: 24, 128>}, {transform_indices = @transform_1, window_bounds = array<i64: 128, 128>}, {transform_indices = @transform_2, window_bounds = array<i64: 1, 128>}, {transform_indices = @transform_3, window_bounds = array<i64: 24, 128>}]} {
    %c0_i32 = arith.constant 0 : i32
    %0 = arith.cmpi eq, %arg2, %c0_i32 : i32
    %1 = arith.extui %0 : i1 to i32
    %c0_i32_0 = arith.constant 0 : i32
    %2 = arith.cmpi ne, %1, %c0_i32_0 : i32
    scf.if %2 {
      %cst_10 = arith.constant 0.000000e+00 : f32
      %12 = vector.broadcast %cst_10 : f32 to vector<24x128xf32>
      %c0_11 = arith.constant 0 : index
      %c0_12 = arith.constant 0 : index
      %13 = vector.load %arg7[%c0_11, %c0_12] : memref<24x128xf32, #tpu.memory_space<vmem>>, vector<24x128xf32>
      tpu.vector_store %arg7[%c0_11, %c0_12], %12 {strides = array<i32>} : memref<24x128xf32, #tpu.memory_space<vmem>>, vector<24x128xf32>,
    } else {
    }
    %c0 = arith.constant 0 : index
    %c0_1 = arith.constant 0 : index
    %3 = vector.load %arg7[%c0, %c0_1] : memref<24x128xf32, #tpu.memory_space<vmem>>, vector<24x128xf32>
    %c0_2 = arith.constant 0 : index
    %c0_3 = arith.constant 0 : index
    %4 = vector.load %arg3[%c0_2, %c0_3] : memref<24x128xbf16, #tpu.memory_space<vmem>>, vector<24x128xbf16>
    %c0_4 = arith.constant 0 : index
    %c0_5 = arith.constant 0 : index
    %5 = vector.load %arg4[%c0_4, %c0_5] : memref<128x128xbf16, #tpu.memory_space<vmem>>, vector<128x128xbf16>
    %cst = arith.constant dense<0.000000e+00> : vector<24x128xf32>
    %6 = tpu.matmul %4, %5, %cst {dimension_numbers = #tpu.dot_dimension_numbers<[1], [0], [0], [1], [0, 0, 1, 1], [], []>} : vector<24x128xbf16>, vector<128x128xbf16>, vector<24x128xf32> -> vector<24x128xf32>
    %7 = arith.addf %3, %6 : vector<24x128xf32>
    %c0_6 = arith.constant 0 : index
    %c0_7 = arith.constant 0 : index
    %8 = vector.load %arg7[%c0_6, %c0_7] : memref<24x128xf32, #tpu.memory_space<vmem>>, vector<24x128xf32>
    tpu.vector_store %arg7[%c0_6, %c0_7], %7 {strides = array<i32>} : memref<24x128xf32, #tpu.memory_space<vmem>>, vector<24x128xf32>,
    %c0_i32_8 = arith.constant 0 : i32
    %9 = arith.cmpi eq, %arg2, %c0_i32_8 : i32
    %10 = arith.extui %9 : i1 to i32
    %c0_i32_9 = arith.constant 0 : i32
    %11 = arith.cmpi ne, %10, %c0_i32_9 : i32
    scf.if %11 {
      %c0_10 = arith.constant 0 : index
      %c0_11 = arith.constant 0 : index
      %12 = vector.load %arg7[%c0_10, %c0_11] : memref<24x128xf32, #tpu.memory_space<vmem>>, vector<24x128xf32>
      %c0_12 = arith.constant 0 : index
      %c0_13 = arith.constant 0 : index
      %13 = vector.load %arg5[%c0_12, %c0_13] : memref<1x128xf32, #tpu.memory_space<vmem>>, vector<1x128xf32>
      %14 = vector.broadcast %13 : vector<1x128xf32> to vector<24x128xf32>
      %15 = arith.addf %12, %14 : vector<24x128xf32>
      %16 = arith.truncf %15 : vector<24x128xf32> to vector<24x128xbf16>
      %c0_14 = arith.constant 0 : index
      %c0_15 = arith.constant 0 : index
      %17 = vector.load %arg6[%c0_14, %c0_15] : memref<24x128xbf16, #tpu.memory_space<vmem>>, vector<24x128xbf16>
      tpu.vector_store %arg6[%c0_14, %c0_15], %16 {strides = array<i32>} : memref<24x128xbf16, #tpu.memory_space<vmem>>, vector<24x128xbf16>,
    } else {
    }
    return
  }
  func.func @transform_0(%arg0: i32, %arg1: i32, %arg2: i32) -> (i32, i32) {
    %c0_i32 = arith.constant 0 : i32
    return %arg0, %arg2 : i32, i32
  }
  func.func @transform_1(%arg0: i32, %arg1: i32, %arg2: i32) -> (i32, i32) {
    %c0_i32 = arith.constant 0 : i32
    return %arg2, %arg1 : i32, i32
  }
  func.func @transform_2(%arg0: i32, %arg1: i32, %arg2: i32) -> (i32, i32) {
    %c0_i32 = arith.constant 0 : i32
    %c0_i32_0 = arith.constant 0 : i32
    return %c0_i32, %arg1 : i32, i32
  }
  func.func @transform_3(%arg0: i32, %arg1: i32, %arg2: i32) -> (i32, i32) {
    %c0_i32 = arith.constant 0 : i32
    return %arg0, %arg1 : i32, i32
  }
}

module attributes {stable_mosaic.version = 11 : i64} {
  func.func @_add_layernorm_kernel(%arg0: i32, %arg1: memref<24x128xbf16, #tpu.memory_space<vmem>>, %arg2: memref<24x128xbf16, #tpu.memory_space<vmem>>, %arg3: memref<1x128xf32, #tpu.memory_space<vmem>>, %arg4: memref<1x128xf32, #tpu.memory_space<vmem>>, %arg5: memref<24x128xbf16, #tpu.memory_space<vmem>>) attributes {dimension_semantics = [#tpu.dimension_semantics<parallel>], iteration_bounds = array<i64: 1>, scalar_prefetch = 0 : i64, scratch_operands = 0 : i64, tpu.core_type = #tpu.core_type<tc>, window_params = [{transform_indices = @transform_0, window_bounds = array<i64: 24, 128>}, {transform_indices = @transform_1, window_bounds = array<i64: 24, 128>}, {pipeline_mode = #tpu.pipeline_mode<synchronous>, transform_indices = @transform_2, window_bounds = array<i64: 1, 128>}, {pipeline_mode = #tpu.pipeline_mode<synchronous>, transform_indices = @transform_3, window_bounds = array<i64: 1, 128>}, {transform_indices = @transform_4, window_bounds = array<i64: 24, 128>}]} {
    %c0 = arith.constant 0 : index
    %c0_0 = arith.constant 0 : index
    %0 = vector.load %arg1[%c0, %c0_0] : memref<24x128xbf16, #tpu.memory_space<vmem>>, vector<24x128xbf16>
    %1 = arith.extf %0 : vector<24x128xbf16> to vector<24x128xf32>
    %c0_1 = arith.constant 0 : index
    %c0_2 = arith.constant 0 : index
    %2 = vector.load %arg2[%c0_1, %c0_2] : memref<24x128xbf16, #tpu.memory_space<vmem>>, vector<24x128xbf16>
    %3 = arith.extf %2 : vector<24x128xbf16> to vector<24x128xf32>
    %4 = arith.addf %1, %3 : vector<24x128xf32>
    %cst = arith.constant dense<0.000000e+00> : vector<24xf32>
    %5 = vector.multi_reduction <add>, %4, %cst [1] : vector<24x128xf32> to vector<24xf32>
    %6 = vector.shape_cast %5 : vector<24xf32> to vector<24x1xf32>
    %cst_3 = arith.constant 1.280000e+02 : f32
    %7 = vector.broadcast %cst_3 : f32 to vector<24x1xf32>
    %8 = arith.divf %6, %7 : vector<24x1xf32>
    %9 = vector.broadcast %8 : vector<24x1xf32> to vector<24x128xf32>
    %10 = arith.subf %4, %9 : vector<24x128xf32>
    %11 = arith.mulf %10, %10 : vector<24x128xf32>
    %cst_4 = arith.constant dense<0.000000e+00> : vector<24xf32>
    %12 = vector.multi_reduction <add>, %11, %cst_4 [1] : vector<24x128xf32> to vector<24xf32>
    %13 = vector.shape_cast %12 : vector<24xf32> to vector<24x1xf32>
    %cst_5 = arith.constant 1.280000e+02 : f32
    %14 = vector.broadcast %cst_5 : f32 to vector<24x1xf32>
    %15 = arith.divf %13, %14 : vector<24x1xf32>
    %16 = vector.broadcast %8 : vector<24x1xf32> to vector<24x128xf32>
    %17 = arith.subf %4, %16 : vector<24x128xf32>
    %cst_6 = arith.constant 9.99999974E-6 : f32
    %18 = vector.broadcast %cst_6 : f32 to vector<24x1xf32>
    %19 = arith.addf %15, %18 : vector<24x1xf32>
    %20 = math.rsqrt %19 : vector<24x1xf32>
    %21 = vector.broadcast %20 : vector<24x1xf32> to vector<24x128xf32>
    %22 = arith.mulf %17, %21 : vector<24x128xf32>
    %c0_7 = arith.constant 0 : index
    %c0_8 = arith.constant 0 : index
    %23 = vector.load %arg3[%c0_7, %c0_8] : memref<1x128xf32, #tpu.memory_space<vmem>>, vector<1x128xf32>
    %24 = vector.broadcast %23 : vector<1x128xf32> to vector<24x128xf32>
    %25 = arith.mulf %22, %24 : vector<24x128xf32>
    %c0_9 = arith.constant 0 : index
    %c0_10 = arith.constant 0 : index
    %26 = vector.load %arg4[%c0_9, %c0_10] : memref<1x128xf32, #tpu.memory_space<vmem>>, vector<1x128xf32>
    %27 = vector.broadcast %26 : vector<1x128xf32> to vector<24x128xf32>
    %28 = arith.addf %25, %27 : vector<24x128xf32>
    %29 = arith.truncf %28 : vector<24x128xf32> to vector<24x128xbf16>
    %c0_11 = arith.constant 0 : index
    %c0_12 = arith.constant 0 : index
    %30 = vector.load %arg5[%c0_11, %c0_12] : memref<24x128xbf16, #tpu.memory_space<vmem>>, vector<24x128xbf16>
    tpu.vector_store %arg5[%c0_11, %c0_12], %29 {strides = array<i32>} : memref<24x128xbf16, #tpu.memory_space<vmem>>, vector<24x128xbf16>,
    return
  }
  func.func @transform_0(%arg0: i32) -> (i32, i32) {
    %c0_i32 = arith.constant 0 : i32
    %c0_i32_0 = arith.constant 0 : i32
    return %arg0, %c0_i32 : i32, i32
  }
  func.func @transform_1(%arg0: i32) -> (i32, i32) {
    %c0_i32 = arith.constant 0 : i32
    %c0_i32_0 = arith.constant 0 : i32
    return %arg0, %c0_i32 : i32, i32
  }
  func.func @transform_2(%arg0: i32) -> (i32, i32) {
    %c0_i32 = arith.constant 0 : i32
    %c0_i32_0 = arith.constant 0 : i32
    %c0_i32_1 = arith.constant 0 : i32
    return %c0_i32, %c0_i32_0 : i32, i32
  }
  func.func @transform_3(%arg0: i32) -> (i32, i32) {
    %c0_i32 = arith.constant 0 : i32
    %c0_i32_0 = arith.constant 0 : i32
    %c0_i32_1 = arith.constant 0 : i32
    return %c0_i32, %c0_i32_0 : i32, i32
  }
  func.func @transform_4(%arg0: i32) -> (i32, i32) {
    %c0_i32 = arith.constant 0 : i32
    %c0_i32_0 = arith.constant 0 : i32
    return %arg0, %c0_i32 : i32, i32
  }
}

module attributes {stable_mosaic.version = 11 : i64} {
  func.func @_ffn_kernel(%arg0: i32, %arg1: memref<24x128xbf16, #tpu.memory_space<vmem>>, %arg2: memref<128x100xbf16, #tpu.memory_space<vmem>>, %arg3: memref<1x100xf32, #tpu.memory_space<vmem>>, %arg4: memref<100x128xbf16, #tpu.memory_space<vmem>>, %arg5: memref<1x128xf32, #tpu.memory_space<vmem>>, %arg6: memref<24x128xbf16, #tpu.memory_space<vmem>>) attributes {dimension_semantics = [#tpu.dimension_semantics<parallel>], iteration_bounds = array<i64: 1>, scalar_prefetch = 0 : i64, scratch_operands = 0 : i64, tpu.core_type = #tpu.core_type<tc>, window_params = [{transform_indices = @transform_0, window_bounds = array<i64: 24, 128>}, {pipeline_mode = #tpu.pipeline_mode<synchronous>, transform_indices = @transform_1, window_bounds = array<i64: 128, 100>}, {pipeline_mode = #tpu.pipeline_mode<synchronous>, transform_indices = @transform_2, window_bounds = array<i64: 1, 100>}, {pipeline_mode = #tpu.pipeline_mode<synchronous>, transform_indices = @transform_3, window_bounds = array<i64: 100, 128>}, {pipeline_mode = #tpu.pipeline_mode<synchronous>, transform_indices = @transform_4, window_bounds = array<i64: 1, 128>}, {transform_indices = @transform_5, window_bounds = array<i64: 24, 128>}]} {
    %c0 = arith.constant 0 : index
    %c0_0 = arith.constant 0 : index
    %0 = vector.load %arg1[%c0, %c0_0] : memref<24x128xbf16, #tpu.memory_space<vmem>>, vector<24x128xbf16>
    %c0_1 = arith.constant 0 : index
    %c0_2 = arith.constant 0 : index
    %1 = vector.load %arg2[%c0_1, %c0_2] : memref<128x100xbf16, #tpu.memory_space<vmem>>, vector<128x100xbf16>
    %cst = arith.constant dense<0.000000e+00> : vector<24x100xf32>
    %2 = tpu.matmul %0, %1, %cst {dimension_numbers = #tpu.dot_dimension_numbers<[1], [0], [0], [1], [0, 0, 1, 1], [], []>} : vector<24x128xbf16>, vector<128x100xbf16>, vector<24x100xf32> -> vector<24x100xf32>
    %c0_3 = arith.constant 0 : index
    %c0_4 = arith.constant 0 : index
    %3 = vector.load %arg3[%c0_3, %c0_4] : memref<1x100xf32, #tpu.memory_space<vmem>>, vector<1x100xf32>
    %4 = vector.broadcast %3 : vector<1x100xf32> to vector<24x100xf32>
    %5 = arith.addf %2, %4 : vector<24x100xf32>
    %cst_5 = arith.constant 0.000000e+00 : f32
    %6 = vector.broadcast %cst_5 : f32 to vector<24x100xf32>
    %7 = arith.maximumf %5, %6 : vector<24x100xf32>
    %8 = arith.truncf %7 : vector<24x100xf32> to vector<24x100xbf16>
    %c0_6 = arith.constant 0 : index
    %c0_7 = arith.constant 0 : index
    %9 = vector.load %arg4[%c0_6, %c0_7] : memref<100x128xbf16, #tpu.memory_space<vmem>>, vector<100x128xbf16>
    %cst_8 = arith.constant dense<0.000000e+00> : vector<24x128xf32>
    %10 = tpu.matmul %8, %9, %cst_8 {dimension_numbers = #tpu.dot_dimension_numbers<[1], [0], [0], [1], [0, 0, 1, 1], [], []>} : vector<24x100xbf16>, vector<100x128xbf16>, vector<24x128xf32> -> vector<24x128xf32>
    %c0_9 = arith.constant 0 : index
    %c0_10 = arith.constant 0 : index
    %11 = vector.load %arg5[%c0_9, %c0_10] : memref<1x128xf32, #tpu.memory_space<vmem>>, vector<1x128xf32>
    %12 = vector.broadcast %11 : vector<1x128xf32> to vector<24x128xf32>
    %13 = arith.addf %10, %12 : vector<24x128xf32>
    %14 = arith.truncf %13 : vector<24x128xf32> to vector<24x128xbf16>
    %c0_11 = arith.constant 0 : index
    %c0_12 = arith.constant 0 : index
    %15 = vector.load %arg6[%c0_11, %c0_12] : memref<24x128xbf16, #tpu.memory_space<vmem>>, vector<24x128xbf16>
    tpu.vector_store %arg6[%c0_11, %c0_12], %14 {strides = array<i32>} : memref<24x128xbf16, #tpu.memory_space<vmem>>, vector<24x128xbf16>,
    return
  }
  func.func @transform_0(%arg0: i32) -> (i32, i32) {
    %c0_i32 = arith.constant 0 : i32
    %c0_i32_0 = arith.constant 0 : i32
    return %arg0, %c0_i32 : i32, i32
  }
  func.func @transform_1(%arg0: i32) -> (i32, i32) {
    %c0_i32 = arith.constant 0 : i32
    %c0_i32_0 = arith.constant 0 : i32
    %c0_i32_1 = arith.constant 0 : i32
    return %c0_i32, %c0_i32_0 : i32, i32
  }
  func.func @transform_2(%arg0: i32) -> (i32, i32) {
    %c0_i32 = arith.constant 0 : i32
    %c0_i32_0 = arith.constant 0 : i32
    %c0_i32_1 = arith.constant 0 : i32
    return %c0_i32, %c0_i32_0 : i32, i32
  }
  func.func @transform_3(%arg0: i32) -> (i32, i32) {
    %c0_i32 = arith.constant 0 : i32
    %c0_i32_0 = arith.constant 0 : i32
    %c0_i32_1 = arith.constant 0 : i32
    return %c0_i32, %c0_i32_0 : i32, i32
  }
  func.func @transform_4(%arg0: i32) -> (i32, i32) {
    %c0_i32 = arith.constant 0 : i32
    %c0_i32_0 = arith.constant 0 : i32
    %c0_i32_1 = arith.constant 0 : i32
    return %c0_i32, %c0_i32_0 : i32, i32
  }
  func.func @transform_5(%arg0: i32) -> (i32, i32) {
    %c0_i32 = arith.constant 0 : i32
    %c0_i32_0 = arith.constant 0 : i32
    return %arg0, %c0_i32 : i32, i32
  }
}

module attributes {stable_mosaic.version = 11 : i64} {
  func.func @_linear_kernel(%arg0: i32, %arg1: i32, %arg2: i32, %arg3: memref<24x128xbf16, #tpu.memory_space<vmem>>, %arg4: memref<128x256xbf16, #tpu.memory_space<vmem>>, %arg5: memref<1x256xf32, #tpu.memory_space<vmem>>, %arg6: memref<24x256xbf16, #tpu.memory_space<vmem>>, %arg7: memref<24x256xf32, #tpu.memory_space<vmem>>) attributes {dimension_semantics = [#tpu.dimension_semantics<parallel>, #tpu.dimension_semantics<parallel>, #tpu.dimension_semantics<arbitrary>], iteration_bounds = array<i64: 1, 1, 1>, scalar_prefetch = 0 : i64, scratch_operands = 1 : i64, tpu.core_type = #tpu.core_type<tc>, window_params = [{transform_indices = @transform_0, window_bounds = array<i64: 24, 128>}, {transform_indices = @transform_1, window_bounds = array<i64: 128, 256>}, {transform_indices = @transform_2, window_bounds = array<i64: 1, 256>}, {transform_indices = @transform_3, window_bounds = array<i64: 24, 256>}]} {
    %c0_i32 = arith.constant 0 : i32
    %0 = arith.cmpi eq, %arg2, %c0_i32 : i32
    %1 = arith.extui %0 : i1 to i32
    %c0_i32_0 = arith.constant 0 : i32
    %2 = arith.cmpi ne, %1, %c0_i32_0 : i32
    scf.if %2 {
      %cst_10 = arith.constant 0.000000e+00 : f32
      %12 = vector.broadcast %cst_10 : f32 to vector<24x256xf32>
      %c0_11 = arith.constant 0 : index
      %c0_12 = arith.constant 0 : index
      %13 = vector.load %arg7[%c0_11, %c0_12] : memref<24x256xf32, #tpu.memory_space<vmem>>, vector<24x256xf32>
      tpu.vector_store %arg7[%c0_11, %c0_12], %12 {strides = array<i32>} : memref<24x256xf32, #tpu.memory_space<vmem>>, vector<24x256xf32>,
    } else {
    }
    %c0 = arith.constant 0 : index
    %c0_1 = arith.constant 0 : index
    %3 = vector.load %arg7[%c0, %c0_1] : memref<24x256xf32, #tpu.memory_space<vmem>>, vector<24x256xf32>
    %c0_2 = arith.constant 0 : index
    %c0_3 = arith.constant 0 : index
    %4 = vector.load %arg3[%c0_2, %c0_3] : memref<24x128xbf16, #tpu.memory_space<vmem>>, vector<24x128xbf16>
    %c0_4 = arith.constant 0 : index
    %c0_5 = arith.constant 0 : index
    %5 = vector.load %arg4[%c0_4, %c0_5] : memref<128x256xbf16, #tpu.memory_space<vmem>>, vector<128x256xbf16>
    %cst = arith.constant dense<0.000000e+00> : vector<24x256xf32>
    %6 = tpu.matmul %4, %5, %cst {dimension_numbers = #tpu.dot_dimension_numbers<[1], [0], [0], [1], [0, 0, 1, 1], [], []>} : vector<24x128xbf16>, vector<128x256xbf16>, vector<24x256xf32> -> vector<24x256xf32>
    %7 = arith.addf %3, %6 : vector<24x256xf32>
    %c0_6 = arith.constant 0 : index
    %c0_7 = arith.constant 0 : index
    %8 = vector.load %arg7[%c0_6, %c0_7] : memref<24x256xf32, #tpu.memory_space<vmem>>, vector<24x256xf32>
    tpu.vector_store %arg7[%c0_6, %c0_7], %7 {strides = array<i32>} : memref<24x256xf32, #tpu.memory_space<vmem>>, vector<24x256xf32>,
    %c0_i32_8 = arith.constant 0 : i32
    %9 = arith.cmpi eq, %arg2, %c0_i32_8 : i32
    %10 = arith.extui %9 : i1 to i32
    %c0_i32_9 = arith.constant 0 : i32
    %11 = arith.cmpi ne, %10, %c0_i32_9 : i32
    scf.if %11 {
      %c0_10 = arith.constant 0 : index
      %c0_11 = arith.constant 0 : index
      %12 = vector.load %arg7[%c0_10, %c0_11] : memref<24x256xf32, #tpu.memory_space<vmem>>, vector<24x256xf32>
      %c0_12 = arith.constant 0 : index
      %c0_13 = arith.constant 0 : index
      %13 = vector.load %arg5[%c0_12, %c0_13] : memref<1x256xf32, #tpu.memory_space<vmem>>, vector<1x256xf32>
      %14 = vector.broadcast %13 : vector<1x256xf32> to vector<24x256xf32>
      %15 = arith.addf %12, %14 : vector<24x256xf32>
      %16 = arith.truncf %15 : vector<24x256xf32> to vector<24x256xbf16>
      %c0_14 = arith.constant 0 : index
      %c0_15 = arith.constant 0 : index
      %17 = vector.load %arg6[%c0_14, %c0_15] : memref<24x256xbf16, #tpu.memory_space<vmem>>, vector<24x256xbf16>
      tpu.vector_store %arg6[%c0_14, %c0_15], %16 {strides = array<i32>} : memref<24x256xbf16, #tpu.memory_space<vmem>>, vector<24x256xbf16>,
    } else {
    }
    return
  }
  func.func @transform_0(%arg0: i32, %arg1: i32, %arg2: i32) -> (i32, i32) {
    %c0_i32 = arith.constant 0 : i32
    return %arg0, %arg2 : i32, i32
  }
  func.func @transform_1(%arg0: i32, %arg1: i32, %arg2: i32) -> (i32, i32) {
    %c0_i32 = arith.constant 0 : i32
    return %arg2, %arg1 : i32, i32
  }
  func.func @transform_2(%arg0: i32, %arg1: i32, %arg2: i32) -> (i32, i32) {
    %c0_i32 = arith.constant 0 : i32
    %c0_i32_0 = arith.constant 0 : i32
    return %c0_i32, %arg1 : i32, i32
  }
  func.func @transform_3(%arg0: i32, %arg1: i32, %arg2: i32) -> (i32, i32) {
    %c0_i32 = arith.constant 0 : i32
    return %arg0, %arg1 : i32, i32
  }
}

module attributes {stable_mosaic.version = 11 : i64} {
  func.func @_cross_attn_kernel(%arg0: i32, %arg1: memref<1x9x128xbf16, #tpu.memory_space<vmem>>, %arg2: memref<1x12x256xbf16, #tpu.memory_space<vmem>>, %arg3: memref<9x12xf32, #tpu.memory_space<vmem>>, %arg4: memref<1x1x12xf32, #tpu.memory_space<vmem>>, %arg5: memref<1x9x128xbf16, #tpu.memory_space<vmem>>) attributes {dimension_semantics = [#tpu.dimension_semantics<parallel>], iteration_bounds = array<i64: 2>, scalar_prefetch = 0 : i64, scratch_operands = 0 : i64, tpu.core_type = #tpu.core_type<tc>, window_params = [{transform_indices = @transform_0, window_bounds = array<i64: 1, 9, 128>}, {transform_indices = @transform_1, window_bounds = array<i64: 1, 12, 256>}, {pipeline_mode = #tpu.pipeline_mode<synchronous>, transform_indices = @transform_2, window_bounds = array<i64: 9, 12>}, {transform_indices = @transform_3, window_bounds = array<i64: 1, 1, 12>}, {transform_indices = @transform_4, window_bounds = array<i64: 1, 9, 128>}]} {
    %c0 = arith.constant 0 : index
    %c0_0 = arith.constant 0 : index
    %c0_1 = arith.constant 0 : index
    %0 = vector.load %arg1[%c0, %c0_0, %c0_1] : memref<1x9x128xbf16, #tpu.memory_space<vmem>>, vector<1x9x128xbf16>
    %1 = vector.shape_cast %0 : vector<1x9x128xbf16> to vector<9x128xbf16>
    %c0_2 = arith.constant 0 : index
    %c0_3 = arith.constant 0 : index
    %c0_4 = arith.constant 0 : index
    %2 = vector.load %arg2[%c0_2, %c0_3, %c0_4] : memref<1x12x256xbf16, #tpu.memory_space<vmem>>, vector<1x12x256xbf16>
    %3 = vector.shape_cast %2 : vector<1x12x256xbf16> to vector<12x256xbf16>
    %c0_5 = arith.constant 0 : index
    %c0_6 = arith.constant 0 : index
    %4 = vector.load %arg3[%c0_5, %c0_6] : memref<9x12xf32, #tpu.memory_space<vmem>>, vector<9x12xf32>
    %c0_7 = arith.constant 0 : index
    %c0_8 = arith.constant 0 : index
    %c0_9 = arith.constant 0 : index
    %5 = vector.load %arg4[%c0_7, %c0_8, %c0_9] : memref<1x1x12xf32, #tpu.memory_space<vmem>>, vector<1x1x12xf32>
    %6 = vector.shape_cast %5 : vector<1x1x12xf32> to vector<1x12xf32>
    %7 = vector.broadcast %6 : vector<1x12xf32> to vector<9x12xf32>
    %8 = arith.addf %4, %7 : vector<9x12xf32>
    %9 = vector.extract_strided_slice %3 {offsets = [0, 0], sizes = [12, 128], strides = [1, 1]} : vector<12x256xbf16> to vector<12x128xbf16>
    %10 = vector.extract_strided_slice %3 {offsets = [0, 128], sizes = [12, 128], strides = [1, 1]} : vector<12x256xbf16> to vector<12x128xbf16>
    %11 = vector.extract_strided_slice %1 {offsets = [0, 0], sizes = [9, 16], strides = [1, 1]} : vector<9x128xbf16> to vector<9x16xbf16>
    %12 = vector.extract_strided_slice %9 {offsets = [0, 0], sizes = [12, 16], strides = [1, 1]} : vector<12x128xbf16> to vector<12x16xbf16>
    %13 = vector.extract_strided_slice %10 {offsets = [0, 0], sizes = [12, 16], strides = [1, 1]} : vector<12x128xbf16> to vector<12x16xbf16>
    %cst = arith.constant dense<0.000000e+00> : vector<9x12xf32>
    %14 = tpu.matmul %11, %12, %cst {dimension_numbers = #tpu.dot_dimension_numbers<[1], [1], [0], [0], [0, 0, 1, 0], [], []>} : vector<9x16xbf16>, vector<12x16xbf16>, vector<9x12xf32> -> vector<9x12xf32>
    %cst_10 = arith.constant 2.500000e-01 : f32
    %15 = vector.broadcast %cst_10 : f32 to vector<9x12xf32>
    %16 = arith.mulf %14, %15 : vector<9x12xf32>
    %17 = arith.addf %16, %8 : vector<9x12xf32>
    %cst_11 = arith.constant dense<0xFF800000> : vector<9xf32>
    %18 = vector.multi_reduction <maximumf>, %17, %cst_11 [1] : vector<9x12xf32> to vector<9xf32>
    %19 = vector.shape_cast %18 : vector<9xf32> to vector<9x1xf32>
    %20 = vector.broadcast %19 : vector<9x1xf32> to vector<9x12xf32>
    %21 = arith.subf %17, %20 : vector<9x12xf32>
    %22 = math.exp %21 : vector<9x12xf32>
    %cst_12 = arith.constant dense<0.000000e+00> : vector<9xf32>
    %23 = vector.multi_reduction <add>, %22, %cst_12 [1] : vector<9x12xf32> to vector<9xf32>
    %24 = vector.shape_cast %23 : vector<9xf32> to vector<9x1xf32>
    %25 = arith.truncf %22 : vector<9x12xf32> to vector<9x12xbf16>
    %cst_13 = arith.constant dense<0.000000e+00> : vector<9x16xf32>
    %26 = tpu.matmul %25, %13, %cst_13 {dimension_numbers = #tpu.dot_dimension_numbers<[1], [0], [0], [1], [0, 0, 1, 1], [], []>} : vector<9x12xbf16>, vector<12x16xbf16>, vector<9x16xf32> -> vector<9x16xf32>
    %27 = tpu.reciprocal %24 {approx = true} : vector<9x1xf32> -> vector<9x1xf32>
    %28 = vector.broadcast %27 : vector<9x1xf32> to vector<9x16xf32>
    %29 = arith.mulf %26, %28 : vector<9x16xf32>
    %30 = vector.extract_strided_slice %1 {offsets = [0, 16], sizes = [9, 16], strides = [1, 1]} : vector<9x128xbf16> to vector<9x16xbf16>
    %31 = vector.extract_strided_slice %9 {offsets = [0, 16], sizes = [12, 16], strides = [1, 1]} : vector<12x128xbf16> to vector<12x16xbf16>
    %32 = vector.extract_strided_slice %10 {offsets = [0, 16], sizes = [12, 16], strides = [1, 1]} : vector<12x128xbf16> to vector<12x16xbf16>
    %cst_14 = arith.constant dense<0.000000e+00> : vector<9x12xf32>
    %33 = tpu.matmul %30, %31, %cst_14 {dimension_numbers = #tpu.dot_dimension_numbers<[1], [1], [0], [0], [0, 0, 1, 0], [], []>} : vector<9x16xbf16>, vector<12x16xbf16>, vector<9x12xf32> -> vector<9x12xf32>
    %cst_15 = arith.constant 2.500000e-01 : f32
    %34 = vector.broadcast %cst_15 : f32 to vector<9x12xf32>
    %35 = arith.mulf %33, %34 : vector<9x12xf32>
    %36 = arith.addf %35, %8 : vector<9x12xf32>
    %cst_16 = arith.constant dense<0xFF800000> : vector<9xf32>
    %37 = vector.multi_reduction <maximumf>, %36, %cst_16 [1] : vector<9x12xf32> to vector<9xf32>
    %38 = vector.shape_cast %37 : vector<9xf32> to vector<9x1xf32>
    %39 = vector.broadcast %38 : vector<9x1xf32> to vector<9x12xf32>
    %40 = arith.subf %36, %39 : vector<9x12xf32>
    %41 = math.exp %40 : vector<9x12xf32>
    %cst_17 = arith.constant dense<0.000000e+00> : vector<9xf32>
    %42 = vector.multi_reduction <add>, %41, %cst_17 [1] : vector<9x12xf32> to vector<9xf32>
    %43 = vector.shape_cast %42 : vector<9xf32> to vector<9x1xf32>
    %44 = arith.truncf %41 : vector<9x12xf32> to vector<9x12xbf16>
    %cst_18 = arith.constant dense<0.000000e+00> : vector<9x16xf32>
    %45 = tpu.matmul %44, %32, %cst_18 {dimension_numbers = #tpu.dot_dimension_numbers<[1], [0], [0], [1], [0, 0, 1, 1], [], []>} : vector<9x12xbf16>, vector<12x16xbf16>, vector<9x16xf32> -> vector<9x16xf32>
    %46 = tpu.reciprocal %43 {approx = true} : vector<9x1xf32> -> vector<9x1xf32>
    %47 = vector.broadcast %46 : vector<9x1xf32> to vector<9x16xf32>
    %48 = arith.mulf %45, %47 : vector<9x16xf32>
    %49 = vector.extract_strided_slice %1 {offsets = [0, 32], sizes = [9, 16], strides = [1, 1]} : vector<9x128xbf16> to vector<9x16xbf16>
    %50 = vector.extract_strided_slice %9 {offsets = [0, 32], sizes = [12, 16], strides = [1, 1]} : vector<12x128xbf16> to vector<12x16xbf16>
    %51 = vector.extract_strided_slice %10 {offsets = [0, 32], sizes = [12, 16], strides = [1, 1]} : vector<12x128xbf16> to vector<12x16xbf16>
    %cst_19 = arith.constant dense<0.000000e+00> : vector<9x12xf32>
    %52 = tpu.matmul %49, %50, %cst_19 {dimension_numbers = #tpu.dot_dimension_numbers<[1], [1], [0], [0], [0, 0, 1, 0], [], []>} : vector<9x16xbf16>, vector<12x16xbf16>, vector<9x12xf32> -> vector<9x12xf32>
    %cst_20 = arith.constant 2.500000e-01 : f32
    %53 = vector.broadcast %cst_20 : f32 to vector<9x12xf32>
    %54 = arith.mulf %52, %53 : vector<9x12xf32>
    %55 = arith.addf %54, %8 : vector<9x12xf32>
    %cst_21 = arith.constant dense<0xFF800000> : vector<9xf32>
    %56 = vector.multi_reduction <maximumf>, %55, %cst_21 [1] : vector<9x12xf32> to vector<9xf32>
    %57 = vector.shape_cast %56 : vector<9xf32> to vector<9x1xf32>
    %58 = vector.broadcast %57 : vector<9x1xf32> to vector<9x12xf32>
    %59 = arith.subf %55, %58 : vector<9x12xf32>
    %60 = math.exp %59 : vector<9x12xf32>
    %cst_22 = arith.constant dense<0.000000e+00> : vector<9xf32>
    %61 = vector.multi_reduction <add>, %60, %cst_22 [1] : vector<9x12xf32> to vector<9xf32>
    %62 = vector.shape_cast %61 : vector<9xf32> to vector<9x1xf32>
    %63 = arith.truncf %60 : vector<9x12xf32> to vector<9x12xbf16>
    %cst_23 = arith.constant dense<0.000000e+00> : vector<9x16xf32>
    %64 = tpu.matmul %63, %51, %cst_23 {dimension_numbers = #tpu.dot_dimension_numbers<[1], [0], [0], [1], [0, 0, 1, 1], [], []>} : vector<9x12xbf16>, vector<12x16xbf16>, vector<9x16xf32> -> vector<9x16xf32>
    %65 = tpu.reciprocal %62 {approx = true} : vector<9x1xf32> -> vector<9x1xf32>
    %66 = vector.broadcast %65 : vector<9x1xf32> to vector<9x16xf32>
    %67 = arith.mulf %64, %66 : vector<9x16xf32>
    %68 = vector.extract_strided_slice %1 {offsets = [0, 48], sizes = [9, 16], strides = [1, 1]} : vector<9x128xbf16> to vector<9x16xbf16>
    %69 = vector.extract_strided_slice %9 {offsets = [0, 48], sizes = [12, 16], strides = [1, 1]} : vector<12x128xbf16> to vector<12x16xbf16>
    %70 = vector.extract_strided_slice %10 {offsets = [0, 48], sizes = [12, 16], strides = [1, 1]} : vector<12x128xbf16> to vector<12x16xbf16>
    %cst_24 = arith.constant dense<0.000000e+00> : vector<9x12xf32>
    %71 = tpu.matmul %68, %69, %cst_24 {dimension_numbers = #tpu.dot_dimension_numbers<[1], [1], [0], [0], [0, 0, 1, 0], [], []>} : vector<9x16xbf16>, vector<12x16xbf16>, vector<9x12xf32> -> vector<9x12xf32>
    %cst_25 = arith.constant 2.500000e-01 : f32
    %72 = vector.broadcast %cst_25 : f32 to vector<9x12xf32>
    %73 = arith.mulf %71, %72 : vector<9x12xf32>
    %74 = arith.addf %73, %8 : vector<9x12xf32>
    %cst_26 = arith.constant dense<0xFF800000> : vector<9xf32>
    %75 = vector.multi_reduction <maximumf>, %74, %cst_26 [1] : vector<9x12xf32> to vector<9xf32>
    %76 = vector.shape_cast %75 : vector<9xf32> to vector<9x1xf32>
    %77 = vector.broadcast %76 : vector<9x1xf32> to vector<9x12xf32>
    %78 = arith.subf %74, %77 : vector<9x12xf32>
    %79 = math.exp %78 : vector<9x12xf32>
    %cst_27 = arith.constant dense<0.000000e+00> : vector<9xf32>
    %80 = vector.multi_reduction <add>, %79, %cst_27 [1] : vector<9x12xf32> to vector<9xf32>
    %81 = vector.shape_cast %80 : vector<9xf32> to vector<9x1xf32>
    %82 = arith.truncf %79 : vector<9x12xf32> to vector<9x12xbf16>
    %cst_28 = arith.constant dense<0.000000e+00> : vector<9x16xf32>
    %83 = tpu.matmul %82, %70, %cst_28 {dimension_numbers = #tpu.dot_dimension_numbers<[1], [0], [0], [1], [0, 0, 1, 1], [], []>} : vector<9x12xbf16>, vector<12x16xbf16>, vector<9x16xf32> -> vector<9x16xf32>
    %84 = tpu.reciprocal %81 {approx = true} : vector<9x1xf32> -> vector<9x1xf32>
    %85 = vector.broadcast %84 : vector<9x1xf32> to vector<9x16xf32>
    %86 = arith.mulf %83, %85 : vector<9x16xf32>
    %87 = vector.extract_strided_slice %1 {offsets = [0, 64], sizes = [9, 16], strides = [1, 1]} : vector<9x128xbf16> to vector<9x16xbf16>
    %88 = vector.extract_strided_slice %9 {offsets = [0, 64], sizes = [12, 16], strides = [1, 1]} : vector<12x128xbf16> to vector<12x16xbf16>
    %89 = vector.extract_strided_slice %10 {offsets = [0, 64], sizes = [12, 16], strides = [1, 1]} : vector<12x128xbf16> to vector<12x16xbf16>
    %cst_29 = arith.constant dense<0.000000e+00> : vector<9x12xf32>
    %90 = tpu.matmul %87, %88, %cst_29 {dimension_numbers = #tpu.dot_dimension_numbers<[1], [1], [0], [0], [0, 0, 1, 0], [], []>} : vector<9x16xbf16>, vector<12x16xbf16>, vector<9x12xf32> -> vector<9x12xf32>
    %cst_30 = arith.constant 2.500000e-01 : f32
    %91 = vector.broadcast %cst_30 : f32 to vector<9x12xf32>
    %92 = arith.mulf %90, %91 : vector<9x12xf32>
    %93 = arith.addf %92, %8 : vector<9x12xf32>
    %cst_31 = arith.constant dense<0xFF800000> : vector<9xf32>
    %94 = vector.multi_reduction <maximumf>, %93, %cst_31 [1] : vector<9x12xf32> to vector<9xf32>
    %95 = vector.shape_cast %94 : vector<9xf32> to vector<9x1xf32>
    %96 = vector.broadcast %95 : vector<9x1xf32> to vector<9x12xf32>
    %97 = arith.subf %93, %96 : vector<9x12xf32>
    %98 = math.exp %97 : vector<9x12xf32>
    %cst_32 = arith.constant dense<0.000000e+00> : vector<9xf32>
    %99 = vector.multi_reduction <add>, %98, %cst_32 [1] : vector<9x12xf32> to vector<9xf32>
    %100 = vector.shape_cast %99 : vector<9xf32> to vector<9x1xf32>
    %101 = arith.truncf %98 : vector<9x12xf32> to vector<9x12xbf16>
    %cst_33 = arith.constant dense<0.000000e+00> : vector<9x16xf32>
    %102 = tpu.matmul %101, %89, %cst_33 {dimension_numbers = #tpu.dot_dimension_numbers<[1], [0], [0], [1], [0, 0, 1, 1], [], []>} : vector<9x12xbf16>, vector<12x16xbf16>, vector<9x16xf32> -> vector<9x16xf32>
    %103 = tpu.reciprocal %100 {approx = true} : vector<9x1xf32> -> vector<9x1xf32>
    %104 = vector.broadcast %103 : vector<9x1xf32> to vector<9x16xf32>
    %105 = arith.mulf %102, %104 : vector<9x16xf32>
    %106 = vector.extract_strided_slice %1 {offsets = [0, 80], sizes = [9, 16], strides = [1, 1]} : vector<9x128xbf16> to vector<9x16xbf16>
    %107 = vector.extract_strided_slice %9 {offsets = [0, 80], sizes = [12, 16], strides = [1, 1]} : vector<12x128xbf16> to vector<12x16xbf16>
    %108 = vector.extract_strided_slice %10 {offsets = [0, 80], sizes = [12, 16], strides = [1, 1]} : vector<12x128xbf16> to vector<12x16xbf16>
    %cst_34 = arith.constant dense<0.000000e+00> : vector<9x12xf32>
    %109 = tpu.matmul %106, %107, %cst_34 {dimension_numbers = #tpu.dot_dimension_numbers<[1], [1], [0], [0], [0, 0, 1, 0], [], []>} : vector<9x16xbf16>, vector<12x16xbf16>, vector<9x12xf32> -> vector<9x12xf32>
    %cst_35 = arith.constant 2.500000e-01 : f32
    %110 = vector.broadcast %cst_35 : f32 to vector<9x12xf32>
    %111 = arith.mulf %109, %110 : vector<9x12xf32>
    %112 = arith.addf %111, %8 : vector<9x12xf32>
    %cst_36 = arith.constant dense<0xFF800000> : vector<9xf32>
    %113 = vector.multi_reduction <maximumf>, %112, %cst_36 [1] : vector<9x12xf32> to vector<9xf32>
    %114 = vector.shape_cast %113 : vector<9xf32> to vector<9x1xf32>
    %115 = vector.broadcast %114 : vector<9x1xf32> to vector<9x12xf32>
    %116 = arith.subf %112, %115 : vector<9x12xf32>
    %117 = math.exp %116 : vector<9x12xf32>
    %cst_37 = arith.constant dense<0.000000e+00> : vector<9xf32>
    %118 = vector.multi_reduction <add>, %117, %cst_37 [1] : vector<9x12xf32> to vector<9xf32>
    %119 = vector.shape_cast %118 : vector<9xf32> to vector<9x1xf32>
    %120 = arith.truncf %117 : vector<9x12xf32> to vector<9x12xbf16>
    %cst_38 = arith.constant dense<0.000000e+00> : vector<9x16xf32>
    %121 = tpu.matmul %120, %108, %cst_38 {dimension_numbers = #tpu.dot_dimension_numbers<[1], [0], [0], [1], [0, 0, 1, 1], [], []>} : vector<9x12xbf16>, vector<12x16xbf16>, vector<9x16xf32> -> vector<9x16xf32>
    %122 = tpu.reciprocal %119 {approx = true} : vector<9x1xf32> -> vector<9x1xf32>
    %123 = vector.broadcast %122 : vector<9x1xf32> to vector<9x16xf32>
    %124 = arith.mulf %121, %123 : vector<9x16xf32>
    %125 = vector.extract_strided_slice %1 {offsets = [0, 96], sizes = [9, 16], strides = [1, 1]} : vector<9x128xbf16> to vector<9x16xbf16>
    %126 = vector.extract_strided_slice %9 {offsets = [0, 96], sizes = [12, 16], strides = [1, 1]} : vector<12x128xbf16> to vector<12x16xbf16>
    %127 = vector.extract_strided_slice %10 {offsets = [0, 96], sizes = [12, 16], strides = [1, 1]} : vector<12x128xbf16> to vector<12x16xbf16>
    %cst_39 = arith.constant dense<0.000000e+00> : vector<9x12xf32>
    %128 = tpu.matmul %125, %126, %cst_39 {dimension_numbers = #tpu.dot_dimension_numbers<[1], [1], [0], [0], [0, 0, 1, 0], [], []>} : vector<9x16xbf16>, vector<12x16xbf16>, vector<9x12xf32> -> vector<9x12xf32>
    %cst_40 = arith.constant 2.500000e-01 : f32
    %129 = vector.broadcast %cst_40 : f32 to vector<9x12xf32>
    %130 = arith.mulf %128, %129 : vector<9x12xf32>
    %131 = arith.addf %130, %8 : vector<9x12xf32>
    %cst_41 = arith.constant dense<0xFF800000> : vector<9xf32>
    %132 = vector.multi_reduction <maximumf>, %131, %cst_41 [1] : vector<9x12xf32> to vector<9xf32>
    %133 = vector.shape_cast %132 : vector<9xf32> to vector<9x1xf32>
    %134 = vector.broadcast %133 : vector<9x1xf32> to vector<9x12xf32>
    %135 = arith.subf %131, %134 : vector<9x12xf32>
    %136 = math.exp %135 : vector<9x12xf32>
    %cst_42 = arith.constant dense<0.000000e+00> : vector<9xf32>
    %137 = vector.multi_reduction <add>, %136, %cst_42 [1] : vector<9x12xf32> to vector<9xf32>
    %138 = vector.shape_cast %137 : vector<9xf32> to vector<9x1xf32>
    %139 = arith.truncf %136 : vector<9x12xf32> to vector<9x12xbf16>
    %cst_43 = arith.constant dense<0.000000e+00> : vector<9x16xf32>
    %140 = tpu.matmul %139, %127, %cst_43 {dimension_numbers = #tpu.dot_dimension_numbers<[1], [0], [0], [1], [0, 0, 1, 1], [], []>} : vector<9x12xbf16>, vector<12x16xbf16>, vector<9x16xf32> -> vector<9x16xf32>
    %141 = tpu.reciprocal %138 {approx = true} : vector<9x1xf32> -> vector<9x1xf32>
    %142 = vector.broadcast %141 : vector<9x1xf32> to vector<9x16xf32>
    %143 = arith.mulf %140, %142 : vector<9x16xf32>
    %144 = vector.extract_strided_slice %1 {offsets = [0, 112], sizes = [9, 16], strides = [1, 1]} : vector<9x128xbf16> to vector<9x16xbf16>
    %145 = vector.extract_strided_slice %9 {offsets = [0, 112], sizes = [12, 16], strides = [1, 1]} : vector<12x128xbf16> to vector<12x16xbf16>
    %146 = vector.extract_strided_slice %10 {offsets = [0, 112], sizes = [12, 16], strides = [1, 1]} : vector<12x128xbf16> to vector<12x16xbf16>
    %cst_44 = arith.constant dense<0.000000e+00> : vector<9x12xf32>
    %147 = tpu.matmul %144, %145, %cst_44 {dimension_numbers = #tpu.dot_dimension_numbers<[1], [1], [0], [0], [0, 0, 1, 0], [], []>} : vector<9x16xbf16>, vector<12x16xbf16>, vector<9x12xf32> -> vector<9x12xf32>
    %cst_45 = arith.constant 2.500000e-01 : f32
    %148 = vector.broadcast %cst_45 : f32 to vector<9x12xf32>
    %149 = arith.mulf %147, %148 : vector<9x12xf32>
    %150 = arith.addf %149, %8 : vector<9x12xf32>
    %cst_46 = arith.constant dense<0xFF800000> : vector<9xf32>
    %151 = vector.multi_reduction <maximumf>, %150, %cst_46 [1] : vector<9x12xf32> to vector<9xf32>
    %152 = vector.shape_cast %151 : vector<9xf32> to vector<9x1xf32>
    %153 = vector.broadcast %152 : vector<9x1xf32> to vector<9x12xf32>
    %154 = arith.subf %150, %153 : vector<9x12xf32>
    %155 = math.exp %154 : vector<9x12xf32>
    %cst_47 = arith.constant dense<0.000000e+00> : vector<9xf32>
    %156 = vector.multi_reduction <add>, %155, %cst_47 [1] : vector<9x12xf32> to vector<9xf32>
    %157 = vector.shape_cast %156 : vector<9xf32> to vector<9x1xf32>
    %158 = arith.truncf %155 : vector<9x12xf32> to vector<9x12xbf16>
    %cst_48 = arith.constant dense<0.000000e+00> : vector<9x16xf32>
    %159 = tpu.matmul %158, %146, %cst_48 {dimension_numbers = #tpu.dot_dimension_numbers<[1], [0], [0], [1], [0, 0, 1, 1], [], []>} : vector<9x12xbf16>, vector<12x16xbf16>, vector<9x16xf32> -> vector<9x16xf32>
    %160 = tpu.reciprocal %157 {approx = true} : vector<9x1xf32> -> vector<9x1xf32>
    %161 = vector.broadcast %160 : vector<9x1xf32> to vector<9x16xf32>
    %162 = arith.mulf %159, %161 : vector<9x16xf32>
    %163 = tpu.concatenate %29, %48, %67, %86, %105, %124, %143, %162 in 1 : vector<9x16xf32>, vector<9x16xf32>, vector<9x16xf32>, vector<9x16xf32>, vector<9x16xf32>, vector<9x16xf32>, vector<9x16xf32>, vector<9x16xf32> -> vector<9x128xf32>
    %164 = arith.truncf %163 : vector<9x128xf32> to vector<9x128xbf16>
    %c0_49 = arith.constant 0 : index
    %c0_50 = arith.constant 0 : index
    %c0_51 = arith.constant 0 : index
    %165 = vector.load %arg5[%c0_49, %c0_50, %c0_51] : memref<1x9x128xbf16, #tpu.memory_space<vmem>>, vector<1x9x128xbf16>
    %166 = vector.shape_cast %165 : vector<1x9x128xbf16> to vector<9x128xbf16>
    %167 = vector.shape_cast %164 : vector<9x128xbf16> to vector<1x9x128xbf16>
    tpu.vector_store %arg5[%c0_49, %c0_50, %c0_51], %167 {strides = array<i32>} : memref<1x9x128xbf16, #tpu.memory_space<vmem>>, vector<1x9x128xbf16>,
    return
  }
  func.func @transform_0(%arg0: i32) -> (i32, i32, i32) {
    %c0_i32 = arith.constant 0 : i32
    %c0_i32_0 = arith.constant 0 : i32
    %c0_i32_1 = arith.constant 0 : i32
    return %arg0, %c0_i32, %c0_i32_0 : i32, i32, i32
  }
  func.func @transform_1(%arg0: i32) -> (i32, i32, i32) {
    %c0_i32 = arith.constant 0 : i32
    %c0_i32_0 = arith.constant 0 : i32
    %c0_i32_1 = arith.constant 0 : i32
    return %arg0, %c0_i32, %c0_i32_0 : i32, i32, i32
  }
  func.func @transform_2(%arg0: i32) -> (i32, i32) {
    %c0_i32 = arith.constant 0 : i32
    %c0_i32_0 = arith.constant 0 : i32
    %c0_i32_1 = arith.constant 0 : i32
    return %c0_i32, %c0_i32_0 : i32, i32
  }
  func.func @transform_3(%arg0: i32) -> (i32, i32, i32) {
    %c0_i32 = arith.constant 0 : i32
    %c0_i32_0 = arith.constant 0 : i32
    %c0_i32_1 = arith.constant 0 : i32
    return %arg0, %c0_i32, %c0_i32_0 : i32, i32, i32
  }
  func.func @transform_4(%arg0: i32) -> (i32, i32, i32) {
    %c0_i32 = arith.constant 0 : i32
    %c0_i32_0 = arith.constant 0 : i32
    %c0_i32_1 = arith.constant 0 : i32
    return %arg0, %c0_i32, %c0_i32_0 : i32, i32, i32
  }
}

module attributes {stable_mosaic.version = 11 : i64} {
  func.func @_ffn_kernel(%arg0: i32, %arg1: memref<18x128xbf16, #tpu.memory_space<vmem>>, %arg2: memref<128x100xbf16, #tpu.memory_space<vmem>>, %arg3: memref<1x100xf32, #tpu.memory_space<vmem>>, %arg4: memref<100x128xbf16, #tpu.memory_space<vmem>>, %arg5: memref<1x128xf32, #tpu.memory_space<vmem>>, %arg6: memref<18x128xbf16, #tpu.memory_space<vmem>>) attributes {dimension_semantics = [#tpu.dimension_semantics<parallel>], iteration_bounds = array<i64: 1>, scalar_prefetch = 0 : i64, scratch_operands = 0 : i64, tpu.core_type = #tpu.core_type<tc>, window_params = [{transform_indices = @transform_0, window_bounds = array<i64: 18, 128>}, {pipeline_mode = #tpu.pipeline_mode<synchronous>, transform_indices = @transform_1, window_bounds = array<i64: 128, 100>}, {pipeline_mode = #tpu.pipeline_mode<synchronous>, transform_indices = @transform_2, window_bounds = array<i64: 1, 100>}, {pipeline_mode = #tpu.pipeline_mode<synchronous>, transform_indices = @transform_3, window_bounds = array<i64: 100, 128>}, {pipeline_mode = #tpu.pipeline_mode<synchronous>, transform_indices = @transform_4, window_bounds = array<i64: 1, 128>}, {transform_indices = @transform_5, window_bounds = array<i64: 18, 128>}]} {
    %c0 = arith.constant 0 : index
    %c0_0 = arith.constant 0 : index
    %0 = vector.load %arg1[%c0, %c0_0] : memref<18x128xbf16, #tpu.memory_space<vmem>>, vector<18x128xbf16>
    %c0_1 = arith.constant 0 : index
    %c0_2 = arith.constant 0 : index
    %1 = vector.load %arg2[%c0_1, %c0_2] : memref<128x100xbf16, #tpu.memory_space<vmem>>, vector<128x100xbf16>
    %cst = arith.constant dense<0.000000e+00> : vector<18x100xf32>
    %2 = tpu.matmul %0, %1, %cst {dimension_numbers = #tpu.dot_dimension_numbers<[1], [0], [0], [1], [0, 0, 1, 1], [], []>} : vector<18x128xbf16>, vector<128x100xbf16>, vector<18x100xf32> -> vector<18x100xf32>
    %c0_3 = arith.constant 0 : index
    %c0_4 = arith.constant 0 : index
    %3 = vector.load %arg3[%c0_3, %c0_4] : memref<1x100xf32, #tpu.memory_space<vmem>>, vector<1x100xf32>
    %4 = vector.broadcast %3 : vector<1x100xf32> to vector<18x100xf32>
    %5 = arith.addf %2, %4 : vector<18x100xf32>
    %cst_5 = arith.constant 0.000000e+00 : f32
    %6 = vector.broadcast %cst_5 : f32 to vector<18x100xf32>
    %7 = arith.maximumf %5, %6 : vector<18x100xf32>
    %8 = arith.truncf %7 : vector<18x100xf32> to vector<18x100xbf16>
    %c0_6 = arith.constant 0 : index
    %c0_7 = arith.constant 0 : index
    %9 = vector.load %arg4[%c0_6, %c0_7] : memref<100x128xbf16, #tpu.memory_space<vmem>>, vector<100x128xbf16>
    %cst_8 = arith.constant dense<0.000000e+00> : vector<18x128xf32>
    %10 = tpu.matmul %8, %9, %cst_8 {dimension_numbers = #tpu.dot_dimension_numbers<[1], [0], [0], [1], [0, 0, 1, 1], [], []>} : vector<18x100xbf16>, vector<100x128xbf16>, vector<18x128xf32> -> vector<18x128xf32>
    %c0_9 = arith.constant 0 : index
    %c0_10 = arith.constant 0 : index
    %11 = vector.load %arg5[%c0_9, %c0_10] : memref<1x128xf32, #tpu.memory_space<vmem>>, vector<1x128xf32>
    %12 = vector.broadcast %11 : vector<1x128xf32> to vector<18x128xf32>
    %13 = arith.addf %10, %12 : vector<18x128xf32>
    %14 = arith.truncf %13 : vector<18x128xf32> to vector<18x128xbf16>
    %c0_11 = arith.constant 0 : index
    %c0_12 = arith.constant 0 : index
    %15 = vector.load %arg6[%c0_11, %c0_12] : memref<18x128xbf16, #tpu.memory_space<vmem>>, vector<18x128xbf16>
    tpu.vector_store %arg6[%c0_11, %c0_12], %14 {strides = array<i32>} : memref<18x128xbf16, #tpu.memory_space<vmem>>, vector<18x128xbf16>,
    return
  }
  func.func @transform_0(%arg0: i32) -> (i32, i32) {
    %c0_i32 = arith.constant 0 : i32
    %c0_i32_0 = arith.constant 0 : i32
    return %arg0, %c0_i32 : i32, i32
  }
  func.func @transform_1(%arg0: i32) -> (i32, i32) {
    %c0_i32 = arith.constant 0 : i32
    %c0_i32_0 = arith.constant 0 : i32
    %c0_i32_1 = arith.constant 0 : i32
    return %c0_i32, %c0_i32_0 : i32, i32
  }
  func.func @transform_2(%arg0: i32) -> (i32, i32) {
    %c0_i32 = arith.constant 0 : i32
    %c0_i32_0 = arith.constant 0 : i32
    %c0_i32_1 = arith.constant 0 : i32
    return %c0_i32, %c0_i32_0 : i32, i32
  }
  func.func @transform_3(%arg0: i32) -> (i32, i32) {
    %c0_i32 = arith.constant 0 : i32
    %c0_i32_0 = arith.constant 0 : i32
    %c0_i32_1 = arith.constant 0 : i32
    return %c0_i32, %c0_i32_0 : i32, i32
  }
  func.func @transform_4(%arg0: i32) -> (i32, i32) {
    %c0_i32 = arith.constant 0 : i32
    %c0_i32_0 = arith.constant 0 : i32
    %c0_i32_1 = arith.constant 0 : i32
    return %c0_i32, %c0_i32_0 : i32, i32
  }
  func.func @transform_5(%arg0: i32) -> (i32, i32) {
    %c0_i32 = arith.constant 0 : i32
    %c0_i32_0 = arith.constant 0 : i32
    return %arg0, %c0_i32 : i32, i32
  }
}

module attributes {stable_mosaic.version = 11 : i64} {
  func.func @_linear_kernel(%arg0: i32, %arg1: i32, %arg2: i32, %arg3: memref<18x128xbf16, #tpu.memory_space<vmem>>, %arg4: memref<128x56xbf16, #tpu.memory_space<vmem>>, %arg5: memref<1x56xf32, #tpu.memory_space<vmem>>, %arg6: memref<18x56xf32, #tpu.memory_space<vmem>>, %arg7: memref<18x56xf32, #tpu.memory_space<vmem>>) attributes {dimension_semantics = [#tpu.dimension_semantics<parallel>, #tpu.dimension_semantics<parallel>, #tpu.dimension_semantics<arbitrary>], iteration_bounds = array<i64: 1, 1, 1>, scalar_prefetch = 0 : i64, scratch_operands = 1 : i64, tpu.core_type = #tpu.core_type<tc>, window_params = [{transform_indices = @transform_0, window_bounds = array<i64: 18, 128>}, {transform_indices = @transform_1, window_bounds = array<i64: 128, 56>}, {transform_indices = @transform_2, window_bounds = array<i64: 1, 56>}, {transform_indices = @transform_3, window_bounds = array<i64: 18, 56>}]} {
    %c0_i32 = arith.constant 0 : i32
    %0 = arith.cmpi eq, %arg2, %c0_i32 : i32
    %1 = arith.extui %0 : i1 to i32
    %c0_i32_0 = arith.constant 0 : i32
    %2 = arith.cmpi ne, %1, %c0_i32_0 : i32
    scf.if %2 {
      %cst_10 = arith.constant 0.000000e+00 : f32
      %12 = vector.broadcast %cst_10 : f32 to vector<18x56xf32>
      %c0_11 = arith.constant 0 : index
      %c0_12 = arith.constant 0 : index
      %13 = vector.load %arg7[%c0_11, %c0_12] : memref<18x56xf32, #tpu.memory_space<vmem>>, vector<18x56xf32>
      tpu.vector_store %arg7[%c0_11, %c0_12], %12 {strides = array<i32>} : memref<18x56xf32, #tpu.memory_space<vmem>>, vector<18x56xf32>,
    } else {
    }
    %c0 = arith.constant 0 : index
    %c0_1 = arith.constant 0 : index
    %3 = vector.load %arg7[%c0, %c0_1] : memref<18x56xf32, #tpu.memory_space<vmem>>, vector<18x56xf32>
    %c0_2 = arith.constant 0 : index
    %c0_3 = arith.constant 0 : index
    %4 = vector.load %arg3[%c0_2, %c0_3] : memref<18x128xbf16, #tpu.memory_space<vmem>>, vector<18x128xbf16>
    %c0_4 = arith.constant 0 : index
    %c0_5 = arith.constant 0 : index
    %5 = vector.load %arg4[%c0_4, %c0_5] : memref<128x56xbf16, #tpu.memory_space<vmem>>, vector<128x56xbf16>
    %cst = arith.constant dense<0.000000e+00> : vector<18x56xf32>
    %6 = tpu.matmul %4, %5, %cst {dimension_numbers = #tpu.dot_dimension_numbers<[1], [0], [0], [1], [0, 0, 1, 1], [], []>} : vector<18x128xbf16>, vector<128x56xbf16>, vector<18x56xf32> -> vector<18x56xf32>
    %7 = arith.addf %3, %6 : vector<18x56xf32>
    %c0_6 = arith.constant 0 : index
    %c0_7 = arith.constant 0 : index
    %8 = vector.load %arg7[%c0_6, %c0_7] : memref<18x56xf32, #tpu.memory_space<vmem>>, vector<18x56xf32>
    tpu.vector_store %arg7[%c0_6, %c0_7], %7 {strides = array<i32>} : memref<18x56xf32, #tpu.memory_space<vmem>>, vector<18x56xf32>,
    %c0_i32_8 = arith.constant 0 : i32
    %9 = arith.cmpi eq, %arg2, %c0_i32_8 : i32
    %10 = arith.extui %9 : i1 to i32
    %c0_i32_9 = arith.constant 0 : i32
    %11 = arith.cmpi ne, %10, %c0_i32_9 : i32
    scf.if %11 {
      %c0_10 = arith.constant 0 : index
      %c0_11 = arith.constant 0 : index
      %12 = vector.load %arg7[%c0_10, %c0_11] : memref<18x56xf32, #tpu.memory_space<vmem>>, vector<18x56xf32>
      %c0_12 = arith.constant 0 : index
      %c0_13 = arith.constant 0 : index
      %13 = vector.load %arg5[%c0_12, %c0_13] : memref<1x56xf32, #tpu.memory_space<vmem>>, vector<1x56xf32>
      %14 = vector.broadcast %13 : vector<1x56xf32> to vector<18x56xf32>
      %15 = arith.addf %12, %14 : vector<18x56xf32>
      %c0_14 = arith.constant 0 : index
      %c0_15 = arith.constant 0 : index
      %16 = vector.load %arg6[%c0_14, %c0_15] : memref<18x56xf32, #tpu.memory_space<vmem>>, vector<18x56xf32>
      tpu.vector_store %arg6[%c0_14, %c0_15], %15 {strides = array<i32>} : memref<18x56xf32, #tpu.memory_space<vmem>>, vector<18x56xf32>,
    } else {
    }
    return
  }
  func.func @transform_0(%arg0: i32, %arg1: i32, %arg2: i32) -> (i32, i32) {
    %c0_i32 = arith.constant 0 : i32
    return %arg0, %arg2 : i32, i32
  }
  func.func @transform_1(%arg0: i32, %arg1: i32, %arg2: i32) -> (i32, i32) {
    %c0_i32 = arith.constant 0 : i32
    return %arg2, %arg1 : i32, i32
  }
  func.func @transform_2(%arg0: i32, %arg1: i32, %arg2: i32) -> (i32, i32) {
    %c0_i32 = arith.constant 0 : i32
    %c0_i32_0 = arith.constant 0 : i32
    return %c0_i32, %arg1 : i32, i32
  }
  func.func @transform_3(%arg0: i32, %arg1: i32, %arg2: i32) -> (i32, i32) {
    %c0_i32 = arith.constant 0 : i32
    return %arg0, %arg1 : i32, i32
  }
}

</mosaic_0001>

<bundles_post_ra>
// kernel: seq2seq_forward.50
= control target key start
LH: loop header
LB: loop body
LE: loop exit
PB: predicated region body
PF: predicated region fallthrough
CT: control target
= control target key end

     0   :  { %s270_s9 = smov 0   ;;  %s293_s0 = inlined_call_operand.vmem [shape: bf16[2,9,128], index: 0, kind: input, shape index: {}]   ;;  %s294_s1 = inlined_call_operand.vmem [shape: f32[1,9,128], index: 1, kind: input, shape index: {}]   ;;  %s295_s2 = inlined_call_operand.vmem [shape: bf16[2,9,128], index: 2, kind: output, shape index: {}]  }
   0x1 LB: > { %s222_s10 = sadd.s32 4294967295, %s253_s9   ;;  %p226_p0 = scmp.ge.s32.totalorder %s253_s9, 1  ;;  %s253_s9 = sphi %s270_s9, %s12_s9  }
   0x2   : > { %p112_p1 = scmp.lt.s32.totalorder %s253_s9, 3 }
   0x4   : > { %p113_p2 = pnand %p226_p0, %p112_p1 }
   0x5   : > { %p134_p3 = scmp.lt.s32.totalorder (!%p113_p2), %s222_s10, 1 }
   0x6   : > { %116 = sbr.rel (%p113_p2) target bundleno = 23 (0x17), region = 28 }
   0xb   : > { %s297_s10 = smov (!%p134_p3, %s222_s10), 1  ;;  %v148_v0 = vld [vmem:[%s294_s1] sm:$0xff]  ;;  %v149_v3 = vld [vmem:[%s294_s1 + $0x8] sm:$0x1]  ;;  %vm161_vm0 = vcmask 1040384  }
   0xc   : > { %s235_s11 = sshll.u32 %s297_s10, 3  ;;  %vm162_vm1 = vsmask.f32 256 }
   0xd   : > { %s138_s14 = scalar_lea.vmem %s293_s0, %s235_s11  ;;  %s143_s21 = scalar_lea.vmem %s295_s2, %s235_s11  ;;  %vm163_vm2 = vmand %vm161_vm0, %vm162_vm1 }
   0xe   : > { %v144_v1 = vld [vmem:[%s138_s14] sm:$0xf]  ;;  %v145_v2 = vld [vmem:[%s138_s14 + $0x4] sm:$0x1] }
   0xf   : > { %v146_v4 = vunpack.c.l.bf16 %v144_v1  ;;  %v147_v5 = vunpack.c.l.bf16 %v145_v2  ;;  %v164_v8 = vld [vmem:[%s143_s21 + $0x4] sm:$0x1] }
  0x11   : > { %v150_v6 = vadd.f32 %v148_v0, %v146_v4  ;;  %v151_v7 = vadd.f32 %v149_v3, %v147_v5 }
  0x13   : > { %v237_v9 = vpack.c.bf16 %v150_v6, %v150_v6  ;;  %v238_v10 = vpack.c.bf16 %v151_v7, %v151_v7 }
  0x15   : > { %160 = vst [vmem:[%s143_s21] sm:$0xf] %v237_v9  ;;  %v165_v11 = vsel %vm163_vm2, %v238_v10, %v164_v8 }
  0x16   : > { %166 = vst [vmem:[%s143_s21 + $0x4] sm:$0x1] %v165_v11 }
  0x17 PF: > { %s12_s9 = sadd.s32 1, %s253_s9  }
  0x18   : > { %p9_p4 = scmp.ge.s32.totalorder %s12_s9, 4  }
  0x1a   :  { %11 = sbr.rel (!%p9_p4) target bundleno = 1 (0x1), region = 58 }

// kernel: seq2seq_forward.53
= control target key start
LH: loop header
LB: loop body
LE: loop exit
PB: predicated region body
PF: predicated region fallthrough
CT: control target
= control target key end

     0   :  { %v255_v1 = vmov 0.0   ;;  %s315_s1 = inlined_call_operand.vmem [shape: bf16[128,128], index: 1, kind: input, shape index: {}]   ;;  %s316_s0 = inlined_call_operand.vmem [shape: bf16[18,128], index: 0, kind: input, shape index: {}]   ;;  %s317_s2 = inlined_call_operand.vmem [shape: f32[1,128], index: 2, kind: input, shape index: {}]   ;;  %s318_s3 = inlined_call_operand.vmem [shape: bf16[18,128], index: 3, kind: output, shape index: {}]  }
   0x1   :  { %v245_v0 = vld [vmem:[%s315_s1 + $0x38] sm:$0xff]   ;;  %21 = vst [vmem:[#allocation2 + $0x8] sm:$0x3] %v255_v1  ;;  %v246_v2 = vld [vmem:[%s315_s1 + $0x30] sm:$0xff]   ;;  %v247_v3 = vld [vmem:[%s315_s1 + $0x28] sm:$0xff]  }
   0x2   :  { %224 = vmatprep.subr.bf16.mxu0 %v245_v0  ;;  %v248_v4 = vld [vmem:[%s315_s1 + $0x20] sm:$0xff]   ;;  %v249_v6 = vld [vmem:[%s315_s1 + $0x18] sm:$0xff]   ;;  %v250_v7 = vld [vmem:[%s315_s1 + $0x10] sm:$0xff]  }
   0x3   :  { %225 = vmatpush3.bf16.msra.mxu0 %v245_v0  ;;  %v253_v5 = vld [vmem:[%s316_s0] sm:$0xff]   ;;  %v251_v8 = vld [vmem:[%s315_s1 + $0x8] sm:$0xff]  }
   0x4   :  { %226 = vmatprep.subr.bf16.mxu0 %v246_v2  ;;  %240 = vmatprep.mubr.bf16.mxu0 %v253_v5  ;;  %v252_v9 = vld [vmem:[%s315_s1] sm:$0xff]   ;;  %v254_v10 = vld [vmem:[%s316_s0 + $0x8] ss:$0 sps:$4 sm:$0x11]  }
   0x5   :  { %v202_v16 = vld [vmem:[%s317_s2] ss:$0 sm:$0xff] }
   0x7   :  { %227 = vmatpush3.bf16.msra.mxu0 %v246_v2 }
   0x8   :  { %228 = vmatprep.subr.bf16.mxu0 %v247_v3  ;;  %v24_v11 = vld [vmem:[#allocation2 + $0x8] sm:$0x3] }
   0xb   :  { %229 = vmatpush3.bf16.msra.mxu0 %v247_v3 }
   0xc   :  { %230 = vmatprep.subr.bf16.mxu0 %v248_v4 }
   0xf   :  { %231 = vmatpush3.bf16.msra.mxu0 %v248_v4 }
  0x10   :  { %232 = vmatprep.subr.bf16.mxu0 %v249_v6 }
  0x13   :  { %233 = vmatpush3.bf16.msra.mxu0 %v249_v6 }
  0x14   :  { %234 = vmatprep.subr.bf16.mxu0 %v250_v7 }
  0x17   :  { %235 = vmatpush3.bf16.msra.mxu0 %v250_v7 }
  0x18   :  { %236 = vmatprep.subr.bf16.mxu0 %v251_v8 }
  0x1b   :  { %237 = vmatpush3.bf16.msra.mxu0 %v251_v8 }
  0x1c   :  { %238 = vmatprep.subr.bf16.mxu0 %v252_v9 }
  0x1f   :  { %239 = vmatpush3.bf16.msra.mxu0 %v252_v9 }
  0x22   :  { %241 = vmatmul.mubr.bf16.vlgmr.msra.gmra.mxu0 %v254_v10 }
  0xe2   :  { %v242_v12 = vpop.f32.mrf.mxu0 }
  0xe3   :  { %v152_v13 = vadd.f32 %v242_v12, %v24_v11 }
  0xe4   :  { %v136_v14 = vpop.f32.mrf.mxu0 }
  0xe5   :  { %155 = vst [vmem:[#allocation2 + $0x8] sm:$0x3] %v152_v13  ;;  %v169_v18 = vadd.f32 %v202_v16, %v136_v14 }
  0xe6   :  { %v243_v15 = vpop.f32.mrf.mxu0 }
  0xe8   :  { %v139_v17 = vpop.f32.mrf.mxu0 }
  0xe9   :  { %v170_v19 = vadd.f32 %v202_v16, %v139_v17 }
  0xeb   :  { %v212_v22 = vpack.c.bf16 %v170_v19, %v169_v18 }
  0xec   :  { %v161_v20 = vld [vmem:[#allocation2 + $0x8] sm:$0x3] }
  0xed   :  { %v171_v21 = vadd.f32 %v202_v16, %v161_v20  ;;  %213 = vst [vmem:[%s318_s3] sm:$0xff] %v212_v22  }
  0xef   :  { %v208_v23 = vpack.c.bf16 %v171_v21, %v171_v21 }
  0xf1   :  { %187 = vst [vmem:[%s318_s3 + $0x8] sm:$0x1] %v208_v23 }

// kernel: seq2seq_forward.51
= control target key start
LH: loop header
LB: loop body
LE: loop exit
PB: predicated region body
PF: predicated region fallthrough
CT: control target
= control target key end

     0   :  { %v512_v1 = vmov 0   ;;  %v513_v2 = vmov 0.0   ;;  %v341_v28 = vlaneseq  ;;  %s635_s1 = inlined_call_operand.vmem [shape: bf16[128,384], index: 1, kind: input, shape index: {}]   ;;  %s636_s0 = inlined_call_operand.vmem [shape: bf16[18,128], index: 0, kind: input, shape index: {}]   ;;  %s637_s2 = inlined_call_operand.vmem [shape: f32[1,384], index: 2, kind: input, shape index: {}]   ;;  %s638_s3 = inlined_call_operand.vmem [shape: bf16[18,384], index: 3, kind: output, shape index: {}]  }
   0x1   :  { %v478_v0 = vld [vmem:[%s635_s1 + $0xac] ss:$12 sps:$4 sm:$0xff]   ;;  %242 = vmatprep.mubr.bf16.mxu0 %v512_v1  ;;  %25 = vst [vmem:[#allocation2 + $0x40] sm:$0x3] %v513_v2  ;;  %26 = vst [vmem:[#allocation2 + $0x38] sm:$0x3] %v513_v2 }
   0x2   :  { %27 = vst [vmem:[#allocation2 + $0x8] sm:$0x3] %v513_v2  ;;  %v480_v3 = vld [vmem:[%s635_s1 + $0xb0] ss:$12 sps:$4 sm:$0xff]   ;;  %210 = vmatprep.subr.bf16.mxu0 %v478_v0  ;;  %v481_v4 = vld [vmem:[%s635_s1 + $0xa8] ss:$12 sps:$4 sm:$0xff]  }
   0x3   :  { %456 = vmatprep.subr.bf16.mxu1 %v480_v3  ;;  %v482_v5 = vld [vmem:[%s635_s1 + $0x94] ss:$12 sps:$4 sm:$0xff]   ;;  %211 = vmatpush1.bf16.msra.mxu0 %v481_v4  ;;  %v484_v6 = vld [vmem:[%s635_s1 + $0x98] ss:$12 sps:$4 sm:$0xff]   ;;  %v485_v7 = vld [vmem:[%s635_s1 + $0x90] ss:$12 sps:$4 sm:$0xff]  }
   0x4   :  { %457 = vmatpush3.bf16.msra.mxu1 %v480_v3  ;;  %212 = vmatprep.subr.bf16.mxu0 %v482_v5  ;;  %v486_v8 = vld [vmem:[%s635_s1 + $0x7c] ss:$12 sps:$4 sm:$0xff]   ;;  %v488_v9 = vld [vmem:[%s635_s1 + $0x80] ss:$12 sps:$4 sm:$0xff]   ;;  %v489_v10 = vld [vmem:[%s635_s1 + $0x78] ss:$12 sps:$4 sm:$0xff]  }
   0x5   :  { %458 = vmatprep.subr.bf16.mxu1 %v484_v6  ;;  %v490_v11 = vld [vmem:[%s635_s1 + $0x64] ss:$12 sps:$4 sm:$0xff]   ;;  %v492_v12 = vld [vmem:[%s635_s1 + $0x68] ss:$12 sps:$4 sm:$0xff]   ;;  %v493_v13 = vld [vmem:[%s635_s1 + $0x60] ss:$12 sps:$4 sm:$0xff]  }
   0x6   :  { %v494_v14 = vld [vmem:[%s635_s1 + $0x4c] ss:$12 sps:$4 sm:$0xff]   ;;  %v496_v15 = vld [vmem:[%s635_s1 + $0x50] ss:$12 sps:$4 sm:$0xff]   ;;  %v497_v16 = vld [vmem:[%s635_s1 + $0x48] ss:$12 sps:$4 sm:$0xff]  }
   0x7   :  { %213 = vmatpush1.bf16.msra.mxu0 %v485_v7  ;;  %v498_v17 = vld [vmem:[%s635_s1 + $0x34] ss:$12 sps:$4 sm:$0xff]   ;;  %v500_v18 = vld [vmem:[%s635_s1 + $0x38] ss:$12 sps:$4 sm:$0xff]   ;;  %v501_v19 = vld [vmem:[%s635_s1 + $0x30] ss:$12 sps:$4 sm:$0xff]  }
   0x8   :  { %459 = vmatpush3.bf16.msra.mxu1 %v484_v6  ;;  %214 = vmatprep.subr.bf16.mxu0 %v486_v8  ;;  %v510_v20 = vld [vmem:[%s636_s0] sm:$0xff]   ;;  %v502_v21 = vld [vmem:[%s635_s1 + $0x1c] ss:$12 sps:$4 sm:$0xff]   ;;  %v342_v29 = vshrl.u32 %v341_v28, 7  ;;  %v35_v54 = vld [vmem:[#allocation2 + $0x38] sm:$0x3] }
   0x9   :  { %460 = vmatprep.subr.bf16.mxu1 %v488_v9  ;;  %v504_v22 = vld [vmem:[%s635_s1 + $0x20] ss:$12 sps:$4 sm:$0xff]   ;;  %472 = vmatprep.mubr.bf16.mxu1 %v510_v20  ;;  %v505_v23 = vld [vmem:[%s635_s1 + $0x18] ss:$12 sps:$4 sm:$0xff]   ;;  %v508_v25 = vld [vmem:[%s635_s1 + $0x8] ss:$12 sps:$4 sm:$0xff]  }
   0xa   :  { %v506_v24 = vld [vmem:[%s635_s1 + $0x4] ss:$12 sps:$4 sm:$0xff]   ;;  %v509_v26 = vld [vmem:[%s635_s1] ss:$12 sps:$4 sm:$0xff]   ;;  %v343_v30 = vsub.s32 0, %v342_v29  ;;  %v351_v32 = vsub.s32 2, %v342_v29 }
   0xb   :  { %215 = vmatpush1.bf16.msra.mxu0 %v489_v10  ;;  %v511_v27 = vld [vmem:[%s636_s0 + $0x8] ss:$0 sps:$4 sm:$0x11]   ;;  %v339_v31 = vld [vmem:[%s637_s2] sm:$0x7]  ;;  %v347_v33 = vsub.s32 1, %v342_v29 }
   0xc   :  { %461 = vmatpush3.bf16.msra.mxu1 %v488_v9  ;;  %216 = vmatprep.subr.bf16.mxu0 %v490_v11  ;;  %v36_v34 = vld [vmem:[#allocation2 + $0x8] sm:$0x3]  ;;  %v344_v36 = vrot.slane %v339_v31, %v343_v30  ;;  %v352_v39 = vrot.slane %v339_v31, %v351_v32  ;;  %v34_v50 = vld [vmem:[#allocation2 + $0x40] sm:$0x3] }
   0xd   :  { %462 = vmatprep.subr.bf16.mxu1 %v492_v12  ;;  %v348_v40 = vrot.slane %v339_v31, %v347_v33 }
   0xf   :  { %217 = vmatpush1.bf16.msra.mxu0 %v493_v13 }
  0x10   :  { %463 = vmatpush3.bf16.msra.mxu1 %v492_v12  ;;  %218 = vmatprep.subr.bf16.mxu0 %v494_v14 }
  0x11   :  { %464 = vmatprep.subr.bf16.mxu1 %v496_v15 }
  0x13   :  { %219 = vmatpush1.bf16.msra.mxu0 %v497_v16 }
  0x14   :  { %465 = vmatpush3.bf16.msra.mxu1 %v496_v15  ;;  %220 = vmatprep.subr.bf16.mxu0 %v498_v17 }
  0x15   :  { %466 = vmatprep.subr.bf16.mxu1 %v500_v18 }
  0x17   :  { %221 = vmatpush1.bf16.msra.mxu0 %v501_v19 }
  0x18   :  { %467 = vmatpush3.bf16.msra.mxu1 %v500_v18  ;;  %222 = vmatprep.subr.bf16.mxu0 %v502_v21 }
  0x19   :  { %468 = vmatprep.subr.bf16.mxu1 %v504_v22 }
  0x1b   :  { %223 = vmatpush1.bf16.msra.mxu0 %v505_v23 }
  0x1c   :  { %469 = vmatpush3.bf16.msra.mxu1 %v504_v22  ;;  %224 = vmatprep.subr.bf16.mxu0 %v506_v24 }
  0x1d   :  { %470 = vmatprep.subr.bf16.mxu1 %v508_v25 }
  0x1f   :  { %225 = vmatpush1.bf16.msra.mxu0 %v509_v26 }
  0x20   :  { %471 = vmatpush3.bf16.msra.mxu1 %v508_v25 }
  0x22   :  { %243 = vmatmul.mubr.bf16.vlgmr.msra.gmra.mxu0 %v510_v20 }
  0x23   :  { %473 = vmatmul.mubr.bf16.vlgmr.msra.gmra.mxu1 %v511_v27  ;;  %252 = vmatprep.mubr.bf16.mxu0 %v512_v1 }
  0x2a   :  { %253 = vmatmul.mubr.bf16.gmra.mxu0 %v511_v27 }
  0xe2   :  { %v244_v35 = vpop.f32.mrf.mxu0 }
  0xe3   :  { %v474_v37 = vpop.f32.mrf.mxu1  ;;  %v356_v45 = vadd.f32 %v344_v36, %v244_v35 }
  0xe4   :  { %v317_v38 = vadd.f32 %v474_v37, %v36_v34  ;;  %v246_v41 = vpop.f32.mrf.mxu0 }
  0xe5   :  { %v295_v42 = vpop.f32.mrf.mxu1  ;;  %v357_v46 = vadd.f32 %v348_v40, %v246_v41 }
  0xe6   :  { %326 = vst [vmem:[#allocation2 + $0x8] sm:$0x3] %v317_v38  ;;  %v248_v43 = vpop.f32.mrf.mxu0  ;;  %v358_v47 = vadd.f32 %v352_v39, %v295_v42 }
  0xe7   :  { %v475_v44 = vpop.f32.mrf.mxu1  ;;  %v440_v51 = vpack.c.bf16 %v357_v46, %v356_v45  ;;  %v359_v55 = vadd.f32 %v344_v36, %v248_v43 }
  0xe8   :  { %v250_v48 = vpop.f32.mrf.mxu0  ;;  %v441_v52 = vpack.c.bf16 %v358_v47, %v358_v47 }
  0xe9   :  { %v298_v49 = vpop.f32.mrf.mxu1  ;;  %398 = vst [vmem:[%s638_s3] sm:$0xff] %v440_v51  ;;  %v360_v56 = vadd.f32 %v348_v40, %v250_v48 }
  0xea   :  { %v254_v53 = vpop.f32.mrf.mxu0  ;;  %399 = vst [vmem:[%s638_s3 + $0x8] sm:$0xf] %v441_v52  ;;  %v361_v59 = vadd.f32 %v352_v39, %v298_v49 }
  0xeb   :  { %v315_v57 = vadd.f32 %v254_v53, %v34_v50  ;;  %v442_v62 = vpack.c.bf16 %v360_v56, %v359_v55 }
  0xec   :  { %v256_v60 = vpop.f32.mrf.mxu0  ;;  %v443_v0 = vpack.c.bf16 %v361_v59, %v361_v59 }
  0xed   :  { %v338_v58 = vld [vmem:[#allocation2 + $0x8] sm:$0x3]  ;;  %324 = vst [vmem:[#allocation2 + $0x40] sm:$0x3] %v315_v57  ;;  %v316_v63 = vadd.f32 %v256_v60, %v35_v54  ;;  %400 = vst [vmem:[%s638_s3 + $0xc] sm:$0xff] %v442_v62 }
  0xee   :  { %v364_v61 = vadd.f32 %v352_v39, %v338_v58  ;;  %v258_v1 = vpop.f32.mrf.mxu0  ;;  %401 = vst [vmem:[%s638_s3 + $0x14] sm:$0xf] %v443_v0 }
  0xef   :  { %325 = vst [vmem:[#allocation2 + $0x38] sm:$0x3] %v316_v63 }
  0xf0   :  { %v445_v2 = vpack.c.bf16 %v364_v61, %v364_v61  ;;  %v259_v3 = vpop.f32.mrf.mxu0 }
  0xf2   :  { %403 = vst [vmem:[%s638_s3 + $0x20] sm:$0x1] %v445_v2 }
  0xf4   :  { %v336_v4 = vld [vmem:[#allocation2 + $0x40] sm:$0x3] }
  0xf5   :  { %v362_v6 = vadd.f32 %v344_v36, %v336_v4 }
  0xf6   :  { %v337_v5 = vld [vmem:[#allocation2 + $0x38] sm:$0x3] }
  0xf7   :  { %v363_v7 = vadd.f32 %v348_v40, %v337_v5 }
  0xf9   :  { %v444_v8 = vpack.c.bf16 %v363_v7, %v362_v6 }
  0xfb   :  { %402 = vst [vmem:[%s638_s3 + $0x18] sm:$0x11] %v444_v8 }

// kernel: seq2seq_forward.52
= control target key start
LH: loop header
LB: loop body
LE: loop exit
PB: predicated region body
PF: predicated region fallthrough
CT: control target
= control target key end

     0   :  { %s1709_s12 = smov 0   ;;  %s1999_s0 = inlined_call_operand.vmem [shape: bf16[2,9,384], index: 0, kind: input, shape index: {}]   ;;  %s2000_s1 = inlined_call_operand.vmem [shape: f32[9,9], index: 1, kind: input, shape index: {}]   ;;  %s2001_s2 = inlined_call_operand.vmem [shape: f32[2,1,9], index: 2, kind: input, shape index: {}]   ;;  %s2002_s3 = inlined_call_operand.vmem [shape: bf16[2,9,128], index: 3, kind: output, shape index: {}]  }
   0x1 LB: > { %s1386_s13 = sadd.s32 4294967295, %s1677_s12   ;;  %p1390_p0 = scmp.ge.s32.totalorder %s1677_s12, 1  ;;  %s1677_s12 = sphi %s1709_s12, %s13_s12  }
   0x2   : > { %p145_p1 = scmp.lt.s32.totalorder %s1677_s12, 3 }
   0x4   : > { %p146_p2 = pnand %p1390_p0, %p145_p1 }
   0x5   : > { %p172_p3 = scmp.lt.s32.totalorder (!%p146_p2), %s1386_s13, 1  ;;  %s1681_s18 = smov (!%p146_p2), 112  }
   0x6   : > { %149 = sbr.rel (%p146_p2) target bundleno = 1164 (0x48c), region = 32  ;;  %s1682_s19 = smov (!%p146_p2), 96  }
   0x7   : > { %s1683_s20 = smov (!%p146_p2), 80   ;;  %s1684_s21 = smov (!%p146_p2), 64  }
   0x8   : > { %s1685_s22 = smov (!%p146_p2), 48   ;;  %s1686_s23 = smov (!%p146_p2), 32  }
   0x9   : > { %s1687_s24 = smov (!%p146_p2), 16  }
   0xb   : > { %v1679_v0 = vmov 0.0   ;;  %vm1680_vm0 = vmmov 0   ;;  %s2004_s13 = smov (!%p172_p3, %s1386_s13), 1  ;;  %vm209_vm1 = vcmask 130048   ;;  %v190_v4 = vld [vmem:[%s2000_s1] sm:$0xff]  ;;  %vm261_vm2 = vcmask 72704  }
   0xc   : > { %1453 = vmatprep.subr.bf16.mxu0 %v1679_v0  ;;  %1455 = vmatprep.mubr.msk.bf16.mxu0 %vm1680_vm0, %v1679_v0  ;;  %s1549_s14 = smul.u32 24, %s2004_s13  ;;  %s179_s27 = scalar_lea.vmem %s2001_s2, %s2004_s13  ;;  %v191_v8 = vld [vmem:[%s2000_s1 + $0x8] sm:$0x1]  ;;  %vm265_vm3 = vcmask 65536   ;;  %vm290_vm4 = vcmask 1043456   ;;  %vm291_vm5 = vcmask 1044480  }
   0xd   : > { %1459 = vmatprep.subr.bf16.mxu1 %v1679_v0  ;;  %1461 = vmatprep.mubr.msk.bf16.mxu1 %vm1680_vm0, %v1679_v0  ;;  %v1394_v5 = vld [vmem:[%s179_s27] ss:$0 sm:$0xff]  ;;  %v1688_v20 = vmov 65535   ;;  %vm1289_vm6 = vcmask 261120   ;;  %vm1292_vm7 = vcmask 392192   ;;  %vm1295_vm8 = vcmask 523264  }
   0xe   : > { %s1729_s17 = scalar_lea.vmem %s1999_s0, %s1549_s14  ;;  %v1755_v6 = vadd.f32 %v1394_v5, %v190_v4  ;;  %v1761_v12 = vadd.f32 %v1394_v5, %v191_v8  ;;  %v292_v21 = vsel %vm290_vm4, 4294967295, %v1688_v20  ;;  %vm1298_vm9 = vcmask 654336   ;;  %s1418_s5 = sshll.u32 %s2004_s13, 3 }
   0xf   : > { %v1603_v1 = vld [vmem:[%s1729_s17 + $0x4] ss:$12 sps:$4 sm:$0x1f]   ;;  %v1605_v3 = vld [vmem:[%s1729_s17] ss:$12 sps:$4 sm:$0x1f]   ;;  %s184_s8 = scalar_lea.vmem %s2002_s3, %s1418_s5 }
  0x10   : > { %v214_v2 = vsel %vm209_vm1, %v1603_v1, 0  ;;  %344 = vrot.lane.b32.xlu1 %v1603_v1, %s1681_s18  ;;  %v1767_v19 = vld [vmem:[%s1729_s17 + $0x8] ss:$12 sps:$4 sm:$0x1f]   ;;  %v1769_v22 = vsel %vm291_vm5, %v292_v21, 0  ;;  %vm1301_vm10 = vcmask 785408  }
  0x11   : > { %1454 = vmatpush3.bf16.xpose.msra.mxu0 %v214_v2  ;;  %v295_v23 = vand.u32 %v1767_v19, %v1769_v22  ;;  %vm1304_vm11 = vcmask 916480   ;;  %vm1316_vm12 = vcmask 1040384   ;;  %vm1317_vm13 = vsmask.f32 256 }
  0x12   : > { %1471 = vmatprep.subr.bf16.mxu0 %v1679_v0  ;;  %vm1318_vm14 = vmand %vm1316_vm12, %vm1317_vm13 }
  0x13   : > { %1460 = vmatpush3.bf16.msra.mxu1 %v295_v23 }
  0x14   : > { %342 = vrot.lane.b32.xlu1 %v1605_v3, %s1681_s18  ;;  %1465 = vmatprep.subr.bf16.mxu1 %v1679_v0 }
  0x18   : > { %1456 = vmatmul.mubr.msk.bf16.vlgmr.msra.gmra.mxu0 %vm209_vm1, %v1605_v3  ;;  %469 = vrot.lane.b32.xlu1 %v1605_v3, %s1682_s19 }
  0x19   : > { %1473 = vmatprep.mubr.msk.bf16.mxu0 %vm1680_vm0, %v1679_v0 }
  0x1c   : > { %598 = vrot.lane.b32.xlu1 %v1603_v1, %s1683_s20 }
  0x20   : > { %596 = vrot.lane.b32.xlu1 %v1605_v3, %s1683_s20 }
  0x24   : > { %725 = vrot.lane.b32.xlu1 %v1603_v1, %s1684_s21 }
  0x28   : > { %723 = vrot.lane.b32.xlu1 %v1605_v3, %s1684_s21 }
  0x2c   : > { %852 = vrot.lane.b32.xlu1 %v1603_v1, %s1685_s22 }
  0x30   : > { %979 = vrot.lane.b32.xlu1 %v1603_v1, %s1686_s23 }
  0x34   : > { %1106 = vrot.lane.b32.xlu1 %v1603_v1, %s1687_s24 }
  0x38   : > { %543 = vrot.lane.b32.xlu1 %v1767_v19, %s1682_s19 }
  0x82   : > { %v345_v30 = vpop.permute.xlu1 %344 }
  0x83   : > { %v350_v35 = vsel %vm209_vm1, %v345_v30, 0 }
  0x86   : > { %v343_v31 = vpop.permute.xlu1 %342 }
  0x8a   : > { %v470_v34 = vpop.permute.xlu1 %469 }
  0x8e   : > { %v599_v38 = vpop.permute.xlu1 %598 }
  0x8f   : > { %v604_v41 = vsel %vm209_vm1, %v599_v38, 0 }
  0x92   : > { %v597_v40 = vpop.permute.xlu1 %596 }
  0x96   : > { %v726_v42 = vpop.permute.xlu1 %725 }
  0x97   : > { %v731_v44 = vsel %vm209_vm1, %v726_v42, 0 }
  0x9a   : > { %v724_v43 = vpop.permute.xlu1 %723 }
  0x9e   : > { %v853_v45 = vpop.permute.xlu1 %852 }
  0x9f   : > { %v858_v46 = vsel %vm209_vm1, %v853_v45, 0 }
  0xa2   : > { %v980_v47 = vpop.permute.xlu1 %979 }
  0xa3   : > { %v985_v49 = vsel %vm209_vm1, %v980_v47, 0 }
  0xa6   : > { %v1107_v50 = vpop.permute.xlu1 %1106 }
  0xa7   : > { %v1112_v52 = vsel %vm209_vm1, %v1107_v50, 0 }
  0xd8   : > { %v250_v7 = vpop.f32.mrf.mxu0 }
  0xd9   : > { %v257_v9 = vmul.f32 0.25, %v250_v7 }
  0xda   : > { %v1457_v10 = vpop.f32.mrf.mxu0 }
  0xdb   : > { %v259_v11 = vadd.f32 %v257_v9, %v1755_v6 }
  0xdc   : > { %v253_v13 = vpop.f32.mrf.mxu0 }
  0xdd   : > { %v258_v14 = vmul.f32 0.25, %v253_v13  ;;  %v262_v15 = vsel %vm261_vm2, %v259_v11, -inf }
  0xde   : > { %263 = vmax.xlane.f32.xlu0 %v262_v15  ;;  %v1458_v16 = vpop.f32.mrf.mxu0 }
  0xdf   : > { %v260_v17 = vadd.f32 %v258_v14, %v1761_v12 }
  0xe1   : > { %v266_v18 = vsel %vm265_vm3, %v260_v17, -inf }
  0xe2   : > { %267 = vmax.xlane.f32.xlu0 %v266_v18 }
  0xf8   : > { %471 = vrot.lane.b32.xlu0 %v1603_v1, %s1682_s19 }
  0xfc   : > { %850 = vrot.lane.b32.xlu0 %v1605_v3, %s1685_s22 }
 0x100   : > { %977 = vrot.lane.b32.xlu0 %v1605_v3, %s1686_s23 }
 0x104   : > { %1104 = vrot.lane.b32.xlu0 %v1605_v3, %s1687_s24 }
 0x108   : > { %416 = vrot.lane.b32.xlu0 %v1767_v19, %s1681_s18 }
 0x167   : > { %v264_v24 = vpop.xlane.xlu0 %263 }
 0x168   : > { %v269_v25 = vsub.f32 %v259_v11, %v264_v24 }
 0x16a   : > { %v271_v26 = vmul.f32 1.442695, %v269_v25 }
 0x16b   : > { %v268_v27 = vpop.xlane.xlu0 %267 }
 0x16c   : > { %v270_v28 = vsub.f32 %v260_v17, %v268_v27  ;;  %1607 = vpow2.f32 %v271_v26 }
 0x16e   : > { %v273_v29 = vmul.f32 1.442695, %v270_v28 }
 0x16f   : > { %v472_v37 = vpop.permute.xlu0 %471 }
 0x170   : > { %1609 = vpow2.f32 %v273_v29  ;;  %v477_v39 = vsel %vm209_vm1, %v472_v37, 0 }
 0x173   : > { %v851_v48 = vpop.permute.xlu0 %850 }
 0x177   : > { %v978_v51 = vpop.permute.xlu0 %977 }
 0x179   : > { %v1782_v32 = vpop.eup %1607 }
 0x17b   : > { %v1105_v53 = vpop.permute.xlu0 %1104 }
 0x17d   : > { %v1784_v33 = vpop.eup %1609 }
 0x17e   : > { %v281_v36 = vpack.c.bf16 %v1784_v33, %v1782_v32 }
 0x17f   : > { %v417_v54 = vpop.permute.xlu0 %416 }
 0x180   : > { %1462 = vmatmul.mubr.msk.bf16.vlgmr.msra.gmra.mxu1 %vm261_vm2, %v281_v36  ;;  %v422_v55 = vand.u32 %v417_v54, %v1769_v22 }
 0x181   : > { %1466 = vmatpush3.bf16.xpose.msra.mxu1 %v350_v35  ;;  %1467 = vmatprep.mubr.msk.bf16.mxu1 %vm1680_vm0, %v1679_v0 }
 0x182   : > { %1477 = vmatprep.subr.bf16.mxu1 %v1679_v0  ;;  %1472 = vmatpush3.bf16.msra.mxu0 %v422_v55 }
 0x183   : > { %1483 = vmatprep.subr.bf16.mxu0 %v1679_v0 }
 0x188   : > { %1468 = vmatmul.mubr.msk.bf16.vlgmr.msra.gmra.mxu1 %vm209_vm1, %v343_v31 }
 0x189   : > { %1478 = vmatpush3.bf16.xpose.msra.mxu1 %v477_v39  ;;  %1479 = vmatprep.mubr.msk.bf16.mxu1 %vm1680_vm0, %v1679_v0 }
 0x18a   : > { %1489 = vmatprep.subr.bf16.mxu1 %v1679_v0 }
 0x190   : > { %1480 = vmatmul.mubr.msk.bf16.vlgmr.msra.gmra.mxu1 %vm209_vm1, %v470_v34 }
 0x191   : > { %1490 = vmatpush3.bf16.xpose.msra.mxu1 %v604_v41  ;;  %1491 = vmatprep.mubr.msk.bf16.mxu1 %vm1680_vm0, %v1679_v0 }
 0x192   : > { %1501 = vmatprep.subr.bf16.mxu1 %v1679_v0 }
 0x198   : > { %1492 = vmatmul.mubr.msk.bf16.vlgmr.msra.gmra.mxu1 %vm209_vm1, %v597_v40 }
 0x199   : > { %1502 = vmatpush3.bf16.xpose.msra.mxu1 %v731_v44  ;;  %1503 = vmatprep.mubr.msk.bf16.mxu1 %vm1680_vm0, %v1679_v0 }
 0x19a   : > { %1513 = vmatprep.subr.bf16.mxu1 %v1679_v0 }
 0x1a0   : > { %1504 = vmatmul.mubr.msk.bf16.vlgmr.msra.gmra.mxu1 %vm209_vm1, %v724_v43 }
 0x1a1   : > { %1514 = vmatpush3.bf16.xpose.msra.mxu1 %v858_v46  ;;  %1515 = vmatprep.mubr.msk.bf16.mxu1 %vm1680_vm0, %v1679_v0 }
 0x1a2   : > { %1525 = vmatprep.subr.bf16.mxu1 %v1679_v0 }
 0x1a8   : > { %1516 = vmatmul.mubr.msk.bf16.vlgmr.msra.gmra.mxu1 %vm209_vm1, %v851_v48 }
 0x1a9   : > { %1526 = vmatpush3.bf16.xpose.msra.mxu1 %v985_v49  ;;  %1527 = vmatprep.mubr.msk.bf16.mxu1 %vm1680_vm0, %v1679_v0 }
 0x1aa   : > { %1537 = vmatprep.subr.bf16.mxu1 %v1679_v0 }
 0x1b0   : > { %1528 = vmatmul.mubr.msk.bf16.vlgmr.msra.gmra.mxu1 %vm209_vm1, %v978_v51 }
 0x1b1   : > { %1538 = vmatpush3.bf16.xpose.msra.mxu1 %v1112_v52  ;;  %1539 = vmatprep.mubr.msk.bf16.mxu1 %vm1680_vm0, %v1679_v0 }
 0x1b8   : > { %1540 = vmatmul.mubr.msk.bf16.vlgmr.msra.gmra.mxu1 %vm209_vm1, %v1105_v53 }
 0x240   : > { %v1825_v56 = vpop.f32.mrf.mxu1 }
 0x242   : > { %v1463_v57 = vpop.f32.mrf.mxu1 }
 0x244   : > { %v1827_v58 = vpop.f32.mrf.mxu1 }
 0x246   : > { %v1464_v59 = vpop.f32.mrf.mxu1 }
 0x248   : > { %v386_v60 = vpop.f32.mrf.mxu1 }
 0x249   : > { %v393_v61 = vmul.f32 0.25, %v386_v60 }
 0x24a   : > { %v1469_v62 = vpop.f32.mrf.mxu1 }
 0x24b   : > { %v1830_v63 = vadd.f32 %v393_v61, %v1755_v6 }
 0x24c   : > { %v389_v1 = vpop.f32.mrf.mxu1 }
 0x24d   : > { %v394_v2 = vmul.f32 0.25, %v389_v1  ;;  %v397_v3 = vsel %vm261_vm2, %v1830_v63, -inf }
 0x24e   : > { %398 = vmax.xlane.f32.xlu1 %v397_v3  ;;  %v1470_v4 = vpop.f32.mrf.mxu1 }
 0x24f   : > { %v1835_v5 = vadd.f32 %v394_v2, %v1761_v12 }
 0x250   : > { %v513_v7 = vpop.f32.mrf.mxu1 }
 0x251   : > { %v520_v8 = vmul.f32 0.25, %v513_v7  ;;  %v400_v9 = vsel %vm265_vm3, %v1835_v5, -inf }
 0x252   : > { %401 = vmax.xlane.f32.xlu0 %v400_v9  ;;  %v1481_v10 = vpop.f32.mrf.mxu1 }
 0x253   : > { %v1840_v11 = vadd.f32 %v520_v8, %v1755_v6 }
 0x254   : > { %v516_v13 = vpop.f32.mrf.mxu1 }
 0x255   : > { %v521_v14 = vmul.f32 0.25, %v516_v13  ;;  %v524_v15 = vsel %vm261_vm2, %v1840_v11, -inf }
 0x256   : > { %525 = vmax.xlane.f32.xlu0 %v524_v15  ;;  %v1482_v16 = vpop.f32.mrf.mxu1 }
 0x257   : > { %v1845_v17 = vadd.f32 %v521_v14, %v1761_v12  ;;  %v544_v16 = vpop.permute.xlu1 %543 }
 0x258   : > { %v640_v18 = vpop.f32.mrf.mxu1 }
 0x259   : > { %v647_v20 = vmul.f32 0.25, %v640_v18  ;;  %v527_v21 = vsel %vm265_vm3, %v1845_v17, -inf }
 0x25a   : > { %528 = vmax.xlane.f32.xlu1 %v527_v21  ;;  %v1493_v23 = vpop.f32.mrf.mxu1 }
 0x25b   : > { %v1850_v24 = vadd.f32 %v647_v20, %v1755_v6 }
 0x25c   : > { %v643_v25 = vpop.f32.mrf.mxu1 }
 0x25d   : > { %v648_v26 = vmul.f32 0.25, %v643_v25  ;;  %v651_v27 = vsel %vm261_vm2, %v1850_v24, -inf }
 0x25e   : > { %652 = vmax.xlane.f32.xlu0 %v651_v27  ;;  %v1494_v28 = vpop.f32.mrf.mxu1 }
 0x25f   : > { %v1855_v29 = vadd.f32 %v648_v26, %v1761_v12 }
 0x260   : > { %v767_v30 = vpop.f32.mrf.mxu1 }
 0x261   : > { %v654_v31 = vsel %vm265_vm3, %v1855_v29, -inf  ;;  %v774_v9 = vmul.f32 0.25, %v767_v30 }
 0x262   : > { %655 = vmax.xlane.f32.xlu1 %v654_v31  ;;  %v1505_v34 = vpop.f32.mrf.mxu1 }
 0x263   : > { %v1892_v13 = vadd.f32 %v774_v9, %v1755_v6 }
 0x264   : > { %v770_v35 = vpop.f32.mrf.mxu1 }
 0x265   : > { %v775_v36 = vmul.f32 0.25, %v770_v35  ;;  %v778_v14 = vsel %vm261_vm2, %v1892_v13, -inf }
 0x266   : > { %v1506_v37 = vpop.f32.mrf.mxu1 }
 0x267   : > { %v1860_v38 = vadd.f32 %v775_v36, %v1761_v12 }
 0x268   : > { %v894_v39 = vpop.f32.mrf.mxu1 }
 0x269   : > { %v901_v40 = vmul.f32 0.25, %v894_v39  ;;  %v781_v41 = vsel %vm265_vm3, %v1860_v38, -inf }
 0x26a   : > { %782 = vmax.xlane.f32.xlu1 %v781_v41  ;;  %v1517_v42 = vpop.f32.mrf.mxu1 }
 0x26b   : > { %v1865_v43 = vadd.f32 %v901_v40, %v1755_v6 }
 0x26c   : > { %v897_v44 = vpop.f32.mrf.mxu1 }
 0x26d   : > { %v902_v45 = vmul.f32 0.25, %v897_v44  ;;  %v905_v46 = vsel %vm261_vm2, %v1865_v43, -inf }
 0x26e   : > { %906 = vmax.xlane.f32.xlu1 %v905_v46  ;;  %v1518_v47 = vpop.f32.mrf.mxu1 }
 0x26f   : > { %v1870_v48 = vadd.f32 %v902_v45, %v1761_v12 }
 0x270   : > { %v1021_v49 = vpop.f32.mrf.mxu1 }
 0x271   : > { %v908_v50 = vsel %vm265_vm3, %v1870_v48, -inf  ;;  %v1028_v10 = vmul.f32 0.25, %v1021_v49 }
 0x272   : > { %909 = vmax.xlane.f32.xlu1 %v908_v50  ;;  %v1529_v51 = vpop.f32.mrf.mxu1 }
 0x273   : > { %v1897_v15 = vadd.f32 %v1028_v10, %v1755_v6 }
 0x274   : > { %670 = vrot.lane.b32.xlu0 %v1767_v19, %s1683_s20  ;;  %v1024_v52 = vpop.f32.mrf.mxu1 }
 0x275   : > { %v1029_v53 = vmul.f32 0.25, %v1024_v52 }
 0x276   : > { %v1530_v54 = vpop.f32.mrf.mxu1 }
 0x277   : > { %v1877_v55 = vadd.f32 %v1029_v53, %v1761_v12 }
 0x278   : > { %v1148_v57 = vpop.f32.mrf.mxu1 }
 0x279   : > { %v1155_v59 = vmul.f32 0.25, %v1148_v57  ;;  %v1035_v60 = vsel %vm265_vm3, %v1877_v55, -inf }
 0x27a   : > { %1036 = vmax.xlane.f32.xlu1 %v1035_v60  ;;  %v1541_v61 = vpop.f32.mrf.mxu1 }
 0x27b   : > { %v1882_v62 = vadd.f32 %v1155_v59, %v1755_v6 }
 0x27c   : > { %v1151_v1 = vpop.f32.mrf.mxu1 }
 0x27d   : > { %v1156_v2 = vmul.f32 0.25, %v1151_v1  ;;  %v1159_v3 = vsel %vm261_vm2, %v1882_v62, -inf }
 0x27e   : > { %1160 = vmax.xlane.f32.xlu1 %v1159_v3  ;;  %v1542_v4 = vpop.f32.mrf.mxu1 }
 0x27f   : > { %v1887_v7 = vadd.f32 %v1156_v2, %v1761_v12  ;;  %v1032_v12 = vsel %vm261_vm2, %v1897_v15, -inf }
 0x281   : > { %v1162_v8 = vsel %vm265_vm3, %v1887_v7, -inf }
 0x282   : > { %1163 = vmax.xlane.f32.xlu1 %v1162_v8 }
 0x293   : > { %779 = vmax.xlane.f32.xlu0 %v778_v14  ;;  %797 = vrot.lane.b32.xlu1 %v1767_v19, %s1684_s21 }
 0x297   : > { %1033 = vmax.xlane.f32.xlu0 %v1032_v12 }
 0x2ad   : > { %924 = vrot.lane.b32.xlu0 %v1767_v19, %s1685_s22 }
 0x2b1   : > { %1051 = vrot.lane.b32.xlu0 %v1767_v19, %s1686_s23 }
 0x2b5   : > { %1178 = vrot.lane.b32.xlu0 %v1767_v19, %s1687_s24 }
 0x2d7   : > { %v399_v6 = vpop.xlane.xlu1 %398 }
 0x2d8   : > { %v403_v18 = vsub.f32 %v1830_v63, %v399_v6 }
 0x2da   : > { %v405_v20 = vmul.f32 1.442695, %v403_v18 }
 0x2db   : > { %v402_v21 = vpop.xlane.xlu0 %401 }
 0x2dc   : > { %1611 = vpow2.f32 %v405_v20  ;;  %v404_v23 = vsub.f32 %v1835_v5, %v402_v21 }
 0x2de   : > { %v407_v25 = vmul.f32 1.442695, %v404_v23 }
 0x2df   : > { %v526_v26 = vpop.xlane.xlu0 %525 }
 0x2e0   : > { %1613 = vpow2.f32 %v407_v25  ;;  %v530_v27 = vsub.f32 %v1840_v11, %v526_v26 }
 0x2e2   : > { %v532_v28 = vmul.f32 1.442695, %v530_v27 }
 0x2e3   : > { %v529_v30 = vpop.xlane.xlu1 %528 }
 0x2e4   : > { %1615 = vpow2.f32 %v532_v28  ;;  %v531_v31 = vsub.f32 %v1845_v17, %v529_v30  ;;  %v549_v17 = vand.u32 %v544_v16, %v1769_v22 }
 0x2e6   : > { %v534_v19 = vmul.f32 1.442695, %v531_v31 }
 0x2e7   : > { %v653_v34 = vpop.xlane.xlu0 %652 }
 0x2e8   : > { %1617 = vpow2.f32 %v534_v19  ;;  %v657_v63 = vsub.f32 %v1850_v24, %v653_v34 }
 0x2e9   : > { %v1612_v35 = vpop.eup %1611 }
 0x2ea   : > { %v659_v36 = vmul.f32 1.442695, %v657_v63  ;;  %v409_v37 = vsel %vm261_vm2, %v1612_v35, 0.0  ;;  %v278_v63 = vsel %vm265_vm3, %v1784_v33, 0.0 }
 0x2eb   : > { %v656_v5 = vpop.xlane.xlu1 %655  ;;  %410 = vadd.xlane.f32.xlu1 %v409_v37  ;;  %v671_v45 = vpop.permute.xlu0 %670 }
 0x2ec   : > { %1619 = vpow2.f32 %v659_v36  ;;  %v658_v39 = vsub.f32 %v1855_v29, %v656_v5  ;;  %v676_v52 = vand.u32 %v671_v45, %v1769_v22 }
 0x2ed   : > { %v1614_v11 = vpop.eup %1613 }
 0x2ee   : > { %v661_v40 = vmul.f32 1.442695, %v658_v39  ;;  %v412_v41 = vsel %vm265_vm3, %v1614_v11, 0.0  ;;  %v415_v42 = vpack.c.bf16 %v1614_v11, %v1612_v35 }
 0x2ef   : > { %413 = vadd.xlane.f32.xlu0 %v412_v41 }
 0x2f0   : > { %1621 = vpow2.f32 %v661_v40  ;;  %1474 = vmatmul.mubr.msk.bf16.vlgmr.msra.gmra.mxu0 %vm261_vm2, %v415_v42 }
 0x2f1   : > { %v1616_v24 = vpop.eup %1615  ;;  %1484 = vmatpush3.bf16.msra.mxu0 %v549_v17  ;;  %1485 = vmatprep.mubr.msk.bf16.mxu0 %vm1680_vm0, %v1679_v0 }
 0x2f2   : > { %v536_v44 = vsel %vm261_vm2, %v1616_v24, 0.0  ;;  %1495 = vmatprep.subr.bf16.mxu0 %v1679_v0 }
 0x2f3   : > { %v783_v29 = vpop.xlane.xlu1 %782  ;;  %537 = vadd.xlane.f32.xlu0 %v536_v44 }
 0x2f4   : > { %v785_v46 = vsub.f32 %v1860_v38, %v783_v29 }
 0x2f5   : > { %v1618_v47 = vpop.eup %1617 }
 0x2f6   : > { %v788_v49 = vmul.f32 1.442695, %v785_v46  ;;  %v539_v50 = vsel %vm265_vm3, %v1618_v47, 0.0  ;;  %v542_v51 = vpack.c.bf16 %v1618_v47, %v1616_v24  ;;  %v275_v46 = vsel %vm261_vm2, %v1782_v32, 0.0 }
 0x2f7   : > { %v907_v53 = vpop.xlane.xlu1 %906  ;;  %540 = vadd.xlane.f32.xlu0 %v539_v50 }
 0x2f8   : > { %1623 = vpow2.f32 %v788_v49  ;;  %1486 = vmatmul.mubr.msk.bf16.vlgmr.msra.gmra.mxu0 %vm261_vm2, %v542_v51  ;;  %v911_v25 = vsub.f32 %v1865_v43, %v907_v53 }
 0x2f9   : > { %v1620_v54 = vpop.eup %1619  ;;  %1496 = vmatpush3.bf16.msra.mxu0 %v676_v52  ;;  %1497 = vmatprep.mubr.msk.bf16.mxu0 %vm1680_vm0, %v1679_v0 }
 0x2fa   : > { %v663_v57 = vsel %vm261_vm2, %v1620_v54, 0.0  ;;  %1507 = vmatprep.subr.bf16.mxu0 %v1679_v0  ;;  %v913_v30 = vmul.f32 1.442695, %v911_v25 }
 0x2fb   : > { %v910_v38 = vpop.xlane.xlu1 %909  ;;  %664 = vadd.xlane.f32.xlu0 %v663_v57 }
 0x2fc   : > { %v912_v59 = vsub.f32 %v1870_v48, %v910_v38 }
 0x2fd   : > { %v1622_v60 = vpop.eup %1621 }
 0x2fe   : > { %v915_v61 = vmul.f32 1.442695, %v912_v59  ;;  %v666_v1 = vsel %vm265_vm3, %v1622_v60, 0.0  ;;  %v669_v2 = vpack.c.bf16 %v1622_v60, %v1620_v54 }
 0x2ff   : > { %667 = vadd.xlane.f32.xlu1 %v666_v1 }
 0x300   : > { %1625 = vpow2.f32 %v915_v61  ;;  %1498 = vmatmul.mubr.msk.bf16.vlgmr.msra.gmra.mxu0 %vm261_vm2, %v669_v2 }
 0x301   : > { %1509 = vmatprep.mubr.msk.bf16.mxu0 %vm1680_vm0, %v1679_v0 }
 0x303   : > { %v1037_v3 = vpop.xlane.xlu1 %1036 }
 0x304   : > { %v1039_v4 = vsub.f32 %v1877_v55, %v1037_v3 }
 0x305   : > { %v1624_v8 = vpop.eup %1623 }
 0x306   : > { %v1042_v9 = vmul.f32 1.442695, %v1039_v4  ;;  %v793_v10 = vsel %vm265_vm3, %v1624_v8, 0.0 }
 0x307   : > { %v1161_v48 = vpop.xlane.xlu1 %1160  ;;  %794 = vadd.xlane.f32.xlu1 %v793_v10 }
 0x308   : > { %1627 = vpow2.f32 %v1042_v9  ;;  %v1165_v35 = vsub.f32 %v1882_v62, %v1161_v48 }
 0x30a   : > { %v1167_v36 = vmul.f32 1.442695, %v1165_v35 }
 0x30b   : > { %v1164_v14 = vpop.xlane.xlu1 %1163 }
 0x30c   : > { %v1166_v12 = vsub.f32 %v1887_v7, %v1164_v14 }
 0x30d   : > { %v1626_v16 = vpop.eup %1625 }
 0x30e   : > { %v1169_v6 = vmul.f32 1.442695, %v1166_v12  ;;  %v920_v18 = vsel %vm265_vm3, %v1626_v16, 0.0 }
 0x30f   : > { %921 = vadd.xlane.f32.xlu1 %v920_v18  ;;  %v798_v20 = vpop.permute.xlu1 %797 }
 0x310   : > { %1629 = vpow2.f32 %v1169_v6  ;;  %v803_v21 = vand.u32 %v798_v20, %v1769_v22 }
 0x312   : > { %1508 = vmatpush3.bf16.msra.mxu0 %v803_v21 }
 0x313   : > { %1519 = vmatprep.subr.bf16.mxu0 %v1679_v0 }
 0x315   : > { %v1628_v55 = vpop.eup %1627 }
 0x316   : > { %v1047_v23 = vsel %vm265_vm3, %v1628_v55, 0.0 }
 0x317   : > { %1048 = vadd.xlane.f32.xlu1 %v1047_v23 }
 0x31c   : > { %v780_v26 = vpop.xlane.xlu0 %779 }
 0x31d   : > { %v1630_v7 = vpop.eup %1629  ;;  %v784_v27 = vsub.f32 %v1892_v13, %v780_v26 }
 0x31e   : > { %v1174_v28 = vsel %vm265_vm3, %v1630_v7, 0.0 }
 0x31f   : > { %v786_v31 = vmul.f32 1.442695, %v784_v27  ;;  %1175 = vadd.xlane.f32.xlu1 %v1174_v28 }
 0x320   : > { %v1034_v19 = vpop.xlane.xlu0 %1033 }
 0x321   : > { %1631 = vpow2.f32 %v786_v31  ;;  %v1038_v34 = vsub.f32 %v1897_v15, %v1034_v19 }
 0x322   : > { %1633 = vpow2.f32 %v913_v30 }
 0x323   : > { %v1040_v43 = vmul.f32 1.442695, %v1038_v34  ;;  %279 = vadd.xlane.f32.xlu1 %v278_v63 }
 0x324   : > { %v925_v13 = vpop.permute.xlu0 %924 }
 0x325   : > { %1635 = vpow2.f32 %v1040_v43  ;;  %v930_v5 = vand.u32 %v925_v13, %v1769_v22 }
 0x326   : > { %1637 = vpow2.f32 %v1167_v36 }
 0x328   : > { %v1052_v62 = vpop.permute.xlu0 %1051 }
 0x329   : > { %v1057_v41 = vand.u32 %v1052_v62, %v1769_v22 }
 0x32c   : > { %v1179_v29 = vpop.permute.xlu0 %1178 }
 0x32d   : > { %v1184_v45 = vand.u32 %v1179_v29, %v1769_v22 }
 0x32e   : > { %v1632_v37 = vpop.eup %1631 }
 0x32f   : > { %v790_v39 = vsel %vm261_vm2, %v1632_v37, 0.0  ;;  %v796_v11 = vpack.c.bf16 %v1624_v8, %v1632_v37  ;;  %v1634_v40 = vpop.eup %1633 }
 0x330   : > { %791 = vadd.xlane.f32.xlu0 %v790_v39  ;;  %v917_v33 = vsel %vm261_vm2, %v1634_v40, 0.0  ;;  %v923_v17 = vpack.c.bf16 %v1626_v16, %v1634_v40 }
 0x331   : > { %1510 = vmatmul.mubr.msk.bf16.vlgmr.msra.gmra.mxu0 %vm261_vm2, %v796_v11 }
 0x332   : > { %1520 = vmatpush3.bf16.msra.mxu0 %v930_v5  ;;  %1521 = vmatprep.mubr.msk.bf16.mxu0 %vm1680_vm0, %v1679_v0  ;;  %v1636_v15 = vpop.eup %1635 }
 0x333   : > { %1531 = vmatprep.subr.bf16.mxu0 %v1679_v0  ;;  %v1044_v42 = vsel %vm261_vm2, %v1636_v15, 0.0  ;;  %v1638_v24 = vpop.eup %1637  ;;  %v1050_v47 = vpack.c.bf16 %v1628_v55, %v1636_v15 }
 0x334   : > { %918 = vadd.xlane.f32.xlu0 %v917_v33  ;;  %v1171_v44 = vsel %vm261_vm2, %v1638_v24, 0.0  ;;  %v1177_v49 = vpack.c.bf16 %v1630_v7, %v1638_v24 }
 0x338   : > { %1045 = vadd.xlane.f32.xlu0 %v1044_v42 }
 0x339   : > { %1522 = vmatmul.mubr.msk.bf16.vlgmr.msra.gmra.mxu0 %vm261_vm2, %v923_v17 }
 0x33a   : > { %1532 = vmatpush3.bf16.msra.mxu0 %v1057_v41  ;;  %1533 = vmatprep.mubr.msk.bf16.mxu0 %vm1680_vm0, %v1679_v0 }
 0x33b   : > { %1543 = vmatprep.subr.bf16.mxu0 %v1679_v0 }
 0x33c   : > { %1172 = vadd.xlane.f32.xlu0 %v1171_v44 }
 0x340   : > { %276 = vadd.xlane.f32.xlu0 %v275_v46 }
 0x341   : > { %1534 = vmatmul.mubr.msk.bf16.vlgmr.msra.gmra.mxu0 %vm261_vm2, %v1050_v47 }
 0x342   : > { %1544 = vmatpush3.bf16.msra.mxu0 %v1184_v45  ;;  %1545 = vmatprep.mubr.msk.bf16.mxu0 %vm1680_vm0, %v1679_v0 }
 0x349   : > { %1546 = vmatmul.mubr.msk.bf16.vlgmr.msra.gmra.mxu0 %vm261_vm2, %v1177_v49 }
 0x374   : > { %v411_v51 = vpop.xlane.xlu1 %410 }
 0x375   : > { %1639 = vrcp.f32 %v411_v51 }
 0x378   : > { %v414_v50 = vpop.xlane.xlu0 %413 }
 0x379   : > { %1641 = vrcp.f32 %v414_v50 }
 0x37c   : > { %v538_v52 = vpop.xlane.xlu0 %537 }
 0x37d   : > { %1643 = vrcp.f32 %v538_v52 }
 0x380   : > { %v541_v22 = vpop.xlane.xlu0 %540 }
 0x381   : > { %1645 = vrcp.f32 %v541_v22 }
 0x382   : > { %v1640_v54 = vpop.eup %1639 }
 0x384   : > { %v665_v57 = vpop.xlane.xlu0 %664 }
 0x385   : > { %1647 = vrcp.f32 %v665_v57 }
 0x386   : > { %v1642_v38 = vpop.eup %1641 }
 0x388   : > { %v668_v59 = vpop.xlane.xlu1 %667 }
 0x389   : > { %1649 = vrcp.f32 %v668_v59 }
 0x38a   : > { %v1644_v8 = vpop.eup %1643 }
 0x38e   : > { %v1646_v9 = vpop.eup %1645 }
 0x390   : > { %v795_v27 = vpop.xlane.xlu1 %794 }
 0x391   : > { %1651 = vrcp.f32 %v795_v27 }
 0x392   : > { %v1648_v20 = vpop.eup %1647 }
 0x396   : > { %v1650_v21 = vpop.eup %1649 }
 0x398   : > { %v922_v30 = vpop.xlane.xlu1 %921 }
 0x39e   : > { %v1652_v63 = vpop.eup %1651 }
 0x3a0   : > { %v1049_v35 = vpop.xlane.xlu1 %1048 }
 0x3a8   : > { %v1176_v15 = vpop.xlane.xlu1 %1175 }
 0x3b0   : > { %v458_v32 = vpop.f32.mrf.mxu0 }
 0x3b1   : > { %v467_v61 = vmul.f32 %v1640_v54, %v458_v32 }
 0x3b2   : > { %v1475_v53 = vpop.f32.mrf.mxu0 }
 0x3b4   : > { %v461_v60 = vpop.f32.mrf.mxu0 }
 0x3b5   : > { %v468_v0 = vmul.f32 %v1642_v38, %v461_v60 }
 0x3b6   : > { %v1476_v1 = vpop.f32.mrf.mxu0 }
 0x3b7   : > { %v1568_v2 = vpack.i.bf16 %v468_v0, %v467_v61 }
 0x3b8   : > { %v585_v3 = vpop.f32.mrf.mxu0 }
 0x3b9   : > { %1569 = vrot.lane.b32.xlu1 %v1568_v2, %s1687_s24  ;;  %v594_v48 = vmul.f32 %v1644_v8, %v585_v3  ;;  %v792_v28 = vpop.xlane.xlu0 %791  ;;  %v280_v3 = vpop.xlane.xlu1 %279 }
 0x3ba   : > { %v1487_v4 = vpop.f32.mrf.mxu0  ;;  %1653 = vrcp.f32 %v792_v28 }
 0x3bb   : > { %1655 = vrcp.f32 %v922_v30 }
 0x3bc   : > { %v588_v10 = vpop.f32.mrf.mxu0 }
 0x3bd   : > { %v595_v14 = vmul.f32 %v1646_v9, %v588_v10  ;;  %v919_v31 = vpop.xlane.xlu0 %918 }
 0x3be   : > { %v1488_v12 = vpop.f32.mrf.mxu0  ;;  %1657 = vrcp.f32 %v919_v31 }
 0x3bf   : > { %v1573_v16 = vpack.i.bf16 %v595_v14, %v594_v48  ;;  %1659 = vrcp.f32 %v1049_v35 }
 0x3c0   : > { %v712_v6 = vpop.f32.mrf.mxu0 }
 0x3c1   : > { %1574 = vrot.lane.b32.xlu0 %v1573_v16, %s1686_s23  ;;  %v721_v23 = vmul.f32 %v1648_v20, %v712_v6  ;;  %v1046_v36 = vpop.xlane.xlu0 %1045 }
 0x3c2   : > { %v1499_v18 = vpop.f32.mrf.mxu0  ;;  %1661 = vrcp.f32 %v1046_v36 }
 0x3c3   : > { %1663 = vrcp.f32 %v1176_v15 }
 0x3c4   : > { %v715_v55 = vpop.f32.mrf.mxu0 }
 0x3c5   : > { %v722_v25 = vmul.f32 %v1650_v21, %v715_v55  ;;  %v1173_v42 = vpop.xlane.xlu0 %1172 }
 0x3c6   : > { %v1500_v26 = vpop.f32.mrf.mxu0  ;;  %1665 = vrcp.f32 %v1173_v42 }
 0x3c7   : > { %v1578_v7 = vpack.i.bf16 %v721_v23, %v722_v25  ;;  %v1654_v43 = vpop.eup %1653  ;;  %1667 = vrcp.f32 %v280_v3 }
 0x3c8   : > { %v1656_v62 = vpop.eup %1655 }
 0x3c9   : > { %1579 = vrot.lane.b32.xlu1 %v1578_v7, %s1685_s22  ;;  %v277_v4 = vpop.xlane.xlu0 %276 }
 0x3ca   : > { %1669 = vrcp.f32 %v277_v4 }
 0x3cb   : > { %v1658_v41 = vpop.eup %1657 }
 0x3cc   : > { %v1660_v49 = vpop.eup %1659 }
 0x3cf   : > { %v1662_v50 = vpop.eup %1661 }
 0x3d0   : > { %v1664_v38 = vpop.eup %1663 }
 0x3d3   : > { %v1666_v59 = vpop.eup %1665 }
 0x3d4   : > { %v1668_v48 = vpop.eup %1667 }
 0x3d5   : > { %v341_v23 = vmul.f32 %v1668_v48, %v1827_v58 }
 0x3d7   : > { %v1670_v12 = vpop.eup %1669 }
 0x3d8   : > { %v340_v55 = vmul.f32 %v1670_v12, %v1825_v56 }
 0x3f1   : > { %v839_v19 = vpop.f32.mrf.mxu0 }
 0x3f2   : > { %v848_v37 = vmul.f32 %v1654_v43, %v839_v19 }
 0x3f3   : > { %v1511_v34 = vpop.f32.mrf.mxu0 }
 0x3f5   : > { %v842_v13 = vpop.f32.mrf.mxu0 }
 0x3f6   : > { %v849_v5 = vmul.f32 %v1652_v63, %v842_v13 }
 0x3f7   : > { %v1512_v39 = vpop.f32.mrf.mxu0 }
 0x3f8   : > { %v1583_v11 = vpack.i.bf16 %v848_v37, %v849_v5 }
 0x3f9   : > { %v966_v40 = vpop.f32.mrf.mxu0 }
 0x3fa   : > { %1584 = vrot.lane.b32.xlu1 %v1583_v11, %s1684_s21  ;;  %v975_v24 = vmul.f32 %v1658_v41, %v966_v40  ;;  %v1319_v41 = vld [vmem:[%s184_s8 + $0x4] sm:$0x1] }
 0x3fb   : > { %v1523_v33 = vpop.f32.mrf.mxu0 }
 0x3fd   : > { %v969_v17 = vpop.f32.mrf.mxu0 }
 0x3fe   : > { %v976_v44 = vmul.f32 %v1656_v62, %v969_v17 }
 0x3ff   : > { %v1524_v29 = vpop.f32.mrf.mxu0 }
 0x400   : > { %v1588_v45 = vpack.i.bf16 %v975_v24, %v976_v44 }
 0x401   : > { %v1093_v46 = vpop.f32.mrf.mxu0 }
 0x402   : > { %1589 = vrot.lane.b32.xlu0 %v1588_v45, %s1683_s20  ;;  %v1102_v52 = vmul.f32 %v1662_v50, %v1093_v46 }
 0x403   : > { %v1535_v47 = vpop.f32.mrf.mxu0 }
 0x405   : > { %v1096_v51 = vpop.f32.mrf.mxu0 }
 0x406   : > { %v1103_v22 = vmul.f32 %v1660_v49, %v1096_v51 }
 0x407   : > { %v1536_v32 = vpop.f32.mrf.mxu0 }
 0x408   : > { %v1593_v53 = vpack.i.bf16 %v1102_v52, %v1103_v22 }
 0x409   : > { %v1220_v54 = vpop.f32.mrf.mxu0 }
 0x40a   : > { %1594 = vrot.lane.b32.xlu1 %v1593_v53, %s1682_s19  ;;  %v1229_v61 = vmul.f32 %v1666_v59, %v1220_v54 }
 0x40b   : > { %v1547_v57 = vpop.f32.mrf.mxu0 }
 0x40d   : > { %v1223_v60 = vpop.f32.mrf.mxu0 }
 0x40e   : > { %v1230_v0 = vmul.f32 %v1664_v38, %v1223_v60 }
 0x40f   : > { %v1548_v1 = vpop.f32.mrf.mxu0 }
 0x410   : > { %v1598_v2 = vpack.i.bf16 %v1229_v61, %v1230_v0 }
 0x412   : > { %1599 = vrot.lane.b32.xlu0 %v1598_v2, %s1681_s18 }
 0x42b   : > { %v1570_v8 = vpop.permute.xlu1 %1569 }
 0x42c   : > { %v1572_v16 = vunpack.i.h.bf16 %v1570_v8  ;;  %v1571_v6 = vunpack.i.l.bf16 %v1570_v8 }
 0x42e   : > { %v1288_v30 = vsel %vm209_vm1, %v341_v23, %v1572_v16  ;;  %v1287_v31 = vsel %vm209_vm1, %v340_v55, %v1571_v6 }
 0x433   : > { %v1575_v10 = vpop.permute.xlu0 %1574 }
 0x434   : > { %v1577_v18 = vunpack.i.h.bf16 %v1575_v10  ;;  %v1576_v20 = vunpack.i.l.bf16 %v1575_v10 }
 0x436   : > { %v1291_v63 = vsel %vm1289_vm6, %v1288_v30, %v1577_v18  ;;  %v1290_v56 = vsel %vm1289_vm6, %v1287_v31, %v1576_v20 }
 0x43b   : > { %v1580_v9 = vpop.permute.xlu1 %1579 }
 0x43c   : > { %v1582_v25 = vunpack.i.h.bf16 %v1580_v9  ;;  %v1581_v26 = vunpack.i.l.bf16 %v1580_v9 }
 0x43e   : > { %v1293_v43 = vsel %vm1292_vm7, %v1290_v56, %v1582_v25  ;;  %v1294_v36 = vsel %vm1292_vm7, %v1291_v63, %v1581_v26 }
 0x46c   : > { %v1585_v14 = vpop.permute.xlu1 %1584 }
 0x46d   : > { %v1587_v27 = vunpack.i.h.bf16 %v1585_v14  ;;  %v1586_v28 = vunpack.i.l.bf16 %v1585_v14 }
 0x46f   : > { %v1296_v13 = vsel %vm1295_vm8, %v1293_v43, %v1587_v27  ;;  %v1297_v37 = vsel %vm1295_vm8, %v1294_v36, %v1586_v28 }
 0x474   : > { %v1590_v21 = vpop.permute.xlu0 %1589 }
 0x475   : > { %v1592_v19 = vunpack.i.h.bf16 %v1590_v21  ;;  %v1591_v34 = vunpack.i.l.bf16 %v1590_v21 }
 0x477   : > { %v1299_v39 = vsel %vm1298_vm9, %v1296_v13, %v1592_v19  ;;  %v1300_v11 = vsel %vm1298_vm9, %v1297_v37, %v1591_v34 }
 0x47c   : > { %v1595_v7 = vpop.permute.xlu1 %1594 }
 0x47d   : > { %v1597_v35 = vunpack.i.h.bf16 %v1595_v7  ;;  %v1596_v58 = vunpack.i.l.bf16 %v1595_v7 }
 0x47f   : > { %v1302_v62 = vsel %vm1301_vm10, %v1299_v39, %v1597_v35  ;;  %v1303_v15 = vsel %vm1301_vm10, %v1300_v11, %v1596_v58 }
 0x484   : > { %v1600_v5 = vpop.permute.xlu0 %1599 }
 0x485   : > { %v1602_v40 = vunpack.i.h.bf16 %v1600_v5  ;;  %v1601_v33 = vunpack.i.l.bf16 %v1600_v5 }
 0x487   : > { %v1305_v42 = vsel %vm1304_vm11, %v1302_v62, %v1602_v40  ;;  %v1306_v17 = vsel %vm1304_vm11, %v1303_v15, %v1601_v33 }
 0x488   : > { %v1419_v24 = vpack.c.bf16 %v1305_v42, %v1305_v42  ;;  %v1420_v44 = vpack.c.bf16 %v1306_v17, %v1306_v17 }
 0x48a   : > { %1315 = vst [vmem:[%s184_s8] sm:$0xf] %v1419_v24  ;;  %v1320_v29 = vsel %vm1318_vm14, %v1420_v44, %v1319_v41 }
 0x48b   : > { %1321 = vst [vmem:[%s184_s8 + $0x4] sm:$0x1] %v1320_v29 }
 0x48c PF: > { %s13_s12 = sadd.s32 1, %s1677_s12  }
 0x48d   : > { %p10_p4 = scmp.ge.s32.totalorder %s13_s12, 4  }
 0x48f   :  { %12 = sbr.rel (!%p10_p4) target bundleno = 1 (0x1), region = 65 }

// kernel: seq2seq_forward.54
= control target key start
LH: loop header
LB: loop body
LE: loop exit
PB: predicated region body
PF: predicated region fallthrough
CT: control target
= control target key end

     0   :  { %vm36_vm0 = vcmask 1041408   ;;  %s187_s0 = inlined_call_operand.vmem [shape: bf16[18,128], index: 0, kind: input, shape index: {}]   ;;  %s188_s1 = inlined_call_operand.vmem [shape: bf16[18,128], index: 1, kind: input, shape index: {}]   ;;  %s189_s2 = inlined_call_operand.vmem [shape: f32[1,128], index: 2, kind: input, shape index: {}]   ;;  %s190_s3 = inlined_call_operand.vmem [shape: f32[1,128], index: 3, kind: input, shape index: {}]   ;;  %s191_s4 = inlined_call_operand.vmem [shape: bf16[18,128], index: 4, kind: output, shape index: {}]  }
   0x1   :  { %v118_v0 = vld [vmem:[%s187_s0] sm:$0xff]   ;;  %v19_v2 = vld [vmem:[%s187_s0 + $0x8] sm:$0x1] }
   0x2   :  { %v122_v1 = vld [vmem:[%s188_s1] sm:$0xff]   ;;  %v120_v3 = vunpack.c.h.bf16 %v118_v0  ;;  %v22_v5 = vunpack.c.l.bf16 %v19_v2  ;;  %v25_v6 = vld [vmem:[%s188_s1 + $0x8] sm:$0x1]  ;;  %v119_v9 = vunpack.c.l.bf16 %v118_v0 }
   0x3   :  { %v124_v4 = vunpack.c.h.bf16 %v122_v1  ;;  %v28_v7 = vunpack.c.l.bf16 %v25_v6  ;;  %v123_v10 = vunpack.c.l.bf16 %v122_v1  ;;  %v109_v38 = vld [vmem:[%s189_s2] ss:$0 sm:$0xff] }
   0x4   :  { %v110_v42 = vld [vmem:[%s190_s3] ss:$0 sm:$0xff] }
   0x5   :  { %v30_v8 = vadd.f32 %v124_v4, %v120_v3  ;;  %v31_v11 = vadd.f32 %v28_v7, %v22_v5  ;;  %v29_v13 = vadd.f32 %v123_v10, %v119_v9 }
   0x7   :  { %34 = vadd.xlane.f32.xlu1 %v30_v8  ;;  %v37_v12 = vsel %vm36_vm0, %v31_v11, 0.0 }
   0x8   :  { %38 = vadd.xlane.f32.xlu0 %v37_v12 }
   0xc   :  { %32 = vadd.xlane.f32.xlu0 %v29_v13 }
  0x90   :  { %v35_v14 = vpop.xlane.xlu1 %34 }
  0x91   :  { %v42_v15 = vmul.f32 0.0078125, %v35_v14  ;;  %v39_v16 = vpop.xlane.xlu0 %38 }
  0x92   :  { %v43_v18 = vmul.f32 0.0078125, %v39_v16 }
  0x93   :  { %v45_v17 = vsub.f32 %v30_v8, %v42_v15 }
  0x94   :  { %v46_v22 = vsub.f32 %v31_v11, %v43_v18 }
  0x95   :  { %v48_v19 = vmul.f32 %v45_v17, %v45_v17  ;;  %v33_v20 = vpop.xlane.xlu0 %32 }
  0x96   :  { %v41_v21 = vmul.f32 0.0078125, %v33_v20  ;;  %v49_v25 = vmul.f32 %v46_v22, %v46_v22 }
  0x97   :  { %52 = vadd.xlane.f32.xlu0 %v48_v19 }
  0x98   :  { %v44_v23 = vsub.f32 %v29_v13, %v41_v21  ;;  %v54_v26 = vsel %vm36_vm0, %v49_v25, 0.0 }
  0x9a   :  { %v47_v24 = vmul.f32 %v44_v23, %v44_v23 }
  0x9c   :  { %50 = vadd.xlane.f32.xlu1 %v47_v24 }
  0xa0   :  { %55 = vadd.xlane.f32.xlu1 %v54_v26 }
 0x120   :  { %v53_v27 = vpop.xlane.xlu0 %52 }
 0x121   :  { %v58_v28 = vmul.f32 0.0078125, %v53_v27 }
 0x123   :  { %v61_v29 = vadd.f32 1e-05, %v58_v28 }
 0x125   :  { %130 = vrsqrt.f32 %v61_v29  ;;  %v51_v30 = vpop.xlane.xlu1 %50 }
 0x126   :  { %v57_v31 = vmul.f32 0.0078125, %v51_v30 }
 0x128   :  { %v60_v32 = vadd.f32 1e-05, %v57_v31 }
 0x129   :  { %v56_v33 = vpop.xlane.xlu1 %55 }
 0x12a   :  { %132 = vrsqrt.f32 %v60_v32  ;;  %v59_v34 = vmul.f32 0.0078125, %v56_v33 }
 0x12c   :  { %v62_v35 = vadd.f32 1e-05, %v59_v34 }
 0x12e   :  { %134 = vrsqrt.f32 %v62_v35 }
 0x132   :  { %v131_v36 = vpop.eup %130 }
 0x133   :  { %v67_v37 = vmul.f32 %v131_v36, %v45_v17 }
 0x135   :  { %v77_v40 = vmul.f32 %v109_v38, %v67_v37 }
 0x137   :  { %v133_v39 = vpop.eup %132  ;;  %v87_v45 = vadd.f32 %v110_v42, %v77_v40 }
 0x138   :  { %v66_v41 = vmul.f32 %v133_v39, %v44_v23 }
 0x13a   :  { %v76_v43 = vmul.f32 %v109_v38, %v66_v41 }
 0x13b   :  { %v135_v44 = vpop.eup %134 }
 0x13c   :  { %v86_v46 = vadd.f32 %v110_v42, %v76_v43  ;;  %v68_v47 = vmul.f32 %v135_v44, %v46_v22 }
 0x13e   :  { %v128_v48 = vpack.c.bf16 %v87_v45, %v86_v46  ;;  %v78_v49 = vmul.f32 %v109_v38, %v68_v47 }
 0x140   :  { %v88_v50 = vadd.f32 %v110_v42, %v78_v49  ;;  %129 = vst [vmem:[%s191_s4] sm:$0xff] %v128_v48  }
 0x142   :  { %v116_v51 = vpack.c.bf16 %v88_v50, %v88_v50 }
 0x144   :  { %104 = vst [vmem:[%s191_s4 + $0x8] sm:$0x1] %v116_v51 }

// kernel: seq2seq_forward.37
= control target key start
LH: loop header
LB: loop body
LE: loop exit
PB: predicated region body
PF: predicated region fallthrough
CT: control target
= control target key end

     0   :  { %s265_s9 = smov 0   ;;  %s282_s0 = inlined_call_operand.vmem [shape: bf16[2,12,128], index: 0, kind: input, shape index: {}]   ;;  %s283_s1 = inlined_call_operand.vmem [shape: f32[1,12,128], index: 1, kind: input, shape index: {}]   ;;  %s284_s2 = inlined_call_operand.vmem [shape: bf16[2,12,128], index: 2, kind: output, shape index: {}]  }
   0x1 LB: > { %s217_s10 = sadd.s32 4294967295, %s248_s9   ;;  %p221_p0 = scmp.ge.s32.totalorder %s248_s9, 1  ;;  %s248_s9 = sphi %s265_s9, %s12_s9  }
   0x2   : > { %p112_p1 = scmp.lt.s32.totalorder %s248_s9, 3 }
   0x4   : > { %p113_p2 = pnand %p221_p0, %p112_p1 }
   0x5   : > { %p134_p3 = scmp.lt.s32.totalorder (!%p113_p2), %s217_s10, 1 }
   0x6   : > { %116 = sbr.rel (%p113_p2) target bundleno = 22 (0x16), region = 28 }
   0xb   : > { %s286_s10 = smov (!%p134_p3, %s217_s10), 1  ;;  %v148_v0 = vld [vmem:[%s283_s1] sm:$0xff]  ;;  %v149_v3 = vld [vmem:[%s283_s1 + $0x8] sm:$0xf] }
   0xc   : > { %s230_s11 = sshll.u32 %s286_s10, 3 }
   0xd   : > { %s138_s14 = scalar_lea.vmem %s282_s0, %s230_s11  ;;  %s143_s21 = scalar_lea.vmem %s284_s2, %s230_s11 }
   0xe   : > { %v144_v1 = vld [vmem:[%s138_s14] sm:$0xf]  ;;  %v145_v2 = vld [vmem:[%s138_s14 + $0x4] sm:$0x3] }
   0xf   : > { %v146_v4 = vunpack.c.l.bf16 %v144_v1  ;;  %v147_v5 = vunpack.c.l.bf16 %v145_v2 }
  0x11   : > { %v150_v6 = vadd.f32 %v148_v0, %v146_v4  ;;  %v151_v7 = vadd.f32 %v149_v3, %v147_v5 }
  0x13   : > { %v232_v8 = vpack.c.bf16 %v150_v6, %v150_v6  ;;  %v233_v9 = vpack.c.bf16 %v151_v7, %v151_v7 }
  0x15   : > { %160 = vst [vmem:[%s143_s21] sm:$0xf] %v232_v8  ;;  %161 = vst [vmem:[%s143_s21 + $0x4] sm:$0x3] %v233_v9 }
  0x16 PF: > { %s12_s9 = sadd.s32 1, %s248_s9  }
  0x17   : > { %p9_p4 = scmp.ge.s32.totalorder %s12_s9, 4  }
  0x19   :  { %11 = sbr.rel (!%p9_p4) target bundleno = 1 (0x1), region = 58 }

// kernel: seq2seq_forward.38
= control target key start
LH: loop header
LB: loop body
LE: loop exit
PB: predicated region body
PF: predicated region fallthrough
CT: control target
= control target key end

     0   :  { %v511_v1 = vmov 0   ;;  %v341_v27 = vlaneseq  ;;  %s631_s1 = inlined_call_operand.vmem [shape: bf16[128,384], index: 1, kind: input, shape index: {}]   ;;  %s632_s0 = inlined_call_operand.vmem [shape: bf16[24,128], index: 0, kind: input, shape index: {}]   ;;  %s633_s2 = inlined_call_operand.vmem [shape: f32[1,384], index: 2, kind: input, shape index: {}]   ;;  %s634_s3 = inlined_call_operand.vmem [shape: bf16[24,384], index: 3, kind: output, shape index: {}]  }
   0x1   :  { %v477_v0 = vld [vmem:[%s631_s1 + $0xac] ss:$12 sps:$4 sm:$0xff]   ;;  %242 = vmatprep.mubr.bf16.mxu0 %v511_v1  ;;  %v479_v2 = vld [vmem:[%s631_s1 + $0xb0] ss:$12 sps:$4 sm:$0xff]   ;;  %v480_v3 = vld [vmem:[%s631_s1 + $0xa8] ss:$12 sps:$4 sm:$0xff]  }
   0x2   :  { %210 = vmatprep.subr.bf16.mxu0 %v477_v0  ;;  %456 = vmatprep.subr.bf16.mxu1 %v479_v2  ;;  %v481_v4 = vld [vmem:[%s631_s1 + $0x94] ss:$12 sps:$4 sm:$0xff]   ;;  %v483_v5 = vld [vmem:[%s631_s1 + $0x98] ss:$12 sps:$4 sm:$0xff]   ;;  %v484_v6 = vld [vmem:[%s631_s1 + $0x90] ss:$12 sps:$4 sm:$0xff]  }
   0x3   :  { %211 = vmatpush1.bf16.msra.mxu0 %v480_v3  ;;  %457 = vmatpush3.bf16.msra.mxu1 %v479_v2  ;;  %v485_v7 = vld [vmem:[%s631_s1 + $0x7c] ss:$12 sps:$4 sm:$0xff]   ;;  %v487_v8 = vld [vmem:[%s631_s1 + $0x80] ss:$12 sps:$4 sm:$0xff]   ;;  %v488_v9 = vld [vmem:[%s631_s1 + $0x78] ss:$12 sps:$4 sm:$0xff]  }
   0x4   :  { %212 = vmatprep.subr.bf16.mxu0 %v481_v4  ;;  %458 = vmatprep.subr.bf16.mxu1 %v483_v5  ;;  %v489_v10 = vld [vmem:[%s631_s1 + $0x64] ss:$12 sps:$4 sm:$0xff]   ;;  %v491_v11 = vld [vmem:[%s631_s1 + $0x68] ss:$12 sps:$4 sm:$0xff]   ;;  %v492_v12 = vld [vmem:[%s631_s1 + $0x60] ss:$12 sps:$4 sm:$0xff]  }
   0x5   :  { %v493_v13 = vld [vmem:[%s631_s1 + $0x4c] ss:$12 sps:$4 sm:$0xff]   ;;  %v495_v14 = vld [vmem:[%s631_s1 + $0x50] ss:$12 sps:$4 sm:$0xff]   ;;  %v496_v15 = vld [vmem:[%s631_s1 + $0x48] ss:$12 sps:$4 sm:$0xff]  }
   0x6   :  { %v497_v16 = vld [vmem:[%s631_s1 + $0x34] ss:$12 sps:$4 sm:$0xff]   ;;  %v499_v17 = vld [vmem:[%s631_s1 + $0x38] ss:$12 sps:$4 sm:$0xff]   ;;  %v500_v19 = vld [vmem:[%s631_s1 + $0x30] ss:$12 sps:$4 sm:$0xff]  }
   0x7   :  { %213 = vmatpush1.bf16.msra.mxu0 %v484_v6  ;;  %459 = vmatpush3.bf16.msra.mxu1 %v483_v5  ;;  %v509_v18 = vld [vmem:[%s632_s0] sm:$0xff]   ;;  %v501_v20 = vld [vmem:[%s631_s1 + $0x1c] ss:$12 sps:$4 sm:$0xff]   ;;  %v342_v28 = vshrl.u32 %v341_v27, 7 }
   0x8   :  { %214 = vmatprep.subr.bf16.mxu0 %v485_v7  ;;  %460 = vmatprep.subr.bf16.mxu1 %v487_v8  ;;  %v503_v21 = vld [vmem:[%s631_s1 + $0x20] ss:$12 sps:$4 sm:$0xff]   ;;  %v504_v22 = vld [vmem:[%s631_s1 + $0x18] ss:$12 sps:$4 sm:$0xff]   ;;  %v507_v24 = vld [vmem:[%s631_s1 + $0x8] ss:$12 sps:$4 sm:$0xff]  }
   0x9   :  { %472 = vmatprep.mubr.bf16.mxu1 %v509_v18  ;;  %v505_v23 = vld [vmem:[%s631_s1 + $0x4] ss:$12 sps:$4 sm:$0xff]   ;;  %v508_v25 = vld [vmem:[%s631_s1] ss:$12 sps:$4 sm:$0xff]   ;;  %v510_v26 = vld [vmem:[%s632_s0 + $0x8] ss:$0 sps:$4 sm:$0xff]  }
   0xa   :  { %v351_v29 = vsub.s32 2, %v342_v28  ;;  %v343_v30 = vsub.s32 0, %v342_v28  ;;  %v347_v31 = vsub.s32 1, %v342_v28  ;;  %v339_v32 = vld [vmem:[%s633_s2] sm:$0x7] }
   0xb   :  { %215 = vmatpush1.bf16.msra.mxu0 %v488_v9  ;;  %461 = vmatpush3.bf16.msra.mxu1 %v487_v8 }
   0xc   :  { %216 = vmatprep.subr.bf16.mxu0 %v489_v10  ;;  %462 = vmatprep.subr.bf16.mxu1 %v491_v11  ;;  %v352_v33 = vrot.slane %v339_v32, %v351_v29  ;;  %v344_v34 = vrot.slane %v339_v32, %v343_v30  ;;  %v348_v35 = vrot.slane %v339_v32, %v347_v31 }
   0xf   :  { %217 = vmatpush1.bf16.msra.mxu0 %v492_v12  ;;  %463 = vmatpush3.bf16.msra.mxu1 %v491_v11 }
  0x10   :  { %218 = vmatprep.subr.bf16.mxu0 %v493_v13  ;;  %464 = vmatprep.subr.bf16.mxu1 %v495_v14 }
  0x13   :  { %219 = vmatpush1.bf16.msra.mxu0 %v496_v15  ;;  %465 = vmatpush3.bf16.msra.mxu1 %v495_v14 }
  0x14   :  { %220 = vmatprep.subr.bf16.mxu0 %v497_v16  ;;  %466 = vmatprep.subr.bf16.mxu1 %v499_v17 }
  0x17   :  { %221 = vmatpush1.bf16.msra.mxu0 %v500_v19  ;;  %467 = vmatpush3.bf16.msra.mxu1 %v499_v17 }
  0x18   :  { %222 = vmatprep.subr.bf16.mxu0 %v501_v20  ;;  %468 = vmatprep.subr.bf16.mxu1 %v503_v21 }
  0x1b   :  { %223 = vmatpush1.bf16.msra.mxu0 %v504_v22  ;;  %469 = vmatpush3.bf16.msra.mxu1 %v503_v21 }
  0x1c   :  { %224 = vmatprep.subr.bf16.mxu0 %v505_v23  ;;  %470 = vmatprep.subr.bf16.mxu1 %v507_v24 }
  0x1f   :  { %225 = vmatpush1.bf16.msra.mxu0 %v508_v25  ;;  %471 = vmatpush3.bf16.msra.mxu1 %v507_v24 }
  0x22   :  { %243 = vmatmul.mubr.bf16.vlgmr.msra.gmra.mxu0 %v509_v18  ;;  %473 = vmatmul.mubr.bf16.vlgmr.msra.gmra.mxu1 %v510_v26 }
  0x23   :  { %252 = vmatprep.mubr.bf16.mxu0 %v511_v1 }
  0x2a   :  { %253 = vmatmul.mubr.bf16.gmra.mxu0 %v510_v26 }
  0xe2   :  { %v244_v36 = vpop.f32.mrf.mxu0  ;;  %v474_v37 = vpop.f32.mrf.mxu1 }
  0xe3   :  { %v364_v38 = vadd.f32 %v474_v37, %v352_v33  ;;  %v356_v41 = vadd.f32 %v344_v34, %v244_v36 }
  0xe4   :  { %v246_v39 = vpop.f32.mrf.mxu0  ;;  %v295_v40 = vpop.f32.mrf.mxu1 }
  0xe5   :  { %v445_v42 = vpack.c.bf16 %v364_v38, %v364_v38  ;;  %v357_v43 = vadd.f32 %v348_v35, %v246_v39  ;;  %v358_v44 = vadd.f32 %v352_v33, %v295_v40 }
  0xe6   :  { %v248_v45 = vpop.f32.mrf.mxu0  ;;  %v475_v46 = vpop.f32.mrf.mxu1 }
  0xe7   :  { %403 = vst [vmem:[%s634_s3 + $0x20] sm:$0xf] %v445_v42  ;;  %v440_v47 = vpack.c.bf16 %v357_v43, %v356_v41  ;;  %v441_v48 = vpack.c.bf16 %v358_v44, %v358_v44  ;;  %v359_v51 = vadd.f32 %v344_v34, %v248_v45 }
  0xe8   :  { %v250_v49 = vpop.f32.mrf.mxu0  ;;  %v298_v50 = vpop.f32.mrf.mxu1 }
  0xe9   :  { %398 = vst [vmem:[%s634_s3] sm:$0xff] %v440_v47  ;;  %399 = vst [vmem:[%s634_s3 + $0x8] sm:$0xf] %v441_v48  ;;  %v360_v52 = vadd.f32 %v348_v35, %v250_v49  ;;  %v361_v53 = vadd.f32 %v352_v33, %v298_v50 }
  0xea   :  { %v254_v54 = vpop.f32.mrf.mxu0 }
  0xeb   :  { %v442_v55 = vpack.c.bf16 %v360_v52, %v359_v51  ;;  %v443_v56 = vpack.c.bf16 %v361_v53, %v361_v53  ;;  %v362_v58 = vadd.f32 %v344_v34, %v254_v54 }
  0xec   :  { %v256_v57 = vpop.f32.mrf.mxu0 }
  0xed   :  { %400 = vst [vmem:[%s634_s3 + $0xc] sm:$0xff] %v442_v55  ;;  %401 = vst [vmem:[%s634_s3 + $0x14] sm:$0xf] %v443_v56  ;;  %v363_v59 = vadd.f32 %v348_v35, %v256_v57 }
  0xee   :  { %v258_v60 = vpop.f32.mrf.mxu0 }
  0xef   :  { %v444_v61 = vpack.c.bf16 %v363_v59, %v362_v58 }
  0xf0   :  { %v259_v62 = vpop.f32.mrf.mxu0 }
  0xf1   :  { %402 = vst [vmem:[%s634_s3 + $0x18] sm:$0xff] %v444_v61 }

// kernel: seq2seq_forward.41
= control target key start
LH: loop header
LB: loop body
LE: loop exit
PB: predicated region body
PF: predicated region fallthrough
CT: control target
= control target key end

     0   :  { %s182_s0 = inlined_call_operand.vmem [shape: bf16[24,128], index: 0, kind: input, shape index: {}]   ;;  %s183_s1 = inlined_call_operand.vmem [shape: bf16[24,128], index: 1, kind: input, shape index: {}]   ;;  %s184_s2 = inlined_call_operand.vmem [shape: f32[1,128], index: 2, kind: input, shape index: {}]   ;;  %s185_s3 = inlined_call_operand.vmem [shape: f32[1,128], index: 3, kind: input, shape index: {}]   ;;  %s186_s4 = inlined_call_operand.vmem [shape: bf16[24,128], index: 4, kind: output, shape index: {}]  }
   0x1   :  { %v115_v0 = vld [vmem:[%s182_s0] sm:$0xff]   ;;  %v19_v2 = vld [vmem:[%s182_s0 + $0x8] sm:$0xf] }
   0x2   :  { %v119_v1 = vld [vmem:[%s183_s1] sm:$0xff]   ;;  %v116_v3 = vunpack.c.l.bf16 %v115_v0  ;;  %v22_v5 = vunpack.c.l.bf16 %v19_v2  ;;  %v25_v6 = vld [vmem:[%s183_s1 + $0x8] sm:$0xf]  ;;  %v117_v7 = vunpack.c.h.bf16 %v115_v0 }
   0x3   :  { %v120_v4 = vunpack.c.l.bf16 %v119_v1  ;;  %v28_v8 = vunpack.c.l.bf16 %v25_v6  ;;  %v121_v9 = vunpack.c.h.bf16 %v119_v1  ;;  %v106_v36 = vld [vmem:[%s184_s2] ss:$0 sm:$0xff] }
   0x4   :  { %v107_v42 = vld [vmem:[%s185_s3] ss:$0 sm:$0xff] }
   0x5   :  { %v29_v10 = vadd.f32 %v120_v4, %v116_v3  ;;  %v31_v11 = vadd.f32 %v28_v8, %v22_v5  ;;  %v30_v12 = vadd.f32 %v121_v9, %v117_v7 }
   0x7   :  { %32 = vadd.xlane.f32.xlu0 %v29_v10  ;;  %36 = vadd.xlane.f32.xlu1 %v31_v11 }
   0xb   :  { %34 = vadd.xlane.f32.xlu0 %v30_v12 }
  0x90   :  { %v33_v13 = vpop.xlane.xlu0 %32  ;;  %v37_v15 = vpop.xlane.xlu1 %36 }
  0x91   :  { %v39_v14 = vmul.f32 0.0078125, %v33_v13  ;;  %v41_v16 = vmul.f32 0.0078125, %v37_v15 }
  0x93   :  { %v42_v17 = vsub.f32 %v29_v10, %v39_v14  ;;  %v44_v18 = vsub.f32 %v31_v11, %v41_v16 }
  0x94   :  { %v35_v19 = vpop.xlane.xlu0 %34 }
  0x95   :  { %v40_v20 = vmul.f32 0.0078125, %v35_v19  ;;  %v45_v21 = vmul.f32 %v42_v17, %v42_v17  ;;  %v47_v23 = vmul.f32 %v44_v18, %v44_v18 }
  0x97   :  { %v43_v22 = vsub.f32 %v30_v12, %v40_v20  ;;  %48 = vadd.xlane.f32.xlu1 %v45_v21 }
  0x99   :  { %v46_v24 = vmul.f32 %v43_v22, %v43_v22 }
  0x9b   :  { %52 = vadd.xlane.f32.xlu1 %v47_v23  ;;  %50 = vadd.xlane.f32.xlu0 %v46_v24 }
 0x120   :  { %v49_v25 = vpop.xlane.xlu1 %48 }
 0x121   :  { %v54_v26 = vmul.f32 0.0078125, %v49_v25 }
 0x123   :  { %v57_v27 = vadd.f32 1e-05, %v54_v26 }
 0x124   :  { %v53_v28 = vpop.xlane.xlu1 %52  ;;  %v51_v29 = vpop.xlane.xlu0 %50 }
 0x125   :  { %127 = vrsqrt.f32 %v57_v27  ;;  %v56_v30 = vmul.f32 0.0078125, %v53_v28  ;;  %v55_v31 = vmul.f32 0.0078125, %v51_v29 }
 0x127   :  { %v59_v32 = vadd.f32 1e-05, %v56_v30  ;;  %v58_v33 = vadd.f32 1e-05, %v55_v31 }
 0x129   :  { %129 = vrsqrt.f32 %v59_v32 }
 0x12a   :  { %131 = vrsqrt.f32 %v58_v33 }
 0x132   :  { %v128_v34 = vpop.eup %127 }
 0x133   :  { %v63_v35 = vmul.f32 %v128_v34, %v42_v17 }
 0x135   :  { %v73_v40 = vmul.f32 %v106_v36, %v63_v35 }
 0x136   :  { %v130_v37 = vpop.eup %129 }
 0x137   :  { %v132_v38 = vpop.eup %131  ;;  %v65_v39 = vmul.f32 %v130_v37, %v44_v18  ;;  %v83_v46 = vadd.f32 %v107_v42, %v73_v40 }
 0x138   :  { %v64_v41 = vmul.f32 %v132_v38, %v43_v22 }
 0x139   :  { %v75_v43 = vmul.f32 %v106_v36, %v65_v39 }
 0x13a   :  { %v74_v44 = vmul.f32 %v106_v36, %v64_v41 }
 0x13b   :  { %v85_v45 = vadd.f32 %v107_v42, %v75_v43 }
 0x13c   :  { %v84_v47 = vadd.f32 %v107_v42, %v74_v44 }
 0x13d   :  { %v113_v48 = vpack.c.bf16 %v85_v45, %v85_v45 }
 0x13e   :  { %v125_v49 = vpack.c.bf16 %v84_v47, %v83_v46 }
 0x13f   :  { %101 = vst [vmem:[%s186_s4 + $0x8] sm:$0xf] %v113_v48 }
 0x140   :  { %126 = vst [vmem:[%s186_s4] sm:$0xff] %v125_v49  }

// kernel: seq2seq_forward.40
= control target key start
LH: loop header
LB: loop body
LE: loop exit
PB: predicated region body
PF: predicated region fallthrough
CT: control target
= control target key end

     0   :  { %s313_s1 = inlined_call_operand.vmem [shape: bf16[128,128], index: 1, kind: input, shape index: {}]   ;;  %s314_s0 = inlined_call_operand.vmem [shape: bf16[24,128], index: 0, kind: input, shape index: {}]   ;;  %s315_s2 = inlined_call_operand.vmem [shape: f32[1,128], index: 2, kind: input, shape index: {}]   ;;  %s316_s3 = inlined_call_operand.vmem [shape: bf16[24,128], index: 3, kind: output, shape index: {}]  }
   0x1   :  { %v244_v0 = vld [vmem:[%s313_s1 + $0x38] sm:$0xff]   ;;  %v245_v1 = vld [vmem:[%s313_s1 + $0x30] sm:$0xff]   ;;  %v246_v2 = vld [vmem:[%s313_s1 + $0x28] sm:$0xff]  }
   0x2   :  { %224 = vmatprep.subr.bf16.mxu0 %v244_v0  ;;  %v247_v3 = vld [vmem:[%s313_s1 + $0x20] sm:$0xff]   ;;  %v248_v5 = vld [vmem:[%s313_s1 + $0x18] sm:$0xff]   ;;  %v249_v6 = vld [vmem:[%s313_s1 + $0x10] sm:$0xff]  }
   0x3   :  { %225 = vmatpush3.bf16.msra.mxu0 %v244_v0  ;;  %v252_v4 = vld [vmem:[%s314_s0] sm:$0xff]   ;;  %v250_v7 = vld [vmem:[%s313_s1 + $0x8] sm:$0xff]  }
   0x4   :  { %226 = vmatprep.subr.bf16.mxu0 %v245_v1  ;;  %240 = vmatprep.mubr.bf16.mxu0 %v252_v4  ;;  %v251_v8 = vld [vmem:[%s313_s1] sm:$0xff]   ;;  %v253_v9 = vld [vmem:[%s314_s0 + $0x8] ss:$0 sps:$4 sm:$0xff]  }
   0x5   :  { %v202_v10 = vld [vmem:[%s315_s2] ss:$0 sm:$0xff] }
   0x7   :  { %227 = vmatpush3.bf16.msra.mxu0 %v245_v1 }
   0x8   :  { %228 = vmatprep.subr.bf16.mxu0 %v246_v2 }
   0xb   :  { %229 = vmatpush3.bf16.msra.mxu0 %v246_v2 }
   0xc   :  { %230 = vmatprep.subr.bf16.mxu0 %v247_v3 }
   0xf   :  { %231 = vmatpush3.bf16.msra.mxu0 %v247_v3 }
  0x10   :  { %232 = vmatprep.subr.bf16.mxu0 %v248_v5 }
  0x13   :  { %233 = vmatpush3.bf16.msra.mxu0 %v248_v5 }
  0x14   :  { %234 = vmatprep.subr.bf16.mxu0 %v249_v6 }
  0x17   :  { %235 = vmatpush3.bf16.msra.mxu0 %v249_v6 }
  0x18   :  { %236 = vmatprep.subr.bf16.mxu0 %v250_v7 }
  0x1b   :  { %237 = vmatpush3.bf16.msra.mxu0 %v250_v7 }
  0x1c   :  { %238 = vmatprep.subr.bf16.mxu0 %v251_v8 }
  0x1f   :  { %239 = vmatpush3.bf16.msra.mxu0 %v251_v8 }
  0x22   :  { %241 = vmatmul.mubr.bf16.vlgmr.msra.gmra.mxu0 %v253_v9 }
  0xe2   :  { %v242_v11 = vpop.f32.mrf.mxu0 }
  0xe3   :  { %v171_v12 = vadd.f32 %v242_v11, %v202_v10 }
  0xe4   :  { %v136_v13 = vpop.f32.mrf.mxu0 }
  0xe5   :  { %v208_v14 = vpack.c.bf16 %v171_v12, %v171_v12  ;;  %v169_v17 = vadd.f32 %v202_v10, %v136_v13 }
  0xe6   :  { %v243_v15 = vpop.f32.mrf.mxu0 }
  0xe7   :  { %187 = vst [vmem:[%s316_s3 + $0x8] sm:$0xf] %v208_v14 }
  0xe8   :  { %v139_v16 = vpop.f32.mrf.mxu0 }
  0xe9   :  { %v170_v18 = vadd.f32 %v202_v10, %v139_v16 }
  0xeb   :  { %v212_v19 = vpack.c.bf16 %v170_v18, %v169_v17 }
  0xed   :  { %213 = vst [vmem:[%s316_s3] sm:$0xff] %v212_v19  }

// kernel: seq2seq_forward.39
= control target key start
LH: loop header
LB: loop body
LE: loop exit
PB: predicated region body
PF: predicated region fallthrough
CT: control target
= control target key end

     0   :  { %s1699_s12 = smov 0   ;;  %s1985_s0 = inlined_call_operand.vmem [shape: bf16[2,12,384], index: 0, kind: input, shape index: {}]   ;;  %s1986_s1 = inlined_call_operand.vmem [shape: f32[12,12], index: 1, kind: input, shape index: {}]   ;;  %s1987_s2 = inlined_call_operand.vmem [shape: f32[2,1,12], index: 2, kind: input, shape index: {}]   ;;  %s1988_s3 = inlined_call_operand.vmem [shape: bf16[2,12,128], index: 3, kind: output, shape index: {}]  }
   0x1 LB: > { %s1378_s13 = sadd.s32 4294967295, %s1668_s12   ;;  %p1382_p0 = scmp.ge.s32.totalorder %s1668_s12, 1  ;;  %s1668_s12 = sphi %s1699_s12, %s13_s12  }
   0x2   : > { %p145_p1 = scmp.lt.s32.totalorder %s1668_s12, 3 }
   0x4   : > { %p146_p2 = pnand %p1382_p0, %p145_p1 }
   0x5   : > { %p172_p3 = scmp.lt.s32.totalorder (!%p146_p2), %s1378_s13, 1  ;;  %s1672_s18 = smov (!%p146_p2), 112  }
   0x6   : > { %149 = sbr.rel (%p146_p2) target bundleno = 1155 (0x483), region = 32  ;;  %s1673_s19 = smov (!%p146_p2), 96  }
   0x7   : > { %s1674_s20 = smov (!%p146_p2), 80   ;;  %s1675_s21 = smov (!%p146_p2), 64  }
   0x8   : > { %s1676_s22 = smov (!%p146_p2), 48   ;;  %s1677_s23 = smov (!%p146_p2), 32  }
   0x9   : > { %s1678_s24 = smov (!%p146_p2), 16  }
   0xb   : > { %v1670_v0 = vmov 0.0   ;;  %vm1671_vm0 = vmmov 0   ;;  %s1990_s13 = smov (!%p172_p3, %s1378_s13), 1  ;;  %vm209_vm1 = vcmask 130048   ;;  %v190_v4 = vld [vmem:[%s1986_s1] sm:$0xff]  ;;  %vm261_vm2 = vcmask 97280  }
   0xc   : > { %1445 = vmatprep.subr.bf16.mxu0 %v1670_v0  ;;  %1447 = vmatprep.mubr.msk.bf16.mxu0 %vm1671_vm0, %v1670_v0  ;;  %s1541_s14 = smul.u32 24, %s1990_s13  ;;  %s179_s27 = scalar_lea.vmem %s1987_s2, %s1990_s13  ;;  %v191_v8 = vld [vmem:[%s1986_s1 + $0x8] sm:$0xf]  ;;  %vm265_vm3 = vcmask 93184   ;;  %vm290_vm4 = vcmask 1045504   ;;  %vm1286_vm5 = vcmask 261120  }
   0xd   : > { %1451 = vmatprep.subr.bf16.mxu1 %v1670_v0  ;;  %1453 = vmatprep.mubr.msk.bf16.mxu1 %vm1671_vm0, %v1670_v0  ;;  %v1386_v5 = vld [vmem:[%s179_s27] ss:$0 sm:$0xff]  ;;  %vm1289_vm6 = vcmask 392192   ;;  %vm1292_vm7 = vcmask 523264   ;;  %vm1295_vm8 = vcmask 654336   ;;  %vm1298_vm9 = vcmask 785408  }
   0xe   : > { %s1719_s17 = scalar_lea.vmem %s1985_s0, %s1541_s14  ;;  %v1745_v6 = vadd.f32 %v1386_v5, %v190_v4  ;;  %v1751_v12 = vadd.f32 %v1386_v5, %v191_v8  ;;  %s1410_s5 = sshll.u32 %s1990_s13, 3  ;;  %vm1301_vm10 = vcmask 916480  }
   0xf   : > { %v1594_v1 = vld [vmem:[%s1719_s17 + $0x4] ss:$12 sps:$4 sm:$0x3f]   ;;  %v1596_v3 = vld [vmem:[%s1719_s17] ss:$12 sps:$4 sm:$0x3f]   ;;  %s184_s8 = scalar_lea.vmem %s1988_s3, %s1410_s5 }
  0x10   : > { %v214_v2 = vsel %vm209_vm1, %v1594_v1, 0  ;;  %341 = vrot.lane.b32.xlu1 %v1594_v1, %s1672_s18  ;;  %v1757_v19 = vld [vmem:[%s1719_s17 + $0x8] ss:$12 sps:$4 sm:$0x3f]  }
  0x11   : > { %1446 = vmatpush3.bf16.xpose.msra.mxu0 %v214_v2  ;;  %v292_v20 = vsel %vm290_vm4, %v1757_v19, 0 }
  0x12   : > { %1463 = vmatprep.subr.bf16.mxu0 %v1670_v0  ;;  %1452 = vmatpush3.bf16.msra.mxu1 %v292_v20 }
  0x13   : > { %1457 = vmatprep.subr.bf16.mxu1 %v1670_v0 }
  0x14   : > { %339 = vrot.lane.b32.xlu1 %v1596_v3, %s1672_s18 }
  0x18   : > { %1448 = vmatmul.mubr.msk.bf16.vlgmr.msra.gmra.mxu0 %vm209_vm1, %v1596_v3  ;;  %466 = vrot.lane.b32.xlu1 %v1596_v3, %s1673_s19 }
  0x19   : > { %1465 = vmatprep.mubr.msk.bf16.mxu0 %vm1671_vm0, %v1670_v0 }
  0x1c   : > { %595 = vrot.lane.b32.xlu1 %v1594_v1, %s1674_s20 }
  0x20   : > { %593 = vrot.lane.b32.xlu1 %v1596_v3, %s1674_s20 }
  0x24   : > { %722 = vrot.lane.b32.xlu1 %v1594_v1, %s1675_s21 }
  0x28   : > { %720 = vrot.lane.b32.xlu1 %v1596_v3, %s1675_s21 }
  0x2c   : > { %849 = vrot.lane.b32.xlu1 %v1594_v1, %s1676_s22 }
  0x30   : > { %976 = vrot.lane.b32.xlu1 %v1594_v1, %s1677_s23 }
  0x34   : > { %1103 = vrot.lane.b32.xlu1 %v1594_v1, %s1678_s24 }
  0x38   : > { %540 = vrot.lane.b32.xlu1 %v1757_v19, %s1673_s19 }
  0x82   : > { %v342_v27 = vpop.permute.xlu1 %341 }
  0x83   : > { %v347_v32 = vsel %vm209_vm1, %v342_v27, 0 }
  0x86   : > { %v340_v28 = vpop.permute.xlu1 %339 }
  0x8a   : > { %v467_v31 = vpop.permute.xlu1 %466 }
  0x8e   : > { %v596_v35 = vpop.permute.xlu1 %595 }
  0x8f   : > { %v601_v38 = vsel %vm209_vm1, %v596_v35, 0 }
  0x92   : > { %v594_v37 = vpop.permute.xlu1 %593 }
  0x96   : > { %v723_v39 = vpop.permute.xlu1 %722 }
  0x97   : > { %v728_v41 = vsel %vm209_vm1, %v723_v39, 0 }
  0x9a   : > { %v721_v40 = vpop.permute.xlu1 %720 }
  0x9e   : > { %v850_v42 = vpop.permute.xlu1 %849 }
  0x9f   : > { %v855_v43 = vsel %vm209_vm1, %v850_v42, 0 }
  0xa2   : > { %v977_v44 = vpop.permute.xlu1 %976 }
  0xa3   : > { %v982_v46 = vsel %vm209_vm1, %v977_v44, 0 }
  0xa6   : > { %v1104_v47 = vpop.permute.xlu1 %1103 }
  0xa7   : > { %v1109_v49 = vsel %vm209_vm1, %v1104_v47, 0 }
  0xd8   : > { %v250_v7 = vpop.f32.mrf.mxu0 }
  0xd9   : > { %v257_v9 = vmul.f32 0.25, %v250_v7 }
  0xda   : > { %v1449_v10 = vpop.f32.mrf.mxu0 }
  0xdb   : > { %v259_v11 = vadd.f32 %v257_v9, %v1745_v6 }
  0xdc   : > { %v253_v13 = vpop.f32.mrf.mxu0 }
  0xdd   : > { %v258_v14 = vmul.f32 0.25, %v253_v13  ;;  %v262_v15 = vsel %vm261_vm2, %v259_v11, -inf }
  0xde   : > { %263 = vmax.xlane.f32.xlu0 %v262_v15  ;;  %v1450_v16 = vpop.f32.mrf.mxu0 }
  0xdf   : > { %v260_v17 = vadd.f32 %v258_v14, %v1751_v12 }
  0xe1   : > { %v266_v18 = vsel %vm265_vm3, %v260_v17, -inf }
  0xe2   : > { %267 = vmax.xlane.f32.xlu0 %v266_v18 }
  0xf8   : > { %468 = vrot.lane.b32.xlu0 %v1594_v1, %s1673_s19 }
  0xfc   : > { %847 = vrot.lane.b32.xlu0 %v1596_v3, %s1676_s22 }
 0x100   : > { %974 = vrot.lane.b32.xlu0 %v1596_v3, %s1677_s23 }
 0x104   : > { %1101 = vrot.lane.b32.xlu0 %v1596_v3, %s1678_s24 }
 0x108   : > { %413 = vrot.lane.b32.xlu0 %v1757_v19, %s1672_s18 }
 0x167   : > { %v264_v21 = vpop.xlane.xlu0 %263 }
 0x168   : > { %v269_v22 = vsub.f32 %v259_v11, %v264_v21 }
 0x16a   : > { %v271_v23 = vmul.f32 1.442695, %v269_v22 }
 0x16b   : > { %v268_v24 = vpop.xlane.xlu0 %267 }
 0x16c   : > { %v270_v25 = vsub.f32 %v260_v17, %v268_v24  ;;  %1598 = vpow2.f32 %v271_v23 }
 0x16e   : > { %v273_v26 = vmul.f32 1.442695, %v270_v25 }
 0x16f   : > { %v469_v34 = vpop.permute.xlu0 %468 }
 0x170   : > { %1600 = vpow2.f32 %v273_v26  ;;  %v474_v36 = vsel %vm209_vm1, %v469_v34, 0 }
 0x173   : > { %v848_v45 = vpop.permute.xlu0 %847 }
 0x177   : > { %v975_v48 = vpop.permute.xlu0 %974 }
 0x179   : > { %v1770_v29 = vpop.eup %1598 }
 0x17b   : > { %v1102_v50 = vpop.permute.xlu0 %1101 }
 0x17d   : > { %v1772_v30 = vpop.eup %1600 }
 0x17e   : > { %v281_v33 = vpack.c.bf16 %v1772_v30, %v1770_v29 }
 0x17f   : > { %v414_v51 = vpop.permute.xlu0 %413 }
 0x180   : > { %1454 = vmatmul.mubr.msk.bf16.vlgmr.msra.gmra.mxu1 %vm261_vm2, %v281_v33  ;;  %v419_v52 = vsel %vm290_vm4, %v414_v51, 0 }
 0x181   : > { %1458 = vmatpush3.bf16.xpose.msra.mxu1 %v347_v32  ;;  %1459 = vmatprep.mubr.msk.bf16.mxu1 %vm1671_vm0, %v1670_v0 }
 0x182   : > { %1469 = vmatprep.subr.bf16.mxu1 %v1670_v0  ;;  %1464 = vmatpush3.bf16.msra.mxu0 %v419_v52 }
 0x183   : > { %1475 = vmatprep.subr.bf16.mxu0 %v1670_v0 }
 0x188   : > { %1460 = vmatmul.mubr.msk.bf16.vlgmr.msra.gmra.mxu1 %vm209_vm1, %v340_v28 }
 0x189   : > { %1470 = vmatpush3.bf16.xpose.msra.mxu1 %v474_v36  ;;  %1471 = vmatprep.mubr.msk.bf16.mxu1 %vm1671_vm0, %v1670_v0 }
 0x18a   : > { %1481 = vmatprep.subr.bf16.mxu1 %v1670_v0 }
 0x190   : > { %1472 = vmatmul.mubr.msk.bf16.vlgmr.msra.gmra.mxu1 %vm209_vm1, %v467_v31 }
 0x191   : > { %1482 = vmatpush3.bf16.xpose.msra.mxu1 %v601_v38  ;;  %1483 = vmatprep.mubr.msk.bf16.mxu1 %vm1671_vm0, %v1670_v0 }
 0x192   : > { %1493 = vmatprep.subr.bf16.mxu1 %v1670_v0 }
 0x198   : > { %1484 = vmatmul.mubr.msk.bf16.vlgmr.msra.gmra.mxu1 %vm209_vm1, %v594_v37 }
 0x199   : > { %1494 = vmatpush3.bf16.xpose.msra.mxu1 %v728_v41  ;;  %1495 = vmatprep.mubr.msk.bf16.mxu1 %vm1671_vm0, %v1670_v0 }
 0x19a   : > { %1505 = vmatprep.subr.bf16.mxu1 %v1670_v0 }
 0x1a0   : > { %1496 = vmatmul.mubr.msk.bf16.vlgmr.msra.gmra.mxu1 %vm209_vm1, %v721_v40 }
 0x1a1   : > { %1506 = vmatpush3.bf16.xpose.msra.mxu1 %v855_v43  ;;  %1507 = vmatprep.mubr.msk.bf16.mxu1 %vm1671_vm0, %v1670_v0 }
 0x1a2   : > { %1517 = vmatprep.subr.bf16.mxu1 %v1670_v0 }
 0x1a8   : > { %1508 = vmatmul.mubr.msk.bf16.vlgmr.msra.gmra.mxu1 %vm209_vm1, %v848_v45 }
 0x1a9   : > { %1518 = vmatpush3.bf16.xpose.msra.mxu1 %v982_v46  ;;  %1519 = vmatprep.mubr.msk.bf16.mxu1 %vm1671_vm0, %v1670_v0 }
 0x1aa   : > { %1529 = vmatprep.subr.bf16.mxu1 %v1670_v0 }
 0x1b0   : > { %1520 = vmatmul.mubr.msk.bf16.vlgmr.msra.gmra.mxu1 %vm209_vm1, %v975_v48 }
 0x1b1   : > { %1530 = vmatpush3.bf16.xpose.msra.mxu1 %v1109_v49  ;;  %1531 = vmatprep.mubr.msk.bf16.mxu1 %vm1671_vm0, %v1670_v0 }
 0x1b8   : > { %1532 = vmatmul.mubr.msk.bf16.vlgmr.msra.gmra.mxu1 %vm209_vm1, %v1102_v50 }
 0x240   : > { %v1813_v53 = vpop.f32.mrf.mxu1 }
 0x242   : > { %v1455_v54 = vpop.f32.mrf.mxu1 }
 0x244   : > { %v1815_v55 = vpop.f32.mrf.mxu1 }
 0x246   : > { %v1456_v56 = vpop.f32.mrf.mxu1 }
 0x248   : > { %v383_v57 = vpop.f32.mrf.mxu1 }
 0x249   : > { %v390_v58 = vmul.f32 0.25, %v383_v57 }
 0x24a   : > { %v1461_v59 = vpop.f32.mrf.mxu1 }
 0x24b   : > { %v1818_v60 = vadd.f32 %v390_v58, %v1745_v6 }
 0x24c   : > { %v386_v61 = vpop.f32.mrf.mxu1 }
 0x24d   : > { %v391_v62 = vmul.f32 0.25, %v386_v61  ;;  %v394_v63 = vsel %vm261_vm2, %v1818_v60, -inf }
 0x24e   : > { %395 = vmax.xlane.f32.xlu1 %v394_v63  ;;  %v1462_v1 = vpop.f32.mrf.mxu1 }
 0x24f   : > { %v1823_v2 = vadd.f32 %v391_v62, %v1751_v12 }
 0x250   : > { %v510_v3 = vpop.f32.mrf.mxu1 }
 0x251   : > { %v517_v4 = vmul.f32 0.25, %v510_v3  ;;  %v397_v5 = vsel %vm265_vm3, %v1823_v2, -inf }
 0x252   : > { %398 = vmax.xlane.f32.xlu0 %v397_v5  ;;  %v1473_v7 = vpop.f32.mrf.mxu1 }
 0x253   : > { %v1828_v8 = vadd.f32 %v517_v4, %v1745_v6 }
 0x254   : > { %v513_v9 = vpop.f32.mrf.mxu1 }
 0x255   : > { %v518_v10 = vmul.f32 0.25, %v513_v9  ;;  %v521_v11 = vsel %vm261_vm2, %v1828_v8, -inf }
 0x256   : > { %522 = vmax.xlane.f32.xlu0 %v521_v11  ;;  %v1474_v13 = vpop.f32.mrf.mxu1 }
 0x257   : > { %v1833_v14 = vadd.f32 %v518_v10, %v1751_v12 }
 0x258   : > { %v637_v15 = vpop.f32.mrf.mxu1 }
 0x259   : > { %v644_v16 = vmul.f32 0.25, %v637_v15  ;;  %v524_v17 = vsel %vm265_vm3, %v1833_v14, -inf }
 0x25a   : > { %525 = vmax.xlane.f32.xlu1 %v524_v17  ;;  %v1485_v18 = vpop.f32.mrf.mxu1 }
 0x25b   : > { %v1838_v20 = vadd.f32 %v644_v16, %v1745_v6 }
 0x25c   : > { %v640_v21 = vpop.f32.mrf.mxu1 }
 0x25d   : > { %v645_v22 = vmul.f32 0.25, %v640_v21  ;;  %v648_v23 = vsel %vm261_vm2, %v1838_v20, -inf }
 0x25e   : > { %649 = vmax.xlane.f32.xlu0 %v648_v23  ;;  %v1486_v24 = vpop.f32.mrf.mxu1 }
 0x25f   : > { %v1843_v25 = vadd.f32 %v645_v22, %v1751_v12 }
 0x260   : > { %v764_v26 = vpop.f32.mrf.mxu1 }
 0x261   : > { %v771_v27 = vmul.f32 0.25, %v764_v26  ;;  %v651_v28 = vsel %vm265_vm3, %v1843_v25, -inf }
 0x262   : > { %652 = vmax.xlane.f32.xlu1 %v651_v28  ;;  %v1497_v31 = vpop.f32.mrf.mxu1 }
 0x263   : > { %v1848_v32 = vadd.f32 %v771_v27, %v1745_v6 }
 0x264   : > { %v767_v33 = vpop.f32.mrf.mxu1 }
 0x265   : > { %v772_v34 = vmul.f32 0.25, %v767_v33  ;;  %v775_v35 = vsel %vm261_vm2, %v1848_v32, -inf }
 0x266   : > { %776 = vmax.xlane.f32.xlu0 %v775_v35  ;;  %v1498_v36 = vpop.f32.mrf.mxu1 }
 0x267   : > { %v1853_v37 = vadd.f32 %v772_v34, %v1751_v12 }
 0x268   : > { %v891_v38 = vpop.f32.mrf.mxu1 }
 0x269   : > { %v898_v39 = vmul.f32 0.25, %v891_v38  ;;  %v778_v40 = vsel %vm265_vm3, %v1853_v37, -inf }
 0x26a   : > { %779 = vmax.xlane.f32.xlu1 %v778_v40  ;;  %v1509_v41 = vpop.f32.mrf.mxu1 }
 0x26b   : > { %v1858_v42 = vadd.f32 %v898_v39, %v1745_v6 }
 0x26c   : > { %v894_v43 = vpop.f32.mrf.mxu1 }
 0x26d   : > { %v899_v44 = vmul.f32 0.25, %v894_v43  ;;  %v902_v45 = vsel %vm261_vm2, %v1858_v42, -inf }
 0x26e   : > { %903 = vmax.xlane.f32.xlu1 %v902_v45  ;;  %v1510_v46 = vpop.f32.mrf.mxu1 }
 0x26f   : > { %v1863_v47 = vadd.f32 %v899_v44, %v1751_v12 }
 0x270   : > { %v1018_v48 = vpop.f32.mrf.mxu1 }
 0x271   : > { %v905_v49 = vsel %vm265_vm3, %v1863_v47, -inf  ;;  %v1025_v9 = vmul.f32 0.25, %v1018_v48 }
 0x272   : > { %906 = vmax.xlane.f32.xlu1 %v905_v49  ;;  %v1521_v50 = vpop.f32.mrf.mxu1 }
 0x273   : > { %v1887_v10 = vadd.f32 %v1025_v9, %v1745_v6 }
 0x274   : > { %v1021_v51 = vpop.f32.mrf.mxu1 }
 0x275   : > { %v1026_v52 = vmul.f32 0.25, %v1021_v51  ;;  %v1029_v11 = vsel %vm261_vm2, %v1887_v10, -inf }
 0x276   : > { %v1522_v54 = vpop.f32.mrf.mxu1 }
 0x277   : > { %v1868_v56 = vadd.f32 %v1026_v52, %v1751_v12 }
 0x278   : > { %v1145_v57 = vpop.f32.mrf.mxu1 }
 0x279   : > { %v1152_v58 = vmul.f32 0.25, %v1145_v57  ;;  %v1032_v59 = vsel %vm265_vm3, %v1868_v56, -inf }
 0x27a   : > { %1033 = vmax.xlane.f32.xlu1 %v1032_v59  ;;  %v1533_v61 = vpop.f32.mrf.mxu1 }
 0x27b   : > { %v1873_v62 = vadd.f32 %v1152_v58, %v1745_v6 }
 0x27c   : > { %667 = vrot.lane.b32.xlu0 %v1757_v19, %s1674_s20  ;;  %v1148_v63 = vpop.f32.mrf.mxu1 }
 0x27d   : > { %v1153_v1 = vmul.f32 0.25, %v1148_v63  ;;  %v1156_v3 = vsel %vm261_vm2, %v1873_v62, -inf }
 0x27e   : > { %1157 = vmax.xlane.f32.xlu1 %v1156_v3  ;;  %v1534_v4 = vpop.f32.mrf.mxu1 }
 0x27f   : > { %v1880_v5 = vadd.f32 %v1153_v1, %v1751_v12  ;;  %v541_v12 = vpop.permute.xlu1 %540 }
 0x280   : > { %v546_v39 = vsel %vm290_vm4, %v541_v12, 0 }
 0x281   : > { %v1159_v7 = vsel %vm265_vm3, %v1880_v5, -inf }
 0x282   : > { %1160 = vmax.xlane.f32.xlu1 %v1159_v7 }
 0x293   : > { %794 = vrot.lane.b32.xlu1 %v1757_v19, %s1675_s21 }
 0x29b   : > { %1030 = vmax.xlane.f32.xlu0 %v1029_v11 }
 0x2b1   : > { %921 = vrot.lane.b32.xlu0 %v1757_v19, %s1676_s22 }
 0x2b5   : > { %1048 = vrot.lane.b32.xlu0 %v1757_v19, %s1677_s23 }
 0x2b9   : > { %1175 = vrot.lane.b32.xlu0 %v1757_v19, %s1678_s24 }
 0x2d7   : > { %v396_v13 = vpop.xlane.xlu1 %395 }
 0x2d8   : > { %v400_v15 = vsub.f32 %v1818_v60, %v396_v13 }
 0x2da   : > { %v402_v16 = vmul.f32 1.442695, %v400_v15 }
 0x2db   : > { %v399_v6 = vpop.xlane.xlu0 %398 }
 0x2dc   : > { %1602 = vpow2.f32 %v402_v16  ;;  %v401_v17 = vsub.f32 %v1823_v2, %v399_v6 }
 0x2de   : > { %v404_v18 = vmul.f32 1.442695, %v401_v17 }
 0x2df   : > { %v523_v21 = vpop.xlane.xlu0 %522 }
 0x2e0   : > { %1604 = vpow2.f32 %v404_v18  ;;  %v527_v22 = vsub.f32 %v1828_v8, %v523_v21 }
 0x2e2   : > { %v529_v23 = vmul.f32 1.442695, %v527_v22 }
 0x2e3   : > { %v526_v24 = vpop.xlane.xlu1 %525 }
 0x2e4   : > { %1606 = vpow2.f32 %v529_v23  ;;  %v528_v26 = vsub.f32 %v1833_v14, %v526_v24 }
 0x2e6   : > { %v531_v19 = vmul.f32 1.442695, %v528_v26 }
 0x2e7   : > { %v650_v27 = vpop.xlane.xlu0 %649 }
 0x2e8   : > { %1608 = vpow2.f32 %v531_v19  ;;  %v654_v60 = vsub.f32 %v1838_v20, %v650_v27 }
 0x2e9   : > { %v1603_v28 = vpop.eup %1602 }
 0x2ea   : > { %v656_v31 = vmul.f32 1.442695, %v654_v60  ;;  %v406_v33 = vsel %vm261_vm2, %v1603_v28, 0.0  ;;  %v278_v60 = vsel %vm265_vm3, %v1772_v30, 0.0 }
 0x2eb   : > { %v653_v2 = vpop.xlane.xlu1 %652  ;;  %407 = vadd.xlane.f32.xlu0 %v406_v33 }
 0x2ec   : > { %1610 = vpow2.f32 %v656_v31  ;;  %v655_v34 = vsub.f32 %v1843_v25, %v653_v2 }
 0x2ed   : > { %v1605_v8 = vpop.eup %1604 }
 0x2ee   : > { %v658_v35 = vmul.f32 1.442695, %v655_v34  ;;  %v409_v36 = vsel %vm265_vm3, %v1605_v8, 0.0  ;;  %v412_v38 = vpack.c.bf16 %v1605_v8, %v1603_v28 }
 0x2ef   : > { %410 = vadd.xlane.f32.xlu1 %v409_v36  ;;  %v777_v14 = vpop.xlane.xlu0 %776 }
 0x2f0   : > { %1612 = vpow2.f32 %v658_v35  ;;  %v781_v20 = vsub.f32 %v1848_v32, %v777_v14  ;;  %1466 = vmatmul.mubr.msk.bf16.vlgmr.msra.gmra.mxu0 %vm261_vm2, %v412_v38 }
 0x2f1   : > { %v1607_v40 = vpop.eup %1606  ;;  %1476 = vmatpush3.bf16.msra.mxu0 %v546_v39  ;;  %1477 = vmatprep.mubr.msk.bf16.mxu0 %vm1671_vm0, %v1670_v0 }
 0x2f2   : > { %v783_v25 = vmul.f32 1.442695, %v781_v20  ;;  %v533_v41 = vsel %vm261_vm2, %v1607_v40, 0.0  ;;  %1487 = vmatprep.subr.bf16.mxu0 %v1670_v0 }
 0x2f3   : > { %v780_v43 = vpop.xlane.xlu1 %779  ;;  %534 = vadd.xlane.f32.xlu0 %v533_v41  ;;  %v668_v46 = vpop.permute.xlu0 %667  ;;  %v275_v41 = vsel %vm261_vm2, %v1770_v29, 0.0 }
 0x2f4   : > { %1614 = vpow2.f32 %v783_v25  ;;  %v782_v44 = vsub.f32 %v1853_v37, %v780_v43  ;;  %v673_v51 = vsel %vm290_vm4, %v668_v46, 0 }
 0x2f5   : > { %v1609_v45 = vpop.eup %1608 }
 0x2f6   : > { %v785_v32 = vmul.f32 1.442695, %v782_v44  ;;  %v536_v48 = vsel %vm265_vm3, %v1609_v45, 0.0  ;;  %v539_v49 = vpack.c.bf16 %v1609_v45, %v1607_v40 }
 0x2f7   : > { %v904_v50 = vpop.xlane.xlu1 %903  ;;  %537 = vadd.xlane.f32.xlu0 %v536_v48 }
 0x2f8   : > { %1616 = vpow2.f32 %v785_v32  ;;  %v908_v52 = vsub.f32 %v1858_v42, %v904_v50  ;;  %1478 = vmatmul.mubr.msk.bf16.vlgmr.msra.gmra.mxu0 %vm261_vm2, %v539_v49 }
 0x2f9   : > { %v1611_v54 = vpop.eup %1610  ;;  %1488 = vmatpush3.bf16.msra.mxu0 %v673_v51  ;;  %1489 = vmatprep.mubr.msk.bf16.mxu0 %vm1671_vm0, %v1670_v0 }
 0x2fa   : > { %v910_v37 = vmul.f32 1.442695, %v908_v52  ;;  %v660_v57 = vsel %vm261_vm2, %v1611_v54, 0.0  ;;  %1499 = vmatprep.subr.bf16.mxu0 %v1670_v0 }
 0x2fb   : > { %v907_v58 = vpop.xlane.xlu1 %906  ;;  %661 = vadd.xlane.f32.xlu1 %v660_v57 }
 0x2fc   : > { %1618 = vpow2.f32 %v910_v37  ;;  %v909_v59 = vsub.f32 %v1863_v47, %v907_v58 }
 0x2fd   : > { %v1613_v61 = vpop.eup %1612 }
 0x2fe   : > { %v912_v63 = vmul.f32 1.442695, %v909_v59  ;;  %v663_v42 = vsel %vm265_vm3, %v1613_v61, 0.0  ;;  %v666_v1 = vpack.c.bf16 %v1613_v61, %v1611_v54 }
 0x2ff   : > { %664 = vadd.xlane.f32.xlu0 %v663_v42 }
 0x300   : > { %1620 = vpow2.f32 %v912_v63  ;;  %1490 = vmatmul.mubr.msk.bf16.vlgmr.msra.gmra.mxu0 %vm261_vm2, %v666_v1 }
 0x301   : > { %v1615_v3 = vpop.eup %1614  ;;  %1501 = vmatprep.mubr.msk.bf16.mxu0 %vm1671_vm0, %v1670_v0 }
 0x302   : > { %v787_v4 = vsel %vm261_vm2, %v1615_v3, 0.0 }
 0x303   : > { %v1034_v7 = vpop.xlane.xlu1 %1033  ;;  %788 = vadd.xlane.f32.xlu1 %v787_v4 }
 0x304   : > { %v1036_v9 = vsub.f32 %v1868_v56, %v1034_v7 }
 0x305   : > { %v1617_v47 = vpop.eup %1616 }
 0x306   : > { %v1039_v11 = vmul.f32 1.442695, %v1036_v9  ;;  %v790_v12 = vsel %vm265_vm3, %v1617_v47, 0.0  ;;  %v793_v24 = vpack.c.bf16 %v1617_v47, %v1615_v3 }
 0x307   : > { %v1158_v13 = vpop.xlane.xlu1 %1157  ;;  %791 = vadd.xlane.f32.xlu0 %v790_v12 }
 0x308   : > { %1622 = vpow2.f32 %v1039_v11  ;;  %v1162_v28 = vsub.f32 %v1873_v62, %v1158_v13 }
 0x309   : > { %v1619_v15 = vpop.eup %1618 }
 0x30a   : > { %v914_v16 = vsel %vm261_vm2, %v1619_v15, 0.0  ;;  %v1164_v2 = vmul.f32 1.442695, %v1162_v28 }
 0x30b   : > { %v1161_v6 = vpop.xlane.xlu1 %1160  ;;  %915 = vadd.xlane.f32.xlu1 %v914_v16 }
 0x30c   : > { %v1163_v17 = vsub.f32 %v1880_v5, %v1161_v6 }
 0x30d   : > { %v1621_v18 = vpop.eup %1620 }
 0x30e   : > { %v1166_v21 = vmul.f32 1.442695, %v1163_v17  ;;  %v917_v22 = vsel %vm265_vm3, %v1621_v18, 0.0  ;;  %v920_v36 = vpack.c.bf16 %v1621_v18, %v1619_v15 }
 0x30f   : > { %v795_v23 = vpop.permute.xlu1 %794  ;;  %918 = vadd.xlane.f32.xlu0 %v917_v22 }
 0x310   : > { %1624 = vpow2.f32 %v1166_v21  ;;  %v800_v56 = vsel %vm290_vm4, %v795_v23, 0 }
 0x311   : > { %1500 = vmatpush3.bf16.msra.mxu0 %v800_v56 }
 0x312   : > { %1511 = vmatprep.subr.bf16.mxu0 %v1670_v0 }
 0x314   : > { %1502 = vmatmul.mubr.msk.bf16.vlgmr.msra.gmra.mxu0 %vm261_vm2, %v793_v24 }
 0x315   : > { %v1623_v26 = vpop.eup %1622  ;;  %1513 = vmatprep.mubr.msk.bf16.mxu0 %vm1671_vm0, %v1670_v0 }
 0x316   : > { %v1044_v5 = vsel %vm265_vm3, %v1623_v26, 0.0 }
 0x317   : > { %1045 = vadd.xlane.f32.xlu0 %v1044_v5 }
 0x31d   : > { %v1625_v19 = vpop.eup %1624 }
 0x31e   : > { %v1171_v27 = vsel %vm265_vm3, %v1625_v19, 0.0 }
 0x31f   : > { %1172 = vadd.xlane.f32.xlu0 %v1171_v27 }
 0x323   : > { %279 = vadd.xlane.f32.xlu0 %v278_v60 }
 0x324   : > { %v1031_v31 = vpop.xlane.xlu0 %1030 }
 0x325   : > { %v1035_v33 = vsub.f32 %v1887_v10, %v1031_v31 }
 0x327   : > { %v1037_v34 = vmul.f32 1.442695, %v1035_v33 }
 0x328   : > { %v922_v8 = vpop.permute.xlu0 %921 }
 0x329   : > { %1626 = vpow2.f32 %v1037_v34  ;;  %v927_v35 = vsel %vm290_vm4, %v922_v8, 0 }
 0x32a   : > { %1512 = vmatpush3.bf16.msra.mxu0 %v927_v35  ;;  %1628 = vpow2.f32 %v1164_v2 }
 0x32b   : > { %1523 = vmatprep.subr.bf16.mxu0 %v1670_v0 }
 0x32c   : > { %v1049_v38 = vpop.permute.xlu0 %1048 }
 0x32d   : > { %1514 = vmatmul.mubr.msk.bf16.vlgmr.msra.gmra.mxu0 %vm261_vm2, %v920_v36  ;;  %v1054_v30 = vsel %vm290_vm4, %v1049_v38, 0 }
 0x32e   : > { %1524 = vmatpush3.bf16.msra.mxu0 %v1054_v30  ;;  %1525 = vmatprep.mubr.msk.bf16.mxu0 %vm1671_vm0, %v1670_v0 }
 0x32f   : > { %1535 = vmatprep.subr.bf16.mxu0 %v1670_v0 }
 0x330   : > { %v1176_v62 = vpop.permute.xlu0 %1175 }
 0x331   : > { %v1181_v39 = vsel %vm290_vm4, %v1176_v62, 0 }
 0x336   : > { %v1627_v10 = vpop.eup %1626 }
 0x337   : > { %v1041_v14 = vsel %vm261_vm2, %v1627_v10, 0.0  ;;  %v1047_v20 = vpack.c.bf16 %v1623_v26, %v1627_v10  ;;  %v1629_v40 = vpop.eup %1628 }
 0x338   : > { %1042 = vadd.xlane.f32.xlu1 %v1041_v14  ;;  %v1168_v25 = vsel %vm261_vm2, %v1629_v40, 0.0  ;;  %v1174_v43 = vpack.c.bf16 %v1625_v19, %v1629_v40 }
 0x339   : > { %1526 = vmatmul.mubr.msk.bf16.vlgmr.msra.gmra.mxu0 %vm261_vm2, %v1047_v20 }
 0x33a   : > { %1536 = vmatpush3.bf16.msra.mxu0 %v1181_v39  ;;  %1537 = vmatprep.mubr.msk.bf16.mxu0 %vm1671_vm0, %v1670_v0 }
 0x33c   : > { %1169 = vadd.xlane.f32.xlu1 %v1168_v25 }
 0x340   : > { %276 = vadd.xlane.f32.xlu1 %v275_v41 }
 0x341   : > { %1538 = vmatmul.mubr.msk.bf16.vlgmr.msra.gmra.mxu0 %vm261_vm2, %v1174_v43 }
 0x374   : > { %v408_v44 = vpop.xlane.xlu0 %407 }
 0x375   : > { %1630 = vrcp.f32 %v408_v44 }
 0x378   : > { %v411_v45 = vpop.xlane.xlu1 %410 }
 0x379   : > { %1632 = vrcp.f32 %v411_v45 }
 0x37c   : > { %v535_v46 = vpop.xlane.xlu0 %534 }
 0x37d   : > { %1634 = vrcp.f32 %v535_v46 }
 0x380   : > { %v538_v32 = vpop.xlane.xlu0 %537 }
 0x381   : > { %1636 = vrcp.f32 %v538_v32 }
 0x382   : > { %v1631_v49 = vpop.eup %1630 }
 0x384   : > { %v662_v50 = vpop.xlane.xlu1 %661 }
 0x385   : > { %1638 = vrcp.f32 %v662_v50 }
 0x386   : > { %v1633_v51 = vpop.eup %1632 }
 0x388   : > { %v665_v52 = vpop.xlane.xlu0 %664 }
 0x389   : > { %1640 = vrcp.f32 %v665_v52 }
 0x38a   : > { %v1635_v63 = vpop.eup %1634 }
 0x38c   : > { %v789_v18 = vpop.xlane.xlu1 %788 }
 0x38d   : > { %1642 = vrcp.f32 %v789_v18 }
 0x38e   : > { %v1637_v42 = vpop.eup %1636 }
 0x390   : > { %v792_v22 = vpop.xlane.xlu0 %791 }
 0x391   : > { %1644 = vrcp.f32 %v792_v22 }
 0x392   : > { %v1639_v12 = vpop.eup %1638 }
 0x394   : > { %v916_v31 = vpop.xlane.xlu1 %915 }
 0x395   : > { %1646 = vrcp.f32 %v916_v31 }
 0x396   : > { %v1641_v13 = vpop.eup %1640 }
 0x398   : > { %v919_v33 = vpop.xlane.xlu0 %918 }
 0x399   : > { %1648 = vrcp.f32 %v919_v33 }
 0x39a   : > { %v1643_v24 = vpop.eup %1642 }
 0x39e   : > { %v1645_v26 = vpop.eup %1644 }
 0x3a0   : > { %v1046_v2 = vpop.xlane.xlu0 %1045 }
 0x3a1   : > { %1650 = vrcp.f32 %v1046_v2 }
 0x3a2   : > { %v1647_v36 = vpop.eup %1646 }
 0x3a6   : > { %v1649_v38 = vpop.eup %1648 }
 0x3a8   : > { %v1173_v39 = vpop.xlane.xlu0 %1172 }
 0x3ae   : > { %v1651_v43 = vpop.eup %1650 }
 0x3b0   : > { %v455_v48 = vpop.f32.mrf.mxu0 }
 0x3b1   : > { %v464_v29 = vmul.f32 %v1631_v49, %v455_v48 }
 0x3b2   : > { %v1467_v0 = vpop.f32.mrf.mxu0 }
 0x3b4   : > { %v458_v54 = vpop.f32.mrf.mxu0 }
 0x3b5   : > { %v465_v37 = vmul.f32 %v1633_v51, %v458_v54 }
 0x3b6   : > { %v1468_v57 = vpop.f32.mrf.mxu0 }
 0x3b7   : > { %v1559_v58 = vpack.i.bf16 %v465_v37, %v464_v29 }
 0x3b8   : > { %v582_v59 = vpop.f32.mrf.mxu0 }
 0x3b9   : > { %1560 = vrot.lane.b32.xlu1 %v1559_v58, %s1678_s24  ;;  %v591_v3 = vmul.f32 %v1635_v63, %v582_v59  ;;  %v280_v59 = vpop.xlane.xlu0 %279 }
 0x3ba   : > { %v1479_v61 = vpop.f32.mrf.mxu0 }
 0x3bc   : > { %v585_v1 = vpop.f32.mrf.mxu0 }
 0x3bd   : > { %v592_v4 = vmul.f32 %v1637_v42, %v585_v1 }
 0x3be   : > { %v1480_v7 = vpop.f32.mrf.mxu0 }
 0x3bf   : > { %v1564_v9 = vpack.i.bf16 %v592_v4, %v591_v3 }
 0x3c0   : > { %v709_v47 = vpop.f32.mrf.mxu0 }
 0x3c1   : > { %1565 = vrot.lane.b32.xlu0 %v1564_v9, %s1677_s23  ;;  %v718_v16 = vmul.f32 %v1639_v12, %v709_v47  ;;  %v1043_v34 = vpop.xlane.xlu1 %1042 }
 0x3c2   : > { %v1491_v11 = vpop.f32.mrf.mxu0  ;;  %1652 = vrcp.f32 %v1043_v34 }
 0x3c3   : > { %1654 = vrcp.f32 %v1173_v39 }
 0x3c4   : > { %v712_v15 = vpop.f32.mrf.mxu0 }
 0x3c5   : > { %v719_v6 = vmul.f32 %v1641_v13, %v712_v15  ;;  %v1170_v40 = vpop.xlane.xlu1 %1169 }
 0x3c6   : > { %v1492_v17 = vpop.f32.mrf.mxu0  ;;  %1656 = vrcp.f32 %v1170_v40 }
 0x3c7   : > { %v1569_v21 = vpack.i.bf16 %v719_v6, %v718_v16  ;;  %1658 = vrcp.f32 %v280_v59 }
 0x3c9   : > { %1570 = vrot.lane.b32.xlu1 %v1569_v21, %s1676_s22  ;;  %v277_v61 = vpop.xlane.xlu1 %276 }
 0x3ca   : > { %1660 = vrcp.f32 %v277_v61 }
 0x3cf   : > { %v1653_v44 = vpop.eup %1652 }
 0x3d0   : > { %v1655_v51 = vpop.eup %1654 }
 0x3d3   : > { %v1657_v52 = vpop.eup %1656 }
 0x3d4   : > { %v836_v23 = vpop.f32.mrf.mxu0  ;;  %v1659_v3 = vpop.eup %1658 }
 0x3d5   : > { %v845_v19 = vmul.f32 %v1643_v24, %v836_v23  ;;  %v338_v16 = vmul.f32 %v1659_v3, %v1815_v55 }
 0x3d6   : > { %v1503_v56 = vpop.f32.mrf.mxu0 }
 0x3d7   : > { %v1661_v7 = vpop.eup %1660 }
 0x3d8   : > { %v839_v5 = vpop.f32.mrf.mxu0  ;;  %v337_v15 = vmul.f32 %v1661_v7, %v1813_v53 }
 0x3d9   : > { %v846_v27 = vmul.f32 %v1645_v26, %v839_v5 }
 0x3da   : > { %v1504_v60 = vpop.f32.mrf.mxu0 }
 0x3db   : > { %v1574_v28 = vpack.i.bf16 %v846_v27, %v845_v19 }
 0x3dd   : > { %1575 = vrot.lane.b32.xlu1 %v1574_v28, %s1675_s21 }
 0x3ed   : > { %v963_v8 = vpop.f32.mrf.mxu0 }
 0x3ee   : > { %v972_v62 = vmul.f32 %v1647_v36, %v963_v8 }
 0x3ef   : > { %v1515_v35 = vpop.f32.mrf.mxu0 }
 0x3f1   : > { %v966_v30 = vpop.f32.mrf.mxu0 }
 0x3f2   : > { %v973_v10 = vmul.f32 %v1649_v38, %v966_v30 }
 0x3f3   : > { %v1516_v14 = vpop.f32.mrf.mxu0 }
 0x3f4   : > { %v1579_v20 = vpack.i.bf16 %v973_v10, %v972_v62 }
 0x3f6   : > { %1580 = vrot.lane.b32.xlu0 %v1579_v20, %s1674_s20 }
 0x3f9   : > { %v1090_v25 = vpop.f32.mrf.mxu0 }
 0x3fa   : > { %v1099_v46 = vmul.f32 %v1653_v44, %v1090_v25 }
 0x3fb   : > { %v1527_v41 = vpop.f32.mrf.mxu0 }
 0x3fd   : > { %v1093_v45 = vpop.f32.mrf.mxu0 }
 0x3fe   : > { %v1100_v32 = vmul.f32 %v1651_v43, %v1093_v45 }
 0x3ff   : > { %v1528_v48 = vpop.f32.mrf.mxu0 }
 0x400   : > { %v1584_v0 = vpack.i.bf16 %v1100_v32, %v1099_v46 }
 0x401   : > { %v1217_v49 = vpop.f32.mrf.mxu0 }
 0x402   : > { %1585 = vrot.lane.b32.xlu1 %v1584_v0, %s1673_s19  ;;  %v1226_v29 = vmul.f32 %v1657_v52, %v1217_v49 }
 0x403   : > { %v1539_v50 = vpop.f32.mrf.mxu0 }
 0x405   : > { %v1220_v54 = vpop.f32.mrf.mxu0 }
 0x406   : > { %v1227_v37 = vmul.f32 %v1655_v51, %v1220_v54 }
 0x407   : > { %v1540_v57 = vpop.f32.mrf.mxu0 }
 0x408   : > { %v1589_v58 = vpack.i.bf16 %v1227_v37, %v1226_v29 }
 0x40a   : > { %1590 = vrot.lane.b32.xlu0 %v1589_v58, %s1672_s18 }
 0x42b   : > { %v1561_v63 = vpop.permute.xlu1 %1560 }
 0x42c   : > { %v1563_v9 = vunpack.i.h.bf16 %v1561_v63  ;;  %v1562_v47 = vunpack.i.l.bf16 %v1561_v63 }
 0x42e   : > { %v1285_v23 = vsel %vm209_vm1, %v338_v16, %v1563_v9  ;;  %v1284_v56 = vsel %vm209_vm1, %v337_v15, %v1562_v47 }
 0x433   : > { %v1566_v1 = vpop.permute.xlu0 %1565 }
 0x434   : > { %v1568_v11 = vunpack.i.h.bf16 %v1566_v1  ;;  %v1567_v12 = vunpack.i.l.bf16 %v1566_v1 }
 0x436   : > { %v1288_v5 = vsel %vm1286_vm5, %v1285_v23, %v1568_v11  ;;  %v1287_v53 = vsel %vm1286_vm5, %v1284_v56, %v1567_v12 }
 0x43b   : > { %v1571_v42 = vpop.permute.xlu1 %1570 }
 0x43c   : > { %v1573_v6 = vunpack.i.h.bf16 %v1571_v42  ;;  %v1572_v17 = vunpack.i.l.bf16 %v1571_v42 }
 0x43e   : > { %v1291_v27 = vsel %vm1289_vm6, %v1288_v5, %v1573_v6  ;;  %v1290_v60 = vsel %vm1289_vm6, %v1287_v53, %v1572_v17 }
 0x44f   : > { %v1576_v4 = vpop.permute.xlu1 %1575 }
 0x450   : > { %v1578_v21 = vunpack.i.h.bf16 %v1576_v4  ;;  %v1577_v22 = vunpack.i.l.bf16 %v1576_v4 }
 0x452   : > { %v1294_v28 = vsel %vm1292_vm7, %v1291_v27, %v1578_v21  ;;  %v1293_v31 = vsel %vm1292_vm7, %v1290_v60, %v1577_v22 }
 0x468   : > { %v1581_v13 = vpop.permute.xlu0 %1580 }
 0x469   : > { %v1583_v24 = vunpack.i.h.bf16 %v1581_v13  ;;  %v1582_v26 = vunpack.i.l.bf16 %v1581_v13 }
 0x46b   : > { %v1297_v2 = vsel %vm1295_vm8, %v1294_v28, %v1583_v24  ;;  %v1296_v34 = vsel %vm1295_vm8, %v1293_v31, %v1582_v26 }
 0x474   : > { %v1586_v18 = vpop.permute.xlu1 %1585 }
 0x475   : > { %v1588_v19 = vunpack.i.h.bf16 %v1586_v18  ;;  %v1587_v55 = vunpack.i.l.bf16 %v1586_v18 }
 0x477   : > { %v1300_v36 = vsel %vm1298_vm9, %v1297_v2, %v1588_v19  ;;  %v1299_v38 = vsel %vm1298_vm9, %v1296_v34, %v1587_v55 }
 0x47c   : > { %v1591_v33 = vpop.permute.xlu0 %1590 }
 0x47d   : > { %v1593_v8 = vunpack.i.h.bf16 %v1591_v33  ;;  %v1592_v35 = vunpack.i.l.bf16 %v1591_v33 }
 0x47f   : > { %v1303_v30 = vsel %vm1301_vm10, %v1300_v36, %v1593_v8  ;;  %v1302_v62 = vsel %vm1301_vm10, %v1299_v38, %v1592_v35 }
 0x480   : > { %v1412_v10 = vpack.c.bf16 %v1303_v30, %v1303_v30  ;;  %v1411_v14 = vpack.c.bf16 %v1302_v62, %v1302_v62 }
 0x482   : > { %1313 = vst [vmem:[%s184_s8 + $0x4] sm:$0x3] %v1412_v10  ;;  %1312 = vst [vmem:[%s184_s8] sm:$0xf] %v1411_v14 }
 0x483 PF: > { %s13_s12 = sadd.s32 1, %s1668_s12  }
 0x484   : > { %p10_p4 = scmp.ge.s32.totalorder %s13_s12, 4  }
 0x486   :  { %12 = sbr.rel (!%p10_p4) target bundleno = 1 (0x1), region = 65 }

// kernel: seq2seq_forward.42
= control target key start
LH: loop header
LB: loop body
LE: loop exit
PB: predicated region body
PF: predicated region fallthrough
CT: control target
= control target key end

     0   :  { %vm224_vm0 = vcmask 1041408   ;;  %vm217_vm1 = vcmask 818176   ;;  %s496_s1 = inlined_call_operand.vmem [shape: bf16[128,100], index: 1, kind: input, shape index: {}]   ;;  %s497_s0 = inlined_call_operand.vmem [shape: bf16[24,128], index: 0, kind: input, shape index: {}]   ;;  %s498_s3 = inlined_call_operand.vmem [shape: bf16[100,128], index: 3, kind: input, shape index: {}]   ;;  %s499_s2 = inlined_call_operand.vmem [shape: f32[1,100], index: 2, kind: input, shape index: {}]   ;;  %s500_s4 = inlined_call_operand.vmem [shape: f32[1,128], index: 4, kind: input, shape index: {}]   ;;  %s501_s5 = inlined_call_operand.vmem [shape: bf16[24,128], index: 5, kind: output, shape index: {}]  }
   0x1   :  { %v386_v0 = vld [vmem:[%s496_s1 + $0x38] sm:$0xff]   ;;  %v387_v1 = vld [vmem:[%s496_s1 + $0x30] sm:$0xff]   ;;  %v388_v2 = vld [vmem:[%s496_s1 + $0x28] sm:$0xff]  }
   0x2   :  { %347 = vmatprep.subr.bf16.mxu0 %v386_v0  ;;  %v389_v3 = vld [vmem:[%s496_s1 + $0x20] sm:$0xff]   ;;  %v396_v5 = vld [vmem:[%s498_s3 + $0x30] ss:$0 sps:$4 sm:$0x33]   ;;  %v397_v6 = vld [vmem:[%s498_s3 + $0x28] sm:$0xff]  }
   0x3   :  { %348 = vmatpush3.bf16.msra.mxu0 %v386_v0  ;;  %v394_v4 = vld [vmem:[%s497_s0] sm:$0xff]   ;;  %v390_v7 = vld [vmem:[%s496_s1 + $0x18] sm:$0xff]   ;;  %385 = vmatprep.subr.msk.bf16.mxu1 %vm224_vm0, %v396_v5  ;;  %v226_v8 = vsel %vm224_vm0, %v396_v5, 0  ;;  %v391_v10 = vld [vmem:[%s496_s1 + $0x10] sm:$0xff]  }
   0x4   :  { %349 = vmatprep.subr.bf16.mxu0 %v387_v1  ;;  %363 = vmatprep.mubr.bf16.mxu0 %v394_v4  ;;  %v398_v9 = vld [vmem:[%s498_s3 + $0x20] sm:$0xff]   ;;  %v399_v11 = vld [vmem:[%s498_s3 + $0x18] sm:$0xff]   ;;  %v392_v12 = vld [vmem:[%s496_s1 + $0x8] sm:$0xff]  }
   0x5   :  { %368 = vmatpush3.bf16.msra.mxu1 %v226_v8  ;;  %v393_v13 = vld [vmem:[%s496_s1] sm:$0xff]   ;;  %v395_v14 = vld [vmem:[%s497_s0 + $0x8] ss:$0 sps:$4 sm:$0xff]   ;;  %v400_v15 = vld [vmem:[%s498_s3 + $0x10] sm:$0xff]  }
   0x6   :  { %369 = vmatprep.subr.bf16.mxu1 %v397_v6  ;;  %v401_v16 = vld [vmem:[%s498_s3 + $0x8] sm:$0xff]   ;;  %v402_v17 = vld [vmem:[%s498_s3] sm:$0xff]  }
   0x7   :  { %350 = vmatpush3.bf16.msra.mxu0 %v387_v1  ;;  %v296_v19 = vld [vmem:[%s499_s2] ss:$0 sm:$0xff] }
   0x8   :  { %351 = vmatprep.subr.bf16.mxu0 %v388_v2  ;;  %v307_v31 = vld [vmem:[%s500_s4] ss:$0 sm:$0xff] }
   0x9   :  { %370 = vmatpush3.bf16.msra.mxu1 %v397_v6 }
   0xa   :  { %371 = vmatprep.subr.bf16.mxu1 %v398_v9 }
   0xb   :  { %352 = vmatpush3.bf16.msra.mxu0 %v388_v2 }
   0xc   :  { %353 = vmatprep.subr.bf16.mxu0 %v389_v3 }
   0xd   :  { %372 = vmatpush3.bf16.msra.mxu1 %v398_v9 }
   0xe   :  { %373 = vmatprep.subr.bf16.mxu1 %v399_v11 }
   0xf   :  { %354 = vmatpush3.bf16.msra.mxu0 %v389_v3 }
  0x10   :  { %355 = vmatprep.subr.bf16.mxu0 %v390_v7 }
  0x11   :  { %374 = vmatpush3.bf16.msra.mxu1 %v399_v11 }
  0x12   :  { %375 = vmatprep.subr.bf16.mxu1 %v400_v15 }
  0x13   :  { %356 = vmatpush3.bf16.msra.mxu0 %v390_v7 }
  0x14   :  { %357 = vmatprep.subr.bf16.mxu0 %v391_v10 }
  0x15   :  { %376 = vmatpush3.bf16.msra.mxu1 %v400_v15 }
  0x16   :  { %377 = vmatprep.subr.bf16.mxu1 %v401_v16 }
  0x17   :  { %358 = vmatpush3.bf16.msra.mxu0 %v391_v10 }
  0x18   :  { %359 = vmatprep.subr.bf16.mxu0 %v392_v12 }
  0x19   :  { %378 = vmatpush3.bf16.msra.mxu1 %v401_v16 }
  0x1a   :  { %379 = vmatprep.subr.bf16.mxu1 %v402_v17 }
  0x1b   :  { %360 = vmatpush3.bf16.msra.mxu0 %v392_v12 }
  0x1c   :  { %361 = vmatprep.subr.bf16.mxu0 %v393_v13 }
  0x1d   :  { %380 = vmatpush3.bf16.msra.mxu1 %v402_v17 }
  0x1f   :  { %362 = vmatpush3.bf16.msra.mxu0 %v393_v13 }
  0x22   :  { %364 = vmatmul.mubr.bf16.vlgmr.msra.gmra.mxu0 %v395_v14 }
  0xe2   :  { %v365_v18 = vpop.f32.mrf.mxu0 }
  0xe3   :  { %v148_v21 = vadd.f32 %v365_v18, %v296_v19 }
  0xe4   :  { %v139_v20 = vpop.f32.mrf.mxu0 }
  0xe5   :  { %v140_v23 = vadd.f32 %v296_v19, %v139_v20  ;;  %v155_v26 = vmax.f32 %v148_v21, 0.0 }
  0xe6   :  { %v366_v22 = vpop.f32.mrf.mxu0 }
  0xe7   :  { %v153_v27 = vmax.f32 %v140_v23, 0.0  ;;  %v157_v30 = vpack.c.bf16 %v155_v26, %v155_v26 }
  0xe8   :  { %v142_v24 = vpop.f32.mrf.mxu0 }
  0xe9   :  { %v143_v25 = vadd.f32 %v296_v19, %v142_v24 }
  0xeb   :  { %v154_v28 = vmax.f32 %v143_v25, 0.0 }
  0xed   :  { %v156_v29 = vpack.c.bf16 %v154_v28, %v153_v27 }
  0xef   :  { %381 = vmatprep.mubr.msk.bf16.mxu1 %vm217_vm1, %v156_v29 }
  0xf0   :  { %382 = vmatmul.mubr.msk.bf16.vlgmr.msra.gmra.mxu1 %vm217_vm1, %v157_v30 }
 0x1b0   :  { %v383_v32 = vpop.f32.mrf.mxu1 }
 0x1b1   :  { %v271_v33 = vadd.f32 %v383_v32, %v307_v31 }
 0x1b2   :  { %v262_v34 = vpop.f32.mrf.mxu1 }
 0x1b3   :  { %v322_v35 = vpack.c.bf16 %v271_v33, %v271_v33  ;;  %v263_v38 = vadd.f32 %v307_v31, %v262_v34 }
 0x1b4   :  { %v384_v36 = vpop.f32.mrf.mxu1 }
 0x1b5   :  { %291 = vst [vmem:[%s501_s5 + $0x8] sm:$0xf] %v322_v35 }
 0x1b6   :  { %v265_v37 = vpop.f32.mrf.mxu1 }
 0x1b7   :  { %v266_v39 = vadd.f32 %v307_v31, %v265_v37 }
 0x1b9   :  { %v326_v40 = vpack.c.bf16 %v266_v39, %v263_v38 }
 0x1bb   :  { %327 = vst [vmem:[%s501_s5] sm:$0xff] %v326_v40  }

// kernel: seq2seq_forward.56
= control target key start
LH: loop header
LB: loop body
LE: loop exit
PB: predicated region body
PF: predicated region fallthrough
CT: control target
= control target key end

     0   :  { %v324_v1 = vmov 0   ;;  %v214_v19 = vlaneseq  ;;  %s411_s1 = inlined_call_operand.vmem [shape: bf16[128,256], index: 1, kind: input, shape index: {}]   ;;  %s412_s0 = inlined_call_operand.vmem [shape: bf16[24,128], index: 0, kind: input, shape index: {}]   ;;  %s413_s2 = inlined_call_operand.vmem [shape: f32[1,256], index: 2, kind: input, shape index: {}]   ;;  %s414_s3 = inlined_call_operand.vmem [shape: bf16[24,256], index: 3, kind: output, shape index: {}]  }
   0x1   :  { %v298_v0 = vld [vmem:[%s411_s1 + $0x74] ss:$8 sps:$4 sm:$0xff]   ;;  %172 = vmatprep.mubr.bf16.mxu0 %v324_v1  ;;  %182 = vmatprep.mubr.bf16.mxu1 %v324_v1  ;;  %v300_v2 = vld [vmem:[%s411_s1 + $0x70] ss:$8 sps:$4 sm:$0xff]   ;;  %v301_v3 = vld [vmem:[%s411_s1 + $0x64] ss:$8 sps:$4 sm:$0xff]  }
   0x2   :  { %140 = vmatprep.subr.bf16.mxu0 %v298_v0  ;;  %281 = vmatprep.subr.bf16.mxu1 %v298_v0  ;;  %v303_v4 = vld [vmem:[%s411_s1 + $0x60] ss:$8 sps:$4 sm:$0xff]   ;;  %v304_v5 = vld [vmem:[%s411_s1 + $0x54] ss:$8 sps:$4 sm:$0xff]   ;;  %v306_v6 = vld [vmem:[%s411_s1 + $0x50] ss:$8 sps:$4 sm:$0xff]  }
   0x3   :  { %141 = vmatpush1.bf16.msra.mxu0 %v300_v2  ;;  %289 = vmatpush1.bf16.msra.mxu1 %v300_v2  ;;  %v307_v7 = vld [vmem:[%s411_s1 + $0x44] ss:$8 sps:$4 sm:$0xff]   ;;  %v309_v8 = vld [vmem:[%s411_s1 + $0x40] ss:$8 sps:$4 sm:$0xff]   ;;  %v310_v9 = vld [vmem:[%s411_s1 + $0x34] ss:$8 sps:$4 sm:$0xff]  }
   0x4   :  { %142 = vmatprep.subr.bf16.mxu0 %v301_v3  ;;  %282 = vmatprep.subr.bf16.mxu1 %v301_v3  ;;  %v312_v10 = vld [vmem:[%s411_s1 + $0x30] ss:$8 sps:$4 sm:$0xff]   ;;  %v313_v11 = vld [vmem:[%s411_s1 + $0x24] ss:$8 sps:$4 sm:$0xff]   ;;  %v315_v12 = vld [vmem:[%s411_s1 + $0x20] ss:$8 sps:$4 sm:$0xff]  }
   0x5   :  { %v316_v13 = vld [vmem:[%s411_s1 + $0x14] ss:$8 sps:$4 sm:$0xff]   ;;  %v318_v14 = vld [vmem:[%s411_s1 + $0x10] ss:$8 sps:$4 sm:$0xff]   ;;  %v319_v15 = vld [vmem:[%s411_s1 + $0x4] ss:$8 sps:$4 sm:$0xff]  }
   0x6   :  { %v321_v16 = vld [vmem:[%s411_s1] ss:$8 sps:$4 sm:$0xff]   ;;  %v215_v20 = vshrl.u32 %v214_v19, 7 }
   0x7   :  { %143 = vmatpush1.bf16.msra.mxu0 %v303_v4  ;;  %290 = vmatpush1.bf16.msra.mxu1 %v303_v4  ;;  %v322_v17 = vld [vmem:[%s412_s0] sm:$0xff]   ;;  %v323_v18 = vld [vmem:[%s412_s0 + $0x8] ss:$0 sps:$4 sm:$0xff]  }
   0x8   :  { %144 = vmatprep.subr.bf16.mxu0 %v304_v5  ;;  %283 = vmatprep.subr.bf16.mxu1 %v304_v5  ;;  %v216_v21 = vsub.s32 0, %v215_v20  ;;  %v220_v22 = vsub.s32 1, %v215_v20  ;;  %v212_v23 = vld [vmem:[%s413_s2] sm:$0x3] }
   0xa   :  { %v217_v24 = vrot.slane %v212_v23, %v216_v21  ;;  %v221_v25 = vrot.slane %v212_v23, %v220_v22 }
   0xb   :  { %145 = vmatpush1.bf16.msra.mxu0 %v306_v6  ;;  %291 = vmatpush1.bf16.msra.mxu1 %v306_v6 }
   0xc   :  { %146 = vmatprep.subr.bf16.mxu0 %v307_v7  ;;  %284 = vmatprep.subr.bf16.mxu1 %v307_v7 }
   0xf   :  { %147 = vmatpush1.bf16.msra.mxu0 %v309_v8  ;;  %292 = vmatpush1.bf16.msra.mxu1 %v309_v8 }
  0x10   :  { %148 = vmatprep.subr.bf16.mxu0 %v310_v9  ;;  %285 = vmatprep.subr.bf16.mxu1 %v310_v9 }
  0x13   :  { %149 = vmatpush1.bf16.msra.mxu0 %v312_v10  ;;  %293 = vmatpush1.bf16.msra.mxu1 %v312_v10 }
  0x14   :  { %150 = vmatprep.subr.bf16.mxu0 %v313_v11  ;;  %286 = vmatprep.subr.bf16.mxu1 %v313_v11 }
  0x17   :  { %151 = vmatpush1.bf16.msra.mxu0 %v315_v12  ;;  %294 = vmatpush1.bf16.msra.mxu1 %v315_v12 }
  0x18   :  { %152 = vmatprep.subr.bf16.mxu0 %v316_v13  ;;  %287 = vmatprep.subr.bf16.mxu1 %v316_v13 }
  0x1b   :  { %153 = vmatpush1.bf16.msra.mxu0 %v318_v14  ;;  %295 = vmatpush1.bf16.msra.mxu1 %v318_v14 }
  0x1c   :  { %154 = vmatprep.subr.bf16.mxu0 %v319_v15  ;;  %288 = vmatprep.subr.bf16.mxu1 %v319_v15 }
  0x1f   :  { %155 = vmatpush1.bf16.msra.mxu0 %v321_v16  ;;  %296 = vmatpush1.bf16.msra.mxu1 %v321_v16 }
  0x22   :  { %173 = vmatmul.mubr.bf16.vlgmr.msra.gmra.mxu0 %v322_v17  ;;  %183 = vmatmul.mubr.bf16.vlgmr.msra.gmra.mxu1 %v323_v18 }
  0xe2   :  { %v174_v26 = vpop.f32.mrf.mxu0  ;;  %v184_v27 = vpop.f32.mrf.mxu1 }
  0xe3   :  { %v228_v28 = vadd.f32 %v217_v24, %v184_v27  ;;  %v224_v31 = vadd.f32 %v217_v24, %v174_v26 }
  0xe4   :  { %v176_v29 = vpop.f32.mrf.mxu0  ;;  %v186_v30 = vpop.f32.mrf.mxu1 }
  0xe5   :  { %v225_v32 = vadd.f32 %v221_v25, %v176_v29  ;;  %v229_v33 = vadd.f32 %v221_v25, %v186_v30 }
  0xe6   :  { %v178_v34 = vpop.f32.mrf.mxu0  ;;  %v188_v35 = vpop.f32.mrf.mxu1 }
  0xe7   :  { %v278_v36 = vpack.c.bf16 %v225_v32, %v224_v31  ;;  %v280_v37 = vpack.c.bf16 %v229_v33, %v228_v28  ;;  %v226_v40 = vadd.f32 %v217_v24, %v178_v34 }
  0xe8   :  { %v180_v38 = vpop.f32.mrf.mxu0  ;;  %v189_v39 = vpop.f32.mrf.mxu1 }
  0xe9   :  { %250 = vst [vmem:[%s414_s3] sm:$0xff] %v278_v36  ;;  %252 = vst [vmem:[%s414_s3 + $0x10] sm:$0xff] %v280_v37  ;;  %v227_v41 = vadd.f32 %v221_v25, %v180_v38 }
  0xeb   :  { %v279_v42 = vpack.c.bf16 %v227_v41, %v226_v40 }
  0xed   :  { %251 = vst [vmem:[%s414_s3 + $0x8] sm:$0xff] %v279_v42 }

// kernel: seq2seq_forward.60
= control target key start
LH: loop header
LB: loop body
LE: loop exit
PB: predicated region body
PF: predicated region fallthrough
CT: control target
= control target key end

     0   :  { %vm224_vm0 = vcmask 1041408   ;;  %vm217_vm1 = vcmask 818176   ;;  %s496_s1 = inlined_call_operand.vmem [shape: bf16[128,100], index: 1, kind: input, shape index: {}]   ;;  %s497_s0 = inlined_call_operand.vmem [shape: bf16[18,128], index: 0, kind: input, shape index: {}]   ;;  %s498_s3 = inlined_call_operand.vmem [shape: bf16[100,128], index: 3, kind: input, shape index: {}]   ;;  %s499_s2 = inlined_call_operand.vmem [shape: f32[1,100], index: 2, kind: input, shape index: {}]   ;;  %s500_s4 = inlined_call_operand.vmem [shape: f32[1,128], index: 4, kind: input, shape index: {}]   ;;  %s501_s5 = inlined_call_operand.vmem [shape: bf16[18,128], index: 5, kind: output, shape index: {}]  }
   0x1   :  { %v386_v0 = vld [vmem:[%s496_s1 + $0x38] sm:$0xff]   ;;  %v387_v1 = vld [vmem:[%s496_s1 + $0x30] sm:$0xff]   ;;  %v388_v2 = vld [vmem:[%s496_s1 + $0x28] sm:$0xff]  }
   0x2   :  { %347 = vmatprep.subr.bf16.mxu0 %v386_v0  ;;  %v389_v3 = vld [vmem:[%s496_s1 + $0x20] sm:$0xff]   ;;  %v390_v5 = vld [vmem:[%s496_s1 + $0x18] sm:$0xff]   ;;  %v396_v6 = vld [vmem:[%s498_s3 + $0x30] ss:$0 sps:$4 sm:$0x33]  }
   0x3   :  { %348 = vmatpush3.bf16.msra.mxu0 %v386_v0  ;;  %v394_v4 = vld [vmem:[%s497_s0] sm:$0xff]   ;;  %v397_v7 = vld [vmem:[%s498_s3 + $0x28] sm:$0xff]   ;;  %385 = vmatprep.subr.msk.bf16.mxu1 %vm224_vm0, %v396_v6  ;;  %v226_v8 = vsel %vm224_vm0, %v396_v6, 0  ;;  %v391_v10 = vld [vmem:[%s496_s1 + $0x10] sm:$0xff]  }
   0x4   :  { %349 = vmatprep.subr.bf16.mxu0 %v387_v1  ;;  %363 = vmatprep.mubr.bf16.mxu0 %v394_v4  ;;  %v398_v9 = vld [vmem:[%s498_s3 + $0x20] sm:$0xff]   ;;  %v399_v11 = vld [vmem:[%s498_s3 + $0x18] sm:$0xff]   ;;  %v392_v12 = vld [vmem:[%s496_s1 + $0x8] sm:$0xff]  }
   0x5   :  { %368 = vmatpush3.bf16.msra.mxu1 %v226_v8  ;;  %v393_v13 = vld [vmem:[%s496_s1] sm:$0xff]   ;;  %v395_v14 = vld [vmem:[%s497_s0 + $0x8] ss:$0 sps:$4 sm:$0x11]   ;;  %v400_v15 = vld [vmem:[%s498_s3 + $0x10] sm:$0xff]  }
   0x6   :  { %369 = vmatprep.subr.bf16.mxu1 %v397_v7  ;;  %v401_v16 = vld [vmem:[%s498_s3 + $0x8] sm:$0xff]   ;;  %v402_v17 = vld [vmem:[%s498_s3] sm:$0xff]  }
   0x7   :  { %350 = vmatpush3.bf16.msra.mxu0 %v387_v1  ;;  %v296_v19 = vld [vmem:[%s499_s2] ss:$0 sm:$0xff] }
   0x8   :  { %351 = vmatprep.subr.bf16.mxu0 %v388_v2  ;;  %v307_v31 = vld [vmem:[%s500_s4] ss:$0 sm:$0xff] }
   0x9   :  { %370 = vmatpush3.bf16.msra.mxu1 %v397_v7 }
   0xa   :  { %371 = vmatprep.subr.bf16.mxu1 %v398_v9 }
   0xb   :  { %352 = vmatpush3.bf16.msra.mxu0 %v388_v2 }
   0xc   :  { %353 = vmatprep.subr.bf16.mxu0 %v389_v3 }
   0xd   :  { %372 = vmatpush3.bf16.msra.mxu1 %v398_v9 }
   0xe   :  { %373 = vmatprep.subr.bf16.mxu1 %v399_v11 }
   0xf   :  { %354 = vmatpush3.bf16.msra.mxu0 %v389_v3 }
  0x10   :  { %355 = vmatprep.subr.bf16.mxu0 %v390_v5 }
  0x11   :  { %374 = vmatpush3.bf16.msra.mxu1 %v399_v11 }
  0x12   :  { %375 = vmatprep.subr.bf16.mxu1 %v400_v15 }
  0x13   :  { %356 = vmatpush3.bf16.msra.mxu0 %v390_v5 }
  0x14   :  { %357 = vmatprep.subr.bf16.mxu0 %v391_v10 }
  0x15   :  { %376 = vmatpush3.bf16.msra.mxu1 %v400_v15 }
  0x16   :  { %377 = vmatprep.subr.bf16.mxu1 %v401_v16 }
  0x17   :  { %358 = vmatpush3.bf16.msra.mxu0 %v391_v10 }
  0x18   :  { %359 = vmatprep.subr.bf16.mxu0 %v392_v12 }
  0x19   :  { %378 = vmatpush3.bf16.msra.mxu1 %v401_v16 }
  0x1a   :  { %379 = vmatprep.subr.bf16.mxu1 %v402_v17 }
  0x1b   :  { %360 = vmatpush3.bf16.msra.mxu0 %v392_v12 }
  0x1c   :  { %361 = vmatprep.subr.bf16.mxu0 %v393_v13 }
  0x1d   :  { %380 = vmatpush3.bf16.msra.mxu1 %v402_v17 }
  0x1f   :  { %362 = vmatpush3.bf16.msra.mxu0 %v393_v13 }
  0x22   :  { %364 = vmatmul.mubr.bf16.vlgmr.msra.gmra.mxu0 %v395_v14 }
  0xe2   :  { %v365_v18 = vpop.f32.mrf.mxu0 }
  0xe3   :  { %v148_v21 = vadd.f32 %v365_v18, %v296_v19 }
  0xe4   :  { %v139_v20 = vpop.f32.mrf.mxu0 }
  0xe5   :  { %v140_v23 = vadd.f32 %v296_v19, %v139_v20  ;;  %v155_v26 = vmax.f32 %v148_v21, 0.0 }
  0xe6   :  { %v366_v22 = vpop.f32.mrf.mxu0 }
  0xe7   :  { %v153_v27 = vmax.f32 %v140_v23, 0.0  ;;  %v157_v30 = vpack.c.bf16 %v155_v26, %v155_v26 }
  0xe8   :  { %v142_v24 = vpop.f32.mrf.mxu0 }
  0xe9   :  { %v143_v25 = vadd.f32 %v296_v19, %v142_v24 }
  0xeb   :  { %v154_v28 = vmax.f32 %v143_v25, 0.0 }
  0xed   :  { %v156_v29 = vpack.c.bf16 %v154_v28, %v153_v27 }
  0xef   :  { %381 = vmatprep.mubr.msk.bf16.mxu1 %vm217_vm1, %v156_v29 }
  0xf0   :  { %382 = vmatmul.mubr.msk.bf16.vlgmr.msra.gmra.mxu1 %vm217_vm1, %v157_v30 }
 0x1b0   :  { %v383_v32 = vpop.f32.mrf.mxu1 }
 0x1b1   :  { %v271_v33 = vadd.f32 %v383_v32, %v307_v31 }
 0x1b2   :  { %v262_v34 = vpop.f32.mrf.mxu1 }
 0x1b3   :  { %v322_v35 = vpack.c.bf16 %v271_v33, %v271_v33  ;;  %v263_v38 = vadd.f32 %v307_v31, %v262_v34 }
 0x1b4   :  { %v384_v36 = vpop.f32.mrf.mxu1 }
 0x1b5   :  { %291 = vst [vmem:[%s501_s5 + $0x8] sm:$0x1] %v322_v35 }
 0x1b6   :  { %v265_v37 = vpop.f32.mrf.mxu1 }
 0x1b7   :  { %v266_v39 = vadd.f32 %v307_v31, %v265_v37 }
 0x1b9   :  { %v326_v40 = vpack.c.bf16 %v266_v39, %v263_v38 }
 0x1bb   :  { %327 = vst [vmem:[%s501_s5] sm:$0xff] %v326_v40  }

// kernel: seq2seq_forward.73
= control target key start
LH: loop header
LB: loop body
LE: loop exit
PB: predicated region body
PF: predicated region fallthrough
CT: control target
= control target key end

     0   :  { %vm22_vm0 = vcmask 451584   ;;  %v235_v1 = vmov 0.0   ;;  %vm19_vm1 = vcmask 457728   ;;  %s307_s1 = inlined_call_operand.vmem [shape: bf16[128,56], index: 1, kind: input, shape index: {}]   ;;  %s308_s0 = inlined_call_operand.vmem [shape: bf16[18,128], index: 0, kind: input, shape index: {}]   ;;  %s309_s2 = inlined_call_operand.vmem [shape: f32[1,56], index: 2, kind: input, shape index: {}]   ;;  %s310_s3 = inlined_call_operand.vmem [shape: f32[18,56], index: 3, kind: output, shape index: {}]  }
   0x1   :  { %v225_v0 = vld [vmem:[%s307_s1 + $0x38] sm:$0xff]   ;;  %23 = vst.msk [vmem:[#allocation2 + $0x10] sm:$0x3] %vm22_vm0, %v235_v1  ;;  %v226_v2 = vld [vmem:[%s307_s1 + $0x30] sm:$0xff]   ;;  %v227_v3 = vld [vmem:[%s307_s1 + $0x28] sm:$0xff]  }
   0x2   :  { %204 = vmatprep.subr.bf16.mxu0 %v225_v0  ;;  %v228_v4 = vld [vmem:[%s307_s1 + $0x20] sm:$0xff]   ;;  %v229_v6 = vld [vmem:[%s307_s1 + $0x18] sm:$0xff]   ;;  %v230_v7 = vld [vmem:[%s307_s1 + $0x10] sm:$0xff]   ;;  %20 = vst.msk [vmem:[#allocation2] sm:$0xff] %vm19_vm1, %v235_v1 }
   0x3   :  { %205 = vmatpush3.bf16.msra.mxu0 %v225_v0  ;;  %v233_v5 = vld [vmem:[%s308_s0] sm:$0xff]   ;;  %v231_v8 = vld [vmem:[%s307_s1 + $0x8] sm:$0xff]   ;;  %21 = vst.msk [vmem:[#allocation2 + $0x8] sm:$0xff] %vm19_vm1, %v235_v1 }
   0x4   :  { %206 = vmatprep.subr.bf16.mxu0 %v226_v2  ;;  %220 = vmatprep.mubr.bf16.mxu0 %v233_v5  ;;  %v232_v9 = vld [vmem:[%s307_s1] sm:$0xff]   ;;  %v234_v10 = vld [vmem:[%s308_s0 + $0x8] ss:$0 sps:$4 sm:$0x11]  }
   0x5   :  { %v193_v21 = vld [vmem:[%s309_s2] ss:$0 sm:$0xff] }
   0x7   :  { %207 = vmatpush3.bf16.msra.mxu0 %v226_v2 }
   0x8   :  { %208 = vmatprep.subr.bf16.mxu0 %v227_v3  ;;  %v26_v11 = vld [vmem:[#allocation2 + $0x10] sm:$0x3] }
   0x9   :  { %v24_v13 = vld [vmem:[#allocation2] sm:$0xff] }
   0xa   :  { %v25_v18 = vld [vmem:[#allocation2 + $0x8] sm:$0xff] }
   0xb   :  { %209 = vmatpush3.bf16.msra.mxu0 %v227_v3 }
   0xc   :  { %210 = vmatprep.subr.bf16.mxu0 %v228_v4 }
   0xf   :  { %211 = vmatpush3.bf16.msra.mxu0 %v228_v4 }
  0x10   :  { %212 = vmatprep.subr.bf16.mxu0 %v229_v6 }
  0x13   :  { %213 = vmatpush3.bf16.msra.mxu0 %v229_v6 }
  0x14   :  { %214 = vmatprep.subr.bf16.mxu0 %v230_v7 }
  0x17   :  { %215 = vmatpush3.bf16.msra.mxu0 %v230_v7 }
  0x18   :  { %216 = vmatprep.subr.bf16.mxu0 %v231_v8 }
  0x1b   :  { %217 = vmatpush3.bf16.msra.mxu0 %v231_v8 }
  0x1c   :  { %218 = vmatprep.subr.bf16.mxu0 %v232_v9 }
  0x1f   :  { %219 = vmatpush3.bf16.msra.mxu0 %v232_v9 }
  0x22   :  { %221 = vmatmul.mubr.bf16.vlgmr.msra.gmra.mxu0 %v234_v10 }
  0xe2   :  { %v222_v12 = vpop.f32.mrf.mxu0 }
  0xe3   :  { %v154_v14 = vadd.f32 %v222_v12, %v26_v11 }
  0xe4   :  { %v138_v15 = vpop.f32.mrf.mxu0 }
  0xe5   :  { %159 = vst.msk [vmem:[#allocation2 + $0x10] sm:$0x3] %vm22_vm0, %v154_v14  ;;  %v152_v16 = vadd.f32 %v138_v15, %v24_v13 }
  0xe6   :  { %v223_v17 = vpop.f32.mrf.mxu0 }
  0xe7   :  { %156 = vst.msk [vmem:[#allocation2] sm:$0xff] %vm19_vm1, %v152_v16 }
  0xe8   :  { %v141_v19 = vpop.f32.mrf.mxu0 }
  0xe9   :  { %v153_v20 = vadd.f32 %v141_v19, %v25_v18 }
  0xeb   :  { %157 = vst.msk [vmem:[#allocation2 + $0x8] sm:$0xff] %vm19_vm1, %v153_v20 }
  0xec   :  { %v165_v22 = vld [vmem:[#allocation2 + $0x10] sm:$0x3] }
  0xed   :  { %v175_v23 = vadd.f32 %v193_v21, %v165_v22 }
  0xee   :  { %v163_v24 = vld [vmem:[#allocation2] sm:$0xff] }
  0xef   :  { %178 = vst.msk [vmem:[%s310_s3 + $0x10] sm:$0x3] %vm22_vm0, %v175_v23  ;;  %v173_v25 = vadd.f32 %v193_v21, %v163_v24 }
  0xf1   :  { %176 = vst.msk [vmem:[%s310_s3] sm:$0xff] %vm19_vm1, %v173_v25 }
  0xf2   :  { %v164_v26 = vld [vmem:[#allocation2 + $0x8] sm:$0xff] }
  0xf3   :  { %v174_v27 = vadd.f32 %v193_v21, %v164_v26 }
  0xf5   :  { %177 = vst.msk [vmem:[%s310_s3 + $0x8] sm:$0xff] %vm19_vm1, %v174_v27 }

// kernel: seq2seq_forward.57
= control target key start
LH: loop header
LB: loop body
LE: loop exit
PB: predicated region body
PF: predicated region fallthrough
CT: control target
= control target key end

     0   :  { %s1772_s15 = smov 0   ;;  %s2066_s0 = inlined_call_operand.vmem [shape: bf16[2,9,128], index: 0, kind: input, shape index: {}]   ;;  %s2067_s1 = inlined_call_operand.vmem [shape: bf16[2,12,256], index: 1, kind: input, shape index: {}]   ;;  %s2068_s2 = inlined_call_operand.vmem [shape: f32[9,12], index: 2, kind: input, shape index: {}]   ;;  %s2069_s3 = inlined_call_operand.vmem [shape: f32[2,1,12], index: 3, kind: input, shape index: {}]   ;;  %s2070_s4 = inlined_call_operand.vmem [shape: bf16[2,9,128], index: 4, kind: output, shape index: {}]  }
   0x1 LB: > { %s1442_s16 = sadd.s32 4294967295, %s1736_s15   ;;  %p1446_p0 = scmp.ge.s32.totalorder %s1736_s15, 1  ;;  %s1736_s15 = sphi %s1772_s15, %s14_s15  }
   0x2   : > { %p180_p1 = scmp.lt.s32.totalorder %s1736_s15, 3 }
   0x4   : > { %p181_p2 = pnand %p1446_p0, %p180_p1 }
   0x5   : > { %p214_p3 = scmp.lt.s32.totalorder (!%p181_p2), %s1442_s16, 1  ;;  %s1740_s25 = smov (!%p181_p2), 112  }
   0x6   : > { %184 = sbr.rel (%p181_p2) target bundleno = 1155 (0x483), region = 36  ;;  %s1741_s26 = smov (!%p181_p2), 96  }
   0x7   : > { %s1742_s27 = smov (!%p181_p2), 80   ;;  %s1743_s28 = smov (!%p181_p2), 64  }
   0x8   : > { %s1744_s29 = smov (!%p181_p2), 48   ;;  %s1745_s30 = smov (!%p181_p2), 32  }
   0x9   : > { %s1746_s5 = smov (!%p181_p2), 16  }
   0xb   : > { %v1738_v0 = vmov 0.0   ;;  %vm1739_vm0 = vmmov 0   ;;  %s2072_s16 = smov (!%p214_p3, %s1442_s16), 1  ;;  %vm258_vm1 = vcmask 130048   ;;  %v237_v4 = vld [vmem:[%s2068_s2] sm:$0xff]  ;;  %vm310_vm2 = vcmask 97280  }
   0xc   : > { %1514 = vmatprep.subr.bf16.mxu0 %v1738_v0  ;;  %1516 = vmatprep.mubr.msk.bf16.mxu0 %vm1739_vm0, %v1738_v0  ;;  %s1478_s17 = sshll.u32 %s2072_s16, 4  ;;  %s1477_s18 = sshll.u32 %s2072_s16, 3  ;;  %v238_v8 = vld [vmem:[%s2068_s2 + $0x8] sm:$0x1]  ;;  %vm314_vm3 = vcmask 90112   ;;  %vm337_vm4 = vcmask 1045504  }
   0xd   : > { %1520 = vmatprep.subr.bf16.mxu1 %v1738_v0  ;;  %1522 = vmatprep.mubr.msk.bf16.mxu1 %vm1739_vm0, %v1738_v0  ;;  %s1793_s21 = scalar_lea.vmem %s2067_s1, %s1478_s17  ;;  %s218_s24 = scalar_lea.vmem %s2066_s0, %s1477_s18  ;;  %vm1333_vm5 = vcmask 261120   ;;  %vm1336_vm6 = vcmask 392192   ;;  %vm1339_vm7 = vcmask 523264   ;;  %vm1342_vm8 = vcmask 654336  }
   0xe   : > { %v1662_v1 = vld [vmem:[%s1793_s21] ss:$8 sps:$4 sm:$0x3f]   ;;  %s226_s8 = scalar_lea.vmem %s2069_s3, %s2072_s16  ;;  %v1835_v19 = vld [vmem:[%s1793_s21 + $0x4] ss:$8 sps:$4 sm:$0x3f]   ;;  %s231_s17 = scalar_lea.vmem %s2070_s4, %s1477_s18 }
   0xf   : > { %v263_v2 = vsel %vm258_vm1, %v1662_v1, 0  ;;  %v1664_v3 = vld [vmem:[%s218_s24] sm:$0x1f]   ;;  %388 = vrot.lane.b32.xlu1 %v1662_v1, %s1740_s25  ;;  %v339_v20 = vsel %vm337_vm4, %v1835_v19, 0  ;;  %vm1345_vm9 = vcmask 785408   ;;  %vm1348_vm10 = vcmask 916480  }
  0x10   : > { %1515 = vmatpush3.bf16.xpose.msra.mxu0 %v263_v2  ;;  %v1453_v5 = vld [vmem:[%s226_s8] ss:$0 sm:$0xff]  ;;  %1521 = vmatpush3.bf16.msra.mxu1 %v339_v20  ;;  %vm1360_vm11 = vcmask 1040384   ;;  %vm1361_vm12 = vsmask.f32 256 }
  0x11   : > { %1532 = vmatprep.subr.bf16.mxu0 %v1738_v0  ;;  %v1823_v6 = vadd.f32 %v1453_v5, %v237_v4  ;;  %v1829_v12 = vadd.f32 %v1453_v5, %v238_v8  ;;  %1526 = vmatprep.subr.bf16.mxu1 %v1738_v0  ;;  %vm1362_vm13 = vmand %vm1360_vm11, %vm1361_vm12 }
  0x13   : > { %386 = vrot.lane.b32.xlu1 %v1664_v3, %s1740_s25 }
  0x17   : > { %1517 = vmatmul.mubr.msk.bf16.vlgmr.msra.gmra.mxu0 %vm258_vm1, %v1664_v3  ;;  %513 = vrot.lane.b32.xlu1 %v1664_v3, %s1741_s26 }
  0x18   : > { %1534 = vmatprep.mubr.msk.bf16.mxu0 %vm1739_vm0, %v1738_v0 }
  0x1b   : > { %642 = vrot.lane.b32.xlu1 %v1662_v1, %s1742_s27 }
  0x1f   : > { %640 = vrot.lane.b32.xlu1 %v1664_v3, %s1742_s27 }
  0x23   : > { %769 = vrot.lane.b32.xlu1 %v1662_v1, %s1743_s28 }
  0x27   : > { %767 = vrot.lane.b32.xlu1 %v1664_v3, %s1743_s28 }
  0x2b   : > { %896 = vrot.lane.b32.xlu1 %v1662_v1, %s1744_s29 }
  0x2f   : > { %1023 = vrot.lane.b32.xlu1 %v1662_v1, %s1745_s30 }
  0x33   : > { %1150 = vrot.lane.b32.xlu1 %v1662_v1, %s1746_s5 }
  0x37   : > { %587 = vrot.lane.b32.xlu1 %v1835_v19, %s1741_s26 }
  0x81   : > { %v389_v27 = vpop.permute.xlu1 %388 }
  0x82   : > { %v394_v32 = vsel %vm258_vm1, %v389_v27, 0 }
  0x85   : > { %v387_v28 = vpop.permute.xlu1 %386 }
  0x89   : > { %v514_v31 = vpop.permute.xlu1 %513 }
  0x8d   : > { %v643_v35 = vpop.permute.xlu1 %642 }
  0x8e   : > { %v648_v38 = vsel %vm258_vm1, %v643_v35, 0 }
  0x91   : > { %v641_v37 = vpop.permute.xlu1 %640 }
  0x95   : > { %v770_v39 = vpop.permute.xlu1 %769 }
  0x96   : > { %v775_v41 = vsel %vm258_vm1, %v770_v39, 0 }
  0x99   : > { %v768_v40 = vpop.permute.xlu1 %767 }
  0x9d   : > { %v897_v42 = vpop.permute.xlu1 %896 }
  0x9e   : > { %v902_v43 = vsel %vm258_vm1, %v897_v42, 0 }
  0xa1   : > { %v1024_v44 = vpop.permute.xlu1 %1023 }
  0xa2   : > { %v1029_v46 = vsel %vm258_vm1, %v1024_v44, 0 }
  0xa5   : > { %v1151_v47 = vpop.permute.xlu1 %1150 }
  0xa6   : > { %v1156_v49 = vsel %vm258_vm1, %v1151_v47, 0 }
  0xd7   : > { %v299_v7 = vpop.f32.mrf.mxu0 }
  0xd8   : > { %v306_v9 = vmul.f32 0.25, %v299_v7 }
  0xd9   : > { %v1518_v10 = vpop.f32.mrf.mxu0 }
  0xda   : > { %v308_v11 = vadd.f32 %v306_v9, %v1823_v6 }
  0xdb   : > { %v302_v13 = vpop.f32.mrf.mxu0 }
  0xdc   : > { %v307_v14 = vmul.f32 0.25, %v302_v13  ;;  %v311_v15 = vsel %vm310_vm2, %v308_v11, -inf }
  0xdd   : > { %312 = vmax.xlane.f32.xlu0 %v311_v15  ;;  %v1519_v16 = vpop.f32.mrf.mxu0 }
  0xde   : > { %v309_v17 = vadd.f32 %v307_v14, %v1829_v12 }
  0xe0   : > { %v315_v18 = vsel %vm314_vm3, %v309_v17, -inf }
  0xe1   : > { %316 = vmax.xlane.f32.xlu0 %v315_v18 }
  0xf7   : > { %515 = vrot.lane.b32.xlu0 %v1662_v1, %s1741_s26 }
  0xfb   : > { %894 = vrot.lane.b32.xlu0 %v1664_v3, %s1744_s29 }
  0xff   : > { %1021 = vrot.lane.b32.xlu0 %v1664_v3, %s1745_s30 }
 0x103   : > { %1148 = vrot.lane.b32.xlu0 %v1664_v3, %s1746_s5 }
 0x107   : > { %460 = vrot.lane.b32.xlu0 %v1835_v19, %s1740_s25 }
 0x166   : > { %v313_v21 = vpop.xlane.xlu0 %312 }
 0x167   : > { %v318_v22 = vsub.f32 %v308_v11, %v313_v21 }
 0x169   : > { %v320_v23 = vmul.f32 1.442695, %v318_v22 }
 0x16a   : > { %v317_v24 = vpop.xlane.xlu0 %316 }
 0x16b   : > { %v319_v25 = vsub.f32 %v309_v17, %v317_v24  ;;  %1666 = vpow2.f32 %v320_v23 }
 0x16d   : > { %v322_v26 = vmul.f32 1.442695, %v319_v25 }
 0x16e   : > { %v516_v34 = vpop.permute.xlu0 %515 }
 0x16f   : > { %1668 = vpow2.f32 %v322_v26  ;;  %v521_v36 = vsel %vm258_vm1, %v516_v34, 0 }
 0x172   : > { %v895_v45 = vpop.permute.xlu0 %894 }
 0x176   : > { %v1022_v48 = vpop.permute.xlu0 %1021 }
 0x178   : > { %v1848_v29 = vpop.eup %1666 }
 0x17a   : > { %v1149_v50 = vpop.permute.xlu0 %1148 }
 0x17c   : > { %v1850_v30 = vpop.eup %1668 }
 0x17d   : > { %v330_v33 = vpack.c.bf16 %v1850_v30, %v1848_v29 }
 0x17e   : > { %v461_v51 = vpop.permute.xlu0 %460 }
 0x17f   : > { %1523 = vmatmul.mubr.msk.bf16.vlgmr.msra.gmra.mxu1 %vm310_vm2, %v330_v33  ;;  %v466_v52 = vsel %vm337_vm4, %v461_v51, 0 }
 0x180   : > { %1527 = vmatpush3.bf16.xpose.msra.mxu1 %v394_v32  ;;  %1528 = vmatprep.mubr.msk.bf16.mxu1 %vm1739_vm0, %v1738_v0 }
 0x181   : > { %1538 = vmatprep.subr.bf16.mxu1 %v1738_v0  ;;  %1533 = vmatpush3.bf16.msra.mxu0 %v466_v52 }
 0x182   : > { %1544 = vmatprep.subr.bf16.mxu0 %v1738_v0 }
 0x187   : > { %1529 = vmatmul.mubr.msk.bf16.vlgmr.msra.gmra.mxu1 %vm258_vm1, %v387_v28 }
 0x188   : > { %1539 = vmatpush3.bf16.xpose.msra.mxu1 %v521_v36  ;;  %1540 = vmatprep.mubr.msk.bf16.mxu1 %vm1739_vm0, %v1738_v0 }
 0x189   : > { %1550 = vmatprep.subr.bf16.mxu1 %v1738_v0 }
 0x18f   : > { %1541 = vmatmul.mubr.msk.bf16.vlgmr.msra.gmra.mxu1 %vm258_vm1, %v514_v31 }
 0x190   : > { %1551 = vmatpush3.bf16.xpose.msra.mxu1 %v648_v38  ;;  %1552 = vmatprep.mubr.msk.bf16.mxu1 %vm1739_vm0, %v1738_v0 }
 0x191   : > { %1562 = vmatprep.subr.bf16.mxu1 %v1738_v0 }
 0x197   : > { %1553 = vmatmul.mubr.msk.bf16.vlgmr.msra.gmra.mxu1 %vm258_vm1, %v641_v37 }
 0x198   : > { %1563 = vmatpush3.bf16.xpose.msra.mxu1 %v775_v41  ;;  %1564 = vmatprep.mubr.msk.bf16.mxu1 %vm1739_vm0, %v1738_v0 }
 0x199   : > { %1574 = vmatprep.subr.bf16.mxu1 %v1738_v0 }
 0x19f   : > { %1565 = vmatmul.mubr.msk.bf16.vlgmr.msra.gmra.mxu1 %vm258_vm1, %v768_v40 }
 0x1a0   : > { %1575 = vmatpush3.bf16.xpose.msra.mxu1 %v902_v43  ;;  %1576 = vmatprep.mubr.msk.bf16.mxu1 %vm1739_vm0, %v1738_v0 }
 0x1a1   : > { %1586 = vmatprep.subr.bf16.mxu1 %v1738_v0 }
 0x1a7   : > { %1577 = vmatmul.mubr.msk.bf16.vlgmr.msra.gmra.mxu1 %vm258_vm1, %v895_v45 }
 0x1a8   : > { %1587 = vmatpush3.bf16.xpose.msra.mxu1 %v1029_v46  ;;  %1588 = vmatprep.mubr.msk.bf16.mxu1 %vm1739_vm0, %v1738_v0 }
 0x1a9   : > { %1598 = vmatprep.subr.bf16.mxu1 %v1738_v0 }
 0x1af   : > { %1589 = vmatmul.mubr.msk.bf16.vlgmr.msra.gmra.mxu1 %vm258_vm1, %v1022_v48 }
 0x1b0   : > { %1599 = vmatpush3.bf16.xpose.msra.mxu1 %v1156_v49  ;;  %1600 = vmatprep.mubr.msk.bf16.mxu1 %vm1739_vm0, %v1738_v0 }
 0x1b7   : > { %1601 = vmatmul.mubr.msk.bf16.vlgmr.msra.gmra.mxu1 %vm258_vm1, %v1149_v50 }
 0x23f   : > { %v1891_v53 = vpop.f32.mrf.mxu1 }
 0x241   : > { %v1524_v54 = vpop.f32.mrf.mxu1 }
 0x243   : > { %v1893_v55 = vpop.f32.mrf.mxu1 }
 0x245   : > { %v1525_v56 = vpop.f32.mrf.mxu1 }
 0x247   : > { %v430_v57 = vpop.f32.mrf.mxu1 }
 0x248   : > { %v437_v58 = vmul.f32 0.25, %v430_v57 }
 0x249   : > { %v1530_v59 = vpop.f32.mrf.mxu1 }
 0x24a   : > { %v1896_v60 = vadd.f32 %v437_v58, %v1823_v6 }
 0x24b   : > { %v433_v61 = vpop.f32.mrf.mxu1 }
 0x24c   : > { %v438_v62 = vmul.f32 0.25, %v433_v61  ;;  %v441_v63 = vsel %vm310_vm2, %v1896_v60, -inf }
 0x24d   : > { %442 = vmax.xlane.f32.xlu1 %v441_v63  ;;  %v1531_v1 = vpop.f32.mrf.mxu1 }
 0x24e   : > { %v1901_v2 = vadd.f32 %v438_v62, %v1829_v12 }
 0x24f   : > { %v557_v3 = vpop.f32.mrf.mxu1 }
 0x250   : > { %v564_v4 = vmul.f32 0.25, %v557_v3  ;;  %v444_v5 = vsel %vm314_vm3, %v1901_v2, -inf }
 0x251   : > { %445 = vmax.xlane.f32.xlu0 %v444_v5  ;;  %v1542_v7 = vpop.f32.mrf.mxu1 }
 0x252   : > { %v1906_v8 = vadd.f32 %v564_v4, %v1823_v6 }
 0x253   : > { %v560_v9 = vpop.f32.mrf.mxu1 }
 0x254   : > { %v565_v10 = vmul.f32 0.25, %v560_v9  ;;  %v568_v11 = vsel %vm310_vm2, %v1906_v8, -inf }
 0x255   : > { %569 = vmax.xlane.f32.xlu0 %v568_v11  ;;  %v1543_v13 = vpop.f32.mrf.mxu1 }
 0x256   : > { %v1911_v14 = vadd.f32 %v565_v10, %v1829_v12 }
 0x257   : > { %v684_v15 = vpop.f32.mrf.mxu1 }
 0x258   : > { %v691_v16 = vmul.f32 0.25, %v684_v15  ;;  %v571_v17 = vsel %vm314_vm3, %v1911_v14, -inf }
 0x259   : > { %572 = vmax.xlane.f32.xlu1 %v571_v17  ;;  %v1554_v18 = vpop.f32.mrf.mxu1 }
 0x25a   : > { %v1916_v20 = vadd.f32 %v691_v16, %v1823_v6 }
 0x25b   : > { %v687_v21 = vpop.f32.mrf.mxu1 }
 0x25c   : > { %v692_v22 = vmul.f32 0.25, %v687_v21  ;;  %v695_v23 = vsel %vm310_vm2, %v1916_v20, -inf }
 0x25d   : > { %696 = vmax.xlane.f32.xlu0 %v695_v23  ;;  %v1555_v24 = vpop.f32.mrf.mxu1 }
 0x25e   : > { %v1921_v25 = vadd.f32 %v692_v22, %v1829_v12 }
 0x25f   : > { %v811_v26 = vpop.f32.mrf.mxu1 }
 0x260   : > { %v818_v27 = vmul.f32 0.25, %v811_v26  ;;  %v698_v28 = vsel %vm314_vm3, %v1921_v25, -inf }
 0x261   : > { %699 = vmax.xlane.f32.xlu1 %v698_v28  ;;  %v1566_v31 = vpop.f32.mrf.mxu1 }
 0x262   : > { %v1926_v32 = vadd.f32 %v818_v27, %v1823_v6 }
 0x263   : > { %v814_v33 = vpop.f32.mrf.mxu1 }
 0x264   : > { %v819_v34 = vmul.f32 0.25, %v814_v33  ;;  %v822_v35 = vsel %vm310_vm2, %v1926_v32, -inf }
 0x265   : > { %823 = vmax.xlane.f32.xlu0 %v822_v35  ;;  %v1567_v36 = vpop.f32.mrf.mxu1 }
 0x266   : > { %v1931_v37 = vadd.f32 %v819_v34, %v1829_v12 }
 0x267   : > { %v938_v38 = vpop.f32.mrf.mxu1 }
 0x268   : > { %v945_v39 = vmul.f32 0.25, %v938_v38  ;;  %v825_v40 = vsel %vm314_vm3, %v1931_v37, -inf }
 0x269   : > { %826 = vmax.xlane.f32.xlu1 %v825_v40  ;;  %v1578_v41 = vpop.f32.mrf.mxu1 }
 0x26a   : > { %v1936_v42 = vadd.f32 %v945_v39, %v1823_v6 }
 0x26b   : > { %v941_v43 = vpop.f32.mrf.mxu1 }
 0x26c   : > { %v946_v44 = vmul.f32 0.25, %v941_v43  ;;  %v949_v45 = vsel %vm310_vm2, %v1936_v42, -inf }
 0x26d   : > { %950 = vmax.xlane.f32.xlu1 %v949_v45  ;;  %v1579_v46 = vpop.f32.mrf.mxu1 }
 0x26e   : > { %v1941_v47 = vadd.f32 %v946_v44, %v1829_v12 }
 0x26f   : > { %v1065_v48 = vpop.f32.mrf.mxu1 }
 0x270   : > { %v952_v49 = vsel %vm314_vm3, %v1941_v47, -inf  ;;  %v1072_v9 = vmul.f32 0.25, %v1065_v48 }
 0x271   : > { %953 = vmax.xlane.f32.xlu1 %v952_v49  ;;  %v1590_v50 = vpop.f32.mrf.mxu1 }
 0x272   : > { %v1965_v10 = vadd.f32 %v1072_v9, %v1823_v6 }
 0x273   : > { %v1068_v51 = vpop.f32.mrf.mxu1 }
 0x274   : > { %v1073_v52 = vmul.f32 0.25, %v1068_v51  ;;  %v1076_v11 = vsel %vm310_vm2, %v1965_v10, -inf }
 0x275   : > { %v1591_v54 = vpop.f32.mrf.mxu1 }
 0x276   : > { %v1946_v56 = vadd.f32 %v1073_v52, %v1829_v12 }
 0x277   : > { %v1192_v57 = vpop.f32.mrf.mxu1 }
 0x278   : > { %v1199_v58 = vmul.f32 0.25, %v1192_v57  ;;  %v1079_v59 = vsel %vm314_vm3, %v1946_v56, -inf }
 0x279   : > { %1080 = vmax.xlane.f32.xlu1 %v1079_v59  ;;  %v1602_v61 = vpop.f32.mrf.mxu1 }
 0x27a   : > { %v1951_v62 = vadd.f32 %v1199_v58, %v1823_v6 }
 0x27b   : > { %714 = vrot.lane.b32.xlu0 %v1835_v19, %s1742_s27  ;;  %v1195_v63 = vpop.f32.mrf.mxu1 }
 0x27c   : > { %v1200_v1 = vmul.f32 0.25, %v1195_v63  ;;  %v1203_v3 = vsel %vm310_vm2, %v1951_v62, -inf }
 0x27d   : > { %1204 = vmax.xlane.f32.xlu1 %v1203_v3  ;;  %v1603_v4 = vpop.f32.mrf.mxu1 }
 0x27e   : > { %v1958_v5 = vadd.f32 %v1200_v1, %v1829_v12  ;;  %v588_v12 = vpop.permute.xlu1 %587 }
 0x27f   : > { %v593_v39 = vsel %vm337_vm4, %v588_v12, 0 }
 0x280   : > { %v1206_v7 = vsel %vm314_vm3, %v1958_v5, -inf }
 0x281   : > { %1207 = vmax.xlane.f32.xlu1 %v1206_v7 }
 0x292   : > { %841 = vrot.lane.b32.xlu1 %v1835_v19, %s1743_s28 }
 0x29a   : > { %1077 = vmax.xlane.f32.xlu0 %v1076_v11 }
 0x2b0   : > { %968 = vrot.lane.b32.xlu0 %v1835_v19, %s1744_s29 }
 0x2b4   : > { %1095 = vrot.lane.b32.xlu0 %v1835_v19, %s1745_s30 }
 0x2b8   : > { %1222 = vrot.lane.b32.xlu0 %v1835_v19, %s1746_s5 }
 0x2d6   : > { %v443_v13 = vpop.xlane.xlu1 %442 }
 0x2d7   : > { %v447_v15 = vsub.f32 %v1896_v60, %v443_v13 }
 0x2d9   : > { %v449_v16 = vmul.f32 1.442695, %v447_v15 }
 0x2da   : > { %v446_v6 = vpop.xlane.xlu0 %445 }
 0x2db   : > { %1670 = vpow2.f32 %v449_v16  ;;  %v448_v17 = vsub.f32 %v1901_v2, %v446_v6 }
 0x2dd   : > { %v451_v18 = vmul.f32 1.442695, %v448_v17 }
 0x2de   : > { %v570_v21 = vpop.xlane.xlu0 %569 }
 0x2df   : > { %1672 = vpow2.f32 %v451_v18  ;;  %v574_v22 = vsub.f32 %v1906_v8, %v570_v21 }
 0x2e1   : > { %v576_v23 = vmul.f32 1.442695, %v574_v22 }
 0x2e2   : > { %v573_v24 = vpop.xlane.xlu1 %572 }
 0x2e3   : > { %1674 = vpow2.f32 %v576_v23  ;;  %v575_v26 = vsub.f32 %v1911_v14, %v573_v24 }
 0x2e5   : > { %v578_v19 = vmul.f32 1.442695, %v575_v26 }
 0x2e6   : > { %v697_v27 = vpop.xlane.xlu0 %696 }
 0x2e7   : > { %1676 = vpow2.f32 %v578_v19  ;;  %v701_v60 = vsub.f32 %v1916_v20, %v697_v27 }
 0x2e8   : > { %v1671_v28 = vpop.eup %1670 }
 0x2e9   : > { %v703_v31 = vmul.f32 1.442695, %v701_v60  ;;  %v453_v33 = vsel %vm310_vm2, %v1671_v28, 0.0  ;;  %v327_v60 = vsel %vm314_vm3, %v1850_v30, 0.0 }
 0x2ea   : > { %v700_v2 = vpop.xlane.xlu1 %699  ;;  %454 = vadd.xlane.f32.xlu1 %v453_v33 }
 0x2eb   : > { %1678 = vpow2.f32 %v703_v31  ;;  %v702_v34 = vsub.f32 %v1921_v25, %v700_v2 }
 0x2ec   : > { %v1673_v8 = vpop.eup %1672 }
 0x2ed   : > { %v705_v35 = vmul.f32 1.442695, %v702_v34  ;;  %v456_v36 = vsel %vm314_vm3, %v1673_v8, 0.0  ;;  %v459_v38 = vpack.c.bf16 %v1673_v8, %v1671_v28 }
 0x2ee   : > { %457 = vadd.xlane.f32.xlu0 %v456_v36  ;;  %v824_v14 = vpop.xlane.xlu0 %823 }
 0x2ef   : > { %1680 = vpow2.f32 %v705_v35  ;;  %v828_v20 = vsub.f32 %v1926_v32, %v824_v14  ;;  %1535 = vmatmul.mubr.msk.bf16.vlgmr.msra.gmra.mxu0 %vm310_vm2, %v459_v38 }
 0x2f0   : > { %v1675_v40 = vpop.eup %1674  ;;  %1545 = vmatpush3.bf16.msra.mxu0 %v593_v39  ;;  %1546 = vmatprep.mubr.msk.bf16.mxu0 %vm1739_vm0, %v1738_v0 }
 0x2f1   : > { %v830_v25 = vmul.f32 1.442695, %v828_v20  ;;  %v580_v41 = vsel %vm310_vm2, %v1675_v40, 0.0  ;;  %1556 = vmatprep.subr.bf16.mxu0 %v1738_v0 }
 0x2f2   : > { %v827_v43 = vpop.xlane.xlu1 %826  ;;  %581 = vadd.xlane.f32.xlu0 %v580_v41  ;;  %v715_v46 = vpop.permute.xlu0 %714  ;;  %v324_v41 = vsel %vm310_vm2, %v1848_v29, 0.0 }
 0x2f3   : > { %1682 = vpow2.f32 %v830_v25  ;;  %v829_v44 = vsub.f32 %v1931_v37, %v827_v43  ;;  %v720_v51 = vsel %vm337_vm4, %v715_v46, 0 }
 0x2f4   : > { %v1677_v45 = vpop.eup %1676 }
 0x2f5   : > { %v832_v32 = vmul.f32 1.442695, %v829_v44  ;;  %v583_v48 = vsel %vm314_vm3, %v1677_v45, 0.0  ;;  %v586_v49 = vpack.c.bf16 %v1677_v45, %v1675_v40 }
 0x2f6   : > { %v951_v50 = vpop.xlane.xlu1 %950  ;;  %584 = vadd.xlane.f32.xlu0 %v583_v48 }
 0x2f7   : > { %1684 = vpow2.f32 %v832_v32  ;;  %v955_v52 = vsub.f32 %v1936_v42, %v951_v50  ;;  %1547 = vmatmul.mubr.msk.bf16.vlgmr.msra.gmra.mxu0 %vm310_vm2, %v586_v49 }
 0x2f8   : > { %v1679_v54 = vpop.eup %1678  ;;  %1557 = vmatpush3.bf16.msra.mxu0 %v720_v51  ;;  %1558 = vmatprep.mubr.msk.bf16.mxu0 %vm1739_vm0, %v1738_v0 }
 0x2f9   : > { %v957_v37 = vmul.f32 1.442695, %v955_v52  ;;  %v707_v57 = vsel %vm310_vm2, %v1679_v54, 0.0  ;;  %1568 = vmatprep.subr.bf16.mxu0 %v1738_v0 }
 0x2fa   : > { %v954_v58 = vpop.xlane.xlu1 %953  ;;  %708 = vadd.xlane.f32.xlu0 %v707_v57 }
 0x2fb   : > { %1686 = vpow2.f32 %v957_v37  ;;  %v956_v59 = vsub.f32 %v1941_v47, %v954_v58 }
 0x2fc   : > { %v1681_v61 = vpop.eup %1680 }
 0x2fd   : > { %v959_v63 = vmul.f32 1.442695, %v956_v59  ;;  %v710_v42 = vsel %vm314_vm3, %v1681_v61, 0.0  ;;  %v713_v1 = vpack.c.bf16 %v1681_v61, %v1679_v54 }
 0x2fe   : > { %711 = vadd.xlane.f32.xlu1 %v710_v42 }
 0x2ff   : > { %1688 = vpow2.f32 %v959_v63  ;;  %1559 = vmatmul.mubr.msk.bf16.vlgmr.msra.gmra.mxu0 %vm310_vm2, %v713_v1 }
 0x300   : > { %v1683_v3 = vpop.eup %1682  ;;  %1570 = vmatprep.mubr.msk.bf16.mxu0 %vm1739_vm0, %v1738_v0 }
 0x301   : > { %v834_v4 = vsel %vm310_vm2, %v1683_v3, 0.0 }
 0x302   : > { %v1081_v7 = vpop.xlane.xlu1 %1080  ;;  %835 = vadd.xlane.f32.xlu0 %v834_v4 }
 0x303   : > { %v1083_v9 = vsub.f32 %v1946_v56, %v1081_v7 }
 0x304   : > { %v1685_v47 = vpop.eup %1684 }
 0x305   : > { %v1086_v11 = vmul.f32 1.442695, %v1083_v9  ;;  %v837_v12 = vsel %vm314_vm3, %v1685_v47, 0.0  ;;  %v840_v24 = vpack.c.bf16 %v1685_v47, %v1683_v3 }
 0x306   : > { %v1205_v13 = vpop.xlane.xlu1 %1204  ;;  %838 = vadd.xlane.f32.xlu1 %v837_v12 }
 0x307   : > { %1690 = vpow2.f32 %v1086_v11  ;;  %v1209_v28 = vsub.f32 %v1951_v62, %v1205_v13 }
 0x308   : > { %v1687_v15 = vpop.eup %1686 }
 0x309   : > { %v961_v16 = vsel %vm310_vm2, %v1687_v15, 0.0  ;;  %v1211_v2 = vmul.f32 1.442695, %v1209_v28 }
 0x30a   : > { %v1208_v6 = vpop.xlane.xlu1 %1207  ;;  %962 = vadd.xlane.f32.xlu0 %v961_v16 }
 0x30b   : > { %v1210_v17 = vsub.f32 %v1958_v5, %v1208_v6 }
 0x30c   : > { %v1689_v18 = vpop.eup %1688 }
 0x30d   : > { %v1213_v21 = vmul.f32 1.442695, %v1210_v17  ;;  %v964_v22 = vsel %vm314_vm3, %v1689_v18, 0.0  ;;  %v967_v36 = vpack.c.bf16 %v1689_v18, %v1687_v15 }
 0x30e   : > { %965 = vadd.xlane.f32.xlu1 %v964_v22  ;;  %v842_v56 = vpop.permute.xlu1 %841 }
 0x30f   : > { %1692 = vpow2.f32 %v1213_v21  ;;  %v847_v23 = vsel %vm337_vm4, %v842_v56, 0 }
 0x310   : > { %1569 = vmatpush3.bf16.msra.mxu0 %v847_v23 }
 0x311   : > { %1580 = vmatprep.subr.bf16.mxu0 %v1738_v0 }
 0x313   : > { %1571 = vmatmul.mubr.msk.bf16.vlgmr.msra.gmra.mxu0 %vm310_vm2, %v840_v24 }
 0x314   : > { %v1691_v26 = vpop.eup %1690  ;;  %1582 = vmatprep.mubr.msk.bf16.mxu0 %vm1739_vm0, %v1738_v0 }
 0x315   : > { %v1091_v5 = vsel %vm314_vm3, %v1691_v26, 0.0 }
 0x316   : > { %1092 = vadd.xlane.f32.xlu1 %v1091_v5 }
 0x31c   : > { %v1693_v19 = vpop.eup %1692 }
 0x31d   : > { %v1218_v27 = vsel %vm314_vm3, %v1693_v19, 0.0 }
 0x31e   : > { %1219 = vadd.xlane.f32.xlu1 %v1218_v27 }
 0x322   : > { %328 = vadd.xlane.f32.xlu1 %v327_v60 }
 0x323   : > { %v1078_v31 = vpop.xlane.xlu0 %1077 }
 0x324   : > { %v1082_v33 = vsub.f32 %v1965_v10, %v1078_v31 }
 0x326   : > { %v1084_v34 = vmul.f32 1.442695, %v1082_v33 }
 0x327   : > { %v969_v8 = vpop.permute.xlu0 %968 }
 0x328   : > { %1694 = vpow2.f32 %v1084_v34  ;;  %v974_v35 = vsel %vm337_vm4, %v969_v8, 0 }
 0x329   : > { %1581 = vmatpush3.bf16.msra.mxu0 %v974_v35  ;;  %1696 = vpow2.f32 %v1211_v2 }
 0x32a   : > { %1592 = vmatprep.subr.bf16.mxu0 %v1738_v0 }
 0x32b   : > { %v1096_v38 = vpop.permute.xlu0 %1095 }
 0x32c   : > { %1583 = vmatmul.mubr.msk.bf16.vlgmr.msra.gmra.mxu0 %vm310_vm2, %v967_v36  ;;  %v1101_v30 = vsel %vm337_vm4, %v1096_v38, 0 }
 0x32d   : > { %1593 = vmatpush3.bf16.msra.mxu0 %v1101_v30  ;;  %1594 = vmatprep.mubr.msk.bf16.mxu0 %vm1739_vm0, %v1738_v0 }
 0x32e   : > { %1604 = vmatprep.subr.bf16.mxu0 %v1738_v0 }
 0x32f   : > { %v1223_v62 = vpop.permute.xlu0 %1222 }
 0x330   : > { %v1228_v39 = vsel %vm337_vm4, %v1223_v62, 0 }
 0x335   : > { %v1695_v10 = vpop.eup %1694 }
 0x336   : > { %v1088_v14 = vsel %vm310_vm2, %v1695_v10, 0.0  ;;  %v1094_v20 = vpack.c.bf16 %v1691_v26, %v1695_v10  ;;  %v1697_v40 = vpop.eup %1696 }
 0x337   : > { %1089 = vadd.xlane.f32.xlu0 %v1088_v14  ;;  %v1215_v25 = vsel %vm310_vm2, %v1697_v40, 0.0  ;;  %v1221_v43 = vpack.c.bf16 %v1693_v19, %v1697_v40 }
 0x338   : > { %1595 = vmatmul.mubr.msk.bf16.vlgmr.msra.gmra.mxu0 %vm310_vm2, %v1094_v20 }
 0x339   : > { %1605 = vmatpush3.bf16.msra.mxu0 %v1228_v39  ;;  %1606 = vmatprep.mubr.msk.bf16.mxu0 %vm1739_vm0, %v1738_v0 }
 0x33b   : > { %1216 = vadd.xlane.f32.xlu0 %v1215_v25 }
 0x33f   : > { %325 = vadd.xlane.f32.xlu0 %v324_v41 }
 0x340   : > { %1607 = vmatmul.mubr.msk.bf16.vlgmr.msra.gmra.mxu0 %vm310_vm2, %v1221_v43 }
 0x373   : > { %v455_v45 = vpop.xlane.xlu1 %454 }
 0x374   : > { %1698 = vrcp.f32 %v455_v45 }
 0x377   : > { %v458_v44 = vpop.xlane.xlu0 %457 }
 0x378   : > { %1700 = vrcp.f32 %v458_v44 }
 0x37b   : > { %v582_v46 = vpop.xlane.xlu0 %581 }
 0x37c   : > { %1702 = vrcp.f32 %v582_v46 }
 0x37f   : > { %v585_v32 = vpop.xlane.xlu0 %584 }
 0x380   : > { %1704 = vrcp.f32 %v585_v32 }
 0x381   : > { %v1699_v49 = vpop.eup %1698 }
 0x383   : > { %v709_v50 = vpop.xlane.xlu0 %708 }
 0x384   : > { %1706 = vrcp.f32 %v709_v50 }
 0x385   : > { %v1701_v51 = vpop.eup %1700 }
 0x387   : > { %v712_v52 = vpop.xlane.xlu1 %711 }
 0x388   : > { %1708 = vrcp.f32 %v712_v52 }
 0x389   : > { %v1703_v63 = vpop.eup %1702 }
 0x38b   : > { %v836_v18 = vpop.xlane.xlu0 %835 }
 0x38c   : > { %1710 = vrcp.f32 %v836_v18 }
 0x38d   : > { %v1705_v42 = vpop.eup %1704 }
 0x38f   : > { %v839_v22 = vpop.xlane.xlu1 %838 }
 0x390   : > { %1712 = vrcp.f32 %v839_v22 }
 0x391   : > { %v1707_v12 = vpop.eup %1706 }
 0x393   : > { %v963_v31 = vpop.xlane.xlu0 %962 }
 0x394   : > { %1714 = vrcp.f32 %v963_v31 }
 0x395   : > { %v1709_v13 = vpop.eup %1708 }
 0x397   : > { %v966_v33 = vpop.xlane.xlu1 %965 }
 0x398   : > { %1716 = vrcp.f32 %v966_v33 }
 0x399   : > { %v1711_v24 = vpop.eup %1710 }
 0x39d   : > { %v1713_v26 = vpop.eup %1712 }
 0x39f   : > { %v1093_v2 = vpop.xlane.xlu1 %1092 }
 0x3a0   : > { %1718 = vrcp.f32 %v1093_v2 }
 0x3a1   : > { %v1715_v36 = vpop.eup %1714 }
 0x3a5   : > { %v1717_v38 = vpop.eup %1716 }
 0x3a7   : > { %v1220_v39 = vpop.xlane.xlu1 %1219 }
 0x3ad   : > { %v1719_v43 = vpop.eup %1718 }
 0x3af   : > { %v502_v48 = vpop.f32.mrf.mxu0 }
 0x3b0   : > { %v511_v29 = vmul.f32 %v1699_v49, %v502_v48 }
 0x3b1   : > { %v1536_v0 = vpop.f32.mrf.mxu0 }
 0x3b3   : > { %v505_v54 = vpop.f32.mrf.mxu0 }
 0x3b4   : > { %v512_v37 = vmul.f32 %v1701_v51, %v505_v54 }
 0x3b5   : > { %v1537_v57 = vpop.f32.mrf.mxu0 }
 0x3b6   : > { %v1627_v58 = vpack.i.bf16 %v512_v37, %v511_v29 }
 0x3b7   : > { %v629_v59 = vpop.f32.mrf.mxu0 }
 0x3b8   : > { %1628 = vrot.lane.b32.xlu1 %v1627_v58, %s1746_s5  ;;  %v638_v3 = vmul.f32 %v1703_v63, %v629_v59  ;;  %v329_v59 = vpop.xlane.xlu1 %328 }
 0x3b9   : > { %v1548_v61 = vpop.f32.mrf.mxu0 }
 0x3bb   : > { %v632_v1 = vpop.f32.mrf.mxu0 }
 0x3bc   : > { %v639_v4 = vmul.f32 %v1705_v42, %v632_v1 }
 0x3bd   : > { %v1549_v7 = vpop.f32.mrf.mxu0 }
 0x3be   : > { %v1632_v9 = vpack.i.bf16 %v639_v4, %v638_v3 }
 0x3bf   : > { %v756_v47 = vpop.f32.mrf.mxu0 }
 0x3c0   : > { %1633 = vrot.lane.b32.xlu0 %v1632_v9, %s1745_s30  ;;  %v765_v16 = vmul.f32 %v1707_v12, %v756_v47  ;;  %v1090_v34 = vpop.xlane.xlu0 %1089 }
 0x3c1   : > { %v1560_v11 = vpop.f32.mrf.mxu0  ;;  %1720 = vrcp.f32 %v1090_v34 }
 0x3c2   : > { %1722 = vrcp.f32 %v1220_v39 }
 0x3c3   : > { %v759_v15 = vpop.f32.mrf.mxu0 }
 0x3c4   : > { %v766_v6 = vmul.f32 %v1709_v13, %v759_v15  ;;  %v1217_v40 = vpop.xlane.xlu0 %1216 }
 0x3c5   : > { %v1561_v17 = vpop.f32.mrf.mxu0  ;;  %1724 = vrcp.f32 %v1217_v40 }
 0x3c6   : > { %v1637_v21 = vpack.i.bf16 %v765_v16, %v766_v6  ;;  %1726 = vrcp.f32 %v329_v59 }
 0x3c8   : > { %1638 = vrot.lane.b32.xlu1 %v1637_v21, %s1744_s29  ;;  %v326_v61 = vpop.xlane.xlu0 %325 }
 0x3c9   : > { %1728 = vrcp.f32 %v326_v61 }
 0x3ce   : > { %v1721_v44 = vpop.eup %1720 }
 0x3cf   : > { %v1723_v51 = vpop.eup %1722 }
 0x3d2   : > { %v1725_v52 = vpop.eup %1724 }
 0x3d3   : > { %v883_v56 = vpop.f32.mrf.mxu0  ;;  %v1727_v3 = vpop.eup %1726 }
 0x3d4   : > { %v892_v19 = vmul.f32 %v1711_v24, %v883_v56  ;;  %v385_v16 = vmul.f32 %v1727_v3, %v1893_v55 }
 0x3d5   : > { %v1572_v23 = vpop.f32.mrf.mxu0 }
 0x3d6   : > { %v1729_v7 = vpop.eup %1728 }
 0x3d7   : > { %v886_v5 = vpop.f32.mrf.mxu0  ;;  %v384_v15 = vmul.f32 %v1729_v7, %v1891_v53 }
 0x3d8   : > { %v893_v27 = vmul.f32 %v1713_v26, %v886_v5 }
 0x3d9   : > { %v1573_v60 = vpop.f32.mrf.mxu0 }
 0x3da   : > { %v1642_v28 = vpack.i.bf16 %v892_v19, %v893_v27 }
 0x3dc   : > { %1643 = vrot.lane.b32.xlu1 %v1642_v28, %s1743_s28 }
 0x3ec   : > { %v1010_v8 = vpop.f32.mrf.mxu0 }
 0x3ed   : > { %v1019_v62 = vmul.f32 %v1715_v36, %v1010_v8 }
 0x3ee   : > { %v1584_v35 = vpop.f32.mrf.mxu0 }
 0x3f0   : > { %v1013_v30 = vpop.f32.mrf.mxu0 }
 0x3f1   : > { %v1020_v10 = vmul.f32 %v1717_v38, %v1013_v30  ;;  %v1363_v30 = vld [vmem:[%s231_s17 + $0x4] sm:$0x1] }
 0x3f2   : > { %v1585_v14 = vpop.f32.mrf.mxu0 }
 0x3f3   : > { %v1647_v20 = vpack.i.bf16 %v1019_v62, %v1020_v10 }
 0x3f5   : > { %1648 = vrot.lane.b32.xlu0 %v1647_v20, %s1742_s27 }
 0x3f8   : > { %v1137_v25 = vpop.f32.mrf.mxu0 }
 0x3f9   : > { %v1146_v46 = vmul.f32 %v1721_v44, %v1137_v25 }
 0x3fa   : > { %v1596_v41 = vpop.f32.mrf.mxu0 }
 0x3fc   : > { %v1140_v45 = vpop.f32.mrf.mxu0 }
 0x3fd   : > { %v1147_v32 = vmul.f32 %v1719_v43, %v1140_v45 }
 0x3fe   : > { %v1597_v48 = vpop.f32.mrf.mxu0 }
 0x3ff   : > { %v1652_v0 = vpack.i.bf16 %v1146_v46, %v1147_v32 }
 0x400   : > { %v1264_v49 = vpop.f32.mrf.mxu0 }
 0x401   : > { %1653 = vrot.lane.b32.xlu1 %v1652_v0, %s1741_s26  ;;  %v1273_v29 = vmul.f32 %v1725_v52, %v1264_v49 }
 0x402   : > { %v1608_v50 = vpop.f32.mrf.mxu0 }
 0x404   : > { %v1267_v54 = vpop.f32.mrf.mxu0 }
 0x405   : > { %v1274_v37 = vmul.f32 %v1723_v51, %v1267_v54 }
 0x406   : > { %v1609_v57 = vpop.f32.mrf.mxu0 }
 0x407   : > { %v1657_v58 = vpack.i.bf16 %v1273_v29, %v1274_v37 }
 0x409   : > { %1658 = vrot.lane.b32.xlu0 %v1657_v58, %s1740_s25 }
 0x42a   : > { %v1629_v63 = vpop.permute.xlu1 %1628 }
 0x42b   : > { %v1631_v9 = vunpack.i.h.bf16 %v1629_v63  ;;  %v1630_v47 = vunpack.i.l.bf16 %v1629_v63 }
 0x42d   : > { %v1332_v56 = vsel %vm258_vm1, %v385_v16, %v1631_v9  ;;  %v1331_v23 = vsel %vm258_vm1, %v384_v15, %v1630_v47 }
 0x432   : > { %v1634_v1 = vpop.permute.xlu0 %1633 }
 0x433   : > { %v1636_v11 = vunpack.i.h.bf16 %v1634_v1  ;;  %v1635_v12 = vunpack.i.l.bf16 %v1634_v1 }
 0x435   : > { %v1335_v5 = vsel %vm1333_vm5, %v1332_v56, %v1636_v11  ;;  %v1334_v53 = vsel %vm1333_vm5, %v1331_v23, %v1635_v12 }
 0x43a   : > { %v1639_v42 = vpop.permute.xlu1 %1638 }
 0x43b   : > { %v1641_v6 = vunpack.i.h.bf16 %v1639_v42  ;;  %v1640_v17 = vunpack.i.l.bf16 %v1639_v42 }
 0x43d   : > { %v1337_v27 = vsel %vm1336_vm6, %v1334_v53, %v1641_v6  ;;  %v1338_v60 = vsel %vm1336_vm6, %v1335_v5, %v1640_v17 }
 0x44e   : > { %v1644_v4 = vpop.permute.xlu1 %1643 }
 0x44f   : > { %v1646_v21 = vunpack.i.h.bf16 %v1644_v4  ;;  %v1645_v22 = vunpack.i.l.bf16 %v1644_v4 }
 0x451   : > { %v1340_v28 = vsel %vm1339_vm7, %v1337_v27, %v1646_v21  ;;  %v1341_v31 = vsel %vm1339_vm7, %v1338_v60, %v1645_v22 }
 0x467   : > { %v1649_v13 = vpop.permute.xlu0 %1648 }
 0x468   : > { %v1651_v24 = vunpack.i.h.bf16 %v1649_v13  ;;  %v1650_v26 = vunpack.i.l.bf16 %v1649_v13 }
 0x46a   : > { %v1343_v2 = vsel %vm1342_vm8, %v1340_v28, %v1651_v24  ;;  %v1344_v34 = vsel %vm1342_vm8, %v1341_v31, %v1650_v26 }
 0x473   : > { %v1654_v18 = vpop.permute.xlu1 %1653 }
 0x474   : > { %v1656_v19 = vunpack.i.h.bf16 %v1654_v18  ;;  %v1655_v55 = vunpack.i.l.bf16 %v1654_v18 }
 0x476   : > { %v1346_v36 = vsel %vm1345_vm9, %v1343_v2, %v1656_v19  ;;  %v1347_v38 = vsel %vm1345_vm9, %v1344_v34, %v1655_v55 }
 0x47b   : > { %v1659_v33 = vpop.permute.xlu0 %1658 }
 0x47c   : > { %v1661_v8 = vunpack.i.h.bf16 %v1659_v33  ;;  %v1660_v35 = vunpack.i.l.bf16 %v1659_v33 }
 0x47e   : > { %v1349_v62 = vsel %vm1348_vm10, %v1346_v36, %v1661_v8  ;;  %v1350_v10 = vsel %vm1348_vm10, %v1347_v38, %v1660_v35 }
 0x47f   : > { %v1480_v14 = vpack.c.bf16 %v1349_v62, %v1349_v62  ;;  %v1481_v39 = vpack.c.bf16 %v1350_v10, %v1350_v10 }
 0x481   : > { %1359 = vst [vmem:[%s231_s17] sm:$0xf] %v1480_v14  ;;  %v1364_v20 = vsel %vm1362_vm13, %v1481_v39, %v1363_v30 }
 0x482   : > { %1365 = vst [vmem:[%s231_s17 + $0x4] sm:$0x1] %v1364_v20 }
 0x483 PF: > { %s14_s15 = sadd.s32 1, %s1736_s15  }
 0x484   : > { %p11_p4 = scmp.ge.s32.totalorder %s14_s15, 4  }
 0x486   :  { %13 = sbr.rel (!%p11_p4) target bundleno = 1 (0x1), region = 72 }

</bundles_post_ra>
